<compile_context>
chip_gen: v7x
topology: tpu7x:2x2x1
jax: 0.10.0
libtpu: 0.0.40
codegen_flags: <defaults>
</compile_context>

<pallas_src>
import math
import jax
import jax.numpy as jnp
from jax.experimental import pallas as pl
from jax.experimental.pallas import tpu as pltpu

# ---- "opt" hyper-parameters (small, consistent with the module) ----
LATENT_DIM = 32
CHANNELS = 1
IMG_SIZE = 16
IMG_SHAPE = (CHANNELS, IMG_SIZE, IMG_SIZE)
IMG_AREA = CHANNELS * IMG_SIZE * IMG_SIZE  # 256
BATCH = 128           # multiple of 128; whole batch = one tile (exact BN stats)

BN_EPS = 0.8          # BatchNorm1d(out_feat, 0.8): 2nd positional arg is eps
LEAKY_SLOPE = 0.2

# Linear layer dimensions (fan_in, fan_out).
_DIMS = [(LATENT_DIM, 128), (128, 256), (256, 512), (512, 1024), (1024, IMG_AREA)]

# Packed 1-row parameter vector layout.  Biases of the BN'd layers (b2/b3/b4)
# are intentionally absent: they cancel in training-mode BatchNorm.  Every
# segment size is a multiple of 128 so every static lane offset is 128-aligned.
_PARAM_SEGMENTS = [
    ("b1", 128), ("b5", IMG_AREA),
    ("g2", 256), ("g3", 512), ("g4", 1024),
    ("be2", 256), ("be3", 512), ("be4", 1024),
]
_PARAM_OFFSETS = {}
_off = 0
for _name, _n in _PARAM_SEGMENTS:
    _PARAM_OFFSETS[_name] = (_off, _n)
    _off += _n
PACKED_TOTAL = _off   # 3968 = 31 * 128


def _leaky_relu(x):
    # max(x, 0.2*x) == LeakyReLU(0.2) for slope in (0, 1): vmul + vmax only.
    return jnp.maximum(x, LEAKY_SLOPE * x)


def _batchnorm_train(x, gamma, beta):
    # PyTorch training-mode BatchNorm1d: biased batch variance, eps=0.8.
    # One-pass statistics (f32); eps=0.8 dominates so E[x^2]-mu^2 is safe here.
    inv_b = 1.0 / x.shape[0]
    s1 = jnp.sum(x, axis=0, keepdims=True)
    s2 = jnp.sum(x * x, axis=0, keepdims=True)
    mu = s1 * inv_b
    var = s2 * inv_b - mu * mu
    return (x - mu) * jax.lax.rsqrt(var + BN_EPS) * gamma + beta


def generator_kernel(z_ref, w1_ref, w2_ref, p_ref, w3_hbm, w4_hbm, w5_hbm,
                     out_ref, w3_buf, w4_buf, w5_buf, sem):
    # ---- kick off all large-weight DMAs up front (overlap with layers 1-3) --
    cp3 = pltpu.make_async_copy(w3_hbm, w3_buf, sem.at[0])
    cp4 = pltpu.make_async_copy(w4_hbm, w4_buf, sem.at[1])
    cp5 = pltpu.make_async_copy(w5_hbm, w5_buf, sem.at[2])
    cp3.start()
    cp4.start()
    cp5.start()

    def seg(name):
        off, n = _PARAM_OFFSETS[name]
        return p_ref[:, off:off + n]          # static, 128-aligned lane slice

    def dense(x, w, bias=None):
        # bf16 x bf16 matmul inputs, f32 accumulation on the MXU.
        y = jnp.dot(x.astype(jnp.bfloat16), w, preferred_element_type=jnp.float32)
        return y if bias is None else y + bias

    # block 1: Linear(latent, 128) + bias + LeakyReLU (no norm)
    h = _leaky_relu(dense(z_ref[...], w1_ref[...], seg("b1")))

    # block 2: Linear(128, 256) [bias folded into BN] + BN + LeakyReLU
    h = _leaky_relu(_batchnorm_train(dense(h, w2_ref[...]), seg("g2"), seg("be2")))

    # block 3: Linear(256, 512) + BN + LeakyReLU
    cp3.wait()
    h = _leaky_relu(_batchnorm_train(dense(h, w3_buf[...]), seg("g3"), seg("be3")))

    # block 4: Linear(512, 1024) + BN + LeakyReLU
    cp4.wait()
    h = _leaky_relu(_batchnorm_train(dense(h, w4_buf[...]), seg("g4"), seg("be4")))

    # head: Linear(1024, img_area) + bias + Tanh
    cp5.wait()
    out_ref[...] = jnp.tanh(dense(h, w5_buf[...], seg("b5")))


def init_params(key):
    """Deterministic PyTorch-style (U[-1/sqrt(fan_in), 1/sqrt(fan_in)]) init.

    Weights are stored in bf16 (MXU input dtype).  The surviving 1-row params
    (b1, b5, BN gamma/beta) are packed into a single (1, PACKED_TOTAL) f32 row.
    """
    params = {}
    vecs = {}
    keys = jax.random.split(key, 2 * len(_DIMS))
    for i, (fi, fo) in enumerate(_DIMS):
        bound = 1.0 / math.sqrt(fi)
        w = jax.random.uniform(keys[2 * i], (fi, fo), jnp.float32, -bound, bound)
        params[f"w{i+1}"] = w.astype(jnp.bfloat16)
        if f"b{i+1}" in _PARAM_OFFSETS:   # only b1 and b5 survive packing
            vecs[f"b{i+1}"] = jax.random.uniform(keys[2 * i + 1], (fo,),
                                                 jnp.float32, -bound, bound)
    # BatchNorm affine params (PyTorch default: weight=1, bias=0) for layers 2..4.
    for name, fo in (("g2", 256), ("g3", 512), ("g4", 1024)):
        vecs[name] = jnp.ones((fo,), jnp.float32)
    for name, fo in (("be2", 256), ("be3", 512), ("be4", 1024)):
        vecs[name] = jnp.zeros((fo,), jnp.float32)
    params["packed"] = jnp.concatenate(
        [vecs[name] for name, _ in _PARAM_SEGMENTS]).reshape(1, PACKED_TOTAL)
    return params


def generator_forward(z, params):
    B = z.shape[0]
    # Small tensors go straight to VMEM (tiny, DMA'd before kernel start);
    # the three big weights stay in HBM and are overlapped with compute.
    args = (
        z, params["w1"], params["w2"], params["packed"],   # VMEM
        params["w3"], params["w4"], params["w5"],          # ANY (HBM)
    )
    vmem_spec = pl.BlockSpec(memory_space=pltpu.MemorySpace.VMEM)
    hbm_spec = pl.BlockSpec(memory_space=pl.ANY)

    weight_elems = sum(fi * fo for fi, fo in _DIMS)
    cost = pl.CostEstimate(
        flops=2 * B * weight_elems,
        transcendentals=B * IMG_AREA,                       # tanh head
        bytes_accessed=(weight_elems * 2                    # bf16 weights
                        + PACKED_TOTAL * 4                  # packed params
                        + B * LATENT_DIM * 4                # z in
                        + B * IMG_AREA * 4),                # image out
    )

    flat = pl.pallas_call(
        generator_kernel,
        out_shape=jax.ShapeDtypeStruct((B, IMG_AREA), jnp.float32),
        in_specs=[vmem_spec, vmem_spec, vmem_spec, vmem_spec,
                  hbm_spec, hbm_spec, hbm_spec],
        out_specs=vmem_spec,
        scratch_shapes=[
            pltpu.VMEM((256, 512), jnp.bfloat16),    # w3 landing buffer
            pltpu.VMEM((512, 1024), jnp.bfloat16),   # w4 landing buffer
            pltpu.VMEM((1024, IMG_AREA), jnp.bfloat16),  # w5 landing buffer
            pltpu.SemaphoreType.DMA((3,)),
        ],
        compiler_params=pltpu.CompilerParams(vmem_limit_bytes=32 << 20),
        cost_estimate=cost,
    )(*args)
    # glue: view(B, C, H, W)
    return flat.reshape(B, *IMG_SHAPE)


if __name__ == "__main__":
    key = jax.random.PRNGKey(0)
    pkey, zkey = jax.random.split(key)
    params = init_params(pkey)
    z = jax.random.normal(zkey, (BATCH, LATENT_DIM), jnp.float32)

    imgs = generator_forward(z, params)
    jax.block_until_ready(imgs)

    assert imgs.shape == (BATCH, CHANNELS, IMG_SIZE, IMG_SIZE)
    assert bool(jnp.all(jnp.isfinite(imgs)))
    assert bool(jnp.all(jnp.abs(imgs) <= 1.0))  # tanh output range
    print("KERNEL_OK")
</pallas_src>

<mosaic_0001>
module attributes {stable_mosaic.version = 11 : i64} {
  func.func @generator_kernel(%arg0: memref<128x32xf32, #tpu.memory_space<vmem>>, %arg1: memref<32x128xbf16, #tpu.memory_space<vmem>>, %arg2: memref<128x256xbf16, #tpu.memory_space<vmem>>, %arg3: memref<1x3968xf32, #tpu.memory_space<vmem>>, %arg4: memref<256x512xbf16, #tpu.memory_space<any>>, %arg5: memref<512x1024xbf16, #tpu.memory_space<any>>, %arg6: memref<1024x256xbf16, #tpu.memory_space<any>>, %arg7: memref<128x256xf32, #tpu.memory_space<vmem>>, %arg8: memref<256x512xbf16, #tpu.memory_space<vmem>>, %arg9: memref<512x1024xbf16, #tpu.memory_space<vmem>>, %arg10: memref<1024x256xbf16, #tpu.memory_space<vmem>>, %arg11: memref<3x!tpu.dma_semaphore, #tpu.memory_space<semaphore_mem>>) attributes {dimension_semantics = [], scalar_prefetch = 0 : i64, scratch_operands = 4 : i64, tpu.core_type = #tpu.core_type<tc>} {
    %c0_i32 = arith.constant 0 : i32
    %0 = tpu.memref_slice %arg11[%c0_i32] : memref<3x!tpu.dma_semaphore, #tpu.memory_space<semaphore_mem>> -> memref<1x!tpu.dma_semaphore, #tpu.memory_space<semaphore_mem>>
    %1 = tpu.memref_squeeze %0 : memref<1x!tpu.dma_semaphore, #tpu.memory_space<semaphore_mem>> -> memref<!tpu.dma_semaphore, #tpu.memory_space<semaphore_mem>>
    tpu.enqueue_dma source(%arg4 : memref<256x512xbf16, #tpu.memory_space<any>>) target(%arg8 : memref<256x512xbf16, #tpu.memory_space<vmem>>) target_semaphore(%1 : memref<!tpu.dma_semaphore, #tpu.memory_space<semaphore_mem>>)
    %c1_i32 = arith.constant 1 : i32
    %2 = tpu.memref_slice %arg11[%c1_i32] : memref<3x!tpu.dma_semaphore, #tpu.memory_space<semaphore_mem>> -> memref<1x!tpu.dma_semaphore, #tpu.memory_space<semaphore_mem>>
    %3 = tpu.memref_squeeze %2 : memref<1x!tpu.dma_semaphore, #tpu.memory_space<semaphore_mem>> -> memref<!tpu.dma_semaphore, #tpu.memory_space<semaphore_mem>>
    tpu.enqueue_dma source(%arg5 : memref<512x1024xbf16, #tpu.memory_space<any>>) target(%arg9 : memref<512x1024xbf16, #tpu.memory_space<vmem>>) target_semaphore(%3 : memref<!tpu.dma_semaphore, #tpu.memory_space<semaphore_mem>>)
    %c2_i32 = arith.constant 2 : i32
    %4 = tpu.memref_slice %arg11[%c2_i32] : memref<3x!tpu.dma_semaphore, #tpu.memory_space<semaphore_mem>> -> memref<1x!tpu.dma_semaphore, #tpu.memory_space<semaphore_mem>>
    %5 = tpu.memref_squeeze %4 : memref<1x!tpu.dma_semaphore, #tpu.memory_space<semaphore_mem>> -> memref<!tpu.dma_semaphore, #tpu.memory_space<semaphore_mem>>
    tpu.enqueue_dma source(%arg6 : memref<1024x256xbf16, #tpu.memory_space<any>>) target(%arg10 : memref<1024x256xbf16, #tpu.memory_space<vmem>>) target_semaphore(%5 : memref<!tpu.dma_semaphore, #tpu.memory_space<semaphore_mem>>)
    %c0 = arith.constant 0 : index
    %c0_0 = arith.constant 0 : index
    %6 = vector.load %arg0[%c0, %c0_0] : memref<128x32xf32, #tpu.memory_space<vmem>>, vector<128x32xf32>
    %c0_1 = arith.constant 0 : index
    %c0_2 = arith.constant 0 : index
    %7 = vector.load %arg1[%c0_1, %c0_2] : memref<32x128xbf16, #tpu.memory_space<vmem>>, vector<32x128xbf16>
    %c0_3 = arith.constant 0 : index
    %c0_4 = arith.constant 0 : index
    %8 = vector.load %arg3[%c0_3, %c0_4] : memref<1x3968xf32, #tpu.memory_space<vmem>>, vector<1x128xf32>
    %9 = arith.truncf %6 : vector<128x32xf32> to vector<128x32xbf16>
    %cst = arith.constant dense<0.000000e+00> : vector<128x128xf32>
    %10 = tpu.matmul %9, %7, %cst {dimension_numbers = #tpu.dot_dimension_numbers<[1], [0], [0], [1], [0, 0, 1, 1], [], []>} : vector<128x32xbf16>, vector<32x128xbf16>, vector<128x128xf32> -> vector<128x128xf32>
    %11 = vector.broadcast %8 : vector<1x128xf32> to vector<128x128xf32>
    %12 = arith.addf %10, %11 : vector<128x128xf32>
    %cst_5 = arith.constant 2.000000e-01 : f32
    %13 = vector.broadcast %cst_5 : f32 to vector<128x128xf32>
    %14 = arith.mulf %13, %12 : vector<128x128xf32>
    %15 = arith.maximumf %12, %14 : vector<128x128xf32>
    %c0_6 = arith.constant 0 : index
    %c0_7 = arith.constant 0 : index
    %16 = vector.load %arg2[%c0_6, %c0_7] : memref<128x256xbf16, #tpu.memory_space<vmem>>, vector<128x256xbf16>
    %17 = arith.truncf %15 : vector<128x128xf32> to vector<128x128xbf16>
    %cst_8 = arith.constant dense<0.000000e+00> : vector<128x256xf32>
    %18 = tpu.matmul %17, %16, %cst_8 {dimension_numbers = #tpu.dot_dimension_numbers<[1], [0], [0], [1], [0, 0, 1, 1], [], []>} : vector<128x128xbf16>, vector<128x256xbf16>, vector<128x256xf32> -> vector<128x256xf32>
    %c0_9 = arith.constant 0 : index
    %c384 = arith.constant 384 : index
    %19 = vector.load %arg3[%c0_9, %c384] : memref<1x3968xf32, #tpu.memory_space<vmem>>, vector<1x256xf32>
    %c0_10 = arith.constant 0 : index
    %c2176 = arith.constant 2176 : index
    %20 = vector.load %arg3[%c0_10, %c2176] : memref<1x3968xf32, #tpu.memory_space<vmem>>, vector<1x256xf32>
    %cst_11 = arith.constant dense<0.000000e+00> : vector<256xf32>
    %21 = vector.multi_reduction <add>, %18, %cst_11 [0] : vector<128x256xf32> to vector<256xf32>
    %22 = vector.shape_cast %21 : vector<256xf32> to vector<1x256xf32>
    %23 = arith.mulf %18, %18 : vector<128x256xf32>
    %cst_12 = arith.constant dense<0.000000e+00> : vector<256xf32>
    %24 = vector.multi_reduction <add>, %23, %cst_12 [0] : vector<128x256xf32> to vector<256xf32>
    %25 = vector.shape_cast %24 : vector<256xf32> to vector<1x256xf32>
    %cst_13 = arith.constant 7.812500e-03 : f32
    %26 = vector.broadcast %cst_13 : f32 to vector<1x256xf32>
    %27 = arith.mulf %22, %26 : vector<1x256xf32>
    %cst_14 = arith.constant 7.812500e-03 : f32
    %28 = vector.broadcast %cst_14 : f32 to vector<1x256xf32>
    %29 = arith.mulf %25, %28 : vector<1x256xf32>
    %30 = arith.mulf %27, %27 : vector<1x256xf32>
    %31 = arith.subf %29, %30 : vector<1x256xf32>
    %32 = vector.broadcast %27 : vector<1x256xf32> to vector<128x256xf32>
    %33 = arith.subf %18, %32 : vector<128x256xf32>
    %cst_15 = arith.constant 8.000000e-01 : f32
    %34 = vector.broadcast %cst_15 : f32 to vector<1x256xf32>
    %35 = arith.addf %31, %34 : vector<1x256xf32>
    %36 = math.rsqrt %35 : vector<1x256xf32>
    %37 = vector.broadcast %36 : vector<1x256xf32> to vector<128x256xf32>
    %38 = arith.mulf %33, %37 : vector<128x256xf32>
    %39 = vector.broadcast %19 : vector<1x256xf32> to vector<128x256xf32>
    %40 = arith.mulf %38, %39 : vector<128x256xf32>
    %41 = vector.broadcast %20 : vector<1x256xf32> to vector<128x256xf32>
    %42 = arith.addf %40, %41 : vector<128x256xf32>
    %cst_16 = arith.constant 2.000000e-01 : f32
    %43 = vector.broadcast %cst_16 : f32 to vector<128x256xf32>
    %44 = arith.mulf %43, %42 : vector<128x256xf32>
    %45 = arith.maximumf %42, %44 : vector<128x256xf32>
    %c0_i32_17 = arith.constant 0 : i32
    %46 = tpu.memref_slice %arg11[%c0_i32_17] : memref<3x!tpu.dma_semaphore, #tpu.memory_space<semaphore_mem>> -> memref<1x!tpu.dma_semaphore, #tpu.memory_space<semaphore_mem>>
    %47 = tpu.memref_squeeze %46 : memref<1x!tpu.dma_semaphore, #tpu.memory_space<semaphore_mem>> -> memref<!tpu.dma_semaphore, #tpu.memory_space<semaphore_mem>>
    tpu.wait_dma2 semaphore(%47 : memref<!tpu.dma_semaphore, #tpu.memory_space<semaphore_mem>>) src(%arg4 : memref<256x512xbf16, #tpu.memory_space<any>>) dst(%arg8 : memref<256x512xbf16, #tpu.memory_space<vmem>>)
    %c0_18 = arith.constant 0 : index
    %c0_19 = arith.constant 0 : index
    %48 = vector.load %arg8[%c0_18, %c0_19] : memref<256x512xbf16, #tpu.memory_space<vmem>>, vector<256x512xbf16>
    %49 = arith.truncf %45 : vector<128x256xf32> to vector<128x256xbf16>
    %cst_20 = arith.constant dense<0.000000e+00> : vector<128x512xf32>
    %50 = tpu.matmul %49, %48, %cst_20 {dimension_numbers = #tpu.dot_dimension_numbers<[1], [0], [0], [1], [0, 0, 1, 1], [], []>} : vector<128x256xbf16>, vector<256x512xbf16>, vector<128x512xf32> -> vector<128x512xf32>
    %c0_21 = arith.constant 0 : index
    %c640 = arith.constant 640 : index
    %51 = vector.load %arg3[%c0_21, %c640] : memref<1x3968xf32, #tpu.memory_space<vmem>>, vector<1x512xf32>
    %c0_22 = arith.constant 0 : index
    %c2432 = arith.constant 2432 : index
    %52 = vector.load %arg3[%c0_22, %c2432] : memref<1x3968xf32, #tpu.memory_space<vmem>>, vector<1x512xf32>
    %cst_23 = arith.constant dense<0.000000e+00> : vector<512xf32>
    %53 = vector.multi_reduction <add>, %50, %cst_23 [0] : vector<128x512xf32> to vector<512xf32>
    %54 = vector.shape_cast %53 : vector<512xf32> to vector<1x512xf32>
    %55 = arith.mulf %50, %50 : vector<128x512xf32>
    %cst_24 = arith.constant dense<0.000000e+00> : vector<512xf32>
    %56 = vector.multi_reduction <add>, %55, %cst_24 [0] : vector<128x512xf32> to vector<512xf32>
    %57 = vector.shape_cast %56 : vector<512xf32> to vector<1x512xf32>
    %cst_25 = arith.constant 7.812500e-03 : f32
    %58 = vector.broadcast %cst_25 : f32 to vector<1x512xf32>
    %59 = arith.mulf %54, %58 : vector<1x512xf32>
    %cst_26 = arith.constant 7.812500e-03 : f32
    %60 = vector.broadcast %cst_26 : f32 to vector<1x512xf32>
    %61 = arith.mulf %57, %60 : vector<1x512xf32>
    %62 = arith.mulf %59, %59 : vector<1x512xf32>
    %63 = arith.subf %61, %62 : vector<1x512xf32>
    %64 = vector.broadcast %59 : vector<1x512xf32> to vector<128x512xf32>
    %65 = arith.subf %50, %64 : vector<128x512xf32>
    %cst_27 = arith.constant 8.000000e-01 : f32
    %66 = vector.broadcast %cst_27 : f32 to vector<1x512xf32>
    %67 = arith.addf %63, %66 : vector<1x512xf32>
    %68 = math.rsqrt %67 : vector<1x512xf32>
    %69 = vector.broadcast %68 : vector<1x512xf32> to vector<128x512xf32>
    %70 = arith.mulf %65, %69 : vector<128x512xf32>
    %71 = vector.broadcast %51 : vector<1x512xf32> to vector<128x512xf32>
    %72 = arith.mulf %70, %71 : vector<128x512xf32>
    %73 = vector.broadcast %52 : vector<1x512xf32> to vector<128x512xf32>
    %74 = arith.addf %72, %73 : vector<128x512xf32>
    %cst_28 = arith.constant 2.000000e-01 : f32
    %75 = vector.broadcast %cst_28 : f32 to vector<128x512xf32>
    %76 = arith.mulf %75, %74 : vector<128x512xf32>
    %77 = arith.maximumf %74, %76 : vector<128x512xf32>
    %c1_i32_29 = arith.constant 1 : i32
    %78 = tpu.memref_slice %arg11[%c1_i32_29] : memref<3x!tpu.dma_semaphore, #tpu.memory_space<semaphore_mem>> -> memref<1x!tpu.dma_semaphore, #tpu.memory_space<semaphore_mem>>
    %79 = tpu.memref_squeeze %78 : memref<1x!tpu.dma_semaphore, #tpu.memory_space<semaphore_mem>> -> memref<!tpu.dma_semaphore, #tpu.memory_space<semaphore_mem>>
    tpu.wait_dma2 semaphore(%79 : memref<!tpu.dma_semaphore, #tpu.memory_space<semaphore_mem>>) src(%arg5 : memref<512x1024xbf16, #tpu.memory_space<any>>) dst(%arg9 : memref<512x1024xbf16, #tpu.memory_space<vmem>>)
    %c0_30 = arith.constant 0 : index
    %c0_31 = arith.constant 0 : index
    %80 = vector.load %arg9[%c0_30, %c0_31] : memref<512x1024xbf16, #tpu.memory_space<vmem>>, vector<512x1024xbf16>
    %81 = arith.truncf %77 : vector<128x512xf32> to vector<128x512xbf16>
    %cst_32 = arith.constant dense<0.000000e+00> : vector<128x1024xf32>
    %82 = tpu.matmul %81, %80, %cst_32 {dimension_numbers = #tpu.dot_dimension_numbers<[1], [0], [0], [1], [0, 0, 1, 1], [], []>} : vector<128x512xbf16>, vector<512x1024xbf16>, vector<128x1024xf32> -> vector<128x1024xf32>
    %c0_33 = arith.constant 0 : index
    %c1152 = arith.constant 1152 : index
    %83 = vector.load %arg3[%c0_33, %c1152] : memref<1x3968xf32, #tpu.memory_space<vmem>>, vector<1x1024xf32>
    %c0_34 = arith.constant 0 : index
    %c2944 = arith.constant 2944 : index
    %84 = vector.load %arg3[%c0_34, %c2944] : memref<1x3968xf32, #tpu.memory_space<vmem>>, vector<1x1024xf32>
    %cst_35 = arith.constant dense<0.000000e+00> : vector<1024xf32>
    %85 = vector.multi_reduction <add>, %82, %cst_35 [0] : vector<128x1024xf32> to vector<1024xf32>
    %86 = vector.shape_cast %85 : vector<1024xf32> to vector<1x1024xf32>
    %87 = arith.mulf %82, %82 : vector<128x1024xf32>
    %cst_36 = arith.constant dense<0.000000e+00> : vector<1024xf32>
    %88 = vector.multi_reduction <add>, %87, %cst_36 [0] : vector<128x1024xf32> to vector<1024xf32>
    %89 = vector.shape_cast %88 : vector<1024xf32> to vector<1x1024xf32>
    %cst_37 = arith.constant 7.812500e-03 : f32
    %90 = vector.broadcast %cst_37 : f32 to vector<1x1024xf32>
    %91 = arith.mulf %86, %90 : vector<1x1024xf32>
    %cst_38 = arith.constant 7.812500e-03 : f32
    %92 = vector.broadcast %cst_38 : f32 to vector<1x1024xf32>
    %93 = arith.mulf %89, %92 : vector<1x1024xf32>
    %94 = arith.mulf %91, %91 : vector<1x1024xf32>
    %95 = arith.subf %93, %94 : vector<1x1024xf32>
    %96 = vector.broadcast %91 : vector<1x1024xf32> to vector<128x1024xf32>
    %97 = arith.subf %82, %96 : vector<128x1024xf32>
    %cst_39 = arith.constant 8.000000e-01 : f32
    %98 = vector.broadcast %cst_39 : f32 to vector<1x1024xf32>
    %99 = arith.addf %95, %98 : vector<1x1024xf32>
    %100 = math.rsqrt %99 : vector<1x1024xf32>
    %101 = vector.broadcast %100 : vector<1x1024xf32> to vector<128x1024xf32>
    %102 = arith.mulf %97, %101 : vector<128x1024xf32>
    %103 = vector.broadcast %83 : vector<1x1024xf32> to vector<128x1024xf32>
    %104 = arith.mulf %102, %103 : vector<128x1024xf32>
    %105 = vector.broadcast %84 : vector<1x1024xf32> to vector<128x1024xf32>
    %106 = arith.addf %104, %105 : vector<128x1024xf32>
    %cst_40 = arith.constant 2.000000e-01 : f32
    %107 = vector.broadcast %cst_40 : f32 to vector<128x1024xf32>
    %108 = arith.mulf %107, %106 : vector<128x1024xf32>
    %109 = arith.maximumf %106, %108 : vector<128x1024xf32>
    %c2_i32_41 = arith.constant 2 : i32
    %110 = tpu.memref_slice %arg11[%c2_i32_41] : memref<3x!tpu.dma_semaphore, #tpu.memory_space<semaphore_mem>> -> memref<1x!tpu.dma_semaphore, #tpu.memory_space<semaphore_mem>>
    %111 = tpu.memref_squeeze %110 : memref<1x!tpu.dma_semaphore, #tpu.memory_space<semaphore_mem>> -> memref<!tpu.dma_semaphore, #tpu.memory_space<semaphore_mem>>
    tpu.wait_dma2 semaphore(%111 : memref<!tpu.dma_semaphore, #tpu.memory_space<semaphore_mem>>) src(%arg6 : memref<1024x256xbf16, #tpu.memory_space<any>>) dst(%arg10 : memref<1024x256xbf16, #tpu.memory_space<vmem>>)
    %c0_42 = arith.constant 0 : index
    %c0_43 = arith.constant 0 : index
    %112 = vector.load %arg10[%c0_42, %c0_43] : memref<1024x256xbf16, #tpu.memory_space<vmem>>, vector<1024x256xbf16>
    %c0_44 = arith.constant 0 : index
    %c128 = arith.constant 128 : index
    %113 = vector.load %arg3[%c0_44, %c128] : memref<1x3968xf32, #tpu.memory_space<vmem>>, vector<1x256xf32>
    %114 = arith.truncf %109 : vector<128x1024xf32> to vector<128x1024xbf16>
    %cst_45 = arith.constant dense<0.000000e+00> : vector<128x256xf32>
    %115 = tpu.matmul %114, %112, %cst_45 {dimension_numbers = #tpu.dot_dimension_numbers<[1], [0], [0], [1], [0, 0, 1, 1], [], []>} : vector<128x1024xbf16>, vector<1024x256xbf16>, vector<128x256xf32> -> vector<128x256xf32>
    %116 = vector.broadcast %113 : vector<1x256xf32> to vector<128x256xf32>
    %117 = arith.addf %115, %116 : vector<128x256xf32>
    %118 = math.tanh %117 : vector<128x256xf32>
    %c0_46 = arith.constant 0 : index
    %c0_47 = arith.constant 0 : index
    %119 = vector.load %arg7[%c0_46, %c0_47] : memref<128x256xf32, #tpu.memory_space<vmem>>, vector<128x256xf32>
    tpu.vector_store %arg7[%c0_46, %c0_47], %118 {strides = array<i32>} : memref<128x256xf32, #tpu.memory_space<vmem>>, vector<128x256xf32>,
    return
  }
}

</mosaic_0001>

<bundles_post_ra>
// kernel: tpu_custom_call.1
= control target key start
LH: loop header
LB: loop body
LE: loop exit
PB: predicated region body
PF: predicated region fallthrough
CT: control target
= control target key end

     0   :  { %12 = vsyncpa [#allocation7], 0  ;;  %s11476_s0 = inlined_call_operand.vmem [shape: f32[128,32], index: 0, kind: input, shape index: {}]   ;;  %s11477_s1 = inlined_call_operand.hbm [shape: bf16[32,128], index: 1, kind: input, shape index: {}]   ;;  %s11478_s2 = inlined_call_operand.vmem [shape: bf16[128,256], index: 2, kind: input, shape index: {}]   ;;  %s11479_s3 = inlined_call_operand.vmem [shape: f32[1,3968], index: 3, kind: input, shape index: {}]   ;;  %s11480_s4 = inlined_call_operand.hbm [shape: bf16[256,512], index: 4, kind: input, shape index: {}]   ;;  %s11481_s5 = inlined_call_operand.hbm [shape: bf16[512,1024], index: 5, kind: input, shape index: {}]   ;;  %s11482_s6 = inlined_call_operand.hbm [shape: bf16[1024,256], index: 6, kind: input, shape index: {}]   ;;  %s11483_s7 = inlined_call_operand.hbm [shape: f32[128,256], index: 7, kind: output, shape index: {}]  }
   0x1   :  { %13 = vsyncpa [#allocation8], 0  ;;  %s5767_s24 = smov [#allocation6]   ;;  %s5713_s28 = scalar_lea.hbm %s11477_s1, 256 }
   0x2   :  { %s21_s25 = sshll.u32 %s5767_s24, 4  ;;  %p5714_p0 = scmp.ne.s32.totalorder %s11477_s1, %s5713_s28  ;;  %s22_s25 = int_to_ptr.vmem [resolvable:$true] %s21_s25 }
   0x3   :  { %p5717_p1 = scmp.lt.u32.totalorder %s5713_s28, %s11477_s1 }
   0x5   :  { %p5719_p2 = pnand %p5717_p1, %p5714_p0 }
   0x7   :  { %5722 = shalt.err (!%p5719_p2)
}
   0x8   :  { %s5723_s10 = scalar_lea.vmem %s22_s25, 256  ;;  %p5728_p4 = scmp.lt.s32.totalorder %s22_s25, %s22_s25 }
   0x9   :  { %p5724_p3 = scmp.ne.s32.totalorder %s22_s25, %s5723_s10  ;;  %p5729_p5 = scmp.lt.s32.totalorder %s5723_s10, %s5723_s10 }
   0xb   :  { %p5730_p6 = por %p5729_p5, %p5728_p4 }
   0xd   :  { %p5731_p7 = pnand %p5730_p6, %p5724_p3 }
   0xf   :  { %5734 = shalt.err (!%p5731_p7)
}
  0x10   :  { %s5768_s11 = smov 64   ;;  %s5769_s12 = smov 4  }
  0x11   :  { %27 = dma.hbm_to_vmem [thread:$0]  %s11477_s1, 256, %s22_s25, [#allocation7], %s5768_s11, %s5768_s11, %s5769_s12  }
  0x12   :  { %5757 = dma.done.wait [#allocation7], 256  }
  0x13   :  { %5758 = vsyncadd [#allocation7], 4294967040  ;;  %s40_s15 = sld [smem:[#allocation0]]   ;;  %56 = sst [smem:[#allocation11 + $0x2]] %s5769_s12  ;;  %vm188_vm0 = vcmask 261120   ;;  %v5785_v42 = vmov 0  }
  0x14   :  { %58 = sst [smem:[#allocation11 + $0x3]] %s5768_s11  ;;  %s5770_s16 = smov [#allocation2]   ;;  %478 = vmatprep.mubr.bf16.mxu1 %v5785_v42 }
  0x15   :  { %s48_s17 = sshll.u32 %s5770_s16, 4  ;;  %s5771_s18 = smov 256   ;;  %s49_s17 = int_to_ptr.vmem [resolvable:$true] %s48_s17 }
  0x16   :  { %64 = sst [smem:[#allocation11 + $0x6]] %s5771_s18  ;;  %s5772_s19 = smov 512  }
  0x17   :  { %66 = sst [smem:[#allocation11 + $0x7]] %s5768_s11  ;;  %s5773_s21 = smov 128  }
  0x18   :  { %68 = sst [smem:[#allocation11 + $0x8]] %s5769_s12  ;;  %s5774_s22 = smov 2  }
  0x19   :  { %52 = sst [smem:[#allocation11]] %s5772_s19  ;;  %s5218_s1 = sshll.u32 %s40_s15, 26 }
  0x1a   :  { %54 = sst [smem:[#allocation11 + $0x1]] %s5772_s19  ;;  %s5848_s20 = sadd.s32 134217728, %s5218_s1 }
  0x1b   :  { %60 = sst [smem:[#allocation11 + $0x4]] %s5773_s21  ;;  %s5775_s23 = smov [#allocation5]  }
  0x1c   :  { %62 = sst [smem:[#allocation11 + $0x5]] %s5774_s22  ;;  %s5776_s24 = smov [#allocation10]  }
  0x1d   :  { %70 = dma.general %s11480_s4, 8192, %s49_s17, %s5775_s23, %s5776_s24, [#allocation11], %s5848_s20, 0  }
  0x1e   :  { %s5777_s27 = smov 1024   ;;  %s5778_s28 = smov 8  }
  0x1f   :  { %87 = sst [smem:[#allocation13]] %s5777_s27  ;;  %s5779_s29 = smov [#allocation3]  }
  0x20   :  { %89 = sst [smem:[#allocation13 + $0x1]] %s5777_s27  ;;  %s83_s30 = sshll.u32 %s5779_s29, 4  ;;  %s84_s30 = int_to_ptr.vmem [resolvable:$true] %s83_s30 }
  0x21   :  { %91 = sst [smem:[#allocation13 + $0x2]] %s5778_s28  ;;  %s5780_s4 = smov [#allocation5 + $0x1]  }
  0x22   :  { %93 = sst [smem:[#allocation13 + $0x3]] %s5768_s11  ;;  %s5781_s8 = smov [#allocation12]  }
  0x23   :  { %95 = sst [smem:[#allocation13 + $0x4]] %s5773_s21  ;;  %s5782_s13 = smov [#allocation4]  }
  0x24   :  { %97 = sst [smem:[#allocation13 + $0x5]] %s5774_s22  ;;  %s118_s14 = sshll.u32 %s5782_s13, 4  ;;  %s119_s14 = int_to_ptr.vmem [resolvable:$true] %s118_s14 }
  0x25   :  { %99 = sst [smem:[#allocation13 + $0x6]] %s5772_s19  ;;  %s5784_s15 = smov [#allocation14]  }
  0x26   :  { %101 = sst [smem:[#allocation13 + $0x7]] %s5768_s11 }
  0x27   :  { %103 = sst [smem:[#allocation13 + $0x8]] %s5769_s12 }
  0x28   :  { %105 = dma.general %s11481_s5, 32768, %s84_s30, %s5780_s4, %s5781_s8, [#allocation13], %s5848_s20, 0  }
  0x29   :  { %122 = sst [smem:[#allocation15]] %s5771_s18  ;;  %s5783_s5 = smov [#allocation5 + $0x2]  }
  0x2a   :  { %124 = sst [smem:[#allocation15 + $0x1]] %s5771_s18 }
  0x2b   :  { %126 = sst [smem:[#allocation15 + $0x2]] %s5774_s22 }
  0x2c   :  { %128 = sst [smem:[#allocation15 + $0x3]] %s5768_s11 }
  0x2d   :  { %130 = sst [smem:[#allocation15 + $0x4]] %s5773_s21 }
  0x2e   :  { %132 = sst [smem:[#allocation15 + $0x5]] %s5774_s22 }
  0x2f   :  { %134 = sst [smem:[#allocation15 + $0x6]] %s5773_s21 }
  0x30   :  { %136 = sst [smem:[#allocation15 + $0x7]] %s5768_s11 }
  0x31   :  { %138 = sst [smem:[#allocation15 + $0x8]] %s5769_s12 }
  0x32   :  { %140 = dma.general %s11482_s6, 16384, %s119_s14, %s5783_s5, %s5784_s15, [#allocation15], %s5848_s20, 0  }
  0x33   :  { %v5593_v0 = vld [vmem:[#allocation6] sm:$0xff]   ;;  %v5594_v1 = vld [vmem:[#allocation6 + $0x8] sm:$0xff]   ;;  %v143_v5 = vld [vmem:[%s11476_s0 + $0x10] sm:$0xff] }
  0x34   :  { %5264 = vmatprep.subr.bf16.mxu0 %v5593_v0  ;;  %v141_v2 = vld [vmem:[%s11476_s0] sm:$0xff]  ;;  %v142_v3 = vld [vmem:[%s11476_s0 + $0x8] sm:$0xff]  ;;  %v144_v6 = vld [vmem:[%s11476_s0 + $0x18] sm:$0xff] }
  0x35   :  { %5265 = vmatpush3.bf16.msra.mxu0 %v5593_v0  ;;  %v162_v4 = vpack.c.bf16 %v142_v3, %v141_v2  ;;  %v145_v7 = vld [vmem:[%s11476_s0 + $0x20] sm:$0xff]  ;;  %v146_v8 = vld [vmem:[%s11476_s0 + $0x28] sm:$0xff]  ;;  %v163_v9 = vpack.c.bf16 %v144_v6, %v143_v5  ;;  %v147_v13 = vld [vmem:[%s11476_s0 + $0x30] sm:$0xff] }
  0x36   :  { %5266 = vmatprep.subr.bf16.mxu0 %v5594_v1  ;;  %v164_v10 = vpack.c.bf16 %v146_v8, %v145_v7  ;;  %v5595_v11 = vld [vmem:[%s11478_s2 + $0x4] ss:$8 sps:$4 sm:$0xff]   ;;  %v5597_v12 = vld [vmem:[%s11478_s2] ss:$8 sps:$4 sm:$0xff]   ;;  %v148_v14 = vld [vmem:[%s11476_s0 + $0x38] sm:$0xff] }
  0x37   :  { %5268 = vmatprep.mubr.msk.bf16.mxu0 %vm188_vm0, %v162_v4  ;;  %v5598_v15 = vld [vmem:[%s11478_s2 + $0x14] ss:$8 sps:$4 sm:$0xff]   ;;  %v149_v16 = vld [vmem:[%s11476_s0 + $0x40] sm:$0xff]  ;;  %446 = vmatprep.subr.bf16.mxu1 %v5595_v11  ;;  %v5600_v17 = vld [vmem:[%s11478_s2 + $0x10] ss:$8 sps:$4 sm:$0xff]   ;;  %v165_v21 = vpack.c.bf16 %v148_v14, %v147_v13 }
  0x38   :  { %447 = vmatpush1.bf16.msra.mxu1 %v5597_v12  ;;  %v150_v18 = vld [vmem:[%s11476_s0 + $0x48] sm:$0xff]  ;;  %v5604_v23 = vld [vmem:[%s11478_s2 + $0x34] ss:$8 sps:$4 sm:$0xff]   ;;  %v5606_v26 = vld [vmem:[%s11478_s2 + $0x30] ss:$8 sps:$4 sm:$0xff]  }
  0x39   :  { %5267 = vmatpush3.bf16.msra.mxu0 %v5594_v1  ;;  %448 = vmatprep.subr.bf16.mxu1 %v5598_v15  ;;  %v5601_v19 = vld [vmem:[%s11478_s2 + $0x24] ss:$8 sps:$4 sm:$0xff]   ;;  %v5603_v20 = vld [vmem:[%s11478_s2 + $0x20] ss:$8 sps:$4 sm:$0xff]   ;;  %v166_v22 = vpack.c.bf16 %v150_v18, %v149_v16  ;;  %v151_v24 = vld [vmem:[%s11476_s0 + $0x50] sm:$0xff] }
  0x3a   :  { %v152_v25 = vld [vmem:[%s11476_s0 + $0x58] sm:$0xff]  ;;  %v153_v27 = vld [vmem:[%s11476_s0 + $0x60] sm:$0xff]  ;;  %v154_v28 = vld [vmem:[%s11476_s0 + $0x68] sm:$0xff] }
  0x3b   :  { %v5607_v29 = vld [vmem:[%s11478_s2 + $0x44] ss:$8 sps:$4 sm:$0xff]   ;;  %v167_v30 = vpack.c.bf16 %v152_v25, %v151_v24  ;;  %v168_v31 = vpack.c.bf16 %v154_v28, %v153_v27  ;;  %v5609_v32 = vld [vmem:[%s11478_s2 + $0x40] ss:$8 sps:$4 sm:$0xff]   ;;  %v155_v33 = vld [vmem:[%s11476_s0 + $0x70] sm:$0xff] }
  0x3c   :  { %5269 = vmatmul.mubr.msk.bf16.vlgmr.msra.gmra.mrb[0].mxu0 %vm188_vm0, %v163_v9  ;;  %449 = vmatpush1.bf16.msra.mxu1 %v5600_v17  ;;  %v156_v34 = vld [vmem:[%s11476_s0 + $0x78] sm:$0xff]  ;;  %v5613_v38 = vld [vmem:[%s11478_s2 + $0x64] ss:$8 sps:$4 sm:$0xff]   ;;  %v5615_v39 = vld [vmem:[%s11478_s2 + $0x60] ss:$8 sps:$4 sm:$0xff]  }
  0x3d   :  { %5272 = vmatprep.mubr.msk.bf16.mxu0 %vm188_vm0, %v164_v10  ;;  %450 = vmatprep.subr.bf16.mxu1 %v5601_v19  ;;  %v169_v35 = vpack.c.bf16 %v156_v34, %v155_v33  ;;  %v5610_v36 = vld [vmem:[%s11478_s2 + $0x54] ss:$8 sps:$4 sm:$0xff]   ;;  %v5612_v37 = vld [vmem:[%s11478_s2 + $0x50] ss:$8 sps:$4 sm:$0xff]   ;;  %v5986_v43 = vld [vmem:[%s11479_s3] ss:$0 sm:$0xff] }
  0x3e   :  { %v5616_v40 = vld [vmem:[%s11478_s2 + $0x74] ss:$8 sps:$4 sm:$0xff]   ;;  %v5618_v41 = vld [vmem:[%s11478_s2 + $0x70] ss:$8 sps:$4 sm:$0xff]  }
  0x40   :  { %451 = vmatpush1.bf16.msra.mxu1 %v5603_v20 }
  0x41   :  { %452 = vmatprep.subr.bf16.mxu1 %v5604_v23 }
  0x44   :  { %5273 = vmatmul.mubr.msk.bf16.gmra.mrb[4].mxu0 %vm188_vm0, %v165_v21  ;;  %453 = vmatpush1.bf16.msra.mxu1 %v5606_v26 }
  0x45   :  { %5276 = vmatprep.mubr.msk.bf16.mxu0 %vm188_vm0, %v166_v22  ;;  %454 = vmatprep.subr.bf16.mxu1 %v5607_v29 }
  0x48   :  { %455 = vmatpush1.bf16.msra.mxu1 %v5609_v32 }
  0x49   :  { %456 = vmatprep.subr.bf16.mxu1 %v5610_v36 }
  0x4c   :  { %5277 = vmatmul.mubr.msk.bf16.gmra.mrb[8].mxu0 %vm188_vm0, %v167_v30  ;;  %457 = vmatpush1.bf16.msra.mxu1 %v5612_v37 }
  0x4d   :  { %5280 = vmatprep.mubr.msk.bf16.mxu0 %vm188_vm0, %v168_v31  ;;  %458 = vmatprep.subr.bf16.mxu1 %v5613_v38 }
  0x50   :  { %459 = vmatpush1.bf16.msra.mxu1 %v5615_v39 }
  0x51   :  { %460 = vmatprep.subr.bf16.mxu1 %v5616_v40 }
  0x54   :  { %5281 = vmatmul.mubr.msk.bf16.gmra.mrb[12].mxu0 %vm188_vm0, %v169_v35  ;;  %461 = vmatpush1.bf16.msra.mxu1 %v5618_v41 }
 0x10f   :  { %v5270_v44 = vpop.f32.mrb[0].mxu0 }
 0x110   :  { %v256_v45 = vadd.f32 %v5270_v44, %v5986_v43  ;;  %v247_v46 = vpop.f32.mrb[1].mxu0 }
 0x111   :  { %v248_v47 = vadd.f32 %v5986_v43, %v247_v46  ;;  %v5271_v48 = vpop.f32.mrb[2].mxu0 }
 0x112   :  { %v312_v49 = vmul.f32 0.2, %v256_v45  ;;  %v259_v50 = vadd.f32 %v5271_v48, %v5986_v43  ;;  %v250_v51 = vpop.f32.mrb[3].mxu0 }
 0x113   :  { %v310_v52 = vmul.f32 0.2, %v248_v47  ;;  %v251_v53 = vadd.f32 %v5986_v43, %v250_v51 }
 0x114   :  { %v313_v54 = vmul.f32 0.2, %v259_v50  ;;  %v328_v56 = vmax.f32 %v256_v45, %v312_v49 }
 0x115   :  { %v311_v55 = vmul.f32 0.2, %v251_v53  ;;  %v326_v58 = vmax.f32 %v248_v47, %v310_v52 }
 0x116   :  { %v329_v57 = vmax.f32 %v259_v50, %v313_v54 }
 0x117   :  { %v327_v59 = vmax.f32 %v251_v53, %v311_v55  ;;  %v5274_v60 = vpop.f32.mrb[4].mxu0 }
 0x118   :  { %v272_v61 = vadd.f32 %v5274_v60, %v5986_v43  ;;  %v263_v62 = vpop.f32.mrb[5].mxu0  ;;  %v359_v63 = vpack.c.bf16 %v329_v57, %v328_v56 }
 0x119   :  { %v264_v0 = vadd.f32 %v5986_v43, %v263_v62  ;;  %v358_v1 = vpack.c.bf16 %v327_v59, %v326_v58  ;;  %v5275_v2 = vpop.f32.mrb[6].mxu0 }
 0x11a   :  { %v316_v3 = vmul.f32 0.2, %v272_v61  ;;  %v275_v4 = vadd.f32 %v5275_v2, %v5986_v43  ;;  %v266_v5 = vpop.f32.mrb[7].mxu0 }
 0x11b   :  { %v314_v6 = vmul.f32 0.2, %v264_v0  ;;  %479 = vmatmul.mubr.bf16.vlgmr.msra.gmra.mrb[0].mxu1 %v358_v1  ;;  %v267_v7 = vadd.f32 %v5986_v43, %v266_v5 }
 0x11c   :  { %v332_v8 = vmax.f32 %v272_v61, %v316_v3  ;;  %v317_v9 = vmul.f32 0.2, %v275_v4  ;;  %488 = vmatprep.mubr.bf16.mxu1 %v5785_v42 }
 0x11d   :  { %v330_v10 = vmax.f32 %v264_v0, %v314_v6  ;;  %v315_v11 = vmul.f32 0.2, %v267_v7 }
 0x11e   :  { %v333_v12 = vmax.f32 %v275_v4, %v317_v9 }
 0x11f   :  { %v331_v13 = vmax.f32 %v267_v7, %v315_v11  ;;  %v5278_v14 = vpop.f32.mrb[8].mxu0 }
 0x120   :  { %v288_v15 = vadd.f32 %v5278_v14, %v5986_v43  ;;  %v279_v16 = vpop.f32.mrb[9].mxu0  ;;  %v361_v17 = vpack.c.bf16 %v333_v12, %v332_v8 }
 0x121   :  { %v280_v18 = vadd.f32 %v5986_v43, %v279_v16  ;;  %v360_v19 = vpack.c.bf16 %v331_v13, %v330_v10  ;;  %v5279_v20 = vpop.f32.mrb[10].mxu0 }
 0x122   :  { %v320_v21 = vmul.f32 0.2, %v288_v15  ;;  %v291_v22 = vadd.f32 %v5279_v20, %v5986_v43  ;;  %v282_v23 = vpop.f32.mrb[11].mxu0 }
 0x123   :  { %489 = vmatmul.mubr.bf16.gmra.mrb[4].mxu1 %v359_v63  ;;  %v318_v24 = vmul.f32 0.2, %v280_v18  ;;  %v283_v25 = vadd.f32 %v5986_v43, %v282_v23 }
 0x124   :  { %v336_v26 = vmax.f32 %v288_v15, %v320_v21  ;;  %498 = vmatprep.mubr.bf16.mxu1 %v5785_v42  ;;  %v321_v27 = vmul.f32 0.2, %v291_v22 }
 0x125   :  { %v334_v28 = vmax.f32 %v280_v18, %v318_v24  ;;  %v319_v29 = vmul.f32 0.2, %v283_v25 }
 0x126   :  { %v337_v30 = vmax.f32 %v291_v22, %v321_v27 }
 0x127   :  { %v335_v31 = vmax.f32 %v283_v25, %v319_v29  ;;  %v5282_v32 = vpop.f32.mrb[12].mxu0 }
 0x128   :  { %v304_v33 = vadd.f32 %v5282_v32, %v5986_v43  ;;  %v295_v34 = vpop.f32.mrb[13].mxu0  ;;  %v363_v35 = vpack.c.bf16 %v337_v30, %v336_v26 }
 0x129   :  { %v296_v36 = vadd.f32 %v5986_v43, %v295_v34  ;;  %v362_v37 = vpack.c.bf16 %v335_v31, %v334_v28  ;;  %v5283_v38 = vpop.f32.mrb[14].mxu0 }
 0x12a   :  { %v324_v39 = vmul.f32 0.2, %v304_v33  ;;  %v307_v40 = vadd.f32 %v5283_v38, %v5986_v43  ;;  %v298_v41 = vpop.f32.mrb[15].mxu0 }
 0x12b   :  { %499 = vmatmul.mubr.bf16.gmra.mrb[8].mxu1 %v360_v19  ;;  %v322_v44 = vmul.f32 0.2, %v296_v36  ;;  %v299_v45 = vadd.f32 %v5986_v43, %v298_v41 }
 0x12c   :  { %508 = vmatprep.mubr.bf16.mxu1 %v5785_v42  ;;  %v340_v46 = vmax.f32 %v304_v33, %v324_v39  ;;  %v325_v47 = vmul.f32 0.2, %v307_v40 }
 0x12d   :  { %v338_v48 = vmax.f32 %v296_v36, %v322_v44  ;;  %v323_v49 = vmul.f32 0.2, %v299_v45 }
 0x12e   :  { %v341_v50 = vmax.f32 %v307_v40, %v325_v47 }
 0x12f   :  { %v339_v51 = vmax.f32 %v299_v45, %v323_v49 }
 0x130   :  { %v365_v52 = vpack.c.bf16 %v341_v50, %v340_v46 }
 0x131   :  { %v364_v53 = vpack.c.bf16 %v339_v51, %v338_v48 }
 0x133   :  { %509 = vmatmul.mubr.bf16.gmra.mrb[12].mxu1 %v361_v17 }
 0x134   :  { %518 = vmatprep.mubr.bf16.mxu1 %v5785_v42 }
 0x13b   :  { %519 = vmatmul.mubr.bf16.gmra.mrb[16].mxu1 %v362_v37 }
 0x13c   :  { %528 = vmatprep.mubr.bf16.mxu1 %v5785_v42 }
 0x143   :  { %529 = vmatmul.mubr.bf16.gmra.mrb[20].mxu1 %v363_v35 }
 0x144   :  { %538 = vmatprep.mubr.bf16.mxu1 %v5785_v42 }
 0x14b   :  { %539 = vmatmul.mubr.bf16.gmra.mrb[24].mxu1 %v364_v53 }
 0x14c   :  { %548 = vmatprep.mubr.bf16.mxu1 %v5785_v42 }
 0x153   :  { %549 = vmatmul.mubr.bf16.gmra.mrb[28].mxu1 %v365_v52 }
 0x1ee   :  { %v6011_v43 = vpop.f32.mrb[0].mxu1 }
 0x1ef   :  { %v6013_v54 = vpop.f32.mrb[1].mxu1  ;;  %v603_v56 = vmul.f32 %v6011_v43, %v6011_v43 }
 0x1f0   :  { %v6015_v55 = vpop.f32.mrb[2].mxu1  ;;  %v604_v42 = vmul.f32 %v6013_v54, %v6013_v54 }
 0x1f1   :  { %v561_v57 = vadd.f32 %v6015_v55, %v6011_v43  ;;  %v605_v58 = vmul.f32 %v6015_v55, %v6015_v55  ;;  %v6023_v59 = vpop.f32.mrb[3].mxu1 }
 0x1f2   :  { %v582_v60 = vadd.f32 %v6023_v59, %v6013_v54  ;;  %v606_v61 = vmul.f32 %v6023_v59, %v6023_v59 }
 0x1f3   :  { %v635_v62 = vadd.f32 %v605_v58, %v603_v56 }
 0x1f4   :  { %v656_v63 = vadd.f32 %v606_v61, %v604_v42 }
 0x1f6   :  { %v6031_v0 = vpop.f32.mrb[4].mxu1 }
 0x1f7   :  { %v562_v1 = vadd.f32 %v561_v57, %v6031_v0  ;;  %v607_v2 = vmul.f32 %v6031_v0, %v6031_v0  ;;  %v6036_v3 = vpop.f32.mrb[5].mxu1 }
 0x1f8   :  { %v583_v4 = vadd.f32 %v582_v60, %v6036_v3  ;;  %v608_v5 = vmul.f32 %v6036_v3, %v6036_v3  ;;  %v6041_v6 = vpop.f32.mrb[6].mxu1 }
 0x1f9   :  { %v636_v7 = vadd.f32 %v635_v62, %v607_v2  ;;  %v563_v8 = vadd.f32 %v562_v1, %v6041_v6  ;;  %v609_v9 = vmul.f32 %v6041_v6, %v6041_v6  ;;  %v6046_v10 = vpop.f32.mrb[7].mxu1 }
 0x1fa   :  { %v657_v11 = vadd.f32 %v656_v63, %v608_v5  ;;  %v584_v12 = vadd.f32 %v583_v4, %v6046_v10  ;;  %v610_v13 = vmul.f32 %v6046_v10, %v6046_v10 }
 0x1fb   :  { %v637_v14 = vadd.f32 %v636_v7, %v609_v9 }
 0x1fc   :  { %v658_v15 = vadd.f32 %v657_v11, %v610_v13 }
 0x1fe   :  { %v6051_v16 = vpop.f32.mrb[8].mxu1 }
 0x1ff   :  { %v564_v17 = vadd.f32 %v563_v8, %v6051_v16  ;;  %v611_v18 = vmul.f32 %v6051_v16, %v6051_v16  ;;  %v6056_v19 = vpop.f32.mrb[9].mxu1 }
 0x200   :  { %v585_v20 = vadd.f32 %v584_v12, %v6056_v19  ;;  %v612_v21 = vmul.f32 %v6056_v19, %v6056_v19  ;;  %v6061_v22 = vpop.f32.mrb[10].mxu1 }
 0x201   :  { %v638_v23 = vadd.f32 %v637_v14, %v611_v18  ;;  %v565_v24 = vadd.f32 %v564_v17, %v6061_v22  ;;  %v613_v25 = vmul.f32 %v6061_v22, %v6061_v22  ;;  %v6066_v26 = vpop.f32.mrb[11].mxu1 }
 0x202   :  { %v659_v27 = vadd.f32 %v658_v15, %v612_v21  ;;  %v586_v28 = vadd.f32 %v585_v20, %v6066_v26  ;;  %v614_v29 = vmul.f32 %v6066_v26, %v6066_v26 }
 0x203   :  { %v639_v30 = vadd.f32 %v638_v23, %v613_v25 }
 0x204   :  { %v660_v31 = vadd.f32 %v659_v27, %v614_v29 }
 0x206   :  { %v6071_v32 = vpop.f32.mrb[12].mxu1 }
 0x207   :  { %v566_v33 = vadd.f32 %v565_v24, %v6071_v32  ;;  %v615_v34 = vmul.f32 %v6071_v32, %v6071_v32  ;;  %v6076_v35 = vpop.f32.mrb[13].mxu1 }
 0x208   :  { %v587_v36 = vadd.f32 %v586_v28, %v6076_v35  ;;  %v616_v37 = vmul.f32 %v6076_v35, %v6076_v35  ;;  %v6081_v38 = vpop.f32.mrb[14].mxu1 }
 0x209   :  { %v640_v39 = vadd.f32 %v639_v30, %v615_v34  ;;  %v567_v40 = vadd.f32 %v566_v33, %v6081_v38  ;;  %v617_v41 = vmul.f32 %v6081_v38, %v6081_v38  ;;  %v6086_v44 = vpop.f32.mrb[15].mxu1 }
 0x20a   :  { %v661_v45 = vadd.f32 %v660_v31, %v616_v37  ;;  %v588_v46 = vadd.f32 %v587_v36, %v6086_v44  ;;  %v618_v47 = vmul.f32 %v6086_v44, %v6086_v44 }
 0x20b   :  { %v641_v48 = vadd.f32 %v640_v39, %v617_v41 }
 0x20c   :  { %v662_v49 = vadd.f32 %v661_v45, %v618_v47 }
 0x20e   :  { %v6091_v50 = vpop.f32.mrb[16].mxu1 }
 0x20f   :  { %v568_v51 = vadd.f32 %v567_v40, %v6091_v50  ;;  %v619_v52 = vmul.f32 %v6091_v50, %v6091_v50  ;;  %v6096_v53 = vpop.f32.mrb[17].mxu1 }
 0x210   :  { %v589_v56 = vadd.f32 %v588_v46, %v6096_v53  ;;  %v620_v57 = vmul.f32 %v6096_v53, %v6096_v53  ;;  %v6101_v58 = vpop.f32.mrb[18].mxu1 }
 0x211   :  { %v642_v42 = vadd.f32 %v641_v48, %v619_v52  ;;  %v569_v60 = vadd.f32 %v568_v51, %v6101_v58  ;;  %v621_v61 = vmul.f32 %v6101_v58, %v6101_v58  ;;  %v6106_v62 = vpop.f32.mrb[19].mxu1 }
 0x212   :  { %v663_v63 = vadd.f32 %v662_v49, %v620_v57  ;;  %v590_v1 = vadd.f32 %v589_v56, %v6106_v62  ;;  %v622_v2 = vmul.f32 %v6106_v62, %v6106_v62 }
 0x213   :  { %v643_v4 = vadd.f32 %v642_v42, %v621_v61 }
 0x214   :  { %v664_v5 = vadd.f32 %v663_v63, %v622_v2 }
 0x216   :  { %v6111_v7 = vpop.f32.mrb[20].mxu1 }
 0x217   :  { %v570_v8 = vadd.f32 %v569_v60, %v6111_v7  ;;  %v623_v9 = vmul.f32 %v6111_v7, %v6111_v7  ;;  %v6116_v11 = vpop.f32.mrb[21].mxu1 }
 0x218   :  { %v591_v12 = vadd.f32 %v590_v1, %v6116_v11  ;;  %v624_v13 = vmul.f32 %v6116_v11, %v6116_v11  ;;  %v6121_v14 = vpop.f32.mrb[22].mxu1 }
 0x219   :  { %v644_v15 = vadd.f32 %v643_v4, %v623_v9  ;;  %v571_v17 = vadd.f32 %v570_v8, %v6121_v14  ;;  %v625_v18 = vmul.f32 %v6121_v14, %v6121_v14  ;;  %v6126_v20 = vpop.f32.mrb[23].mxu1 }
 0x21a   :  { %v665_v21 = vadd.f32 %v664_v5, %v624_v13  ;;  %v592_v23 = vadd.f32 %v591_v12, %v6126_v20  ;;  %v626_v24 = vmul.f32 %v6126_v20, %v6126_v20 }
 0x21b   :  { %v645_v25 = vadd.f32 %v644_v15, %v625_v18 }
 0x21c   :  { %v666_v27 = vadd.f32 %v665_v21, %v626_v24 }
 0x21e   :  { %v6131_v28 = vpop.f32.mrb[24].mxu1 }
 0x21f   :  { %v572_v29 = vadd.f32 %v571_v17, %v6131_v28  ;;  %v627_v30 = vmul.f32 %v6131_v28, %v6131_v28  ;;  %v6136_v31 = vpop.f32.mrb[25].mxu1 }
 0x220   :  { %v593_v33 = vadd.f32 %v592_v23, %v6136_v31  ;;  %v628_v34 = vmul.f32 %v6136_v31, %v6136_v31  ;;  %v6141_v36 = vpop.f32.mrb[26].mxu1 }
 0x221   :  { %v646_v37 = vadd.f32 %v645_v25, %v627_v30  ;;  %v573_v39 = vadd.f32 %v572_v29, %v6141_v36  ;;  %v629_v40 = vmul.f32 %v6141_v36, %v6141_v36  ;;  %v6146_v41 = vpop.f32.mrb[27].mxu1 }
 0x222   :  { %v667_v45 = vadd.f32 %v666_v27, %v628_v34  ;;  %v594_v46 = vadd.f32 %v593_v33, %v6146_v41  ;;  %v630_v47 = vmul.f32 %v6146_v41, %v6146_v41 }
 0x223   :  { %v647_v48 = vadd.f32 %v646_v37, %v629_v40 }
 0x224   :  { %v668_v49 = vadd.f32 %v667_v45, %v630_v47 }
 0x226   :  { %v6151_v51 = vpop.f32.mrb[28].mxu1 }
 0x227   :  { %v574_v52 = vadd.f32 %v573_v39, %v6151_v51  ;;  %v631_v56 = vmul.f32 %v6151_v51, %v6151_v51  ;;  %v6156_v57 = vpop.f32.mrb[29].mxu1 }
 0x228   :  { %v595_v42 = vadd.f32 %v594_v46, %v6156_v57  ;;  %v632_v60 = vmul.f32 %v6156_v57, %v6156_v57  ;;  %v6161_v61 = vpop.f32.mrb[30].mxu1  ;;  %v754_v46 = vlaneseq }
 0x229   :  { %v648_v63 = vadd.f32 %v647_v48, %v631_v56  ;;  %v575_v1 = vadd.f32 %v574_v52, %v6161_v61  ;;  %v633_v2 = vmul.f32 %v6161_v61, %v6161_v61  ;;  %v6166_v4 = vpop.f32.mrb[31].mxu1 }
 0x22a   :  { %v669_v5 = vadd.f32 %v668_v49, %v632_v60  ;;  %v596_v8 = vadd.f32 %v595_v42, %v6166_v4  ;;  %v634_v9 = vmul.f32 %v6166_v4, %v6166_v4 }
 0x22b   :  { %v576_v12 = vrot.slane %v575_v1, 4  ;;  %v649_v13 = vadd.f32 %v648_v63, %v633_v2 }
 0x22c   :  { %v597_v15 = vrot.slane %v596_v8, 4  ;;  %v670_v17 = vadd.f32 %v669_v5, %v634_v9 }
 0x22d   :  { %v577_v18 = vadd.f32 %v576_v12, %v575_v1  ;;  %v650_v21 = vrot.slane %v649_v13, 4  ;;  %v6173_v1 = vshrl.u32 %v754_v46, 7 }
 0x22e   :  { %v598_v23 = vadd.f32 %v597_v15, %v596_v8  ;;  %v671_v24 = vrot.slane %v670_v17, 4 }
 0x22f   :  { %v578_v25 = vrot.slane %v577_v18, 2  ;;  %v651_v27 = vadd.f32 %v650_v21, %v649_v13  ;;  %12037 = vst [vmem:[#allocation21_spill] sm:$0xff] %v6173_v1 }
 0x230   :  { %v599_v29 = vrot.slane %v598_v23, 2  ;;  %v672_v30 = vadd.f32 %v671_v24, %v670_v17 }
 0x231   :  { %v579_v33 = vadd.f32 %v578_v25, %v577_v18  ;;  %v652_v34 = vrot.slane %v651_v27, 2 }
 0x232   :  { %v600_v37 = vadd.f32 %v599_v29, %v598_v23  ;;  %v673_v39 = vrot.slane %v672_v30, 2 }
 0x233   :  { %v580_v40 = vrot.slane %v579_v33, 1  ;;  %v653_v45 = vadd.f32 %v652_v34, %v651_v27 }
 0x234   :  { %v601_v47 = vrot.slane %v600_v37, 1  ;;  %v674_v48 = vadd.f32 %v673_v39, %v672_v30 }
 0x235   :  { %v581_v49 = vadd.f32 %v580_v40, %v579_v33  ;;  %v654_v52 = vrot.slane %v653_v45, 1 }
 0x236   :  { %v602_v56 = vadd.f32 %v601_v47, %v600_v37  ;;  %v675_v42 = vrot.slane %v674_v48, 1 }
 0x237   :  { %v655_v60 = vadd.f32 %v654_v52, %v653_v45  ;;  %v6171_v63 = vmul.f32 0.0078125, %v581_v49  ;;  %v6246_v49 = vsub.s32 0, %v6173_v1 }
 0x238   :  { %v676_v2 = vadd.f32 %v675_v42, %v674_v48  ;;  %v6175_v5 = vmul.f32 0.0078125, %v602_v56  ;;  %v6249_v56 = vsub.s32 1, %v6173_v1  ;;  %v559_v42 = vld [vmem:[%s11479_s3 + $0x3] sm:$0x3] }
 0x239   :  { %v679_v8 = vmul.f32 0.0078125, %v655_v60  ;;  %v681_v9 = vmul.f32 %v6171_v63, %v6171_v63  ;;  %v685_v12 = vsub.f32 %v6011_v43, %v6171_v63  ;;  %v687_v13 = vsub.f32 %v6015_v55, %v6171_v63  ;;  %12038 = vst [vmem:[#allocation22_spill] sm:$0xff] %v6246_v49  ;;  %v6257_v60 = vld [vmem:[%s11479_s3 + $0x11] sm:$0x3] }
 0x23a   :  { %v689_v15 = vsub.f32 %v6031_v0, %v6171_v63  ;;  %v691_v17 = vsub.f32 %v6041_v6, %v6171_v63  ;;  %v693_v18 = vsub.f32 %v6051_v16, %v6171_v63  ;;  %v695_v21 = vsub.f32 %v6061_v22, %v6171_v63  ;;  %12039 = vst [vmem:[#allocation23_spill] sm:$0xff] %v6249_v56 }
 0x23b   :  { %v683_v23 = vsub.f32 %v679_v8, %v681_v9  ;;  %v697_v24 = vsub.f32 %v6071_v32, %v6171_v63  ;;  %v699_v43 = vsub.f32 %v6081_v38, %v6171_v63  ;;  %v701_v55 = vsub.f32 %v6091_v50, %v6171_v63 }
 0x23c   :  { %v703_v0 = vsub.f32 %v6101_v58, %v6171_v63  ;;  %v705_v6 = vsub.f32 %v6111_v7, %v6171_v63  ;;  %v707_v16 = vsub.f32 %v6121_v14, %v6171_v63  ;;  %v709_v22 = vsub.f32 %v6131_v28, %v6171_v63 }
 0x23d   :  { %v711_v32 = vsub.f32 %v6141_v36, %v6171_v63  ;;  %v713_v38 = vsub.f32 %v6151_v51, %v6171_v63  ;;  %v715_v50 = vsub.f32 %v6161_v61, %v6171_v63  ;;  %v717_v25 = vadd.f32 0.8, %v683_v23 }
 0x23e   :  { %v680_v58 = vmul.f32 0.0078125, %v676_v2  ;;  %v682_v7 = vmul.f32 %v6175_v5, %v6175_v5  ;;  %v686_v14 = vsub.f32 %v6013_v54, %v6175_v5  ;;  %v688_v28 = vsub.f32 %v6023_v59, %v6175_v5 }
 0x23f   :  { %5619 = vrsqrt.f32 %v717_v25  ;;  %v690_v36 = vsub.f32 %v6036_v3, %v6175_v5  ;;  %v757_v2 = vrot.slane %v559_v42, %v6246_v49  ;;  %v800_v8 = vrot.slane %v6257_v60, %v6246_v49 }
 0x240   :  { %v684_v27 = vsub.f32 %v680_v58, %v682_v7  ;;  %v6263_v9 = vrot.slane %v559_v42, %v6249_v56  ;;  %v12050_v3 = vsub.f32 %v6086_v44, %v6175_v5  ;;  %v12055_v44 = vsub.f32 %v6136_v31, %v6175_v5 }
 0x241   :  { %v804_v31 = vrot.slane %v6257_v60, %v6249_v56 }
 0x242   :  { %v718_v52 = vadd.f32 0.8, %v684_v27 }
 0x244   :  { %5621 = vrsqrt.f32 %v718_v52 }
 0x249   :  { %v5620_v63 = vpop.eup %5619 }
 0x24a   :  { %v721_v23 = vmul.f32 %v5620_v63, %v685_v12  ;;  %v723_v25 = vmul.f32 %v5620_v63, %v687_v13  ;;  %v725_v58 = vmul.f32 %v5620_v63, %v689_v15  ;;  %v727_v7 = vmul.f32 %v5620_v63, %v691_v17 }
 0x24b   :  { %v729_v27 = vmul.f32 %v5620_v63, %v693_v18  ;;  %v731_v48 = vmul.f32 %v5620_v63, %v695_v21  ;;  %v733_v47 = vmul.f32 %v5620_v63, %v697_v24  ;;  %v735_v46 = vmul.f32 %v5620_v63, %v699_v43 }
 0x24c   :  { %v737_v45 = vmul.f32 %v5620_v63, %v701_v55  ;;  %v739_v40 = vmul.f32 %v5620_v63, %v703_v0  ;;  %v741_v39 = vmul.f32 %v5620_v63, %v705_v6  ;;  %v743_v37 = vmul.f32 %v5620_v63, %v707_v16 }
 0x24d   :  { %v745_v34 = vmul.f32 %v5620_v63, %v709_v22  ;;  %v747_v33 = vmul.f32 %v5620_v63, %v711_v32  ;;  %v749_v30 = vmul.f32 %v5620_v63, %v713_v38  ;;  %v751_v29 = vmul.f32 %v5620_v63, %v715_v50 }
 0x24e   :  { %v764_v52 = vmul.f32 %v757_v2, %v721_v23  ;;  %v766_v61 = vmul.f32 %v757_v2, %v723_v25  ;;  %v768_v42 = vmul.f32 %v757_v2, %v725_v58  ;;  %v770_v51 = vmul.f32 %v757_v2, %v727_v7  ;;  %v5622_v63 = vpop.eup %5621 }
 0x24f   :  { %v772_v12 = vmul.f32 %v757_v2, %v729_v27  ;;  %v774_v13 = vmul.f32 %v757_v2, %v731_v48  ;;  %v776_v15 = vmul.f32 %v757_v2, %v733_v47  ;;  %v778_v17 = vmul.f32 %v757_v2, %v735_v46 }
 0x250   :  { %v780_v18 = vmul.f32 %v757_v2, %v737_v45  ;;  %v782_v21 = vmul.f32 %v757_v2, %v739_v40  ;;  %v784_v24 = vmul.f32 %v757_v2, %v741_v39  ;;  %v786_v43 = vmul.f32 %v757_v2, %v743_v37 }
 0x251   :  { %v788_v55 = vmul.f32 %v757_v2, %v745_v34  ;;  %v790_v0 = vmul.f32 %v757_v2, %v747_v33  ;;  %v792_v6 = vmul.f32 %v757_v2, %v749_v30  ;;  %v794_v16 = vmul.f32 %v757_v2, %v751_v29 }
 0x252   :  { %v6265_v22 = vadd.f32 %v800_v8, %v764_v52  ;;  %v6267_v32 = vadd.f32 %v800_v8, %v766_v61  ;;  %v6269_v38 = vadd.f32 %v800_v8, %v768_v42  ;;  %v6271_v50 = vadd.f32 %v800_v8, %v770_v51 }
 0x253   :  { %v6273_v48 = vadd.f32 %v800_v8, %v772_v12  ;;  %v6275_v46 = vadd.f32 %v800_v8, %v774_v13  ;;  %v6277_v40 = vadd.f32 %v800_v8, %v776_v15  ;;  %v6279_v37 = vadd.f32 %v800_v8, %v778_v17 }
 0x254   :  { %v6281_v33 = vadd.f32 %v800_v8, %v780_v18  ;;  %v6283_v29 = vadd.f32 %v800_v8, %v782_v21  ;;  %v6285_v30 = vadd.f32 %v800_v8, %v784_v24  ;;  %v6287_v61 = vadd.f32 %v800_v8, %v786_v43 }
 0x255   :  { %v6289_v34 = vadd.f32 %v800_v8, %v788_v55  ;;  %v6291_v51 = vadd.f32 %v800_v8, %v790_v0  ;;  %v6293_v39 = vadd.f32 %v800_v8, %v792_v6  ;;  %v6295_v45 = vadd.f32 %v800_v8, %v794_v16 }
 0x256   :  { %v6298_v47 = vmul.f32 0.2, %v6265_v22  ;;  %v6301_v2 = vmul.f32 0.2, %v6267_v32  ;;  %v6304_v23 = vmul.f32 0.2, %v6269_v38  ;;  %v722_v25 = vmul.f32 %v5622_v63, %v686_v14 }
 0x257   :  { %12040 = vst [vmem:[#allocation24_spill] sm:$0xff] %v6291_v51  ;;  %12041 = vst [vmem:[#allocation25_spill] sm:$0xff] %v6293_v39  ;;  %v6310_v58 = vmul.f32 0.2, %v6271_v50  ;;  %v6313_v7 = vmul.f32 0.2, %v6273_v48  ;;  %v724_v27 = vmul.f32 %v5622_v63, %v688_v28  ;;  %v726_v28 = vmul.f32 %v5622_v63, %v690_v36 }
 0x258   :  { %12042 = vst [vmem:[#allocation26_spill] sm:$0xff] %v6295_v45  ;;  %v6316_v8 = vmul.f32 0.2, %v6275_v46  ;;  %v6322_v52 = vmul.f32 0.2, %v6277_v40  ;;  %v12046_v43 = vsub.f32 %v6046_v10, %v6175_v5  ;;  %v12047_v0 = vsub.f32 %v6056_v19, %v6175_v5 }
 0x259   :  { %v6325_v42 = vmul.f32 0.2, %v6279_v37  ;;  %v6328_v54 = vmul.f32 0.2, %v6281_v33  ;;  %v6333_v12 = vmul.f32 0.2, %v6283_v29  ;;  %v12048_v6 = vsub.f32 %v6066_v26, %v6175_v5 }
 0x25a   :  { %v6336_v13 = vmul.f32 0.2, %v6285_v30  ;;  %v6339_v59 = vmul.f32 0.2, %v6287_v61  ;;  %v6344_v15 = vmul.f32 0.2, %v6289_v34  ;;  %v728_v55 = vmul.f32 %v5622_v63, %v12046_v43 }
 0x25b   :  { %v6347_v17 = vmul.f32 0.2, %v6291_v51  ;;  %v6350_v18 = vmul.f32 0.2, %v6293_v39  ;;  %v6355_v24 = vmul.f32 0.2, %v6295_v45  ;;  %v730_v14 = vmul.f32 %v5622_v63, %v12047_v0 }
 0x25c   :  { %v732_v1 = vmul.f32 %v5622_v63, %v12048_v6  ;;  %v12049_v16 = vsub.f32 %v6076_v35, %v6175_v5  ;;  %v736_v36 = vmul.f32 %v5622_v63, %v12050_v3  ;;  %v12051_v10 = vsub.f32 %v6096_v53, %v6175_v5 }
 0x25d   :  { %12043 = vst [vmem:[#allocation27_spill] sm:$0xff] %v6347_v17  ;;  %12044 = vst [vmem:[#allocation28_spill] sm:$0xff] %v6350_v18  ;;  %v12052_v19 = vsub.f32 %v6106_v62, %v6175_v5  ;;  %v12053_v26 = vsub.f32 %v6116_v11, %v6175_v5  ;;  %v12054_v35 = vsub.f32 %v6126_v20, %v6175_v5 }
 0x25e   :  { %12045 = vst [vmem:[#allocation29_spill] sm:$0xff] %v6355_v24  ;;  %v734_v21 = vmul.f32 %v5622_v63, %v12049_v16  ;;  %v738_v43 = vmul.f32 %v5622_v63, %v12051_v10  ;;  %v746_v3 = vmul.f32 %v5622_v63, %v12055_v44  ;;  %v12056_v53 = vsub.f32 %v6146_v41, %v6175_v5 }
 0x25f   :  { %v740_v0 = vmul.f32 %v5622_v63, %v12052_v19  ;;  %v742_v6 = vmul.f32 %v5622_v63, %v12053_v26  ;;  %v744_v16 = vmul.f32 %v5622_v63, %v12054_v35  ;;  %v12057_v62 = vsub.f32 %v6156_v57, %v6175_v5 }
 0x260   :  { %v748_v10 = vmul.f32 %v5622_v63, %v12056_v53  ;;  %v12058_v11 = vsub.f32 %v6166_v4, %v6175_v5  ;;  %v765_v49 = vmul.f32 %v6263_v9, %v722_v25  ;;  %v767_v20 = vmul.f32 %v6263_v9, %v724_v27 }
 0x261   :  { %v750_v19 = vmul.f32 %v5622_v63, %v12057_v62  ;;  %v769_v35 = vmul.f32 %v6263_v9, %v726_v28  ;;  %v771_v41 = vmul.f32 %v6263_v9, %v728_v55  ;;  %v773_v44 = vmul.f32 %v6263_v9, %v730_v14 }
 0x262   :  { %v752_v26 = vmul.f32 %v5622_v63, %v12058_v11  ;;  %v775_v57 = vmul.f32 %v6263_v9, %v732_v1  ;;  %v777_v53 = vmul.f32 %v6263_v9, %v734_v21  ;;  %v779_v4 = vmul.f32 %v6263_v9, %v736_v36 }
 0x263   :  { %v781_v5 = vmul.f32 %v6263_v9, %v738_v43  ;;  %v783_v63 = vmul.f32 %v6263_v9, %v740_v0  ;;  %v785_v25 = vmul.f32 %v6263_v9, %v742_v6  ;;  %v787_v27 = vmul.f32 %v6263_v9, %v744_v16 }
 0x264   :  { %v789_v60 = vmul.f32 %v6263_v9, %v746_v3  ;;  %v791_v28 = vmul.f32 %v6263_v9, %v748_v10  ;;  %v793_v14 = vmul.f32 %v6263_v9, %v750_v19  ;;  %v808_v55 = vadd.f32 %v804_v31, %v765_v49 }
 0x265   :  { %v810_v1 = vadd.f32 %v804_v31, %v767_v20  ;;  %v6442_v62 = vadd.f32 %v804_v31, %v769_v35  ;;  %v795_v21 = vmul.f32 %v6263_v9, %v752_v26  ;;  %v6445_v36 = vadd.f32 %v804_v31, %v771_v41 }
 0x266   :  { %v6447_v43 = vadd.f32 %v804_v31, %v773_v44  ;;  %v6449_v0 = vadd.f32 %v804_v31, %v775_v57  ;;  %v6451_v6 = vadd.f32 %v804_v31, %v777_v53  ;;  %v6453_v16 = vadd.f32 %v804_v31, %v779_v4 }
 0x267   :  { %v6455_v3 = vadd.f32 %v804_v31, %v781_v5  ;;  %v6457_v10 = vadd.f32 %v804_v31, %v783_v63  ;;  %v6459_v49 = vadd.f32 %v804_v31, %v785_v25  ;;  %v6461_v19 = vadd.f32 %v804_v31, %v787_v27 }
 0x268   :  { %v6463_v11 = vadd.f32 %v804_v31, %v789_v60  ;;  %v6465_v9 = vadd.f32 %v804_v31, %v791_v28  ;;  %v6467_v26 = vadd.f32 %v804_v31, %v793_v14  ;;  %v840_v20 = vmul.f32 0.2, %v808_v55 }
 0x269   :  { %v842_v35 = vmul.f32 0.2, %v810_v1  ;;  %v6470_v41 = vmul.f32 0.2, %v6442_v62  ;;  %v6472_v44 = vadd.f32 %v804_v31, %v795_v21  ;;  %v6475_v57 = vmul.f32 0.2, %v6445_v36 }
 0x26a   :  { %v6478_v53 = vmul.f32 0.2, %v6447_v43  ;;  %v6481_v4 = vmul.f32 0.2, %v6449_v0  ;;  %v6484_v5 = vmul.f32 0.2, %v6451_v6  ;;  %v872_v31 = vmax.f32 %v808_v55, %v840_v20 }
 0x26b   :  { %v6487_v63 = vmul.f32 0.2, %v6453_v16  ;;  %v6490_v25 = vmul.f32 0.2, %v6455_v3  ;;  %v6493_v27 = vmul.f32 0.2, %v6457_v10  ;;  %v874_v14 = vmax.f32 %v810_v1, %v842_v35 }
 0x26c   :  { %v6496_v60 = vmul.f32 0.2, %v6459_v49  ;;  %v6499_v28 = vmul.f32 0.2, %v6461_v19  ;;  %v6502_v21 = vmul.f32 0.2, %v6463_v11 }
 0x26d   :  { %v6505_v56 = vmul.f32 0.2, %v6465_v9  ;;  %v6508_v24 = vmul.f32 0.2, %v6467_v26  ;;  %v6513_v20 = vmul.f32 0.2, %v6472_v44 }
 0x26f   :  { %12059 = vst [vmem:[#allocation30_spill] sm:$0xff] %v6508_v24  ;;  %12060 = vst [vmem:[#allocation31_spill] sm:$0xff] %v6513_v20 }
 0x270   :  { %5759 = dma.done.wait [#allocation5], 8192 }
 0x271   :  { %5760 = vsyncadd [#allocation5], 4294959104  ;;  %v6541_v17 = vpack.c.bf16 %v874_v14, %v872_v31  ;;  %v908_v45 = vld [vmem:[#allocation2 + $0x8] sm:$0xff]  ;;  %v907_v1 = vld [vmem:[#allocation2] sm:$0xff] }
 0x272   :  { %v912_v51 = vld [vmem:[#allocation2 + $0x28] sm:$0xff]  ;;  %987 = vmatprep.subr.bf16.mxu1 %v908_v45  ;;  %v911_v35 = vld [vmem:[#allocation2 + $0x20] sm:$0xff] }
 0x273   :  { %12061 = vst [vmem:[#allocation32_spill] sm:$0xff] %v6541_v17  ;;  %1019 = vmatprep.mubr.bf16.mxu1 %v6541_v17  ;;  %988 = vmatpush1.bf16.msra.mxu1 %v907_v1  ;;  %v916_v18 = vld [vmem:[#allocation2 + $0x48] sm:$0xff]  ;;  %v915_v39 = vld [vmem:[#allocation2 + $0x40] sm:$0xff] }
 0x274   :  { %989 = vmatprep.subr.bf16.mxu1 %v912_v51  ;;  %v920_v24 = vld [vmem:[#allocation2 + $0x68] sm:$0xff]  ;;  %v919_v55 = vld [vmem:[#allocation2 + $0x60] sm:$0xff] }
 0x275   :  { %v924_v20 = vld [vmem:[#allocation2 + $0x88] sm:$0xff]  ;;  %v923_v31 = vld [vmem:[#allocation2 + $0x80] sm:$0xff] }
 0x276   :  { %v928_v14 = vld [vmem:[#allocation2 + $0xa8] sm:$0xff]  ;;  %v927_v17 = vld [vmem:[#allocation2 + $0xa0] sm:$0xff] }
 0x277   :  { %990 = vmatpush1.bf16.msra.mxu1 %v911_v35  ;;  %v932_v45 = vld [vmem:[#allocation2 + $0xc8] sm:$0xff]  ;;  %v931_v51 = vld [vmem:[#allocation2 + $0xc0] sm:$0xff] }
 0x278   :  { %991 = vmatprep.subr.bf16.mxu1 %v916_v18  ;;  %v936_v1 = vld [vmem:[#allocation2 + $0xe8] sm:$0xff]  ;;  %v935_v18 = vld [vmem:[#allocation2 + $0xe0] sm:$0xff] }
 0x279   :  { %v940_v35 = vld [vmem:[#allocation2 + $0x108] sm:$0xff] }
 0x27b   :  { %992 = vmatpush1.bf16.msra.mxu1 %v915_v39  ;;  %v939_v39 = vld [vmem:[#allocation2 + $0x100] sm:$0xff] }
 0x27c   :  { %993 = vmatprep.subr.bf16.mxu1 %v920_v24  ;;  %v944_v24 = vld [vmem:[#allocation2 + $0x128] sm:$0xff] }
 0x27f   :  { %994 = vmatpush1.bf16.msra.mxu1 %v919_v55  ;;  %v943_v55 = vld [vmem:[#allocation2 + $0x120] sm:$0xff] }
 0x280   :  { %995 = vmatprep.subr.bf16.mxu1 %v924_v20  ;;  %v948_v20 = vld [vmem:[#allocation2 + $0x148] sm:$0xff] }
 0x283   :  { %996 = vmatpush1.bf16.msra.mxu1 %v923_v31  ;;  %v947_v31 = vld [vmem:[#allocation2 + $0x140] sm:$0xff] }
 0x284   :  { %997 = vmatprep.subr.bf16.mxu1 %v928_v14  ;;  %v952_v14 = vld [vmem:[#allocation2 + $0x168] sm:$0xff] }
 0x287   :  { %998 = vmatpush1.bf16.msra.mxu1 %v927_v17  ;;  %v951_v17 = vld [vmem:[#allocation2 + $0x160] sm:$0xff] }
 0x288   :  { %999 = vmatprep.subr.bf16.mxu1 %v932_v45  ;;  %v956_v45 = vld [vmem:[#allocation2 + $0x188] sm:$0xff] }
 0x28b   :  { %1000 = vmatpush1.bf16.msra.mxu1 %v931_v51  ;;  %v955_v51 = vld [vmem:[#allocation2 + $0x180] sm:$0xff] }
 0x28c   :  { %1001 = vmatprep.subr.bf16.mxu1 %v936_v1  ;;  %v960_v1 = vld [vmem:[#allocation2 + $0x1a8] sm:$0xff] }
 0x28f   :  { %1002 = vmatpush1.bf16.msra.mxu1 %v935_v18  ;;  %v959_v18 = vld [vmem:[#allocation2 + $0x1a0] sm:$0xff] }
 0x290   :  { %1003 = vmatprep.subr.bf16.mxu1 %v940_v35  ;;  %v964_v35 = vld [vmem:[#allocation2 + $0x1c8] sm:$0xff] }
 0x293   :  { %1004 = vmatpush1.bf16.msra.mxu1 %v939_v39  ;;  %v963_v39 = vld [vmem:[#allocation2 + $0x1c0] sm:$0xff] }
 0x294   :  { %1005 = vmatprep.subr.bf16.mxu1 %v944_v24  ;;  %v968_v24 = vld [vmem:[#allocation2 + $0x1e8] sm:$0xff] }
 0x297   :  { %1006 = vmatpush1.bf16.msra.mxu1 %v943_v55  ;;  %v967_v55 = vld [vmem:[#allocation2 + $0x1e0] sm:$0xff] }
 0x298   :  { %1007 = vmatprep.subr.bf16.mxu1 %v948_v20  ;;  %v910_v20 = vld [vmem:[#allocation2 + $0x18] sm:$0xff] }
 0x29b   :  { %1008 = vmatpush1.bf16.msra.mxu1 %v947_v31  ;;  %v12062_v31 = vmax.f32 %v6265_v22, %v6298_v47  ;;  %v913_v22 = vld [vmem:[#allocation2 + $0x30] sm:$0xff]  ;;  %v12066_v47 = vmax.f32 %v6269_v38, %v6304_v23  ;;  %v12070_v23 = vmax.f32 %v6273_v48, %v6313_v7  ;;  %v12074_v7 = vmax.f32 %v6277_v40, %v6322_v52 }
 0x29c   :  { %1009 = vmatprep.subr.bf16.mxu1 %v952_v14  ;;  %v12063_v14 = vmax.f32 %v6267_v32, %v6301_v2  ;;  %v918_v32 = vld [vmem:[#allocation2 + $0x58] sm:$0xff]  ;;  %v12067_v2 = vmax.f32 %v6271_v50, %v6310_v58  ;;  %v921_v38 = vld [vmem:[#allocation2 + $0x70] sm:$0xff]  ;;  %v12071_v58 = vmax.f32 %v6275_v46, %v6316_v8  ;;  %v12075_v8 = vmax.f32 %v6279_v37, %v6325_v42 }
 0x29d   :  { %v926_v50 = vld [vmem:[#allocation2 + $0x98] sm:$0xff]  ;;  %v929_v48 = vld [vmem:[#allocation2 + $0xb0] sm:$0xff]  ;;  %v12078_v52 = vmax.f32 %v6281_v33, %v6328_v54  ;;  %v12079_v42 = vmax.f32 %v6283_v29, %v6333_v12  ;;  %v12082_v29 = vmax.f32 %v6285_v30, %v6336_v13  ;;  %v12083_v12 = vmax.f32 %v6287_v61, %v6339_v59  ;;  %v12087_v59 = vld [vmem:[#allocation24_spill] sm:$0xff] }
 0x29e   :  { %v934_v46 = vld [vmem:[#allocation2 + $0xd8] sm:$0xff]  ;;  %v937_v40 = vld [vmem:[#allocation2 + $0xf0] sm:$0xff]  ;;  %v12086_v61 = vmax.f32 %v6289_v34, %v6344_v15 }
 0x29f   :  { %1010 = vmatpush1.bf16.msra.mxu1 %v951_v17  ;;  %v6550_v17 = vpack.c.bf16 %v12063_v14, %v12062_v31  ;;  %v933_v31 = vld [vmem:[#allocation2 + $0xd0] sm:$0xff]  ;;  %v938_v14 = vld [vmem:[#allocation2 + $0xf8] sm:$0xff] }
 0x2a0   :  { %1011 = vmatprep.subr.bf16.mxu1 %v956_v45  ;;  %v12064_v45 = vmax.f32 %v6442_v62, %v6470_v41  ;;  %v6568_v62 = vpack.c.bf16 %v12067_v2, %v12066_v47  ;;  %v12069_v41 = vmax.f32 %v6449_v0, %v6481_v4  ;;  %v12072_v0 = vmax.f32 %v6451_v6, %v6484_v5  ;;  %v942_v37 = vld [vmem:[#allocation2 + $0x118] sm:$0xff]  ;;  %v945_v33 = vld [vmem:[#allocation2 + $0x130] sm:$0xff] }
 0x2a1   :  { %v6604_v6 = vpack.c.bf16 %v12075_v8, %v12074_v7  ;;  %v12077_v5 = vmax.f32 %v6457_v10, %v6493_v27  ;;  %v12080_v10 = vmax.f32 %v6459_v49, %v6496_v60  ;;  %v950_v54 = vld [vmem:[#allocation2 + $0x158] sm:$0xff]  ;;  %v981_v49 = vpack.c.bf16 %v12083_v12, %v12082_v29  ;;  %v953_v30 = vld [vmem:[#allocation2 + $0x170] sm:$0xff] }
 0x2a2   :  { %v12085_v60 = vmax.f32 %v6465_v9, %v6505_v56  ;;  %v958_v13 = vld [vmem:[#allocation2 + $0x198] sm:$0xff]  ;;  %v961_v34 = vld [vmem:[#allocation2 + $0x1b0] sm:$0xff] }
 0x2a3   :  { %1012 = vmatpush1.bf16.msra.mxu1 %v955_v51  ;;  %v12065_v51 = vmax.f32 %v6445_v36, %v6475_v57  ;;  %v12068_v36 = vmax.f32 %v6447_v43, %v6478_v53  ;;  %v6586_v43 = vpack.c.bf16 %v12071_v58, %v12070_v23  ;;  %v12073_v53 = vmax.f32 %v6453_v16, %v6487_v63  ;;  %v12090_v56 = vld [vmem:[#allocation30_spill] sm:$0xff]  ;;  %v12098_v23 = vld [vmem:[#allocation29_spill] sm:$0xff] }
 0x2a4   :  { %1013 = vmatprep.subr.bf16.mxu1 %v960_v1  ;;  %v12076_v16 = vmax.f32 %v6455_v3, %v6490_v25  ;;  %v979_v3 = vpack.c.bf16 %v12079_v42, %v12078_v52  ;;  %v12081_v25 = vmax.f32 %v6461_v19, %v6499_v28  ;;  %v12084_v19 = vmax.f32 %v6463_v11, %v6502_v21  ;;  %v12092_v21 = vld [vmem:[#allocation31_spill] sm:$0xff]  ;;  %v966_v15 = vld [vmem:[#allocation2 + $0x1d8] sm:$0xff] }
 0x2a5   :  { %v6558_v1 = vpack.c.bf16 %v12065_v51, %v12064_v45  ;;  %v6576_v57 = vpack.c.bf16 %v12069_v41, %v12068_v36  ;;  %v6594_v4 = vpack.c.bf16 %v12073_v53, %v12072_v0  ;;  %v941_v45 = vld [vmem:[#allocation2 + $0x110] sm:$0xff]  ;;  %v946_v51 = vld [vmem:[#allocation2 + $0x138] sm:$0xff]  ;;  %v12091_v9 = vmax.f32 %v6467_v26, %v12090_v56  ;;  %v12100_v53 = vld [vmem:[#allocation32_spill] sm:$0xff] }
 0x2a6   :  { %v6612_v63 = vpack.c.bf16 %v12077_v5, %v12076_v16  ;;  %v982_v27 = vpack.c.bf16 %v12081_v25, %v12080_v10  ;;  %v984_v28 = vpack.c.bf16 %v12085_v60, %v12084_v19  ;;  %v12093_v47 = vmax.f32 %v6472_v44, %v12092_v21  ;;  %v957_v36 = vld [vmem:[#allocation2 + $0x190] sm:$0xff]  ;;  %v962_v41 = vld [vmem:[#allocation2 + $0x1b8] sm:$0xff] }
 0x2a7   :  { %1014 = vmatpush1.bf16.msra.mxu1 %v959_v18  ;;  %v909_v18 = vld [vmem:[#allocation2 + $0x10] sm:$0xff]  ;;  %v970_v0 = vld [vmem:[#allocation2 + $0x1f8] sm:$0xff] }
 0x2a8   :  { %1015 = vmatprep.subr.bf16.mxu1 %v964_v35  ;;  %v914_v35 = vld [vmem:[#allocation2 + $0x38] sm:$0xff]  ;;  %v986_v2 = vpack.c.bf16 %v12093_v47, %v12091_v9  ;;  %v965_v44 = vld [vmem:[#allocation2 + $0x1d0] sm:$0xff] }
 0x2ab   :  { %1016 = vmatpush1.bf16.msra.mxu1 %v963_v39  ;;  %v917_v39 = vld [vmem:[#allocation2 + $0x50] sm:$0xff] }
 0x2ac   :  { %1017 = vmatprep.subr.bf16.mxu1 %v968_v24  ;;  %v922_v24 = vld [vmem:[#allocation2 + $0x78] sm:$0xff] }
 0x2af   :  { %1018 = vmatpush1.bf16.msra.mxu1 %v967_v55  ;;  %v925_v55 = vld [vmem:[#allocation2 + $0x90] sm:$0xff] }
 0x2b0   :  { %1100 = vmatprep.subr.bf16.mxu1 %v910_v20  ;;  %v930_v20 = vld [vmem:[#allocation2 + $0xb8] sm:$0xff] }
 0x2b2   :  { %1020 = vmatmul.mubr.bf16.vlgmr.msra.gmra.mrb[32].mxu1 %v6550_v17 }
 0x2b3   :  { %1101 = vmatpush1.bf16.msra.mxu1 %v909_v18  ;;  %1029 = vmatprep.mubr.bf16.mxu1 %v6558_v1  ;;  %v949_v18 = vld [vmem:[#allocation2 + $0x150] sm:$0xff] }
 0x2b4   :  { %1102 = vmatprep.subr.bf16.mxu1 %v914_v35  ;;  %v954_v35 = vld [vmem:[#allocation2 + $0x178] sm:$0xff] }
 0x2b7   :  { %1103 = vmatpush1.bf16.msra.mxu1 %v913_v22  ;;  %v12088_v22 = vld [vmem:[#allocation27_spill] sm:$0xff] }
 0x2b8   :  { %1104 = vmatprep.subr.bf16.mxu1 %v918_v32  ;;  %v12089_v32 = vmax.f32 %v12087_v59, %v12088_v22 }
 0x2ba   :  { %1030 = vmatmul.mubr.bf16.gmra.mrb[36].mxu1 %v6568_v62  ;;  %v983_v11 = vpack.c.bf16 %v12089_v32, %v12086_v61 }
 0x2bb   :  { %1105 = vmatpush1.bf16.msra.mxu1 %v917_v39  ;;  %1039 = vmatprep.mubr.bf16.mxu1 %v6576_v57  ;;  %v12094_v39 = vld [vmem:[#allocation25_spill] sm:$0xff] }
 0x2bc   :  { %1106 = vmatprep.subr.bf16.mxu1 %v922_v24  ;;  %v12095_v24 = vld [vmem:[#allocation28_spill] sm:$0xff] }
 0x2bf   :  { %1107 = vmatpush1.bf16.msra.mxu1 %v921_v38  ;;  %v12096_v38 = vmax.f32 %v12094_v39, %v12095_v24 }
 0x2c0   :  { %1108 = vmatprep.subr.bf16.mxu1 %v926_v50  ;;  %v12097_v50 = vld [vmem:[#allocation26_spill] sm:$0xff] }
 0x2c1   :  { %v12099_v58 = vmax.f32 %v12097_v50, %v12098_v23 }
 0x2c2   :  { %1040 = vmatmul.mubr.bf16.gmra.mrb[40].mxu1 %v6586_v43 }
 0x2c3   :  { %1109 = vmatpush1.bf16.msra.mxu1 %v925_v55  ;;  %1049 = vmatprep.mubr.bf16.mxu1 %v6594_v4  ;;  %v985_v26 = vpack.c.bf16 %v12099_v58, %v12096_v38  ;;  %v969_v55 = vld [vmem:[#allocation2 + $0x1f0] sm:$0xff] }
 0x2c4   :  { %1110 = vmatprep.subr.bf16.mxu1 %v930_v20 }
 0x2c7   :  { %1111 = vmatpush1.bf16.msra.mxu1 %v929_v48 }
 0x2c8   :  { %1112 = vmatprep.subr.bf16.mxu1 %v934_v46 }
 0x2ca   :  { %1050 = vmatmul.mubr.bf16.gmra.mrb[44].mxu1 %v6604_v6 }
 0x2cb   :  { %1113 = vmatpush1.bf16.msra.mxu1 %v933_v31  ;;  %1059 = vmatprep.mubr.bf16.mxu1 %v6612_v63 }
 0x2cc   :  { %1114 = vmatprep.subr.bf16.mxu1 %v938_v14 }
 0x2cf   :  { %1115 = vmatpush1.bf16.msra.mxu1 %v937_v40 }
 0x2d0   :  { %1116 = vmatprep.subr.bf16.mxu1 %v942_v37 }
 0x2d2   :  { %1060 = vmatmul.mubr.bf16.gmra.mrb[48].mxu1 %v979_v3 }
 0x2d3   :  { %1117 = vmatpush1.bf16.msra.mxu1 %v941_v45  ;;  %1069 = vmatprep.mubr.bf16.mxu1 %v982_v27 }
 0x2d4   :  { %1118 = vmatprep.subr.bf16.mxu1 %v946_v51 }
 0x2d7   :  { %1119 = vmatpush1.bf16.msra.mxu1 %v945_v33 }
 0x2d8   :  { %1120 = vmatprep.subr.bf16.mxu1 %v950_v54 }
 0x2da   :  { %1070 = vmatmul.mubr.bf16.gmra.mrb[52].mxu1 %v981_v49 }
 0x2db   :  { %1121 = vmatpush1.bf16.msra.mxu1 %v949_v18  ;;  %1079 = vmatprep.mubr.bf16.mxu1 %v984_v28 }
 0x2dc   :  { %1122 = vmatprep.subr.bf16.mxu1 %v954_v35 }
 0x2df   :  { %1123 = vmatpush1.bf16.msra.mxu1 %v953_v30 }
 0x2e0   :  { %1124 = vmatprep.subr.bf16.mxu1 %v958_v13 }
 0x2e2   :  { %1080 = vmatmul.mubr.bf16.gmra.mrb[56].mxu1 %v983_v11 }
 0x2e3   :  { %1125 = vmatpush1.bf16.msra.mxu1 %v957_v36  ;;  %1089 = vmatprep.mubr.bf16.mxu1 %v986_v2 }
 0x2e4   :  { %1126 = vmatprep.subr.bf16.mxu1 %v962_v41 }
 0x2e7   :  { %1127 = vmatpush1.bf16.msra.mxu1 %v961_v34 }
 0x2e8   :  { %1128 = vmatprep.subr.bf16.mxu1 %v966_v15 }
 0x2ea   :  { %1090 = vmatmul.mubr.bf16.gmra.mrb[60].mxu1 %v985_v26 }
 0x2eb   :  { %1129 = vmatpush1.bf16.msra.mxu1 %v965_v44  ;;  %1132 = vmatprep.mubr.bf16.mxu1 %v12100_v53 }
 0x2ec   :  { %1130 = vmatprep.subr.bf16.mxu1 %v970_v0 }
 0x2ef   :  { %1131 = vmatpush1.bf16.msra.mxu1 %v969_v55 }
 0x2f2   :  { %1133 = vmatmul.mubr.bf16.vlgmr.msra.gmra.mrb[64].mxu1 %v6550_v17 }
 0x2f3   :  { %1142 = vmatprep.mubr.bf16.mxu1 %v6558_v1 }
 0x2fa   :  { %1143 = vmatmul.mubr.bf16.gmra.mrb[68].mxu1 %v6568_v62 }
 0x2fb   :  { %1152 = vmatprep.mubr.bf16.mxu1 %v6576_v57 }
 0x302   :  { %1153 = vmatmul.mubr.bf16.gmra.mrb[72].mxu1 %v6586_v43 }
 0x303   :  { %1162 = vmatprep.mubr.bf16.mxu1 %v6594_v4 }
 0x30a   :  { %1163 = vmatmul.mubr.bf16.gmra.mrb[76].mxu1 %v6604_v6 }
 0x30b   :  { %1172 = vmatprep.mubr.bf16.mxu1 %v6612_v63 }
 0x312   :  { %1173 = vmatmul.mubr.bf16.gmra.mrb[80].mxu1 %v979_v3 }
 0x313   :  { %1182 = vmatprep.mubr.bf16.mxu1 %v982_v27 }
 0x31a   :  { %1183 = vmatmul.mubr.bf16.gmra.mrb[84].mxu1 %v981_v49 }
 0x31b   :  { %1192 = vmatprep.mubr.bf16.mxu1 %v984_v28 }
 0x322   :  { %1193 = vmatmul.mubr.bf16.gmra.mrb[88].mxu1 %v983_v11 }
 0x323   :  { %1202 = vmatprep.mubr.bf16.mxu1 %v986_v2 }
 0x32a   :  { %1203 = vmatmul.mubr.bf16.gmra.mrb[92].mxu1 %v985_v26 }
 0x385   :  { %v6667_v17 = vpop.f32.mrb[32].mxu1 }
 0x386   :  { %v6669_v1 = vpop.f32.mrb[33].mxu1  ;;  %v1299_v57 = vmul.f32 %v6667_v17, %v6667_v17 }
 0x387   :  { %v6671_v62 = vpop.f32.mrb[34].mxu1  ;;  %v1300_v48 = vmul.f32 %v6669_v1, %v6669_v1 }
 0x388   :  { %v1215_v43 = vadd.f32 %v6671_v62, %v6667_v17  ;;  %v1303_v4 = vmul.f32 %v6671_v62, %v6671_v62  ;;  %v6679_v20 = vpop.f32.mrb[35].mxu1 }
 0x389   :  { %v1236_v46 = vadd.f32 %v6679_v20, %v6669_v1  ;;  %v1304_v7 = vmul.f32 %v6679_v20, %v6679_v20 }
 0x38a   :  { %v1363_v8 = vadd.f32 %v1303_v4, %v1299_v57 }
 0x38b   :  { %v1384_v6 = vadd.f32 %v1304_v7, %v1300_v48 }
 0x38d   :  { %v6687_v16 = vpop.f32.mrb[36].mxu1 }
 0x38e   :  { %v1216_v5 = vadd.f32 %v1215_v43, %v6687_v16  ;;  %v1307_v63 = vmul.f32 %v6687_v16, %v6687_v16  ;;  %v6692_v31 = vpop.f32.mrb[37].mxu1 }
 0x38f   :  { %v1237_v14 = vadd.f32 %v1236_v46, %v6692_v31  ;;  %v1308_v40 = vmul.f32 %v6692_v31, %v6692_v31  ;;  %v6697_v37 = vpop.f32.mrb[38].mxu1 }
 0x390   :  { %v1364_v52 = vadd.f32 %v1363_v8, %v1307_v63  ;;  %v1217_v42 = vadd.f32 %v1216_v5, %v6697_v37  ;;  %v1311_v3 = vmul.f32 %v6697_v37, %v6697_v37  ;;  %v6702_v10 = vpop.f32.mrb[39].mxu1 }
 0x391   :  { %v1385_v25 = vadd.f32 %v1384_v6, %v1308_v40  ;;  %v1238_v27 = vadd.f32 %v1237_v14, %v6702_v10  ;;  %v1312_v45 = vmul.f32 %v6702_v10, %v6702_v10 }
 0x392   :  { %v1365_v51 = vadd.f32 %v1364_v52, %v1311_v3 }
 0x393   :  { %v1386_v33 = vadd.f32 %v1385_v25, %v1312_v45 }
 0x395   :  { %v6707_v54 = vpop.f32.mrb[40].mxu1 }
 0x396   :  { %v1218_v29 = vadd.f32 %v1217_v42, %v6707_v54  ;;  %v1315_v12 = vmul.f32 %v6707_v54, %v6707_v54  ;;  %v6712_v49 = vpop.f32.mrb[41].mxu1 }
 0x397   :  { %v1239_v19 = vadd.f32 %v1238_v27, %v6712_v49  ;;  %v1316_v60 = vmul.f32 %v6712_v49, %v6712_v49  ;;  %v6717_v28 = vpop.f32.mrb[42].mxu1 }
 0x398   :  { %v1366_v18 = vadd.f32 %v1365_v51, %v1315_v12  ;;  %v1219_v35 = vadd.f32 %v1218_v29, %v6717_v28  ;;  %v1319_v30 = vmul.f32 %v6717_v28, %v6717_v28  ;;  %v6722_v13 = vpop.f32.mrb[43].mxu1 }
 0x399   :  { %v1387_v61 = vadd.f32 %v1386_v33, %v1316_v60  ;;  %v1240_v59 = vadd.f32 %v1239_v19, %v6722_v13  ;;  %v1320_v22 = vmul.f32 %v6722_v13, %v6722_v13 }
 0x39a   :  { %v1367_v32 = vadd.f32 %v1366_v18, %v1319_v30 }
 0x39b   :  { %v1388_v11 = vadd.f32 %v1387_v61, %v1320_v22 }
 0x39d   :  { %v6727_v56 = vpop.f32.mrb[44].mxu1 }
 0x39e   :  { %v1220_v9 = vadd.f32 %v1219_v35, %v6727_v56  ;;  %v1323_v21 = vmul.f32 %v6727_v56, %v6727_v56  ;;  %v6732_v47 = vpop.f32.mrb[45].mxu1 }
 0x39f   :  { %v1241_v2 = vadd.f32 %v1240_v59, %v6732_v47  ;;  %v1324_v36 = vmul.f32 %v6732_v47, %v6732_v47  ;;  %v6737_v41 = vpop.f32.mrb[46].mxu1 }
 0x3a0   :  { %v1368_v34 = vadd.f32 %v1367_v32, %v1323_v21  ;;  %v1221_v15 = vadd.f32 %v1220_v9, %v6737_v41  ;;  %v1327_v39 = vmul.f32 %v6737_v41, %v6737_v41  ;;  %v6742_v24 = vpop.f32.mrb[47].mxu1 }
 0x3a1   :  { %v1389_v38 = vadd.f32 %v1388_v11, %v1324_v36  ;;  %v1242_v50 = vadd.f32 %v1241_v2, %v6742_v24  ;;  %v1328_v23 = vmul.f32 %v6742_v24, %v6742_v24 }
 0x3a2   :  { %v1369_v58 = vadd.f32 %v1368_v34, %v1327_v39 }
 0x3a3   :  { %v1390_v26 = vadd.f32 %v1389_v38, %v1328_v23 }
 0x3a5   :  { %v6747_v44 = vpop.f32.mrb[48].mxu1 }
 0x3a6   :  { %v1222_v0 = vadd.f32 %v1221_v15, %v6747_v44  ;;  %v1331_v53 = vmul.f32 %v6747_v44, %v6747_v44  ;;  %v6752_v55 = vpop.f32.mrb[49].mxu1 }
 0x3a7   :  { %v1243_v57 = vadd.f32 %v1242_v50, %v6752_v55  ;;  %v1332_v43 = vmul.f32 %v6752_v55, %v6752_v55  ;;  %v6757_v4 = vpop.f32.mrb[50].mxu1 }
 0x3a8   :  { %v1370_v48 = vadd.f32 %v1369_v58, %v1331_v53  ;;  %v1223_v46 = vadd.f32 %v1222_v0, %v6757_v4  ;;  %v1335_v7 = vmul.f32 %v6757_v4, %v6757_v4  ;;  %v6762_v8 = vpop.f32.mrb[51].mxu1 }
 0x3a9   :  { %v1391_v6 = vadd.f32 %v1390_v26, %v1332_v43  ;;  %v1244_v5 = vadd.f32 %v1243_v57, %v6762_v8  ;;  %v1336_v63 = vmul.f32 %v6762_v8, %v6762_v8 }
 0x3aa   :  { %v1371_v14 = vadd.f32 %v1370_v48, %v1335_v7 }
 0x3ab   :  { %v1392_v40 = vadd.f32 %v1391_v6, %v1336_v63 }
 0x3ad   :  { %v6767_v52 = vpop.f32.mrb[52].mxu1 }
 0x3ae   :  { %v1224_v42 = vadd.f32 %v1223_v46, %v6767_v52  ;;  %v1339_v3 = vmul.f32 %v6767_v52, %v6767_v52  ;;  %v6772_v25 = vpop.f32.mrb[53].mxu1 }
 0x3af   :  { %v1245_v27 = vadd.f32 %v1244_v5, %v6772_v25  ;;  %v1340_v45 = vmul.f32 %v6772_v25, %v6772_v25  ;;  %v6777_v51 = vpop.f32.mrb[54].mxu1 }
 0x3b0   :  { %v1372_v33 = vadd.f32 %v1371_v14, %v1339_v3  ;;  %v1225_v29 = vadd.f32 %v1224_v42, %v6777_v51  ;;  %v1343_v12 = vmul.f32 %v6777_v51, %v6777_v51  ;;  %v6782_v19 = vpop.f32.mrb[55].mxu1 }
 0x3b1   :  { %v1393_v60 = vadd.f32 %v1392_v40, %v1340_v45  ;;  %v1246_v18 = vadd.f32 %v1245_v27, %v6782_v19  ;;  %v1344_v35 = vmul.f32 %v6782_v19, %v6782_v19 }
 0x3b2   :  { %v1373_v30 = vadd.f32 %v1372_v33, %v1343_v12 }
 0x3b3   :  { %v1394_v61 = vadd.f32 %v1393_v60, %v1344_v35 }
 0x3b5   :  { %v6787_v59 = vpop.f32.mrb[56].mxu1 }
 0x3b6   :  { %v1226_v22 = vadd.f32 %v1225_v29, %v6787_v59  ;;  %v1347_v32 = vmul.f32 %v6787_v59, %v6787_v59  ;;  %v6792_v11 = vpop.f32.mrb[57].mxu1 }
 0x3b7   :  { %v1247_v9 = vadd.f32 %v1246_v18, %v6792_v11  ;;  %v1348_v21 = vmul.f32 %v6792_v11, %v6792_v11  ;;  %v6797_v2 = vpop.f32.mrb[58].mxu1 }
 0x3b8   :  { %v1374_v36 = vadd.f32 %v1373_v30, %v1347_v32  ;;  %v1227_v34 = vadd.f32 %v1226_v22, %v6797_v2  ;;  %v1351_v15 = vmul.f32 %v6797_v2, %v6797_v2  ;;  %v6802_v39 = vpop.f32.mrb[59].mxu1 }
 0x3b9   :  { %v1395_v38 = vadd.f32 %v1394_v61, %v1348_v21  ;;  %v1248_v50 = vadd.f32 %v1247_v9, %v6802_v39  ;;  %v1352_v23 = vmul.f32 %v6802_v39, %v6802_v39 }
 0x3ba   :  { %v1375_v58 = vadd.f32 %v1374_v36, %v1351_v15 }
 0x3bb   :  { %v1396_v26 = vadd.f32 %v1395_v38, %v1352_v23 }
 0x3bd   :  { %v6807_v0 = vpop.f32.mrb[60].mxu1 }
 0x3be   :  { %v1228_v53 = vadd.f32 %v1227_v34, %v6807_v0  ;;  %v1355_v57 = vmul.f32 %v6807_v0, %v6807_v0  ;;  %v6812_v43 = vpop.f32.mrb[61].mxu1 }
 0x3bf   :  { %v1249_v48 = vadd.f32 %v1248_v50, %v6812_v43  ;;  %v1356_v46 = vmul.f32 %v6812_v43, %v6812_v43  ;;  %v6817_v7 = vpop.f32.mrb[62].mxu1 }
 0x3c0   :  { %v1376_v6 = vadd.f32 %v1375_v58, %v1355_v57  ;;  %v1229_v5 = vadd.f32 %v1228_v53, %v6817_v7  ;;  %v1359_v63 = vmul.f32 %v6817_v7, %v6817_v7  ;;  %v6822_v14 = vpop.f32.mrb[63].mxu1 }
 0x3c1   :  { %v1397_v40 = vadd.f32 %v1396_v26, %v1356_v46  ;;  %v1250_v42 = vadd.f32 %v1249_v48, %v6822_v14  ;;  %v1360_v3 = vmul.f32 %v6822_v14, %v6822_v14 }
 0x3c2   :  { %v1230_v27 = vrot.slane %v1229_v5, 4  ;;  %v1377_v45 = vadd.f32 %v1376_v6, %v1359_v63 }
 0x3c3   :  { %v1251_v33 = vrot.slane %v1250_v42, 4  ;;  %v1398_v29 = vadd.f32 %v1397_v40, %v1360_v3 }
 0x3c4   :  { %v1231_v12 = vadd.f32 %v1230_v27, %v1229_v5  ;;  %v1378_v60 = vrot.slane %v1377_v45, 4 }
 0x3c5   :  { %v1252_v18 = vadd.f32 %v1251_v33, %v1250_v42  ;;  %v1399_v35 = vrot.slane %v1398_v29, 4  ;;  %v6827_v30 = vpop.f32.mrb[64].mxu1 }
 0x3c6   :  { %12101 = vst [vmem:[#allocation24_spill] sm:$0xff] %v6827_v30  ;;  %v1232_v61 = vrot.slane %v1231_v12, 2  ;;  %v1379_v22 = vadd.f32 %v1378_v60, %v1377_v45  ;;  %v6829_v32 = vpop.f32.mrb[65].mxu1  ;;  %v1301_v36 = vmul.f32 %v6827_v30, %v6827_v30 }
 0x3c7   :  { %12102 = vst [vmem:[#allocation27_spill] sm:$0xff] %v6829_v32  ;;  %v1253_v9 = vrot.slane %v1252_v18, 2  ;;  %v1400_v21 = vadd.f32 %v1399_v35, %v1398_v29  ;;  %v1302_v34 = vmul.f32 %v6829_v32, %v6829_v32  ;;  %v6835_v15 = vpop.f32.mrb[66].mxu1 }
 0x3c8   :  { %12103 = vst [vmem:[#allocation30_spill] sm:$0xff] %v6835_v15  ;;  %v1233_v38 = vadd.f32 %v1232_v61, %v1231_v12  ;;  %v1380_v50 = vrot.slane %v1379_v22, 2  ;;  %v1257_v23 = vadd.f32 %v6835_v15, %v6827_v30  ;;  %v1305_v58 = vmul.f32 %v6835_v15, %v6835_v15  ;;  %v6841_v26 = vpop.f32.mrb[67].mxu1 }
 0x3c9   :  { %12104 = vst [vmem:[#allocation31_spill] sm:$0xff] %v6841_v26  ;;  %v1254_v53 = vadd.f32 %v1253_v9, %v1252_v18  ;;  %v1401_v57 = vrot.slane %v1400_v21, 2  ;;  %v1278_v48 = vadd.f32 %v6841_v26, %v6829_v32  ;;  %v1306_v46 = vmul.f32 %v6841_v26, %v6841_v26 }
 0x3ca   :  { %v1234_v6 = vrot.slane %v1233_v38, 1  ;;  %v1381_v5 = vadd.f32 %v1380_v50, %v1379_v22  ;;  %v6847_v63 = vadd.f32 %v1305_v58, %v1301_v36 }
 0x3cb   :  { %v1255_v40 = vrot.slane %v1254_v53, 1  ;;  %v1402_v42 = vadd.f32 %v1401_v57, %v1400_v21  ;;  %v6849_v3 = vadd.f32 %v1306_v46, %v1302_v34 }
 0x3cc   :  { %v1235_v27 = vadd.f32 %v1234_v6, %v1233_v38  ;;  %v1382_v45 = vrot.slane %v1381_v5, 1 }
 0x3cd   :  { %v1256_v33 = vadd.f32 %v1255_v40, %v1254_v53  ;;  %v1403_v29 = vrot.slane %v1402_v42, 1  ;;  %v6851_v12 = vpop.f32.mrb[68].mxu1 }
 0x3ce   :  { %12105 = vst [vmem:[#allocation25_spill] sm:$0xff] %v6851_v12  ;;  %v1383_v60 = vadd.f32 %v1382_v45, %v1381_v5  ;;  %v6853_v18 = vmul.f32 0.0078125, %v1235_v27  ;;  %v1258_v35 = vadd.f32 %v1257_v23, %v6851_v12  ;;  %v1309_v61 = vmul.f32 %v6851_v12, %v6851_v12  ;;  %v6858_v22 = vpop.f32.mrb[69].mxu1  ;;  %v6945_v45 = vld [vmem:[%s11479_s3 + $0x13] sm:$0xf] }
 0x3cf   :  { %12106 = vst [vmem:[#allocation28_spill] sm:$0xff] %v6858_v22  ;;  %v1404_v9 = vadd.f32 %v1403_v29, %v1402_v42  ;;  %v6860_v21 = vmul.f32 0.0078125, %v1256_v33  ;;  %v1279_v36 = vadd.f32 %v1278_v48, %v6858_v22  ;;  %v1310_v34 = vmul.f32 %v6858_v22, %v6858_v22  ;;  %v6865_v38 = vpop.f32.mrb[70].mxu1  ;;  %12114 = vst [vmem:[#allocation37_spill] sm:$0xff] %v6945_v45  ;;  %v12115_v22 = vld [vmem:[#allocation22_spill] sm:$0xff] }
 0x3d0   :  { %12107 = vst [vmem:[#allocation26_spill] sm:$0xff] %v6865_v38  ;;  %v1451_v50 = vmul.f32 0.0078125, %v1383_v60  ;;  %v1455_v58 = vmul.f32 %v6853_v18, %v6853_v18  ;;  %v6873_v57 = vpop.f32.mrb[71].mxu1  ;;  %v1406_v46 = vadd.f32 %v6847_v63, %v1309_v61  ;;  %v1259_v53 = vadd.f32 %v1258_v35, %v6865_v38  ;;  %v12116_v61 = vld [vmem:[#allocation23_spill] sm:$0xff] }
 0x3d1   :  { %12108 = vst [vmem:[#allocation29_spill] sm:$0xff] %v6873_v57  ;;  %v1452_v33 = vmul.f32 0.0078125, %v1404_v9  ;;  %v1456_v29 = vmul.f32 %v6860_v21, %v6860_v21  ;;  %v1427_v48 = vadd.f32 %v6849_v3, %v1310_v34  ;;  %v1313_v23 = vmul.f32 %v6865_v38, %v6865_v38 }
 0x3d2   :  { %v1459_v40 = vsub.f32 %v1451_v50, %v1455_v58  ;;  %v1280_v9 = vadd.f32 %v1279_v36, %v6873_v57  ;;  %v6969_v63 = vrot.slane %v6945_v45, %v12115_v22 }
 0x3d3   :  { %v1460_v58 = vsub.f32 %v1452_v33, %v1456_v29  ;;  %v1314_v33 = vmul.f32 %v6873_v57, %v6873_v57  ;;  %v1407_v34 = vadd.f32 %v1406_v46, %v1313_v23 }
 0x3d4   :  { %v1527_v42 = vadd.f32 0.8, %v1459_v40 }
 0x3d5   :  { %v6909_v5 = vpop.f32.mrb[72].mxu1  ;;  %v1528_v27 = vadd.f32 0.8, %v1460_v58  ;;  %v1428_v50 = vadd.f32 %v1427_v48, %v1314_v33 }
 0x3d6   :  { %12109 = vst [vmem:[#allocation32_spill] sm:$0xff] %v6909_v5  ;;  %5623 = vrsqrt.f32 %v1527_v42  ;;  %v6917_v40 = vpop.f32.mrb[73].mxu1  ;;  %v6940_v42 = vld [vmem:[%s11479_s3 + $0x5] sm:$0xf]  ;;  %v1317_v29 = vmul.f32 %v6909_v5, %v6909_v5  ;;  %v1260_v3 = vadd.f32 %v1259_v53, %v6909_v5 }
 0x3d7   :  { %12110 = vst [vmem:[#allocation33_spill] sm:$0xff] %v6917_v40  ;;  %v6925_v6 = vpop.f32.mrb[74].mxu1  ;;  %12113 = vst [vmem:[#allocation36_spill] sm:$0xff] %v6940_v42  ;;  %v1603_v58 = vrot.slane %v6940_v42, %v12115_v22  ;;  %v1318_v35 = vmul.f32 %v6917_v40, %v6917_v40  ;;  %v6976_v36 = vrot.slane %v6940_v42, %v12116_v61  ;;  %5625 = vrsqrt.f32 %v1528_v27 }
 0x3d8   :  { %12111 = vst [vmem:[#allocation34_spill] sm:$0xff] %v6925_v6  ;;  %v6935_v60 = vpop.f32.mrb[75].mxu1  ;;  %v1281_v57 = vadd.f32 %v1280_v9, %v6917_v40  ;;  %v6983_v22 = vrot.slane %v6945_v45, %v12116_v61  ;;  %v1261_v53 = vadd.f32 %v1260_v3, %v6925_v6  ;;  %v6988_v32 = vmul.f32 %v6925_v6, %v6925_v6 }
 0x3d9   :  { %12112 = vst [vmem:[#allocation35_spill] sm:$0xff] %v6935_v60  ;;  %v6992_v42 = vadd.f32 %v1407_v34, %v1317_v29  ;;  %v6994_v23 = vadd.f32 %v1428_v50, %v1318_v35  ;;  %v7001_v46 = vmul.f32 %v6935_v60, %v6935_v60  ;;  %v12122_v35 = vsub.f32 %v6667_v17, %v6853_v18 }
 0x3da   :  { %v6997_v48 = vadd.f32 %v1281_v57, %v6935_v60  ;;  %v12124_v45 = vsub.f32 %v6687_v16, %v6853_v18  ;;  %v12125_v40 = vsub.f32 %v6697_v37, %v6853_v18  ;;  %v12126_v6 = vsub.f32 %v6707_v54, %v6853_v18 }
 0x3db   :  { %v12127_v17 = vsub.f32 %v6717_v28, %v6853_v18  ;;  %v12129_v16 = vsub.f32 %v6737_v41, %v6853_v18  ;;  %v12130_v37 = vsub.f32 %v6747_v44, %v6853_v18  ;;  %v12131_v54 = vsub.f32 %v6757_v4, %v6853_v18 }
 0x3dc   :  { %v12132_v28 = vsub.f32 %v6767_v52, %v6853_v18  ;;  %v12134_v41 = vsub.f32 %v6787_v59, %v6853_v18  ;;  %v12135_v44 = vsub.f32 %v6797_v2, %v6853_v18  ;;  %v12136_v4 = vsub.f32 %v6807_v0, %v6853_v18 }
 0x3dd   :  { %v6979_v26 = vpop.f32.mrb[76].mxu1  ;;  %v12137_v52 = vsub.f32 %v6817_v7, %v6853_v18 }
 0x3de   :  { %12117 = vst [vmem:[#allocation38_spill] sm:$0xff] %v6979_v26  ;;  %v6990_v5 = vpop.f32.mrb[77].mxu1  ;;  %v7006_v33 = vadd.f32 %v1261_v53, %v6979_v26  ;;  %v7010_v3 = vmul.f32 %v6979_v26, %v6979_v26  ;;  %v12123_v53 = vsub.f32 %v6671_v62, %v6853_v18  ;;  %v12128_v62 = vsub.f32 %v6727_v56, %v6853_v18 }
 0x3df   :  { %v7003_v27 = vpop.f32.mrb[78].mxu1  ;;  %v7014_v50 = vmul.f32 %v6990_v5, %v6990_v5  ;;  %v12133_v56 = vsub.f32 %v6777_v51, %v6853_v18 }
 0x3e0   :  { %12118 = vst [vmem:[#allocation39_spill] sm:$0xff] %v7003_v27  ;;  %v5624_v9 = vpop.eup %5623  ;;  %12119 = vst [vmem:[#allocation40_spill] sm:$0xff] %v7006_v33  ;;  %v7018_v57 = vmul.f32 %v7003_v27, %v7003_v27  ;;  %v7020_v29 = vpop.f32.mrb[79].mxu1 }
 0x3e1   :  { %12121 = vst [vmem:[#allocation42_spill] sm:$0xff] %v7020_v29  ;;  %v1535_v34 = vmul.f32 %v5624_v9, %v12122_v35  ;;  %v1539_v61 = vmul.f32 %v5624_v9, %v12123_v53  ;;  %v1543_v60 = vmul.f32 %v5624_v9, %v12124_v45  ;;  %v1547_v26 = vmul.f32 %v5624_v9, %v12125_v40  ;;  %v7076_v7 = vpop.eup %5625 }
 0x3e2   :  { %12120 = vst [vmem:[#allocation41_spill] sm:$0xff] %v7018_v57  ;;  %v1551_v38 = vmul.f32 %v5624_v9, %v12126_v6  ;;  %v1555_v35 = vmul.f32 %v5624_v9, %v12127_v17  ;;  %v1559_v53 = vmul.f32 %v5624_v9, %v12128_v62  ;;  %v1563_v45 = vmul.f32 %v5624_v9, %v12129_v16 }
 0x3e3   :  { %v1567_v40 = vmul.f32 %v5624_v9, %v12130_v37  ;;  %v1571_v6 = vmul.f32 %v5624_v9, %v12131_v54  ;;  %v1575_v17 = vmul.f32 %v5624_v9, %v12132_v28  ;;  %v1579_v62 = vmul.f32 %v5624_v9, %v12133_v56 }
 0x3e4   :  { %v1583_v16 = vmul.f32 %v5624_v9, %v12134_v41  ;;  %v1587_v37 = vmul.f32 %v5624_v9, %v12135_v44  ;;  %v1591_v54 = vmul.f32 %v5624_v9, %v12136_v4  ;;  %v1595_v28 = vmul.f32 %v5624_v9, %v12137_v52 }
 0x3e5   :  { %v1620_v12 = vmul.f32 %v1603_v58, %v1535_v34  ;;  %v1624_v15 = vmul.f32 %v1603_v58, %v1539_v61  ;;  %v1628_v51 = vmul.f32 %v1603_v58, %v1543_v60  ;;  %v1632_v56 = vmul.f32 %v1603_v58, %v1547_v26  ;;  %v7070_v30 = vpop.f32.mrb[80].mxu1 }
 0x3e6   :  { %v1636_v59 = vmul.f32 %v1603_v58, %v1551_v38  ;;  %v1640_v41 = vmul.f32 %v1603_v58, %v1555_v35  ;;  %v1644_v57 = vmul.f32 %v1603_v58, %v1559_v53  ;;  %v1648_v29 = vmul.f32 %v1603_v58, %v1563_v45  ;;  %v7072_v2 = vpop.f32.mrb[81].mxu1 }
 0x3e7   :  { %v1652_v44 = vmul.f32 %v1603_v58, %v1567_v40  ;;  %v1656_v33 = vmul.f32 %v1603_v58, %v1571_v6  ;;  %v1660_v0 = vmul.f32 %v1603_v58, %v1575_v17  ;;  %v1664_v4 = vmul.f32 %v1603_v58, %v1579_v62  ;;  %v7074_v27 = vpop.f32.mrb[82].mxu1 }
 0x3e8   :  { %12138 = vst [vmem:[#allocation43_spill] sm:$0xff] %v7074_v27  ;;  %v1668_v18 = vmul.f32 %v1603_v58, %v1583_v16  ;;  %v1672_v61 = vmul.f32 %v1603_v58, %v1587_v37  ;;  %v1676_v60 = vmul.f32 %v1603_v58, %v1591_v54  ;;  %v1680_v26 = vmul.f32 %v1603_v58, %v1595_v28  ;;  %v7078_v9 = vpop.f32.mrb[83].mxu1 }
 0x3e9   :  { %12139 = vst [vmem:[#allocation44_spill] sm:$0xff] %v7078_v9  ;;  %v7081_v38 = vadd.f32 %v6969_v63, %v1620_v12  ;;  %v7084_v34 = vadd.f32 %v6969_v63, %v1624_v15  ;;  %v7087_v35 = vadd.f32 %v6969_v63, %v1628_v51  ;;  %v7090_v53 = vadd.f32 %v6969_v63, %v1632_v56 }
 0x3ea   :  { %v7093_v45 = vadd.f32 %v6969_v63, %v1636_v59  ;;  %v7096_v40 = vadd.f32 %v6969_v63, %v1640_v41  ;;  %v7099_v58 = vadd.f32 %v6969_v63, %v1644_v57  ;;  %v7102_v12 = vadd.f32 %v6969_v63, %v1648_v29 }
 0x3eb   :  { %12140 = vst [vmem:[#allocation45_spill] sm:$0xff] %v7081_v38  ;;  %12141 = vst [vmem:[#allocation46_spill] sm:$0xff] %v7084_v34  ;;  %v7105_v15 = vadd.f32 %v6969_v63, %v1652_v44  ;;  %v7108_v6 = vadd.f32 %v6969_v63, %v1656_v33  ;;  %v7111_v17 = vadd.f32 %v6969_v63, %v1660_v0  ;;  %v7129_v33 = vmul.f32 0.2, %v7081_v38 }
 0x3ec   :  { %12142 = vst [vmem:[#allocation47_spill] sm:$0xff] %v7087_v35  ;;  %12143 = vst [vmem:[#allocation48_spill] sm:$0xff] %v7090_v53  ;;  %v7114_v62 = vadd.f32 %v6969_v63, %v1664_v4  ;;  %v7117_v16 = vadd.f32 %v6969_v63, %v1668_v18  ;;  %v7120_v57 = vadd.f32 %v6969_v63, %v1672_v61  ;;  %v7132_v54 = vmul.f32 0.2, %v7084_v34 }
 0x3ed   :  { %12144 = vst [vmem:[#allocation49_spill] sm:$0xff] %v7093_v45  ;;  %12145 = vst [vmem:[#allocation50_spill] sm:$0xff] %v7096_v40  ;;  %v7123_v29 = vadd.f32 %v6969_v63, %v1676_v60  ;;  %v7126_v37 = vadd.f32 %v6969_v63, %v1680_v26  ;;  %v7135_v52 = vmul.f32 0.2, %v7087_v35  ;;  %v12159_v28 = vsub.f32 %v6669_v1, %v6860_v21  ;;  %v7196_v34 = vpop.f32.mrb[84].mxu1 }
 0x3ee   :  { %12146 = vst [vmem:[#allocation51_spill] sm:$0xff] %v7099_v58  ;;  %12147 = vst [vmem:[#allocation52_spill] sm:$0xff] %v7102_v12  ;;  %v7142_v56 = vmul.f32 0.2, %v7090_v53  ;;  %v7145_v63 = vmul.f32 0.2, %v7093_v45  ;;  %v12163_v41 = vsub.f32 %v6679_v20, %v6860_v21  ;;  %v12174_v26 = vsub.f32 %v6692_v31, %v6860_v21 }
 0x3ef   :  { %12148 = vst [vmem:[#allocation53_spill] sm:$0xff] %v7105_v15  ;;  %12149 = vst [vmem:[#allocation54_spill] sm:$0xff] %v7108_v6  ;;  %v1536_v51 = vmul.f32 %v7076_v7, %v12159_v28  ;;  %v7148_v59 = vmul.f32 0.2, %v7096_v40  ;;  %v7155_v0 = vmul.f32 0.2, %v7099_v58  ;;  %v12177_v9 = vsub.f32 %v6722_v13, %v6860_v21 }
 0x3f0   :  { %12150 = vst [vmem:[#allocation55_spill] sm:$0xff] %v7111_v17  ;;  %12151 = vst [vmem:[#allocation56_spill] sm:$0xff] %v7114_v62  ;;  %v1540_v44 = vmul.f32 %v7076_v7, %v12163_v41  ;;  %v7158_v1 = vmul.f32 0.2, %v7102_v12  ;;  %v7161_v4 = vmul.f32 0.2, %v7105_v15  ;;  %v12178_v31 = vsub.f32 %v6732_v47, %v6860_v21 }
 0x3f1   :  { %12152 = vst [vmem:[#allocation57_spill] sm:$0xff] %v7117_v16  ;;  %12153 = vst [vmem:[#allocation58_spill] sm:$0xff] %v7120_v57  ;;  %v7166_v61 = vmul.f32 0.2, %v7108_v6  ;;  %v7169_v60 = vmul.f32 0.2, %v7111_v17  ;;  %v12181_v13 = vsub.f32 %v6762_v8, %v6860_v21  ;;  %v12182_v47 = vsub.f32 %v6772_v25, %v6860_v21 }
 0x3f2   :  { %12154 = vst [vmem:[#allocation59_spill] sm:$0xff] %v7123_v29  ;;  %12155 = vst [vmem:[#allocation60_spill] sm:$0xff] %v7126_v37  ;;  %v7172_v20 = vmul.f32 0.2, %v7114_v62  ;;  %v7177_v28 = vmul.f32 0.2, %v7117_v16  ;;  %v12185_v8 = vsub.f32 %v6802_v39, %v6860_v21  ;;  %v12186_v25 = vsub.f32 %v6812_v43, %v6860_v21 }
 0x3f3   :  { %12156 = vst [vmem:[#allocation61_spill] sm:$0xff] %v7129_v33  ;;  %12157 = vst [vmem:[#allocation62_spill] sm:$0xff] %v7132_v54  ;;  %v7180_v41 = vmul.f32 0.2, %v7120_v57  ;;  %v7183_v18 = vmul.f32 0.2, %v7123_v29  ;;  %v12175_v54 = vsub.f32 %v6702_v10, %v6860_v21  ;;  %v12176_v33 = vsub.f32 %v6712_v49, %v6860_v21 }
 0x3f4   :  { %12158 = vst [vmem:[#allocation63_spill] sm:$0xff] %v7135_v52  ;;  %12160 = vst [vmem:[#allocation64_spill] sm:$0xff] %v7142_v56  ;;  %v7188_v38 = vmul.f32 0.2, %v7126_v37  ;;  %v7206_v56 = vpop.f32.mrb[85].mxu1  ;;  %v12179_v10 = vsub.f32 %v6742_v24, %v6860_v21  ;;  %v12180_v49 = vsub.f32 %v6752_v55, %v6860_v21  ;;  %v12183_v24 = vsub.f32 %v6782_v19, %v6860_v21  ;;  %v12217_v12 = vld [vmem:[#allocation42_spill] sm:$0xff] }
 0x3f5   :  { %12161 = vst [vmem:[#allocation65_spill] sm:$0xff] %v7145_v63  ;;  %12162 = vst [vmem:[#allocation66_spill] sm:$0xff] %v7148_v59  ;;  %v1548_v27 = vmul.f32 %v7076_v7, %v12175_v54  ;;  %v1552_v52 = vmul.f32 %v7076_v7, %v12176_v33  ;;  %v12184_v55 = vsub.f32 %v6792_v11, %v6860_v21  ;;  %v12218_v58 = vld [vmem:[#allocation41_spill] sm:$0xff] }
 0x3f6   :  { %12164 = vst [vmem:[#allocation67_spill] sm:$0xff] %v7155_v0  ;;  %12165 = vst [vmem:[#allocation68_spill] sm:$0xff] %v7158_v1  ;;  %v7216_v1 = vpop.f32.mrb[86].mxu1  ;;  %v1564_v54 = vmul.f32 %v7076_v7, %v12179_v10  ;;  %v1568_v33 = vmul.f32 %v7076_v7, %v12180_v49  ;;  %v1580_v10 = vmul.f32 %v7076_v7, %v12183_v24 }
 0x3f7   :  { %12166 = vst [vmem:[#allocation69_spill] sm:$0xff] %v7161_v4  ;;  %12167 = vst [vmem:[#allocation70_spill] sm:$0xff] %v7166_v61  ;;  %v1584_v49 = vmul.f32 %v7076_v7, %v12184_v55  ;;  %v12187_v19 = vsub.f32 %v6822_v14, %v6860_v21  ;;  %v1621_v11 = vmul.f32 %v6976_v36, %v1536_v51 }
 0x3f8   :  { %12168 = vst [vmem:[#allocation71_spill] sm:$0xff] %v7169_v60  ;;  %12169 = vst [vmem:[#allocation72_spill] sm:$0xff] %v7172_v20  ;;  %v1544_v60 = vmul.f32 %v7076_v7, %v12174_v26  ;;  %v1560_v26 = vmul.f32 %v7076_v7, %v12178_v31  ;;  %v1576_v31 = vmul.f32 %v7076_v7, %v12182_v47 }
 0x3f9   :  { %12170 = vst [vmem:[#allocation73_spill] sm:$0xff] %v7177_v28  ;;  %12171 = vst [vmem:[#allocation74_spill] sm:$0xff] %v7180_v41  ;;  %v7230_v28 = vpop.f32.mrb[87].mxu1  ;;  %v1592_v47 = vmul.f32 %v7076_v7, %v12186_v25  ;;  %v1596_v24 = vmul.f32 %v7076_v7, %v12187_v19  ;;  %v1625_v55 = vmul.f32 %v6976_v36, %v1540_v44 }
 0x3fa   :  { %12172 = vst [vmem:[#allocation75_spill] sm:$0xff] %v7183_v18  ;;  %12173 = vst [vmem:[#allocation76_spill] sm:$0xff] %v7188_v38  ;;  %v1556_v38 = vmul.f32 %v7076_v7, %v12177_v9  ;;  %v7248_v37 = vpop.f32.mrb[88].mxu1  ;;  %v1572_v9 = vmul.f32 %v7076_v7, %v12181_v13  ;;  %v1588_v13 = vmul.f32 %v7076_v7, %v12185_v8 }
 0x3fb   :  { %v7266_v18 = vpop.f32.mrb[89].mxu1  ;;  %v1629_v39 = vmul.f32 %v6976_v36, %v1544_v60  ;;  %v1633_v8 = vmul.f32 %v6976_v36, %v1548_v27  ;;  %v1637_v43 = vmul.f32 %v6976_v36, %v1552_v52  ;;  %v1645_v14 = vmul.f32 %v6976_v36, %v1560_v26 }
 0x3fc   :  { %v7284_v29 = vpop.f32.mrb[90].mxu1  ;;  %v1641_v25 = vmul.f32 %v6976_v36, %v1556_v38  ;;  %v1649_v21 = vmul.f32 %v6976_v36, %v1564_v54  ;;  %v1653_v7 = vmul.f32 %v6976_v36, %v1568_v33  ;;  %v1657_v51 = vmul.f32 %v6976_v36, %v1572_v9 }
 0x3fd   :  { %v7290_v41 = vpop.f32.mrb[91].mxu1  ;;  %v1661_v44 = vmul.f32 %v6976_v36, %v1576_v31  ;;  %v1665_v60 = vmul.f32 %v6976_v36, %v1580_v10  ;;  %v1669_v27 = vmul.f32 %v6976_v36, %v1584_v49  ;;  %v1673_v19 = vmul.f32 %v6976_v36, %v1588_v13 }
 0x3fe   :  { %v1677_v52 = vmul.f32 %v6976_v36, %v1592_v47  ;;  %v1681_v38 = vmul.f32 %v6976_v36, %v1596_v24  ;;  %v7305_v26 = vadd.f32 %v6983_v22, %v1621_v11  ;;  %v7308_v54 = vadd.f32 %v6983_v22, %v1625_v55  ;;  %v7316_v31 = vpop.f32.mrb[92].mxu1 }
 0x3ff   :  { %v7311_v33 = vadd.f32 %v6983_v22, %v1629_v39  ;;  %v7314_v9 = vadd.f32 %v6983_v22, %v1633_v8  ;;  %v7319_v10 = vadd.f32 %v6983_v22, %v1637_v43  ;;  %v7322_v49 = vadd.f32 %v6983_v22, %v1641_v25  ;;  %v7330_v47 = vpop.f32.mrb[93].mxu1 }
 0x400   :  { %v7325_v36 = vadd.f32 %v6983_v22, %v1645_v14  ;;  %v7328_v13 = vadd.f32 %v6983_v22, %v1649_v21  ;;  %v7333_v24 = vadd.f32 %v6983_v22, %v1653_v7  ;;  %v7336_v11 = vadd.f32 %v6983_v22, %v1657_v51  ;;  %v7344_v8 = vpop.f32.mrb[94].mxu1 }
 0x401   :  { %12188 = vst [vmem:[#allocation77_spill] sm:$0xff] %v7314_v9  ;;  %12189 = vst [vmem:[#allocation78_spill] sm:$0xff] %v7319_v10  ;;  %v7339_v55 = vadd.f32 %v6983_v22, %v1661_v44  ;;  %v7342_v39 = vadd.f32 %v6983_v22, %v1665_v60  ;;  %v7347_v43 = vadd.f32 %v6983_v22, %v1669_v27  ;;  %v7358_v7 = vpop.f32.mrb[95].mxu1  ;;  %v7361_v51 = vmul.f32 0.2, %v7305_v26 }
 0x402   :  { %12190 = vst [vmem:[#allocation79_spill] sm:$0xff] %v7322_v49  ;;  %12191 = vst [vmem:[#allocation80_spill] sm:$0xff] %v7325_v36  ;;  %v7350_v25 = vadd.f32 %v6983_v22, %v1673_v19  ;;  %v7353_v14 = vadd.f32 %v6983_v22, %v1677_v52  ;;  %v7356_v21 = vadd.f32 %v6983_v22, %v1681_v38  ;;  %v7364_v44 = vmul.f32 0.2, %v7308_v54 }
 0x403   :  { %12192 = vst [vmem:[#allocation81_spill] sm:$0xff] %v7328_v13  ;;  %12193 = vst [vmem:[#allocation82_spill] sm:$0xff] %v7333_v24  ;;  %v7367_v60 = vmul.f32 0.2, %v7311_v33  ;;  %v1409_v27 = vadd.f32 %v6992_v42, %v6988_v32  ;;  %v7372_v19 = vmul.f32 0.2, %v7314_v9  ;;  %v1430_v38 = vadd.f32 %v6994_v23, %v7001_v46 }
 0x404   :  { %12194 = vst [vmem:[#allocation83_spill] sm:$0xff] %v7336_v11  ;;  %12195 = vst [vmem:[#allocation84_spill] sm:$0xff] %v7339_v55  ;;  %v7375_v22 = vmul.f32 0.2, %v7319_v10  ;;  %v7378_v52 = vmul.f32 0.2, %v7322_v49  ;;  %v1283_v15 = vadd.f32 %v6997_v48, %v6990_v5  ;;  %v1333_v0 = vmul.f32 %v7070_v30, %v7070_v30 }
 0x405   :  { %12196 = vst [vmem:[#allocation85_spill] sm:$0xff] %v7342_v39  ;;  %12197 = vst [vmem:[#allocation86_spill] sm:$0xff] %v7347_v43  ;;  %v7383_v57 = vmul.f32 0.2, %v7325_v36  ;;  %v7386_v16 = vmul.f32 0.2, %v7328_v13  ;;  %v1410_v59 = vadd.f32 %v1409_v27, %v7010_v3  ;;  %v1334_v3 = vmul.f32 %v7072_v2, %v7072_v2 }
 0x406   :  { %12198 = vst [vmem:[#allocation87_spill] sm:$0xff] %v7350_v25  ;;  %12199 = vst [vmem:[#allocation88_spill] sm:$0xff] %v7353_v14  ;;  %v7389_v32 = vmul.f32 0.2, %v7333_v24  ;;  %v7394_v20 = vmul.f32 0.2, %v7336_v11  ;;  %v1284_v6 = vadd.f32 %v1283_v15, %v12217_v12 }
 0x407   :  { %12200 = vst [vmem:[#allocation89_spill] sm:$0xff] %v7356_v21  ;;  %12201 = vst [vmem:[#allocation90_spill] sm:$0xff] %v7367_v60  ;;  %v7397_v62 = vmul.f32 0.2, %v7339_v55  ;;  %v7400_v23 = vmul.f32 0.2, %v7342_v39 }
 0x408   :  { %12202 = vst [vmem:[#allocation91_spill] sm:$0xff] %v7372_v19  ;;  %12203 = vst [vmem:[#allocation92_spill] sm:$0xff] %v7375_v22  ;;  %v7405_v17 = vmul.f32 0.2, %v7347_v43  ;;  %v7408_v61 = vmul.f32 0.2, %v7350_v25 }
 0x409   :  { %12204 = vst [vmem:[#allocation93_spill] sm:$0xff] %v7378_v52  ;;  %12205 = vst [vmem:[#allocation94_spill] sm:$0xff] %v7383_v57  ;;  %v7411_v42 = vmul.f32 0.2, %v7353_v14  ;;  %v7416_v4 = vmul.f32 0.2, %v7356_v21  ;;  %v1285_v14 = vadd.f32 %v1284_v6, %v7072_v2  ;;  %v1346_v6 = vmul.f32 %v7230_v28, %v7230_v28 }
 0x40a   :  { %12206 = vst [vmem:[#allocation95_spill] sm:$0xff] %v7386_v16  ;;  %12207 = vst [vmem:[#allocation96_spill] sm:$0xff] %v7389_v32  ;;  %v12215_v46 = vld [vmem:[#allocation39_spill] sm:$0xff] }
 0x40b   :  { %12208 = vst [vmem:[#allocation97_spill] sm:$0xff] %v7394_v20  ;;  %12209 = vst [vmem:[#allocation98_spill] sm:$0xff] %v7397_v62  ;;  %v1431_v62 = vadd.f32 %v1430_v38, %v7014_v50  ;;  %v12219_v27 = vld [vmem:[#allocation43_spill] sm:$0xff] }
 0x40c   :  { %12210 = vst [vmem:[#allocation99_spill] sm:$0xff] %v7400_v23  ;;  %12211 = vst [vmem:[#allocation100_spill] sm:$0xff] %v7405_v17  ;;  %v12216_v23 = vld [vmem:[#allocation40_spill] sm:$0xff]  ;;  %v1330_v17 = vmul.f32 %v12217_v12, %v12217_v12  ;;  %v1337_v48 = vmul.f32 %v12219_v27, %v12219_v27 }
 0x40d   :  { %12212 = vst [vmem:[#allocation101_spill] sm:$0xff] %v7408_v61  ;;  %12213 = vst [vmem:[#allocation102_spill] sm:$0xff] %v7411_v42  ;;  %v1263_v39 = vadd.f32 %v12216_v23, %v12215_v46  ;;  %v1411_v42 = vadd.f32 %v1410_v59, %v12218_v58  ;;  %v12220_v23 = vld [vmem:[#allocation44_spill] sm:$0xff]  ;;  %v1341_v58 = vmul.f32 %v7196_v34, %v7196_v34 }
 0x40e   :  { %12214 = vst [vmem:[#allocation103_spill] sm:$0xff] %v7416_v4  ;;  %v1432_v50 = vadd.f32 %v1431_v62, %v1330_v17  ;;  %v1338_v4 = vmul.f32 %v12220_v23, %v12220_v23  ;;  %v1342_v61 = vmul.f32 %v7206_v56, %v7206_v56  ;;  %v1286_v17 = vadd.f32 %v1285_v14, %v12220_v23 }
 0x40f   :  { %v1264_v38 = vadd.f32 %v1263_v39, %v7070_v30  ;;  %v1412_v21 = vadd.f32 %v1411_v42, %v1333_v0  ;;  %v1345_v62 = vmul.f32 %v7216_v1, %v7216_v1  ;;  %v1350_v14 = vmul.f32 %v7266_v18, %v7266_v18 }
 0x410   :  { %v1433_v59 = vadd.f32 %v1432_v50, %v1334_v3  ;;  %v1287_v3 = vadd.f32 %v1286_v17, %v7206_v56  ;;  %v1349_v50 = vmul.f32 %v7248_v37, %v7248_v37 }
 0x411   :  { %v1265_v15 = vadd.f32 %v1264_v38, %v12219_v27  ;;  %v1413_v25 = vadd.f32 %v1412_v21, %v1337_v48 }
 0x412   :  { %v1434_v39 = vadd.f32 %v1433_v59, %v1338_v4  ;;  %v1288_v4 = vadd.f32 %v1287_v3, %v7230_v28  ;;  %v1353_v59 = vmul.f32 %v7284_v29, %v7284_v29 }
 0x413   :  { %v1266_v0 = vadd.f32 %v1265_v15, %v7196_v34  ;;  %v1414_v42 = vadd.f32 %v1413_v25, %v1341_v58  ;;  %v1354_v58 = vmul.f32 %v7290_v41, %v7290_v41 }
 0x414   :  { %v1435_v38 = vadd.f32 %v1434_v39, %v1342_v61  ;;  %v1289_v61 = vadd.f32 %v1288_v4, %v7266_v18  ;;  %v1357_v39 = vmul.f32 %v7316_v31, %v7316_v31 }
 0x415   :  { %v1267_v21 = vadd.f32 %v1266_v0, %v7216_v1  ;;  %v1415_v48 = vadd.f32 %v1414_v42, %v1345_v62  ;;  %v1358_v42 = vmul.f32 %v7330_v47, %v7330_v47 }
 0x416   :  { %v1436_v15 = vadd.f32 %v1435_v38, %v1346_v6  ;;  %v1290_v6 = vadd.f32 %v1289_v61, %v7290_v41  ;;  %v1361_v38 = vmul.f32 %v7344_v8, %v7344_v8 }
 0x417   :  { %v1268_v25 = vadd.f32 %v1267_v21, %v7248_v37  ;;  %v1416_v17 = vadd.f32 %v1415_v48, %v1349_v50  ;;  %v1362_v48 = vmul.f32 %v7358_v7, %v7358_v7 }
 0x418   :  { %v1437_v0 = vadd.f32 %v1436_v15, %v1350_v14  ;;  %v1291_v14 = vadd.f32 %v1290_v6, %v7330_v47 }
 0x419   :  { %v1269_v62 = vadd.f32 %v1268_v25, %v7284_v29  ;;  %v1417_v3 = vadd.f32 %v1416_v17, %v1353_v59 }
 0x41a   :  { %v1438_v21 = vadd.f32 %v1437_v0, %v1354_v58  ;;  %v1292_v59 = vadd.f32 %v1291_v14, %v7358_v7 }
 0x41b   :  { %v1270_v50 = vadd.f32 %v1269_v62, %v7316_v31  ;;  %v1418_v4 = vadd.f32 %v1417_v3, %v1357_v39 }
 0x41c   :  { %v1439_v15 = vadd.f32 %v1438_v21, %v1358_v42  ;;  %v1293_v20 = vrot.slane %v1292_v59, 4 }
 0x41d   :  { %v1271_v25 = vadd.f32 %v1270_v50, %v7344_v8  ;;  %v1419_v43 = vadd.f32 %v1418_v4, %v1361_v38 }
 0x41e   :  { %v1440_v61 = vadd.f32 %v1439_v15, %v1362_v48  ;;  %v1294_v62 = vadd.f32 %v1293_v20, %v1292_v59 }
 0x41f   :  { %v1272_v17 = vrot.slane %v1271_v25, 4  ;;  %v1420_v55 = vrot.slane %v1419_v43, 4 }
 0x420   :  { %v1441_v58 = vrot.slane %v1440_v61, 4  ;;  %v1295_v39 = vrot.slane %v1294_v62, 2 }
 0x421   :  { %v1273_v11 = vadd.f32 %v1272_v17, %v1271_v25  ;;  %v1421_v0 = vadd.f32 %v1420_v55, %v1419_v43  ;;  %v12223_v17 = vld [vmem:[#allocation25_spill] sm:$0xff] }
 0x422   :  { %v1442_v24 = vadd.f32 %v1441_v58, %v1440_v61  ;;  %v1296_v21 = vadd.f32 %v1295_v39, %v1294_v62  ;;  %v12224_v58 = vld [vmem:[#allocation26_spill] sm:$0xff] }
 0x423   :  { %v1274_v32 = vrot.slane %v1273_v11, 2  ;;  %v1422_v16 = vrot.slane %v1421_v0, 2 }
 0x424   :  { %v1443_v6 = vrot.slane %v1442_v24, 2  ;;  %v1297_v14 = vrot.slane %v1296_v21, 1 }
 0x425   :  { %v1275_v3 = vadd.f32 %v1274_v32, %v1273_v11  ;;  %v1423_v42 = vadd.f32 %v1422_v16, %v1421_v0  ;;  %v12221_v16 = vld [vmem:[#allocation24_spill] sm:$0xff] }
 0x426   :  { %v1444_v38 = vadd.f32 %v1443_v6, %v1442_v24  ;;  %v1298_v57 = vadd.f32 %v1297_v14, %v1296_v21  ;;  %v12222_v24 = vld [vmem:[#allocation30_spill] sm:$0xff]  ;;  %v12225_v0 = vld [vmem:[#allocation32_spill] sm:$0xff] }
 0x427   :  { %v1276_v50 = vrot.slane %v1275_v3, 1  ;;  %v1424_v4 = vrot.slane %v1423_v42, 1 }
 0x428   :  { %v1445_v48 = vrot.slane %v1444_v38, 1  ;;  %v7504_v43 = vmul.f32 0.0078125, %v1298_v57  ;;  %v12226_v57 = vld [vmem:[#allocation34_spill] sm:$0xff] }
 0x429   :  { %v1277_v13 = vadd.f32 %v1276_v50, %v1275_v3  ;;  %v1425_v15 = vadd.f32 %v1424_v4, %v1423_v42  ;;  %v12227_v3 = vld [vmem:[#allocation38_spill] sm:$0xff] }
 0x42a   :  { %v1446_v20 = vadd.f32 %v1445_v48, %v1444_v38 }
 0x42b   :  { %v7502_v25 = vmul.f32 0.0078125, %v1277_v13  ;;  %v1453_v55 = vmul.f32 0.0078125, %v1425_v15 }
 0x42d   :  { %v1457_v11 = vmul.f32 %v7502_v25, %v7502_v25  ;;  %v1465_v32 = vsub.f32 %v12221_v16, %v7502_v25  ;;  %v1469_v59 = vsub.f32 %v12222_v24, %v7502_v25  ;;  %v1473_v61 = vsub.f32 %v12223_v17, %v7502_v25  ;;  %v12229_v16 = vld [vmem:[#allocation31_spill] sm:$0xff]  ;;  %v12230_v24 = vld [vmem:[#allocation28_spill] sm:$0xff] }
 0x42e   :  { %v1477_v13 = vsub.f32 %v12224_v58, %v7502_v25  ;;  %v1481_v62 = vsub.f32 %v12225_v0, %v7502_v25  ;;  %v1485_v39 = vsub.f32 %v12226_v57, %v7502_v25  ;;  %v1489_v6 = vsub.f32 %v12227_v3, %v7502_v25  ;;  %v12234_v57 = vld [vmem:[#allocation21_spill] sm:$0xff] }
 0x42f   :  { %v1461_v42 = vsub.f32 %v1453_v55, %v1457_v11  ;;  %v1493_v21 = vsub.f32 %v12215_v46, %v7502_v25  ;;  %v1497_v50 = vsub.f32 %v7070_v30, %v7502_v25  ;;  %v1501_v38 = vsub.f32 %v12219_v27, %v7502_v25  ;;  %v12228_v11 = vld [vmem:[#allocation27_spill] sm:$0xff] }
 0x430   :  { %v1505_v4 = vsub.f32 %v7196_v34, %v7502_v25  ;;  %v1509_v14 = vsub.f32 %v7216_v1, %v7502_v25  ;;  %v1513_v48 = vsub.f32 %v7248_v37, %v7502_v25  ;;  %v1517_v15 = vsub.f32 %v7284_v29, %v7502_v25  ;;  %v12237_v29 = vld [vmem:[#allocation36_spill] sm:$0xff]  ;;  %v12238_v37 = vld [vmem:[#allocation37_spill] sm:$0xff] }
 0x431   :  { %v1521_v46 = vsub.f32 %v7316_v31, %v7502_v25  ;;  %v1525_v30 = vsub.f32 %v7344_v8, %v7502_v25  ;;  %v1529_v55 = vadd.f32 0.8, %v1461_v42  ;;  %v1454_v27 = vmul.f32 0.0078125, %v1446_v20  ;;  %v12231_v31 = vld [vmem:[#allocation29_spill] sm:$0xff]  ;;  %v12233_v20 = vld [vmem:[#allocation35_spill] sm:$0xff] }
 0x432   :  { %v1458_v34 = vmul.f32 %v7504_v43, %v7504_v43  ;;  %v12232_v8 = vld [vmem:[#allocation33_spill] sm:$0xff]  ;;  %v7578_v17 = vsub.s32 3, %v12234_v57 }
 0x433   :  { %5627 = vrsqrt.f32 %v1529_v55  ;;  %v7575_v55 = vsub.s32 2, %v12234_v57 }
 0x434   :  { %v1462_v0 = vsub.f32 %v1454_v27, %v1458_v34  ;;  %12236 = vst [vmem:[#allocation40_spill] sm:$0xff] %v7578_v17  ;;  %v7586_v3 = vrot.slane %v12237_v29, %v7578_v17 }
 0x435   :  { %12235 = vst [vmem:[#allocation39_spill] sm:$0xff] %v7575_v55  ;;  %v1611_v27 = vrot.slane %v12237_v29, %v7575_v55  ;;  %v1696_v34 = vrot.slane %v12238_v37, %v7575_v55 }
 0x436   :  { %v1530_v58 = vadd.f32 0.8, %v1462_v0 }
 0x438   :  { %5629 = vrsqrt.f32 %v1530_v58 }
 0x43d   :  { %v5628_v25 = vpop.eup %5627 }
 0x43e   :  { %v1537_v42 = vmul.f32 %v5628_v25, %v1465_v32  ;;  %v1541_v1 = vmul.f32 %v5628_v25, %v1469_v59  ;;  %v1545_v36 = vmul.f32 %v5628_v25, %v1473_v61  ;;  %v1549_v40 = vmul.f32 %v5628_v25, %v1477_v13 }
 0x43f   :  { %v1553_v0 = vmul.f32 %v5628_v25, %v1481_v62  ;;  %v1557_v63 = vmul.f32 %v5628_v25, %v1485_v39  ;;  %v1561_v57 = vmul.f32 %v5628_v25, %v1489_v6  ;;  %v1565_v45 = vmul.f32 %v5628_v25, %v1493_v21 }
 0x440   :  { %v1569_v52 = vmul.f32 %v5628_v25, %v1497_v50  ;;  %v1573_v49 = vmul.f32 %v5628_v25, %v1501_v38  ;;  %v1577_v22 = vmul.f32 %v5628_v25, %v1505_v4  ;;  %v1581_v10 = vmul.f32 %v5628_v25, %v1509_v14 }
 0x441   :  { %v1585_v53 = vmul.f32 %v5628_v25, %v1513_v48  ;;  %v1589_v35 = vmul.f32 %v5628_v25, %v1517_v15  ;;  %v1593_v55 = vmul.f32 %v5628_v25, %v1521_v46  ;;  %v1597_v58 = vmul.f32 %v5628_v25, %v1525_v30 }
 0x442   :  { %v1622_v19 = vmul.f32 %v1611_v27, %v1537_v42  ;;  %v1626_v9 = vmul.f32 %v1611_v27, %v1541_v1  ;;  %v1630_v29 = vmul.f32 %v1611_v27, %v1545_v36  ;;  %v1634_v60 = vmul.f32 %v1611_v27, %v1549_v40  ;;  %v5630_v40 = vpop.eup %5629 }
 0x443   :  { %v1638_v32 = vmul.f32 %v1611_v27, %v1553_v0  ;;  %v1642_v59 = vmul.f32 %v1611_v27, %v1557_v63  ;;  %v1646_v61 = vmul.f32 %v1611_v27, %v1561_v57  ;;  %v1650_v13 = vmul.f32 %v1611_v27, %v1565_v45 }
 0x444   :  { %v1654_v62 = vmul.f32 %v1611_v27, %v1569_v52  ;;  %v1658_v39 = vmul.f32 %v1611_v27, %v1573_v49  ;;  %v1662_v6 = vmul.f32 %v1611_v27, %v1577_v22  ;;  %v1666_v21 = vmul.f32 %v1611_v27, %v1581_v10 }
 0x445   :  { %v1670_v50 = vmul.f32 %v1611_v27, %v1585_v53  ;;  %v1674_v38 = vmul.f32 %v1611_v27, %v1589_v35  ;;  %v1678_v4 = vmul.f32 %v1611_v27, %v1593_v55  ;;  %v1682_v14 = vmul.f32 %v1611_v27, %v1597_v58 }
 0x446   :  { %v7588_v48 = vadd.f32 %v1696_v34, %v1622_v19  ;;  %v7590_v15 = vadd.f32 %v1696_v34, %v1626_v9  ;;  %v7592_v46 = vadd.f32 %v1696_v34, %v1630_v29  ;;  %v7594_v36 = vadd.f32 %v1696_v34, %v1634_v60 }
 0x447   :  { %v7596_v63 = vadd.f32 %v1696_v34, %v1638_v32  ;;  %v7598_v45 = vadd.f32 %v1696_v34, %v1642_v59  ;;  %v7600_v49 = vadd.f32 %v1696_v34, %v1646_v61  ;;  %v7602_v10 = vadd.f32 %v1696_v34, %v1650_v13 }
 0x448   :  { %v7604_v35 = vadd.f32 %v1696_v34, %v1654_v62  ;;  %v7606_v53 = vadd.f32 %v1696_v34, %v1658_v39  ;;  %v7608_v19 = vadd.f32 %v1696_v34, %v1662_v6  ;;  %v7610_v9 = vadd.f32 %v1696_v34, %v1666_v21 }
 0x449   :  { %v7612_v22 = vadd.f32 %v1696_v34, %v1670_v50  ;;  %v7614_v60 = vadd.f32 %v1696_v34, %v1674_v38  ;;  %v7616_v52 = vadd.f32 %v1696_v34, %v1678_v4  ;;  %v7618_v30 = vadd.f32 %v1696_v34, %v1682_v14 }
 0x44a   :  { %12239 = vst [vmem:[#allocation42_spill] sm:$0xff] %v7610_v9  ;;  %v7621_v1 = vmul.f32 0.2, %v7588_v48  ;;  %v7624_v25 = vmul.f32 0.2, %v7590_v15  ;;  %v12245_v42 = vsub.f32 %v12228_v11, %v7504_v43  ;;  %v12246_v58 = vsub.f32 %v12229_v16, %v7504_v43 }
 0x44b   :  { %12240 = vst [vmem:[#allocation41_spill] sm:$0xff] %v7612_v22  ;;  %12241 = vst [vmem:[#allocation43_spill] sm:$0xff] %v7614_v60  ;;  %v7627_v57 = vmul.f32 0.2, %v7592_v46  ;;  %v7633_v27 = vmul.f32 0.2, %v7594_v36  ;;  %v12255_v14 = vsub.f32 %v12231_v31, %v7504_v43  ;;  %v12257_v39 = vsub.f32 %v12233_v20, %v7504_v43 }
 0x44c   :  { %12242 = vst [vmem:[#allocation44_spill] sm:$0xff] %v7616_v52  ;;  %12243 = vst [vmem:[#allocation24_spill] sm:$0xff] %v7618_v30  ;;  %v1538_v55 = vmul.f32 %v5630_v40, %v12245_v42  ;;  %v7636_v0 = vmul.f32 0.2, %v7596_v63  ;;  %v7639_v34 = vmul.f32 0.2, %v7598_v45  ;;  %v1542_v29 = vmul.f32 %v5630_v40, %v12246_v58 }
 0x44d   :  { %12244 = vst [vmem:[#allocation30_spill] sm:$0xff] %v7627_v57  ;;  %v7645_v32 = vmul.f32 0.2, %v7600_v49  ;;  %v7648_v59 = vmul.f32 0.2, %v7602_v10  ;;  %v12254_v57 = vsub.f32 %v12230_v24, %v7504_v43  ;;  %v1550_v42 = vmul.f32 %v5630_v40, %v12255_v14 }
 0x44e   :  { %v7651_v11 = vmul.f32 0.2, %v7604_v35  ;;  %v7656_v13 = vmul.f32 0.2, %v7606_v53  ;;  %v7659_v62 = vmul.f32 0.2, %v7608_v19  ;;  %v12256_v58 = vsub.f32 %v12232_v8, %v7504_v43 }
 0x44f   :  { %v7662_v16 = vmul.f32 0.2, %v7610_v9  ;;  %v7667_v6 = vmul.f32 0.2, %v7612_v22  ;;  %v7670_v21 = vmul.f32 0.2, %v7614_v60  ;;  %v12258_v61 = vsub.f32 %v6990_v5, %v7504_v43 }
 0x450   :  { %12247 = vst [vmem:[#allocation25_spill] sm:$0xff] %v7656_v13  ;;  %12248 = vst [vmem:[#allocation26_spill] sm:$0xff] %v7659_v62  ;;  %v7673_v50 = vmul.f32 0.2, %v7616_v52  ;;  %v7678_v4 = vmul.f32 0.2, %v7618_v30  ;;  %v1546_v13 = vmul.f32 %v5630_v40, %v12254_v57  ;;  %v12259_v24 = vsub.f32 %v12217_v12, %v7504_v43 }
 0x451   :  { %12249 = vst [vmem:[#allocation32_spill] sm:$0xff] %v7662_v16  ;;  %12250 = vst [vmem:[#allocation34_spill] sm:$0xff] %v7667_v6  ;;  %v1554_v6 = vmul.f32 %v5630_v40, %v12256_v58  ;;  %v1562_v38 = vmul.f32 %v5630_v40, %v12258_v61  ;;  %v12260_v31 = vsub.f32 %v7072_v2, %v7504_v43 }
 0x452   :  { %12251 = vst [vmem:[#allocation38_spill] sm:$0xff] %v7670_v21  ;;  %12252 = vst [vmem:[#allocation27_spill] sm:$0xff] %v7673_v50  ;;  %v1558_v21 = vmul.f32 %v5630_v40, %v12257_v39  ;;  %v1566_v57 = vmul.f32 %v5630_v40, %v12259_v24  ;;  %v12261_v8 = vsub.f32 %v12220_v23, %v7504_v43 }
 0x453   :  { %12253 = vst [vmem:[#allocation31_spill] sm:$0xff] %v7678_v4  ;;  %v1570_v14 = vmul.f32 %v5630_v40, %v12260_v31  ;;  %v12262_v20 = vsub.f32 %v7206_v56, %v7504_v43  ;;  %v12263_v5 = vsub.f32 %v7230_v28, %v7504_v43  ;;  %v12264_v12 = vsub.f32 %v7266_v18, %v7504_v43 }
 0x454   :  { %v1574_v58 = vmul.f32 %v5630_v40, %v12261_v8  ;;  %v12265_v2 = vsub.f32 %v7290_v41, %v7504_v43  ;;  %v12266_v23 = vsub.f32 %v7330_v47, %v7504_v43  ;;  %v12267_v56 = vsub.f32 %v7358_v7, %v7504_v43 }
 0x455   :  { %v1578_v39 = vmul.f32 %v5630_v40, %v12262_v20  ;;  %v1582_v61 = vmul.f32 %v5630_v40, %v12263_v5  ;;  %v1586_v24 = vmul.f32 %v5630_v40, %v12264_v12  ;;  %v1623_v4 = vmul.f32 %v7586_v3, %v1538_v55 }
 0x456   :  { %v1590_v31 = vmul.f32 %v5630_v40, %v12265_v2  ;;  %v1594_v8 = vmul.f32 %v5630_v40, %v12266_v23  ;;  %v1598_v20 = vmul.f32 %v5630_v40, %v12267_v56  ;;  %v1627_v28 = vmul.f32 %v7586_v3, %v1542_v29 }
 0x457   :  { %v1631_v5 = vmul.f32 %v7586_v3, %v1546_v13  ;;  %v1700_v18 = vrot.slane %v12238_v37, %v7578_v17  ;;  %v1635_v41 = vmul.f32 %v7586_v3, %v1550_v42  ;;  %v1639_v12 = vmul.f32 %v7586_v3, %v1554_v6 }
 0x458   :  { %v1643_v47 = vmul.f32 %v7586_v3, %v1558_v21  ;;  %v1647_v2 = vmul.f32 %v7586_v3, %v1562_v38  ;;  %v1651_v7 = vmul.f32 %v7586_v3, %v1566_v57  ;;  %v1655_v43 = vmul.f32 %v7586_v3, %v1570_v14 }
 0x459   :  { %v1659_v40 = vmul.f32 %v7586_v3, %v1574_v58  ;;  %v1663_v55 = vmul.f32 %v7586_v3, %v1578_v39  ;;  %v1667_v29 = vmul.f32 %v7586_v3, %v1582_v61  ;;  %v1671_v37 = vmul.f32 %v7586_v3, %v1586_v24 }
 0x45a   :  { %v1675_v13 = vmul.f32 %v7586_v3, %v1590_v31  ;;  %v1679_v6 = vmul.f32 %v7586_v3, %v1594_v8  ;;  %v7765_v42 = vadd.f32 %v1700_v18, %v1623_v4  ;;  %v7767_v21 = vadd.f32 %v1700_v18, %v1627_v28 }
 0x45b   :  { %v7769_v38 = vadd.f32 %v1700_v18, %v1631_v5  ;;  %v1683_v57 = vmul.f32 %v7586_v3, %v1598_v20  ;;  %v7772_v14 = vadd.f32 %v1700_v18, %v1635_v41  ;;  %v7774_v58 = vadd.f32 %v1700_v18, %v1639_v12 }
 0x45c   :  { %v7776_v39 = vadd.f32 %v1700_v18, %v1643_v47  ;;  %v7778_v61 = vadd.f32 %v1700_v18, %v1647_v2  ;;  %v7780_v24 = vadd.f32 %v1700_v18, %v1651_v7  ;;  %v7782_v31 = vadd.f32 %v1700_v18, %v1655_v43 }
 0x45d   :  { %v7784_v4 = vadd.f32 %v1700_v18, %v1659_v40  ;;  %v7786_v23 = vadd.f32 %v1700_v18, %v1663_v55  ;;  %v7788_v8 = vadd.f32 %v1700_v18, %v1667_v29  ;;  %v7790_v56 = vadd.f32 %v1700_v18, %v1671_v37 }
 0x45e   :  { %v7792_v3 = vadd.f32 %v1700_v18, %v1675_v13  ;;  %v7794_v20 = vadd.f32 %v1700_v18, %v1679_v6  ;;  %v7797_v28 = vmul.f32 0.2, %v7765_v42  ;;  %v7800_v5 = vmul.f32 0.2, %v7767_v21 }
 0x45f   :  { %12268 = vst [vmem:[#allocation28_spill] sm:$0xff] %v7790_v56  ;;  %v7803_v41 = vmul.f32 0.2, %v7769_v38  ;;  %v7805_v12 = vadd.f32 %v1700_v18, %v1683_v57  ;;  %v7808_v47 = vmul.f32 0.2, %v7772_v14 }
 0x460   :  { %12269 = vst [vmem:[#allocation29_spill] sm:$0xff] %v7792_v3  ;;  %12270 = vst [vmem:[#allocation33_spill] sm:$0xff] %v7794_v20  ;;  %v7811_v2 = vmul.f32 0.2, %v7774_v58  ;;  %v7814_v7 = vmul.f32 0.2, %v7776_v39 }
 0x461   :  { %12271 = vst [vmem:[#allocation35_spill] sm:$0xff] %v7805_v12  ;;  %v7817_v43 = vmul.f32 0.2, %v7778_v61  ;;  %v7820_v40 = vmul.f32 0.2, %v7780_v24 }
 0x462   :  { %v7823_v55 = vmul.f32 0.2, %v7782_v31  ;;  %v7828_v29 = vmul.f32 0.2, %v7784_v4  ;;  %v7831_v37 = vmul.f32 0.2, %v7786_v23 }
 0x463   :  { %v7834_v13 = vmul.f32 0.2, %v7788_v8  ;;  %v7839_v57 = vmul.f32 0.2, %v7790_v56  ;;  %v7842_v17 = vmul.f32 0.2, %v7792_v3 }
 0x464   :  { %v7845_v18 = vmul.f32 0.2, %v7794_v20  ;;  %v7850_v50 = vmul.f32 0.2, %v7805_v12 }
 0x465   :  { %12272 = vst [vmem:[#allocation36_spill] sm:$0xff] %v7839_v57  ;;  %12273 = vst [vmem:[#allocation37_spill] sm:$0xff] %v7842_v17 }
 0x466   :  { %12274 = vst [vmem:[#allocation104_spill] sm:$0xff] %v7845_v18  ;;  %12275 = vst [vmem:[#allocation105_spill] sm:$0xff] %v7850_v50 }
 0x467   :  { %5761 = dma.done.wait [#allocation5 + $0x1], 32768 }
 0x468   :  { %5762 = vsyncadd [#allocation5 + $0x1], 4294934528  ;;  %v12276_v52 = vmax.f32 %v7305_v26, %v7361_v51  ;;  %v12277_v6 = vmax.f32 %v7308_v54, %v7364_v44  ;;  %v1902_v22 = vld [vmem:[#allocation3 + $0x8] sm:$0xff]  ;;  %v1904_v60 = vld [vmem:[#allocation3 + $0x18] sm:$0xff] }
 0x469   :  { %v1901_v16 = vld [vmem:[#allocation3] sm:$0xff]  ;;  %2189 = vmatprep.subr.bf16.mxu0 %v1902_v22  ;;  %2415 = vmatprep.subr.bf16.mxu1 %v1904_v60  ;;  %v1903_v30 = vld [vmem:[#allocation3 + $0x10] sm:$0xff]  ;;  %v1910_v50 = vld [vmem:[#allocation3 + $0x48] sm:$0xff] }
 0x46a   :  { %v7884_v9 = vpack.c.bf16 %v12277_v6, %v12276_v52  ;;  %v1912_v12 = vld [vmem:[#allocation3 + $0x58] sm:$0xff]  ;;  %2190 = vmatpush1.bf16.msra.mxu0 %v1901_v16  ;;  %2416 = vmatpush1.bf16.msra.mxu1 %v1903_v30  ;;  %v1909_v26 = vld [vmem:[#allocation3 + $0x40] sm:$0xff]  ;;  %v1911_v54 = vld [vmem:[#allocation3 + $0x50] sm:$0xff] }
 0x46b   :  { %2191 = vmatprep.subr.bf16.mxu0 %v1910_v50  ;;  %2417 = vmatprep.subr.bf16.mxu1 %v1912_v12  ;;  %v1918_v51 = vld [vmem:[#allocation3 + $0x88] sm:$0xff]  ;;  %v1920_v44 = vld [vmem:[#allocation3 + $0x98] sm:$0xff]  ;;  %v1917_v52 = vld [vmem:[#allocation3 + $0x80] sm:$0xff] }
 0x46c   :  { %12278 = vst [vmem:[#allocation106_spill] sm:$0xff] %v7884_v9  ;;  %2221 = vmatprep.mubr.bf16.mxu0 %v7884_v9  ;;  %2447 = vmatprep.mubr.bf16.mxu1 %v7884_v9  ;;  %v1919_v6 = vld [vmem:[#allocation3 + $0x90] sm:$0xff]  ;;  %v1926_v9 = vld [vmem:[#allocation3 + $0xc8] sm:$0xff]  ;;  %v1928_v22 = vld [vmem:[#allocation3 + $0xd8] sm:$0xff] }
 0x46d   :  { %v1925_v60 = vld [vmem:[#allocation3 + $0xc0] sm:$0xff]  ;;  %v1927_v30 = vld [vmem:[#allocation3 + $0xd0] sm:$0xff]  ;;  %v1934_v16 = vld [vmem:[#allocation3 + $0x108] sm:$0xff] }
 0x46e   :  { %2192 = vmatpush1.bf16.msra.mxu0 %v1909_v26  ;;  %2418 = vmatpush1.bf16.msra.mxu1 %v1911_v54  ;;  %v1936_v50 = vld [vmem:[#allocation3 + $0x118] sm:$0xff]  ;;  %v1933_v12 = vld [vmem:[#allocation3 + $0x100] sm:$0xff]  ;;  %v1935_v26 = vld [vmem:[#allocation3 + $0x110] sm:$0xff] }
 0x46f   :  { %2193 = vmatprep.subr.bf16.mxu0 %v1918_v51  ;;  %2419 = vmatprep.subr.bf16.mxu1 %v1920_v44  ;;  %v1942_v54 = vld [vmem:[#allocation3 + $0x148] sm:$0xff]  ;;  %v1944_v51 = vld [vmem:[#allocation3 + $0x158] sm:$0xff]  ;;  %v1941_v44 = vld [vmem:[#allocation3 + $0x140] sm:$0xff] }
 0x470   :  { %v12280_v18 = vld [vmem:[#allocation61_spill] sm:$0xff]  ;;  %v12282_v17 = vld [vmem:[#allocation46_spill] sm:$0xff]  ;;  %v12289_v56 = vld [vmem:[#allocation91_spill] sm:$0xff] }
 0x471   :  { %v12288_v57 = vld [vmem:[#allocation77_spill] sm:$0xff] }
 0x472   :  { %2194 = vmatpush1.bf16.msra.mxu0 %v1917_v52  ;;  %2420 = vmatpush1.bf16.msra.mxu1 %v1919_v6  ;;  %v1943_v52 = vld [vmem:[#allocation3 + $0x150] sm:$0xff]  ;;  %v1952_v6 = vld [vmem:[#allocation3 + $0x198] sm:$0xff]  ;;  %v12290_v62 = vmax.f32 %v12288_v57, %v12289_v56  ;;  %v12293_v56 = vld [vmem:[#allocation63_spill] sm:$0xff] }
 0x473   :  { %2195 = vmatprep.subr.bf16.mxu0 %v1926_v9  ;;  %2421 = vmatprep.subr.bf16.mxu1 %v1928_v22  ;;  %v1950_v9 = vld [vmem:[#allocation3 + $0x188] sm:$0xff]  ;;  %v1949_v22 = vld [vmem:[#allocation3 + $0x180] sm:$0xff] }
 0x474   :  { %v12296_v57 = vld [vmem:[#allocation64_spill] sm:$0xff] }
 0x476   :  { %2196 = vmatpush1.bf16.msra.mxu0 %v1925_v60  ;;  %2422 = vmatpush1.bf16.msra.mxu1 %v1927_v30  ;;  %v1951_v60 = vld [vmem:[#allocation3 + $0x190] sm:$0xff]  ;;  %v1958_v30 = vld [vmem:[#allocation3 + $0x1c8] sm:$0xff] }
 0x477   :  { %2197 = vmatprep.subr.bf16.mxu0 %v1934_v16  ;;  %2423 = vmatprep.subr.bf16.mxu1 %v1936_v50  ;;  %v1960_v16 = vld [vmem:[#allocation3 + $0x1d8] sm:$0xff]  ;;  %v1957_v50 = vld [vmem:[#allocation3 + $0x1c0] sm:$0xff] }
 0x47a   :  { %2198 = vmatpush1.bf16.msra.mxu0 %v1933_v12  ;;  %2424 = vmatpush1.bf16.msra.mxu1 %v1935_v26  ;;  %v1959_v12 = vld [vmem:[#allocation3 + $0x1d0] sm:$0xff]  ;;  %v1966_v26 = vld [vmem:[#allocation3 + $0x208] sm:$0xff] }
 0x47b   :  { %2199 = vmatprep.subr.bf16.mxu0 %v1942_v54  ;;  %2425 = vmatprep.subr.bf16.mxu1 %v1944_v51  ;;  %v1968_v54 = vld [vmem:[#allocation3 + $0x218] sm:$0xff]  ;;  %v1965_v51 = vld [vmem:[#allocation3 + $0x200] sm:$0xff] }
 0x47e   :  { %2200 = vmatpush1.bf16.msra.mxu0 %v1941_v44  ;;  %2426 = vmatpush1.bf16.msra.mxu1 %v1943_v52  ;;  %v1967_v44 = vld [vmem:[#allocation3 + $0x210] sm:$0xff]  ;;  %v1974_v52 = vld [vmem:[#allocation3 + $0x248] sm:$0xff] }
 0x47f   :  { %2201 = vmatprep.subr.bf16.mxu0 %v1950_v9  ;;  %2427 = vmatprep.subr.bf16.mxu1 %v1952_v6  ;;  %v1976_v9 = vld [vmem:[#allocation3 + $0x258] sm:$0xff]  ;;  %v1973_v6 = vld [vmem:[#allocation3 + $0x240] sm:$0xff] }
 0x482   :  { %2202 = vmatpush1.bf16.msra.mxu0 %v1949_v22  ;;  %2428 = vmatpush1.bf16.msra.mxu1 %v1951_v60  ;;  %v1975_v22 = vld [vmem:[#allocation3 + $0x250] sm:$0xff]  ;;  %v1982_v60 = vld [vmem:[#allocation3 + $0x288] sm:$0xff] }
 0x483   :  { %2203 = vmatprep.subr.bf16.mxu0 %v1958_v30  ;;  %2429 = vmatprep.subr.bf16.mxu1 %v1960_v16  ;;  %v1984_v30 = vld [vmem:[#allocation3 + $0x298] sm:$0xff]  ;;  %v1981_v16 = vld [vmem:[#allocation3 + $0x280] sm:$0xff] }
 0x486   :  { %2204 = vmatpush1.bf16.msra.mxu0 %v1957_v50  ;;  %2430 = vmatpush1.bf16.msra.mxu1 %v1959_v12  ;;  %v1983_v50 = vld [vmem:[#allocation3 + $0x290] sm:$0xff]  ;;  %v1990_v12 = vld [vmem:[#allocation3 + $0x2c8] sm:$0xff] }
 0x487   :  { %2205 = vmatprep.subr.bf16.mxu0 %v1966_v26  ;;  %2431 = vmatprep.subr.bf16.mxu1 %v1968_v54  ;;  %v1992_v26 = vld [vmem:[#allocation3 + $0x2d8] sm:$0xff]  ;;  %v1989_v54 = vld [vmem:[#allocation3 + $0x2c0] sm:$0xff] }
 0x48a   :  { %2206 = vmatpush1.bf16.msra.mxu0 %v1965_v51  ;;  %2432 = vmatpush1.bf16.msra.mxu1 %v1967_v44  ;;  %v1991_v51 = vld [vmem:[#allocation3 + $0x2d0] sm:$0xff]  ;;  %v1998_v44 = vld [vmem:[#allocation3 + $0x308] sm:$0xff] }
 0x48b   :  { %2207 = vmatprep.subr.bf16.mxu0 %v1974_v52  ;;  %2433 = vmatprep.subr.bf16.mxu1 %v1976_v9  ;;  %v2000_v52 = vld [vmem:[#allocation3 + $0x318] sm:$0xff]  ;;  %v1997_v9 = vld [vmem:[#allocation3 + $0x300] sm:$0xff] }
 0x48e   :  { %2208 = vmatpush1.bf16.msra.mxu0 %v1973_v6  ;;  %2434 = vmatpush1.bf16.msra.mxu1 %v1975_v22  ;;  %v1999_v6 = vld [vmem:[#allocation3 + $0x310] sm:$0xff]  ;;  %v2006_v22 = vld [vmem:[#allocation3 + $0x348] sm:$0xff] }
 0x48f   :  { %2209 = vmatprep.subr.bf16.mxu0 %v1982_v60  ;;  %2435 = vmatprep.subr.bf16.mxu1 %v1984_v30  ;;  %v2008_v60 = vld [vmem:[#allocation3 + $0x358] sm:$0xff]  ;;  %v2005_v30 = vld [vmem:[#allocation3 + $0x340] sm:$0xff] }
 0x492   :  { %2210 = vmatpush1.bf16.msra.mxu0 %v1981_v16  ;;  %2436 = vmatpush1.bf16.msra.mxu1 %v1983_v50  ;;  %v2007_v16 = vld [vmem:[#allocation3 + $0x350] sm:$0xff]  ;;  %v2014_v50 = vld [vmem:[#allocation3 + $0x388] sm:$0xff] }
 0x493   :  { %2211 = vmatprep.subr.bf16.mxu0 %v1990_v12  ;;  %2437 = vmatprep.subr.bf16.mxu1 %v1992_v26  ;;  %v2016_v12 = vld [vmem:[#allocation3 + $0x398] sm:$0xff]  ;;  %v2013_v26 = vld [vmem:[#allocation3 + $0x380] sm:$0xff] }
 0x496   :  { %2212 = vmatpush1.bf16.msra.mxu0 %v1989_v54  ;;  %2438 = vmatpush1.bf16.msra.mxu1 %v1991_v51  ;;  %v2015_v54 = vld [vmem:[#allocation3 + $0x390] sm:$0xff]  ;;  %v2022_v51 = vld [vmem:[#allocation3 + $0x3c8] sm:$0xff] }
 0x497   :  { %2213 = vmatprep.subr.bf16.mxu0 %v1998_v44  ;;  %2439 = vmatprep.subr.bf16.mxu1 %v2000_v52  ;;  %v2024_v44 = vld [vmem:[#allocation3 + $0x3d8] sm:$0xff]  ;;  %v2021_v52 = vld [vmem:[#allocation3 + $0x3c0] sm:$0xff] }
 0x49a   :  { %2214 = vmatpush1.bf16.msra.mxu0 %v1997_v9  ;;  %2440 = vmatpush1.bf16.msra.mxu1 %v1999_v6  ;;  %v2023_v9 = vld [vmem:[#allocation3 + $0x3d0] sm:$0xff]  ;;  %v2030_v6 = vld [vmem:[#allocation3 + $0x408] sm:$0xff] }
 0x49b   :  { %2215 = vmatprep.subr.bf16.mxu0 %v2006_v22  ;;  %2441 = vmatprep.subr.bf16.mxu1 %v2008_v60  ;;  %v2032_v22 = vld [vmem:[#allocation3 + $0x418] sm:$0xff]  ;;  %v12279_v60 = vld [vmem:[#allocation45_spill] sm:$0xff] }
 0x49c   :  { %v12281_v20 = vmax.f32 %v12279_v60, %v12280_v18  ;;  %v2045_v60 = vld [vmem:[#allocation3 + $0x480] sm:$0xff] }
 0x49e   :  { %2216 = vmatpush1.bf16.msra.mxu0 %v2005_v30  ;;  %2442 = vmatpush1.bf16.msra.mxu1 %v2007_v16  ;;  %v12283_v30 = vld [vmem:[#allocation62_spill] sm:$0xff] }
 0x49f   :  { %2217 = vmatprep.subr.bf16.mxu0 %v2014_v50  ;;  %2443 = vmatprep.subr.bf16.mxu1 %v2016_v12  ;;  %v12284_v16 = vmax.f32 %v12282_v17, %v12283_v30  ;;  %v2029_v12 = vld [vmem:[#allocation3 + $0x400] sm:$0xff]  ;;  %v2047_v30 = vld [vmem:[#allocation3 + $0x490] sm:$0xff] }
 0x4a0   :  { %v2037_v17 = vld [vmem:[#allocation3 + $0x440] sm:$0xff] }
 0x4a1   :  { %v7894_v50 = vpack.c.bf16 %v12284_v16, %v12281_v20  ;;  %v2039_v20 = vld [vmem:[#allocation3 + $0x450] sm:$0xff]  ;;  %v2054_v16 = vld [vmem:[#allocation3 + $0x4c8] sm:$0xff] }
 0x4a2   :  { %2218 = vmatpush1.bf16.msra.mxu0 %v2013_v26  ;;  %2444 = vmatpush1.bf16.msra.mxu1 %v2015_v54  ;;  %v2031_v26 = vld [vmem:[#allocation3 + $0x410] sm:$0xff]  ;;  %v2038_v54 = vld [vmem:[#allocation3 + $0x448] sm:$0xff] }
 0x4a3   :  { %2219 = vmatprep.subr.bf16.mxu0 %v2022_v51  ;;  %2445 = vmatprep.subr.bf16.mxu1 %v2024_v44  ;;  %12285 = vst [vmem:[#allocation45_spill] sm:$0xff] %v7894_v50  ;;  %v2040_v51 = vld [vmem:[#allocation3 + $0x458] sm:$0xff] }
 0x4a4   :  { %v12286_v44 = vld [vmem:[#allocation90_spill] sm:$0xff] }
 0x4a5   :  { %v12287_v3 = vmax.f32 %v7311_v33, %v12286_v44  ;;  %v2046_v33 = vld [vmem:[#allocation3 + $0x488] sm:$0xff]  ;;  %v12302_v44 = vld [vmem:[#allocation79_spill] sm:$0xff] }
 0x4a6   :  { %2220 = vmatpush1.bf16.msra.mxu0 %v2021_v52  ;;  %2446 = vmatpush1.bf16.msra.mxu1 %v2023_v9  ;;  %v2048_v52 = vld [vmem:[#allocation3 + $0x498] sm:$0xff]  ;;  %v12292_v9 = vld [vmem:[#allocation47_spill] sm:$0xff] }
 0x4a7   :  { %2302 = vmatprep.subr.bf16.mxu0 %v2030_v6  ;;  %2528 = vmatprep.subr.bf16.mxu1 %v2032_v22  ;;  %v7902_v18 = vpack.c.bf16 %v12290_v62, %v12287_v3  ;;  %v12294_v62 = vmax.f32 %v12292_v9, %v12293_v56  ;;  %v12295_v3 = vld [vmem:[#allocation48_spill] sm:$0xff]  ;;  %v12306_v56 = vld [vmem:[#allocation49_spill] sm:$0xff] }
 0x4a8   :  { %v12297_v6 = vmax.f32 %v12295_v3, %v12296_v57  ;;  %v12310_v3 = vld [vmem:[#allocation66_spill] sm:$0xff] }
 0x4a9   :  { %12291 = vst [vmem:[#allocation61_spill] sm:$0xff] %v7902_v18  ;;  %2222 = vmatmul.mubr.bf16.vlgmr.msra.gmra.mrb[16].mxu0 %v7894_v50  ;;  %2448 = vmatmul.mubr.bf16.vlgmr.msra.gmra.mrb[96].mxu1 %v7894_v50 }
 0x4aa   :  { %2303 = vmatpush1.bf16.msra.mxu0 %v2029_v12  ;;  %2529 = vmatpush1.bf16.msra.mxu1 %v2031_v26  ;;  %v7914_v22 = vpack.c.bf16 %v12297_v6, %v12294_v62  ;;  %v2056_v12 = vld [vmem:[#allocation3 + $0x4d8] sm:$0xff] }
 0x4ab   :  { %2304 = vmatprep.subr.bf16.mxu0 %v2038_v54  ;;  %2530 = vmatprep.subr.bf16.mxu1 %v2040_v51  ;;  %v12299_v26 = vld [vmem:[#allocation78_spill] sm:$0xff]  ;;  %v12300_v54 = vld [vmem:[#allocation92_spill] sm:$0xff] }
 0x4ac   :  { %2231 = vmatprep.mubr.bf16.mxu0 %v7902_v18  ;;  %2457 = vmatprep.mubr.bf16.mxu1 %v7902_v18  ;;  %12298 = vst [vmem:[#allocation46_spill] sm:$0xff] %v7914_v22  ;;  %v12301_v51 = vmax.f32 %v12299_v26, %v12300_v54  ;;  %v12303_v18 = vld [vmem:[#allocation93_spill] sm:$0xff]  ;;  %v12309_v62 = vld [vmem:[#allocation50_spill] sm:$0xff]  ;;  %v12313_v26 = vld [vmem:[#allocation80_spill] sm:$0xff] }
 0x4ad   :  { %v12304_v50 = vmax.f32 %v12302_v44, %v12303_v18  ;;  %v12307_v18 = vld [vmem:[#allocation65_spill] sm:$0xff]  ;;  %v12311_v57 = vmax.f32 %v12309_v62, %v12310_v3  ;;  %v12314_v54 = vld [vmem:[#allocation94_spill] sm:$0xff]  ;;  %v12324_v62 = vld [vmem:[#allocation68_spill] sm:$0xff] }
 0x4ae   :  { %2305 = vmatpush1.bf16.msra.mxu0 %v2037_v17  ;;  %2531 = vmatpush1.bf16.msra.mxu1 %v2039_v20  ;;  %v2053_v17 = vld [vmem:[#allocation3 + $0x4c0] sm:$0xff]  ;;  %v2055_v20 = vld [vmem:[#allocation3 + $0x4d0] sm:$0xff] }
 0x4af   :  { %2306 = vmatprep.subr.bf16.mxu0 %v2046_v33  ;;  %2532 = vmatprep.subr.bf16.mxu1 %v2048_v52  ;;  %v7922_v9 = vpack.c.bf16 %v12304_v50, %v12301_v51  ;;  %v2062_v33 = vld [vmem:[#allocation3 + $0x508] sm:$0xff]  ;;  %v2064_v52 = vld [vmem:[#allocation3 + $0x518] sm:$0xff]  ;;  %v12308_v50 = vmax.f32 %v12306_v56, %v12307_v18  ;;  %v12315_v51 = vmax.f32 %v12313_v26, %v12314_v54  ;;  %v12316_v44 = vld [vmem:[#allocation81_spill] sm:$0xff] }
 0x4b0   :  { %v12320_v18 = vld [vmem:[#allocation51_spill] sm:$0xff]  ;;  %v12327_v26 = vld [vmem:[#allocation82_spill] sm:$0xff]  ;;  %v12328_v54 = vld [vmem:[#allocation96_spill] sm:$0xff] }
 0x4b1   :  { %12305 = vst [vmem:[#allocation62_spill] sm:$0xff] %v7922_v9  ;;  %2232 = vmatmul.mubr.bf16.gmra.mrb[20].mxu0 %v7914_v22  ;;  %2458 = vmatmul.mubr.bf16.gmra.mrb[100].mxu1 %v7914_v22  ;;  %v7934_v6 = vpack.c.bf16 %v12311_v57, %v12308_v50  ;;  %v12323_v50 = vld [vmem:[#allocation52_spill] sm:$0xff] }
 0x4b2   :  { %2307 = vmatpush1.bf16.msra.mxu0 %v2045_v60  ;;  %2533 = vmatpush1.bf16.msra.mxu1 %v2047_v30  ;;  %v2061_v60 = vld [vmem:[#allocation3 + $0x500] sm:$0xff]  ;;  %v2063_v30 = vld [vmem:[#allocation3 + $0x510] sm:$0xff]  ;;  %v12325_v3 = vmax.f32 %v12323_v50, %v12324_v62  ;;  %v12338_v50 = vld [vmem:[#allocation70_spill] sm:$0xff] }
 0x4b3   :  { %2308 = vmatprep.subr.bf16.mxu0 %v2054_v16  ;;  %2534 = vmatprep.subr.bf16.mxu1 %v2056_v12  ;;  %12312 = vst [vmem:[#allocation90_spill] sm:$0xff] %v7934_v6  ;;  %v2070_v16 = vld [vmem:[#allocation3 + $0x548] sm:$0xff]  ;;  %v2072_v12 = vld [vmem:[#allocation3 + $0x558] sm:$0xff] }
 0x4b4   :  { %2241 = vmatprep.mubr.bf16.mxu0 %v7922_v9  ;;  %2467 = vmatprep.mubr.bf16.mxu1 %v7922_v9  ;;  %v12317_v9 = vld [vmem:[#allocation95_spill] sm:$0xff] }
 0x4b5   :  { %v12318_v22 = vmax.f32 %v12316_v44, %v12317_v9  ;;  %v12321_v9 = vld [vmem:[#allocation67_spill] sm:$0xff] }
 0x4b6   :  { %2309 = vmatpush1.bf16.msra.mxu0 %v2053_v17  ;;  %2535 = vmatpush1.bf16.msra.mxu1 %v2055_v20  ;;  %v2069_v17 = vld [vmem:[#allocation3 + $0x540] sm:$0xff]  ;;  %v2071_v20 = vld [vmem:[#allocation3 + $0x550] sm:$0xff] }
 0x4b7   :  { %2310 = vmatprep.subr.bf16.mxu0 %v2062_v33  ;;  %2536 = vmatprep.subr.bf16.mxu1 %v2064_v52  ;;  %v7942_v56 = vpack.c.bf16 %v12318_v22, %v12315_v51  ;;  %v2078_v33 = vld [vmem:[#allocation3 + $0x588] sm:$0xff]  ;;  %v2080_v52 = vld [vmem:[#allocation3 + $0x598] sm:$0xff]  ;;  %v12322_v22 = vmax.f32 %v12320_v18, %v12321_v9  ;;  %v12329_v51 = vmax.f32 %v12327_v26, %v12328_v54  ;;  %v12330_v44 = vld [vmem:[#allocation83_spill] sm:$0xff] }
 0x4b8   :  { %v12334_v9 = vld [vmem:[#allocation53_spill] sm:$0xff]  ;;  %v12341_v26 = vld [vmem:[#allocation84_spill] sm:$0xff]  ;;  %v12342_v54 = vld [vmem:[#allocation98_spill] sm:$0xff] }
 0x4b9   :  { %12319 = vst [vmem:[#allocation77_spill] sm:$0xff] %v7942_v56  ;;  %2242 = vmatmul.mubr.bf16.gmra.mrb[24].mxu0 %v7934_v6  ;;  %2468 = vmatmul.mubr.bf16.gmra.mrb[104].mxu1 %v7934_v6  ;;  %v7954_v57 = vpack.c.bf16 %v12325_v3, %v12322_v22  ;;  %v12337_v22 = vld [vmem:[#allocation54_spill] sm:$0xff] }
 0x4ba   :  { %2311 = vmatpush1.bf16.msra.mxu0 %v2061_v60  ;;  %2537 = vmatpush1.bf16.msra.mxu1 %v2063_v30  ;;  %v2077_v60 = vld [vmem:[#allocation3 + $0x580] sm:$0xff]  ;;  %v2079_v30 = vld [vmem:[#allocation3 + $0x590] sm:$0xff]  ;;  %v12339_v62 = vmax.f32 %v12337_v22, %v12338_v50  ;;  %v12352_v22 = vld [vmem:[#allocation72_spill] sm:$0xff] }
 0x4bb   :  { %2312 = vmatprep.subr.bf16.mxu0 %v2070_v16  ;;  %2538 = vmatprep.subr.bf16.mxu1 %v2072_v12  ;;  %12326 = vst [vmem:[#allocation91_spill] sm:$0xff] %v7954_v57  ;;  %v2086_v16 = vld [vmem:[#allocation3 + $0x5c8] sm:$0xff]  ;;  %v2088_v12 = vld [vmem:[#allocation3 + $0x5d8] sm:$0xff] }
 0x4bc   :  { %2251 = vmatprep.mubr.bf16.mxu0 %v7942_v56  ;;  %2477 = vmatprep.mubr.bf16.mxu1 %v7942_v56  ;;  %v12331_v56 = vld [vmem:[#allocation97_spill] sm:$0xff] }
 0x4bd   :  { %v12332_v6 = vmax.f32 %v12330_v44, %v12331_v56  ;;  %v12335_v56 = vld [vmem:[#allocation69_spill] sm:$0xff] }
 0x4be   :  { %2313 = vmatpush1.bf16.msra.mxu0 %v2069_v17  ;;  %2539 = vmatpush1.bf16.msra.mxu1 %v2071_v20  ;;  %v2085_v17 = vld [vmem:[#allocation3 + $0x5c0] sm:$0xff]  ;;  %v2087_v20 = vld [vmem:[#allocation3 + $0x5d0] sm:$0xff] }
 0x4bf   :  { %2314 = vmatprep.subr.bf16.mxu0 %v2078_v33  ;;  %2540 = vmatprep.subr.bf16.mxu1 %v2080_v52  ;;  %v7962_v18 = vpack.c.bf16 %v12332_v6, %v12329_v51  ;;  %v2094_v33 = vld [vmem:[#allocation3 + $0x608] sm:$0xff]  ;;  %v2096_v52 = vld [vmem:[#allocation3 + $0x618] sm:$0xff]  ;;  %v12336_v6 = vmax.f32 %v12334_v9, %v12335_v56  ;;  %v12343_v51 = vmax.f32 %v12341_v26, %v12342_v54  ;;  %v12344_v44 = vld [vmem:[#allocation85_spill] sm:$0xff] }
 0x4c0   :  { %v12348_v56 = vld [vmem:[#allocation55_spill] sm:$0xff]  ;;  %v12355_v26 = vld [vmem:[#allocation86_spill] sm:$0xff]  ;;  %v12356_v54 = vld [vmem:[#allocation100_spill] sm:$0xff] }
 0x4c1   :  { %12333 = vst [vmem:[#allocation47_spill] sm:$0xff] %v7962_v18  ;;  %2252 = vmatmul.mubr.bf16.gmra.mrb[28].mxu0 %v7954_v57  ;;  %2478 = vmatmul.mubr.bf16.gmra.mrb[108].mxu1 %v7954_v57  ;;  %v7974_v3 = vpack.c.bf16 %v12339_v62, %v12336_v6  ;;  %v12351_v6 = vld [vmem:[#allocation56_spill] sm:$0xff] }
 0x4c2   :  { %2315 = vmatpush1.bf16.msra.mxu0 %v2077_v60  ;;  %2541 = vmatpush1.bf16.msra.mxu1 %v2079_v30  ;;  %v2093_v60 = vld [vmem:[#allocation3 + $0x600] sm:$0xff]  ;;  %v2095_v30 = vld [vmem:[#allocation3 + $0x610] sm:$0xff]  ;;  %v12353_v50 = vmax.f32 %v12351_v6, %v12352_v22  ;;  %v12366_v6 = vld [vmem:[#allocation74_spill] sm:$0xff] }
 0x4c3   :  { %2316 = vmatprep.subr.bf16.mxu0 %v2086_v16  ;;  %2542 = vmatprep.subr.bf16.mxu1 %v2088_v12  ;;  %12340 = vst [vmem:[#allocation63_spill] sm:$0xff] %v7974_v3  ;;  %v2102_v16 = vld [vmem:[#allocation3 + $0x648] sm:$0xff]  ;;  %v2104_v12 = vld [vmem:[#allocation3 + $0x658] sm:$0xff] }
 0x4c4   :  { %2261 = vmatprep.mubr.bf16.mxu0 %v7962_v18  ;;  %2487 = vmatprep.mubr.bf16.mxu1 %v7962_v18  ;;  %v12345_v18 = vld [vmem:[#allocation99_spill] sm:$0xff] }
 0x4c5   :  { %v12346_v57 = vmax.f32 %v12344_v44, %v12345_v18  ;;  %v12349_v18 = vld [vmem:[#allocation71_spill] sm:$0xff] }
 0x4c6   :  { %2317 = vmatpush1.bf16.msra.mxu0 %v2085_v17  ;;  %2543 = vmatpush1.bf16.msra.mxu1 %v2087_v20  ;;  %v2101_v17 = vld [vmem:[#allocation3 + $0x640] sm:$0xff]  ;;  %v2103_v20 = vld [vmem:[#allocation3 + $0x650] sm:$0xff] }
 0x4c7   :  { %2318 = vmatprep.subr.bf16.mxu0 %v2094_v33  ;;  %2544 = vmatprep.subr.bf16.mxu1 %v2096_v52  ;;  %v7982_v9 = vpack.c.bf16 %v12346_v57, %v12343_v51  ;;  %v2110_v33 = vld [vmem:[#allocation3 + $0x688] sm:$0xff]  ;;  %v2112_v52 = vld [vmem:[#allocation3 + $0x698] sm:$0xff]  ;;  %v12350_v57 = vmax.f32 %v12348_v56, %v12349_v18  ;;  %v12357_v51 = vmax.f32 %v12355_v26, %v12356_v54  ;;  %v12358_v44 = vld [vmem:[#allocation87_spill] sm:$0xff] }
 0x4c8   :  { %v12362_v18 = vld [vmem:[#allocation57_spill] sm:$0xff]  ;;  %v12368_v26 = vld [vmem:[#allocation88_spill] sm:$0xff]  ;;  %v12369_v54 = vld [vmem:[#allocation102_spill] sm:$0xff] }
 0x4c9   :  { %12347 = vst [vmem:[#allocation48_spill] sm:$0xff] %v7982_v9  ;;  %2262 = vmatmul.mubr.bf16.gmra.mrb[32].mxu0 %v7974_v3  ;;  %2488 = vmatmul.mubr.bf16.gmra.mrb[112].mxu1 %v7974_v3  ;;  %v7994_v62 = vpack.c.bf16 %v12353_v50, %v12350_v57  ;;  %v12365_v57 = vld [vmem:[#allocation58_spill] sm:$0xff] }
 0x4ca   :  { %2319 = vmatpush1.bf16.msra.mxu0 %v2093_v60  ;;  %2545 = vmatpush1.bf16.msra.mxu1 %v2095_v30  ;;  %v2109_v60 = vld [vmem:[#allocation3 + $0x680] sm:$0xff]  ;;  %v2111_v30 = vld [vmem:[#allocation3 + $0x690] sm:$0xff]  ;;  %v12367_v22 = vmax.f32 %v12365_v57, %v12366_v6  ;;  %v12378_v57 = vld [vmem:[#allocation76_spill] sm:$0xff] }
 0x4cb   :  { %2320 = vmatprep.subr.bf16.mxu0 %v2102_v16  ;;  %2546 = vmatprep.subr.bf16.mxu1 %v2104_v12  ;;  %12354 = vst [vmem:[#allocation64_spill] sm:$0xff] %v7994_v62  ;;  %v2118_v16 = vld [vmem:[#allocation3 + $0x6c8] sm:$0xff]  ;;  %v2120_v12 = vld [vmem:[#allocation3 + $0x6d8] sm:$0xff] }
 0x4cc   :  { %2271 = vmatprep.mubr.bf16.mxu0 %v7982_v9  ;;  %2497 = vmatprep.mubr.bf16.mxu1 %v7982_v9  ;;  %v12359_v9 = vld [vmem:[#allocation101_spill] sm:$0xff] }
 0x4cd   :  { %v12360_v3 = vmax.f32 %v12358_v44, %v12359_v9  ;;  %v12363_v9 = vld [vmem:[#allocation73_spill] sm:$0xff] }
 0x4ce   :  { %2321 = vmatpush1.bf16.msra.mxu0 %v2101_v17  ;;  %2547 = vmatpush1.bf16.msra.mxu1 %v2103_v20  ;;  %v2117_v17 = vld [vmem:[#allocation3 + $0x6c0] sm:$0xff]  ;;  %v2119_v20 = vld [vmem:[#allocation3 + $0x6d0] sm:$0xff] }
 0x4cf   :  { %2322 = vmatprep.subr.bf16.mxu0 %v2110_v33  ;;  %2548 = vmatprep.subr.bf16.mxu1 %v2112_v52  ;;  %v8002_v56 = vpack.c.bf16 %v12360_v3, %v12357_v51  ;;  %v2126_v33 = vld [vmem:[#allocation3 + $0x708] sm:$0xff]  ;;  %v2128_v52 = vld [vmem:[#allocation3 + $0x718] sm:$0xff]  ;;  %v12364_v3 = vmax.f32 %v12362_v18, %v12363_v9  ;;  %v12370_v51 = vmax.f32 %v12368_v26, %v12369_v54  ;;  %v12371_v44 = vld [vmem:[#allocation89_spill] sm:$0xff] }
 0x4d0   :  { %v12374_v9 = vld [vmem:[#allocation59_spill] sm:$0xff]  ;;  %v12380_v26 = vmax.f32 %v7765_v42, %v7797_v28  ;;  %v12381_v54 = vmax.f32 %v7767_v21, %v7800_v5  ;;  %v1906_v42 = vld [vmem:[#allocation3 + $0x28] sm:$0xff]  ;;  %v1908_v28 = vld [vmem:[#allocation3 + $0x38] sm:$0xff]  ;;  %v12382_v21 = vmax.f32 %v7588_v48, %v7621_v1  ;;  %v12383_v5 = vmax.f32 %v7590_v15, %v7624_v25 }
 0x4d1   :  { %12361 = vst [vmem:[#allocation78_spill] sm:$0xff] %v8002_v56  ;;  %2272 = vmatmul.mubr.bf16.gmra.mrb[36].mxu0 %v7994_v62  ;;  %2498 = vmatmul.mubr.bf16.gmra.mrb[116].mxu1 %v7994_v62  ;;  %v8014_v50 = vpack.c.bf16 %v12367_v22, %v12364_v3  ;;  %v12377_v3 = vld [vmem:[#allocation60_spill] sm:$0xff]  ;;  %v1913_v15 = vld [vmem:[#allocation3 + $0x60] sm:$0xff]  ;;  %v1915_v1 = vld [vmem:[#allocation3 + $0x70] sm:$0xff] }
 0x4d2   :  { %2323 = vmatpush1.bf16.msra.mxu0 %v2109_v60  ;;  %2549 = vmatpush1.bf16.msra.mxu1 %v2111_v30  ;;  %v2125_v60 = vld [vmem:[#allocation3 + $0x700] sm:$0xff]  ;;  %v2127_v30 = vld [vmem:[#allocation3 + $0x710] sm:$0xff]  ;;  %v12379_v6 = vmax.f32 %v12377_v3, %v12378_v57  ;;  %v12385_v3 = vmax.f32 %v7772_v14, %v7808_v47  ;;  %v1922_v25 = vld [vmem:[#allocation3 + $0xa8] sm:$0xff]  ;;  %v12388_v47 = vmax.f32 %v7594_v36, %v7633_v27 }
 0x4d3   :  { %2324 = vmatprep.subr.bf16.mxu0 %v2118_v16  ;;  %2550 = vmatprep.subr.bf16.mxu1 %v2120_v12  ;;  %v2134_v16 = vld [vmem:[#allocation3 + $0x748] sm:$0xff]  ;;  %v2136_v12 = vld [vmem:[#allocation3 + $0x758] sm:$0xff]  ;;  %v1929_v36 = vld [vmem:[#allocation3 + $0xe0] sm:$0xff] }
 0x4d4   :  { %2281 = vmatprep.mubr.bf16.mxu0 %v8002_v56  ;;  %2507 = vmatprep.mubr.bf16.mxu1 %v8002_v56  ;;  %v12372_v56 = vld [vmem:[#allocation103_spill] sm:$0xff]  ;;  %v12386_v14 = vld [vmem:[#allocation30_spill] sm:$0xff]  ;;  %v1931_v27 = vld [vmem:[#allocation3 + $0xf0] sm:$0xff] }
 0x4d5   :  { %v12373_v62 = vmax.f32 %v12371_v44, %v12372_v56  ;;  %v12375_v56 = vld [vmem:[#allocation75_spill] sm:$0xff] }
 0x4d6   :  { %2325 = vmatpush1.bf16.msra.mxu0 %v2117_v17  ;;  %2551 = vmatpush1.bf16.msra.mxu1 %v2119_v20  ;;  %v2133_v17 = vld [vmem:[#allocation3 + $0x740] sm:$0xff]  ;;  %v2135_v20 = vld [vmem:[#allocation3 + $0x750] sm:$0xff] }
 0x4d7   :  { %2326 = vmatprep.subr.bf16.mxu0 %v2126_v33  ;;  %2552 = vmatprep.subr.bf16.mxu1 %v2128_v52  ;;  %v8022_v18 = vpack.c.bf16 %v12373_v62, %v12370_v51  ;;  %v2142_v33 = vld [vmem:[#allocation3 + $0x788] sm:$0xff]  ;;  %v2144_v52 = vld [vmem:[#allocation3 + $0x798] sm:$0xff]  ;;  %v12376_v62 = vmax.f32 %v12374_v9, %v12375_v56  ;;  %v8042_v51 = vpack.c.bf16 %v12381_v54, %v12380_v26  ;;  %v2149_v44 = vld [vmem:[#allocation3 + $0x7c0] sm:$0xff] }
 0x4d8   :  { %v1914_v9 = vld [vmem:[#allocation3 + $0x68] sm:$0xff]  ;;  %v1916_v56 = vld [vmem:[#allocation3 + $0x78] sm:$0xff]  ;;  %v12390_v26 = vmax.f32 %v7776_v39, %v7814_v7  ;;  %v12391_v39 = vmax.f32 %v7596_v63, %v7636_v0  ;;  %v12392_v7 = vmax.f32 %v7598_v45, %v7639_v34  ;;  %v1945_v45 = vld [vmem:[#allocation3 + $0x160] sm:$0xff] }
 0x4d9   :  { %2282 = vmatmul.mubr.bf16.gmra.mrb[40].mxu0 %v8014_v50  ;;  %2508 = vmatmul.mubr.bf16.gmra.mrb[120].mxu1 %v8014_v50  ;;  %v8034_v22 = vpack.c.bf16 %v12379_v6, %v12376_v62  ;;  %v12384_v62 = vmax.f32 %v7769_v38, %v7803_v41  ;;  %v1924_v38 = vld [vmem:[#allocation3 + $0xb8] sm:$0xff]  ;;  %v12387_v41 = vmax.f32 %v7592_v46, %v12386_v14  ;;  %v1921_v6 = vld [vmem:[#allocation3 + $0xa0] sm:$0xff]  ;;  %v1947_v0 = vld [vmem:[#allocation3 + $0x170] sm:$0xff] }
 0x4da   :  { %2327 = vmatpush1.bf16.msra.mxu0 %v2125_v60  ;;  %2553 = vmatpush1.bf16.msra.mxu1 %v2127_v30  ;;  %v2141_v60 = vld [vmem:[#allocation3 + $0x780] sm:$0xff]  ;;  %v2143_v30 = vld [vmem:[#allocation3 + $0x790] sm:$0xff]  ;;  %v8094_v54 = vpack.c.bf16 %v12392_v7, %v12391_v39  ;;  %v1954_v34 = vld [vmem:[#allocation3 + $0x1a8] sm:$0xff] }
 0x4db   :  { %2328 = vmatprep.subr.bf16.mxu0 %v2134_v16  ;;  %2554 = vmatprep.subr.bf16.mxu1 %v2136_v12  ;;  %v2150_v16 = vld [vmem:[#allocation3 + $0x7c8] sm:$0xff]  ;;  %v2152_v12 = vld [vmem:[#allocation3 + $0x7d8] sm:$0xff]  ;;  %v8062_v48 = vpack.c.bf16 %v12385_v3, %v12384_v62  ;;  %v8074_v57 = vpack.c.bf16 %v12388_v47, %v12387_v41  ;;  %v12397_v62 = vmax.f32 %v7782_v31, %v7823_v55  ;;  %v12400_v55 = vld [vmem:[#allocation25_spill] sm:$0xff] }
 0x4dc   :  { %2291 = vmatprep.mubr.bf16.mxu0 %v8022_v18  ;;  %2517 = vmatprep.mubr.bf16.mxu1 %v8022_v18  ;;  %v12398_v3 = vmax.f32 %v7784_v4, %v7828_v29  ;;  %v1972_v31 = vld [vmem:[#allocation3 + $0x238] sm:$0xff]  ;;  %v12399_v4 = vmax.f32 %v7604_v35, %v7651_v11  ;;  %v12401_v29 = vmax.f32 %v7606_v53, %v12400_v55  ;;  %v1977_v53 = vld [vmem:[#allocation3 + $0x260] sm:$0xff]  ;;  %v1979_v11 = vld [vmem:[#allocation3 + $0x270] sm:$0xff] }
 0x4dd   :  { %v1980_v14 = vld [vmem:[#allocation3 + $0x278] sm:$0xff]  ;;  %v12402_v41 = vmax.f32 %v7786_v23, %v7831_v37  ;;  %v12403_v47 = vmax.f32 %v7788_v8, %v7834_v13  ;;  %v1986_v23 = vld [vmem:[#allocation3 + $0x2a8] sm:$0xff]  ;;  %v12412_v7 = vld [vmem:[#allocation29_spill] sm:$0xff] }
 0x4de   :  { %2329 = vmatpush1.bf16.msra.mxu0 %v2133_v17  ;;  %2555 = vmatpush1.bf16.msra.mxu1 %v2135_v20  ;;  %v2151_v17 = vld [vmem:[#allocation3 + $0x7d0] sm:$0xff]  ;;  %v8054_v20 = vpack.c.bf16 %v12383_v5, %v12382_v21  ;;  %v12393_v21 = vmax.f32 %v7778_v61, %v7817_v43  ;;  %v12394_v5 = vmax.f32 %v7780_v24, %v7820_v40  ;;  %v1956_v61 = vld [vmem:[#allocation3 + $0x1b8] sm:$0xff] }
 0x4df   :  { %2330 = vmatprep.subr.bf16.mxu0 %v2142_v33  ;;  %2556 = vmatprep.subr.bf16.mxu1 %v2144_v52  ;;  %v1905_v33 = vld [vmem:[#allocation3 + $0x20] sm:$0xff]  ;;  %v1907_v52 = vld [vmem:[#allocation3 + $0x30] sm:$0xff]  ;;  %v12395_v24 = vmax.f32 %v7600_v49, %v7645_v32  ;;  %v12396_v43 = vmax.f32 %v7602_v10, %v7648_v59  ;;  %v8122_v49 = vpack.c.bf16 %v12398_v3, %v12397_v62  ;;  %v1970_v59 = vld [vmem:[#allocation3 + $0x228] sm:$0xff] }
 0x4e0   :  { %v8102_v63 = vpack.c.bf16 %v12394_v5, %v12393_v21  ;;  %v1961_v10 = vld [vmem:[#allocation3 + $0x1e0] sm:$0xff]  ;;  %v1963_v32 = vld [vmem:[#allocation3 + $0x1f0] sm:$0xff]  ;;  %v8142_v35 = vpack.c.bf16 %v12403_v47, %v12402_v41  ;;  %v1988_v37 = vld [vmem:[#allocation3 + $0x2b8] sm:$0xff] }
 0x4e1   :  { %2292 = vmatmul.mubr.bf16.gmra.mrb[44].mxu0 %v8034_v22  ;;  %2518 = vmatmul.mubr.bf16.gmra.mrb[124].mxu1 %v8034_v22  ;;  %v8114_v40 = vpack.c.bf16 %v12396_v43, %v12395_v24  ;;  %v12404_v8 = vld [vmem:[#allocation26_spill] sm:$0xff]  ;;  %v2002_v21 = vld [vmem:[#allocation3 + $0x328] sm:$0xff]  ;;  %v12421_v3 = vld [vmem:[#allocation33_spill] sm:$0xff] }
 0x4e2   :  { %2331 = vmatpush1.bf16.msra.mxu0 %v2141_v60  ;;  %2557 = vmatpush1.bf16.msra.mxu1 %v2143_v30  ;;  %v1923_v60 = vld [vmem:[#allocation3 + $0xb0] sm:$0xff]  ;;  %v1930_v30 = vld [vmem:[#allocation3 + $0xe8] sm:$0xff]  ;;  %v12405_v13 = vmax.f32 %v7608_v19, %v12404_v8  ;;  %v2004_v5 = vld [vmem:[#allocation3 + $0x338] sm:$0xff] }
 0x4e3   :  { %2332 = vmatprep.subr.bf16.mxu0 %v2150_v16  ;;  %2558 = vmatprep.subr.bf16.mxu1 %v2152_v12  ;;  %v1932_v16 = vld [vmem:[#allocation3 + $0xf8] sm:$0xff]  ;;  %v12389_v12 = vmax.f32 %v7774_v58, %v7811_v2  ;;  %v1938_v58 = vld [vmem:[#allocation3 + $0x128] sm:$0xff]  ;;  %v12428_v41 = vld [vmem:[#allocation27_spill] sm:$0xff] }
 0x4e4   :  { %2334 = vmatprep.mubr.bf16.mxu0 %v8042_v51  ;;  %2560 = vmatprep.mubr.bf16.mxu1 %v8042_v51  ;;  %v1940_v2 = vld [vmem:[#allocation3 + $0x138] sm:$0xff]  ;;  %v2017_v8 = vld [vmem:[#allocation3 + $0x3a0] sm:$0xff] }
 0x4e5   :  { %v8082_v46 = vpack.c.bf16 %v12390_v26, %v12389_v12  ;;  %v1985_v12 = vld [vmem:[#allocation3 + $0x2a0] sm:$0xff]  ;;  %v1987_v26 = vld [vmem:[#allocation3 + $0x2b0] sm:$0xff]  ;;  %v12419_v24 = vld [vmem:[#allocation38_spill] sm:$0xff] }
 0x4e6   :  { %2333 = vmatpush1.bf16.msra.mxu0 %v2149_v44  ;;  %2559 = vmatpush1.bf16.msra.mxu1 %v2151_v17  ;;  %v1937_v44 = vld [vmem:[#allocation3 + $0x120] sm:$0xff]  ;;  %v1939_v17 = vld [vmem:[#allocation3 + $0x130] sm:$0xff]  ;;  %v2012_v62 = vld [vmem:[#allocation3 + $0x378] sm:$0xff] }
 0x4e7   :  { %2641 = vmatprep.subr.bf16.mxu0 %v1906_v42  ;;  %2867 = vmatprep.subr.bf16.mxu1 %v1908_v28  ;;  %v1946_v42 = vld [vmem:[#allocation3 + $0x168] sm:$0xff]  ;;  %v1948_v28 = vld [vmem:[#allocation3 + $0x178] sm:$0xff] }
 0x4e9   :  { %2335 = vmatmul.mubr.bf16.vlgmr.msra.gmra.mrb[16].mxu0 %v8054_v20  ;;  %2561 = vmatmul.mubr.bf16.vlgmr.msra.gmra.mrb[96].mxu1 %v8054_v20 }
 0x4ea   :  { %2642 = vmatpush1.bf16.msra.mxu0 %v1905_v33  ;;  %2868 = vmatpush1.bf16.msra.mxu1 %v1907_v52  ;;  %v1953_v33 = vld [vmem:[#allocation3 + $0x1a0] sm:$0xff]  ;;  %v1955_v52 = vld [vmem:[#allocation3 + $0x1b0] sm:$0xff] }
 0x4eb   :  { %2643 = vmatprep.subr.bf16.mxu0 %v1914_v9  ;;  %2869 = vmatprep.subr.bf16.mxu1 %v1916_v56  ;;  %v1962_v9 = vld [vmem:[#allocation3 + $0x1e8] sm:$0xff]  ;;  %v1964_v56 = vld [vmem:[#allocation3 + $0x1f8] sm:$0xff] }
 0x4ec   :  { %2344 = vmatprep.mubr.bf16.mxu0 %v8062_v48  ;;  %2570 = vmatprep.mubr.bf16.mxu1 %v8062_v48 }
 0x4ee   :  { %2644 = vmatpush1.bf16.msra.mxu0 %v1913_v15  ;;  %2870 = vmatpush1.bf16.msra.mxu1 %v1915_v1  ;;  %v8134_v15 = vpack.c.bf16 %v12401_v29, %v12399_v4  ;;  %v1969_v1 = vld [vmem:[#allocation3 + $0x220] sm:$0xff] }
 0x4ef   :  { %2645 = vmatprep.subr.bf16.mxu0 %v1922_v25  ;;  %2871 = vmatprep.subr.bf16.mxu1 %v1924_v38  ;;  %v1971_v25 = vld [vmem:[#allocation3 + $0x230] sm:$0xff]  ;;  %v1978_v38 = vld [vmem:[#allocation3 + $0x268] sm:$0xff]  ;;  %v2009_v29 = vld [vmem:[#allocation3 + $0x360] sm:$0xff] }
 0x4f1   :  { %2345 = vmatmul.mubr.bf16.gmra.mrb[20].mxu0 %v8074_v57  ;;  %2571 = vmatmul.mubr.bf16.gmra.mrb[100].mxu1 %v8074_v57 }
 0x4f2   :  { %2646 = vmatpush1.bf16.msra.mxu0 %v1921_v6  ;;  %2872 = vmatpush1.bf16.msra.mxu1 %v1923_v60  ;;  %v12406_v6 = vld [vmem:[#allocation42_spill] sm:$0xff]  ;;  %v12407_v60 = vld [vmem:[#allocation32_spill] sm:$0xff] }
 0x4f3   :  { %2647 = vmatprep.subr.bf16.mxu0 %v1930_v30  ;;  %2873 = vmatprep.subr.bf16.mxu1 %v1932_v16  ;;  %v12408_v30 = vmax.f32 %v12406_v6, %v12407_v60  ;;  %v2026_v6 = vld [vmem:[#allocation3 + $0x3e8] sm:$0xff]  ;;  %v2028_v60 = vld [vmem:[#allocation3 + $0x3f8] sm:$0xff] }
 0x4f4   :  { %2354 = vmatprep.mubr.bf16.mxu0 %v8082_v46  ;;  %2580 = vmatprep.mubr.bf16.mxu1 %v8082_v46 }
 0x4f5   :  { %v8154_v16 = vpack.c.bf16 %v12408_v30, %v12405_v13  ;;  %v2019_v13 = vld [vmem:[#allocation3 + $0x3b0] sm:$0xff]  ;;  %v2025_v30 = vld [vmem:[#allocation3 + $0x3e0] sm:$0xff] }
 0x4f6   :  { %2648 = vmatpush1.bf16.msra.mxu0 %v1929_v36  ;;  %2874 = vmatpush1.bf16.msra.mxu1 %v1931_v27  ;;  %v1994_v36 = vld [vmem:[#allocation3 + $0x2e8] sm:$0xff]  ;;  %v1996_v27 = vld [vmem:[#allocation3 + $0x2f8] sm:$0xff] }
 0x4f7   :  { %2649 = vmatprep.subr.bf16.mxu0 %v1938_v58  ;;  %2875 = vmatprep.subr.bf16.mxu1 %v1940_v2  ;;  %v12409_v58 = vld [vmem:[#allocation28_spill] sm:$0xff] }
 0x4f8   :  { %v12410_v2 = vld [vmem:[#allocation36_spill] sm:$0xff] }
 0x4f9   :  { %2355 = vmatmul.mubr.bf16.gmra.mrb[24].mxu0 %v8094_v54  ;;  %2581 = vmatmul.mubr.bf16.gmra.mrb[104].mxu1 %v8094_v54  ;;  %v12411_v39 = vmax.f32 %v12409_v58, %v12410_v2  ;;  %v2033_v58 = vld [vmem:[#allocation3 + $0x420] sm:$0xff]  ;;  %v2035_v2 = vld [vmem:[#allocation3 + $0x430] sm:$0xff] }
 0x4fa   :  { %2650 = vmatpush1.bf16.msra.mxu0 %v1937_v44  ;;  %2876 = vmatpush1.bf16.msra.mxu1 %v1939_v17  ;;  %v12413_v44 = vld [vmem:[#allocation37_spill] sm:$0xff] }
 0x4fb   :  { %2651 = vmatprep.subr.bf16.mxu0 %v1946_v42  ;;  %2877 = vmatprep.subr.bf16.mxu1 %v1948_v28  ;;  %v12414_v17 = vmax.f32 %v12412_v7, %v12413_v44  ;;  %v1993_v42 = vld [vmem:[#allocation3 + $0x2e0] sm:$0xff]  ;;  %v1995_v28 = vld [vmem:[#allocation3 + $0x2f0] sm:$0xff]  ;;  %v2044_v7 = vld [vmem:[#allocation3 + $0x478] sm:$0xff] }
 0x4fc   :  { %2364 = vmatprep.mubr.bf16.mxu0 %v8102_v63  ;;  %2590 = vmatprep.mubr.bf16.mxu1 %v8102_v63  ;;  %v12434_v44 = vld [vmem:[#allocation45_spill] sm:$0xff] }
 0x4fd   :  { %v8162_v19 = vpack.c.bf16 %v12414_v17, %v12411_v39  ;;  %v2042_v39 = vld [vmem:[#allocation3 + $0x468] sm:$0xff]  ;;  %v2041_v17 = vld [vmem:[#allocation3 + $0x460] sm:$0xff] }
 0x4fe   :  { %2652 = vmatpush1.bf16.msra.mxu0 %v1945_v45  ;;  %2878 = vmatpush1.bf16.msra.mxu1 %v1947_v0  ;;  %v12415_v45 = vld [vmem:[#allocation41_spill] sm:$0xff]  ;;  %v12416_v0 = vld [vmem:[#allocation34_spill] sm:$0xff] }
 0x4ff   :  { %2653 = vmatprep.subr.bf16.mxu0 %v1954_v34  ;;  %2879 = vmatprep.subr.bf16.mxu1 %v1956_v61  ;;  %v12417_v34 = vmax.f32 %v12415_v45, %v12416_v0  ;;  %v12418_v61 = vld [vmem:[#allocation43_spill] sm:$0xff]  ;;  %v2051_v0 = vld [vmem:[#allocation3 + $0x4b0] sm:$0xff] }
 0x500   :  { %v12420_v43 = vmax.f32 %v12418_v61, %v12419_v24  ;;  %v2049_v45 = vld [vmem:[#allocation3 + $0x4a0] sm:$0xff]  ;;  %v2060_v61 = vld [vmem:[#allocation3 + $0x4f8] sm:$0xff] }
 0x501   :  { %2365 = vmatmul.mubr.bf16.gmra.mrb[28].mxu0 %v8114_v40  ;;  %2591 = vmatmul.mubr.bf16.gmra.mrb[108].mxu1 %v8114_v40  ;;  %v12436_v24 = vld [vmem:[#allocation46_spill] sm:$0xff] }
 0x502   :  { %2654 = vmatpush1.bf16.msra.mxu0 %v1953_v33  ;;  %2880 = vmatpush1.bf16.msra.mxu1 %v1955_v52  ;;  %v8174_v33 = vpack.c.bf16 %v12420_v43, %v12417_v34  ;;  %v2001_v52 = vld [vmem:[#allocation3 + $0x320] sm:$0xff]  ;;  %v2058_v34 = vld [vmem:[#allocation3 + $0x4e8] sm:$0xff] }
 0x503   :  { %2655 = vmatprep.subr.bf16.mxu0 %v1962_v9  ;;  %2881 = vmatprep.subr.bf16.mxu1 %v1964_v56  ;;  %v2003_v9 = vld [vmem:[#allocation3 + $0x330] sm:$0xff]  ;;  %v2010_v56 = vld [vmem:[#allocation3 + $0x368] sm:$0xff]  ;;  %v2057_v43 = vld [vmem:[#allocation3 + $0x4e0] sm:$0xff] }
 0x504   :  { %2374 = vmatprep.mubr.bf16.mxu0 %v8122_v49  ;;  %2600 = vmatprep.mubr.bf16.mxu1 %v8122_v49 }
 0x506   :  { %2656 = vmatpush1.bf16.msra.mxu0 %v1961_v10  ;;  %2882 = vmatpush1.bf16.msra.mxu1 %v1963_v32  ;;  %v12422_v10 = vld [vmem:[#allocation104_spill] sm:$0xff] }
 0x507   :  { %2657 = vmatprep.subr.bf16.mxu0 %v1970_v59  ;;  %2883 = vmatprep.subr.bf16.mxu1 %v1972_v31  ;;  %v12423_v32 = vmax.f32 %v12421_v3, %v12422_v10  ;;  %v12424_v59 = vld [vmem:[#allocation35_spill] sm:$0xff]  ;;  %v12425_v31 = vld [vmem:[#allocation105_spill] sm:$0xff] }
 0x508   :  { %v12426_v4 = vmax.f32 %v12424_v59, %v12425_v31  ;;  %v2065_v3 = vld [vmem:[#allocation3 + $0x520] sm:$0xff]  ;;  %v2067_v10 = vld [vmem:[#allocation3 + $0x530] sm:$0xff]  ;;  %v2076_v59 = vld [vmem:[#allocation3 + $0x578] sm:$0xff] }
 0x509   :  { %2375 = vmatmul.mubr.bf16.gmra.mrb[32].mxu0 %v8134_v15  ;;  %2601 = vmatmul.mubr.bf16.gmra.mrb[112].mxu1 %v8134_v15  ;;  %v12438_v31 = vld [vmem:[#allocation90_spill] sm:$0xff] }
 0x50a   :  { %2658 = vmatpush1.bf16.msra.mxu0 %v1969_v1  ;;  %2884 = vmatpush1.bf16.msra.mxu1 %v1971_v25  ;;  %v8182_v55 = vpack.c.bf16 %v12426_v4, %v12423_v32  ;;  %v2011_v1 = vld [vmem:[#allocation3 + $0x370] sm:$0xff]  ;;  %v2018_v25 = vld [vmem:[#allocation3 + $0x3a8] sm:$0xff]  ;;  %v2073_v4 = vld [vmem:[#allocation3 + $0x560] sm:$0xff] }
 0x50b   :  { %2659 = vmatprep.subr.bf16.mxu0 %v1978_v38  ;;  %2885 = vmatprep.subr.bf16.mxu1 %v1980_v14  ;;  %v2020_v38 = vld [vmem:[#allocation3 + $0x3b8] sm:$0xff]  ;;  %v12427_v14 = vld [vmem:[#allocation44_spill] sm:$0xff] }
 0x50c   :  { %2384 = vmatprep.mubr.bf16.mxu0 %v8142_v35  ;;  %2610 = vmatprep.mubr.bf16.mxu1 %v8142_v35  ;;  %v12429_v47 = vmax.f32 %v12427_v14, %v12428_v41  ;;  %v2074_v32 = vld [vmem:[#allocation3 + $0x568] sm:$0xff]  ;;  %v2081_v14 = vld [vmem:[#allocation3 + $0x5a0] sm:$0xff]  ;;  %v2083_v41 = vld [vmem:[#allocation3 + $0x5b0] sm:$0xff] }
 0x50e   :  { %2660 = vmatpush1.bf16.msra.mxu0 %v1977_v53  ;;  %2886 = vmatpush1.bf16.msra.mxu1 %v1979_v11  ;;  %v12430_v53 = vld [vmem:[#allocation24_spill] sm:$0xff]  ;;  %v12431_v11 = vld [vmem:[#allocation31_spill] sm:$0xff] }
 0x50f   :  { %2661 = vmatprep.subr.bf16.mxu0 %v1986_v23  ;;  %2887 = vmatprep.subr.bf16.mxu1 %v1988_v37  ;;  %v12432_v23 = vmax.f32 %v12430_v53, %v12431_v11  ;;  %v2092_v53 = vld [vmem:[#allocation3 + $0x5f8] sm:$0xff]  ;;  %v12440_v11 = vld [vmem:[#allocation91_spill] sm:$0xff] }
 0x511   :  { %2385 = vmatmul.mubr.bf16.gmra.mrb[36].mxu0 %v8154_v16  ;;  %2611 = vmatmul.mubr.bf16.gmra.mrb[116].mxu1 %v8154_v16  ;;  %v8194_v37 = vpack.c.bf16 %v12432_v23, %v12429_v47  ;;  %v2090_v47 = vld [vmem:[#allocation3 + $0x5e8] sm:$0xff]  ;;  %v2089_v23 = vld [vmem:[#allocation3 + $0x5e0] sm:$0xff] }
 0x512   :  { %2662 = vmatpush1.bf16.msra.mxu0 %v1985_v12  ;;  %2888 = vmatpush1.bf16.msra.mxu1 %v1987_v26  ;;  %v2027_v12 = vld [vmem:[#allocation3 + $0x3f0] sm:$0xff]  ;;  %v12433_v26 = vld [vmem:[#allocation106_spill] sm:$0xff] }
 0x513   :  { %2663 = vmatprep.subr.bf16.mxu0 %v1994_v36  ;;  %2889 = vmatprep.subr.bf16.mxu1 %v1996_v27  ;;  %v2034_v36 = vld [vmem:[#allocation3 + $0x428] sm:$0xff]  ;;  %v2036_v27 = vld [vmem:[#allocation3 + $0x438] sm:$0xff] }
 0x514   :  { %2394 = vmatprep.mubr.bf16.mxu0 %v8162_v19  ;;  %2620 = vmatprep.mubr.bf16.mxu1 %v8162_v19 }
 0x516   :  { %2664 = vmatpush1.bf16.msra.mxu0 %v1993_v42  ;;  %2890 = vmatpush1.bf16.msra.mxu1 %v1995_v28  ;;  %v2043_v42 = vld [vmem:[#allocation3 + $0x470] sm:$0xff] }
 0x517   :  { %2665 = vmatprep.subr.bf16.mxu0 %v2002_v21  ;;  %2891 = vmatprep.subr.bf16.mxu1 %v2004_v5  ;;  %v12435_v28 = vld [vmem:[#allocation61_spill] sm:$0xff]  ;;  %v2050_v21 = vld [vmem:[#allocation3 + $0x4a8] sm:$0xff]  ;;  %v2052_v5 = vld [vmem:[#allocation3 + $0x4b8] sm:$0xff] }
 0x519   :  { %2395 = vmatmul.mubr.bf16.gmra.mrb[40].mxu0 %v8174_v33  ;;  %2621 = vmatmul.mubr.bf16.gmra.mrb[120].mxu1 %v8174_v33 }
 0x51a   :  { %2666 = vmatpush1.bf16.msra.mxu0 %v2001_v52  ;;  %2892 = vmatpush1.bf16.msra.mxu1 %v2003_v9  ;;  %v2059_v52 = vld [vmem:[#allocation3 + $0x4f0] sm:$0xff]  ;;  %v12437_v9 = vld [vmem:[#allocation62_spill] sm:$0xff] }
 0x51b   :  { %2667 = vmatprep.subr.bf16.mxu0 %v2010_v56  ;;  %2893 = vmatprep.subr.bf16.mxu1 %v2012_v62  ;;  %v2066_v56 = vld [vmem:[#allocation3 + $0x528] sm:$0xff]  ;;  %v2068_v62 = vld [vmem:[#allocation3 + $0x538] sm:$0xff] }
 0x51c   :  { %2404 = vmatprep.mubr.bf16.mxu0 %v8182_v55  ;;  %2630 = vmatprep.mubr.bf16.mxu1 %v8182_v55 }
 0x51e   :  { %2668 = vmatpush1.bf16.msra.mxu0 %v2009_v29  ;;  %2894 = vmatpush1.bf16.msra.mxu1 %v2011_v1  ;;  %v2075_v29 = vld [vmem:[#allocation3 + $0x570] sm:$0xff] }
 0x51f   :  { %2669 = vmatprep.subr.bf16.mxu0 %v2018_v25  ;;  %2895 = vmatprep.subr.bf16.mxu1 %v2020_v38  ;;  %v12439_v1 = vld [vmem:[#allocation77_spill] sm:$0xff]  ;;  %v2082_v25 = vld [vmem:[#allocation3 + $0x5a8] sm:$0xff]  ;;  %v2084_v38 = vld [vmem:[#allocation3 + $0x5b8] sm:$0xff] }
 0x521   :  { %2405 = vmatmul.mubr.bf16.gmra.mrb[44].mxu0 %v8194_v37  ;;  %2631 = vmatmul.mubr.bf16.gmra.mrb[124].mxu1 %v8194_v37 }
 0x522   :  { %2670 = vmatpush1.bf16.msra.mxu0 %v2017_v8  ;;  %2896 = vmatpush1.bf16.msra.mxu1 %v2019_v13  ;;  %v2091_v8 = vld [vmem:[#allocation3 + $0x5f0] sm:$0xff]  ;;  %v12441_v13 = vld [vmem:[#allocation47_spill] sm:$0xff] }
 0x523   :  { %2671 = vmatprep.subr.bf16.mxu0 %v2026_v6  ;;  %2897 = vmatprep.subr.bf16.mxu1 %v2028_v60  ;;  %v2098_v6 = vld [vmem:[#allocation3 + $0x628] sm:$0xff]  ;;  %v2100_v60 = vld [vmem:[#allocation3 + $0x638] sm:$0xff] }
 0x524   :  { %2673 = vmatprep.mubr.bf16.mxu0 %v12433_v26  ;;  %2899 = vmatprep.mubr.bf16.mxu1 %v12433_v26  ;;  %v2106_v26 = vld [vmem:[#allocation3 + $0x668] sm:$0xff] }
 0x526   :  { %2672 = vmatpush1.bf16.msra.mxu0 %v2025_v30  ;;  %2898 = vmatpush1.bf16.msra.mxu1 %v2027_v12  ;;  %v2097_v30 = vld [vmem:[#allocation3 + $0x620] sm:$0xff]  ;;  %v2099_v12 = vld [vmem:[#allocation3 + $0x630] sm:$0xff] }
 0x527   :  { %2754 = vmatprep.subr.bf16.mxu0 %v2034_v36  ;;  %2980 = vmatprep.subr.bf16.mxu1 %v2036_v27  ;;  %v2108_v36 = vld [vmem:[#allocation3 + $0x678] sm:$0xff]  ;;  %v12442_v27 = vld [vmem:[#allocation63_spill] sm:$0xff] }
 0x529   :  { %2674 = vmatmul.mubr.bf16.vlgmr.msra.gmra.mrb[48].mxu0 %v12434_v44  ;;  %2900 = vmatmul.mubr.bf16.vlgmr.msra.gmra.mrb[128].mxu1 %v12434_v44  ;;  %v2116_v44 = vld [vmem:[#allocation3 + $0x6b8] sm:$0xff] }
 0x52a   :  { %2755 = vmatpush1.bf16.msra.mxu0 %v2033_v58  ;;  %2981 = vmatpush1.bf16.msra.mxu1 %v2035_v2  ;;  %v2105_v58 = vld [vmem:[#allocation3 + $0x660] sm:$0xff]  ;;  %v2107_v2 = vld [vmem:[#allocation3 + $0x670] sm:$0xff] }
 0x52b   :  { %2756 = vmatprep.subr.bf16.mxu0 %v2042_v39  ;;  %2982 = vmatprep.subr.bf16.mxu1 %v2044_v7  ;;  %v12443_v39 = vld [vmem:[#allocation48_spill] sm:$0xff] }
 0x52c   :  { %2683 = vmatprep.mubr.bf16.mxu0 %v12435_v28  ;;  %2909 = vmatprep.mubr.bf16.mxu1 %v12435_v28  ;;  %v2114_v7 = vld [vmem:[#allocation3 + $0x6a8] sm:$0xff] }
 0x52d   :  { %v2122_v28 = vld [vmem:[#allocation3 + $0x6e8] sm:$0xff] }
 0x52e   :  { %2757 = vmatpush1.bf16.msra.mxu0 %v2041_v17  ;;  %2983 = vmatpush1.bf16.msra.mxu1 %v2043_v42  ;;  %v2113_v17 = vld [vmem:[#allocation3 + $0x6a0] sm:$0xff]  ;;  %v2115_v42 = vld [vmem:[#allocation3 + $0x6b0] sm:$0xff] }
 0x52f   :  { %2758 = vmatprep.subr.bf16.mxu0 %v2050_v21  ;;  %2984 = vmatprep.subr.bf16.mxu1 %v2052_v5  ;;  %v2124_v21 = vld [vmem:[#allocation3 + $0x6f8] sm:$0xff]  ;;  %v12444_v5 = vld [vmem:[#allocation64_spill] sm:$0xff] }
 0x531   :  { %2684 = vmatmul.mubr.bf16.gmra.mrb[52].mxu0 %v12436_v24  ;;  %2910 = vmatmul.mubr.bf16.gmra.mrb[132].mxu1 %v12436_v24  ;;  %v2132_v24 = vld [vmem:[#allocation3 + $0x738] sm:$0xff] }
 0x532   :  { %2759 = vmatpush1.bf16.msra.mxu0 %v2049_v45  ;;  %2985 = vmatpush1.bf16.msra.mxu1 %v2051_v0  ;;  %v2121_v45 = vld [vmem:[#allocation3 + $0x6e0] sm:$0xff]  ;;  %v2123_v0 = vld [vmem:[#allocation3 + $0x6f0] sm:$0xff] }
 0x533   :  { %2760 = vmatprep.subr.bf16.mxu0 %v2058_v34  ;;  %2986 = vmatprep.subr.bf16.mxu1 %v2060_v61  ;;  %v12445_v34 = vld [vmem:[#allocation78_spill] sm:$0xff]  ;;  %v2130_v61 = vld [vmem:[#allocation3 + $0x728] sm:$0xff] }
 0x534   :  { %2693 = vmatprep.mubr.bf16.mxu0 %v12437_v9  ;;  %2919 = vmatprep.mubr.bf16.mxu1 %v12437_v9  ;;  %v2138_v9 = vld [vmem:[#allocation3 + $0x768] sm:$0xff] }
 0x536   :  { %2761 = vmatpush1.bf16.msra.mxu0 %v2057_v43  ;;  %2987 = vmatpush1.bf16.msra.mxu1 %v2059_v52  ;;  %v2129_v43 = vld [vmem:[#allocation3 + $0x720] sm:$0xff]  ;;  %v2131_v52 = vld [vmem:[#allocation3 + $0x730] sm:$0xff] }
 0x537   :  { %2762 = vmatprep.subr.bf16.mxu0 %v2066_v56  ;;  %2988 = vmatprep.subr.bf16.mxu1 %v2068_v62  ;;  %v2140_v56 = vld [vmem:[#allocation3 + $0x778] sm:$0xff]  ;;  %v2137_v62 = vld [vmem:[#allocation3 + $0x760] sm:$0xff] }
 0x539   :  { %2694 = vmatmul.mubr.bf16.gmra.mrb[56].mxu0 %v12438_v31  ;;  %2920 = vmatmul.mubr.bf16.gmra.mrb[136].mxu1 %v12438_v31  ;;  %v2147_v31 = vld [vmem:[#allocation3 + $0x7b0] sm:$0xff] }
 0x53a   :  { %2763 = vmatpush1.bf16.msra.mxu0 %v2065_v3  ;;  %2989 = vmatpush1.bf16.msra.mxu1 %v2067_v10  ;;  %v2139_v3 = vld [vmem:[#allocation3 + $0x770] sm:$0xff]  ;;  %v2146_v10 = vld [vmem:[#allocation3 + $0x7a8] sm:$0xff] }
 0x53b   :  { %2764 = vmatprep.subr.bf16.mxu0 %v2074_v32  ;;  %2990 = vmatprep.subr.bf16.mxu1 %v2076_v59  ;;  %v2148_v32 = vld [vmem:[#allocation3 + $0x7b8] sm:$0xff]  ;;  %v2145_v59 = vld [vmem:[#allocation3 + $0x7a0] sm:$0xff] }
 0x53c   :  { %2703 = vmatprep.mubr.bf16.mxu0 %v12439_v1  ;;  %2929 = vmatprep.mubr.bf16.mxu1 %v12439_v1 }
 0x53e   :  { %2765 = vmatpush1.bf16.msra.mxu0 %v2073_v4  ;;  %2991 = vmatpush1.bf16.msra.mxu1 %v2075_v29  ;;  %v2154_v4 = vld [vmem:[#allocation3 + $0x7e8] sm:$0xff]  ;;  %v2153_v29 = vld [vmem:[#allocation3 + $0x7e0] sm:$0xff] }
 0x53f   :  { %2766 = vmatprep.subr.bf16.mxu0 %v2082_v25  ;;  %2992 = vmatprep.subr.bf16.mxu1 %v2084_v38 }
 0x541   :  { %2704 = vmatmul.mubr.bf16.gmra.mrb[60].mxu0 %v12440_v11  ;;  %2930 = vmatmul.mubr.bf16.gmra.mrb[140].mxu1 %v12440_v11 }
 0x542   :  { %2767 = vmatpush1.bf16.msra.mxu0 %v2081_v14  ;;  %2993 = vmatpush1.bf16.msra.mxu1 %v2083_v41 }
 0x543   :  { %2768 = vmatprep.subr.bf16.mxu0 %v2090_v47  ;;  %2994 = vmatprep.subr.bf16.mxu1 %v2092_v53 }
 0x544   :  { %2713 = vmatprep.mubr.bf16.mxu0 %v12441_v13  ;;  %2939 = vmatprep.mubr.bf16.mxu1 %v12441_v13 }
 0x546   :  { %2769 = vmatpush1.bf16.msra.mxu0 %v2089_v23  ;;  %2995 = vmatpush1.bf16.msra.mxu1 %v2091_v8 }
 0x547   :  { %2770 = vmatprep.subr.bf16.mxu0 %v2098_v6  ;;  %2996 = vmatprep.subr.bf16.mxu1 %v2100_v60 }
 0x549   :  { %2714 = vmatmul.mubr.bf16.gmra.mrb[64].mxu0 %v12442_v27  ;;  %2940 = vmatmul.mubr.bf16.gmra.mrb[144].mxu1 %v12442_v27 }
 0x54a   :  { %2771 = vmatpush1.bf16.msra.mxu0 %v2097_v30  ;;  %2997 = vmatpush1.bf16.msra.mxu1 %v2099_v12 }
 0x54b   :  { %2772 = vmatprep.subr.bf16.mxu0 %v2106_v26  ;;  %2998 = vmatprep.subr.bf16.mxu1 %v2108_v36 }
 0x54c   :  { %2723 = vmatprep.mubr.bf16.mxu0 %v12443_v39  ;;  %2949 = vmatprep.mubr.bf16.mxu1 %v12443_v39 }
 0x54e   :  { %2773 = vmatpush1.bf16.msra.mxu0 %v2105_v58  ;;  %2999 = vmatpush1.bf16.msra.mxu1 %v2107_v2 }
 0x54f   :  { %2774 = vmatprep.subr.bf16.mxu0 %v2114_v7  ;;  %3000 = vmatprep.subr.bf16.mxu1 %v2116_v44 }
 0x551   :  { %2724 = vmatmul.mubr.bf16.gmra.mrb[68].mxu0 %v12444_v5  ;;  %2950 = vmatmul.mubr.bf16.gmra.mrb[148].mxu1 %v12444_v5 }
 0x552   :  { %2775 = vmatpush1.bf16.msra.mxu0 %v2113_v17  ;;  %3001 = vmatpush1.bf16.msra.mxu1 %v2115_v42 }
 0x553   :  { %2776 = vmatprep.subr.bf16.mxu0 %v2122_v28  ;;  %3002 = vmatprep.subr.bf16.mxu1 %v2124_v21 }
 0x554   :  { %2733 = vmatprep.mubr.bf16.mxu0 %v12445_v34  ;;  %2959 = vmatprep.mubr.bf16.mxu1 %v12445_v34 }
 0x556   :  { %2777 = vmatpush1.bf16.msra.mxu0 %v2121_v45  ;;  %3003 = vmatpush1.bf16.msra.mxu1 %v2123_v0 }
 0x557   :  { %2778 = vmatprep.subr.bf16.mxu0 %v2130_v61  ;;  %3004 = vmatprep.subr.bf16.mxu1 %v2132_v24 }
 0x559   :  { %2734 = vmatmul.mubr.bf16.gmra.mrb[72].mxu0 %v8014_v50  ;;  %2960 = vmatmul.mubr.bf16.gmra.mrb[152].mxu1 %v8014_v50  ;;  %v2156_v50 = vld [vmem:[#allocation3 + $0x7f8] sm:$0xff] }
 0x55a   :  { %2779 = vmatpush1.bf16.msra.mxu0 %v2129_v43  ;;  %3005 = vmatpush1.bf16.msra.mxu1 %v2131_v52 }
 0x55b   :  { %2780 = vmatprep.subr.bf16.mxu0 %v2138_v9  ;;  %3006 = vmatprep.subr.bf16.mxu1 %v2140_v56 }
 0x55c   :  { %2743 = vmatprep.mubr.bf16.mxu0 %v8022_v18  ;;  %2969 = vmatprep.mubr.bf16.mxu1 %v8022_v18  ;;  %v2155_v18 = vld [vmem:[#allocation3 + $0x7f0] sm:$0xff] }
 0x55e   :  { %2781 = vmatpush1.bf16.msra.mxu0 %v2137_v62  ;;  %3007 = vmatpush1.bf16.msra.mxu1 %v2139_v3 }
 0x55f   :  { %2782 = vmatprep.subr.bf16.mxu0 %v2146_v10  ;;  %3008 = vmatprep.subr.bf16.mxu1 %v2148_v32 }
 0x561   :  { %2744 = vmatmul.mubr.bf16.gmra.mrb[76].mxu0 %v8034_v22  ;;  %2970 = vmatmul.mubr.bf16.gmra.mrb[156].mxu1 %v8034_v22 }
 0x562   :  { %2783 = vmatpush1.bf16.msra.mxu0 %v2145_v59  ;;  %3009 = vmatpush1.bf16.msra.mxu1 %v2147_v31 }
 0x563   :  { %2784 = vmatprep.subr.bf16.mxu0 %v2154_v4  ;;  %3010 = vmatprep.subr.bf16.mxu1 %v2156_v50 }
 0x564   :  { %2786 = vmatprep.mubr.bf16.mxu0 %v8042_v51  ;;  %3012 = vmatprep.mubr.bf16.mxu1 %v8042_v51 }
 0x566   :  { %2785 = vmatpush1.bf16.msra.mxu0 %v2153_v29  ;;  %3011 = vmatpush1.bf16.msra.mxu1 %v2155_v18 }
 0x569   :  { %2787 = vmatmul.mubr.bf16.vlgmr.msra.gmra.mrb[48].mxu0 %v8054_v20  ;;  %3013 = vmatmul.mubr.bf16.vlgmr.msra.gmra.mrb[128].mxu1 %v8054_v20 }
 0x56a   :  { %2796 = vmatprep.mubr.bf16.mxu0 %v8062_v48  ;;  %3022 = vmatprep.mubr.bf16.mxu1 %v8062_v48 }
 0x571   :  { %2797 = vmatmul.mubr.bf16.gmra.mrb[52].mxu0 %v8074_v57  ;;  %3023 = vmatmul.mubr.bf16.gmra.mrb[132].mxu1 %v8074_v57 }
 0x572   :  { %2806 = vmatprep.mubr.bf16.mxu0 %v8082_v46  ;;  %3032 = vmatprep.mubr.bf16.mxu1 %v8082_v46 }
 0x579   :  { %2807 = vmatmul.mubr.bf16.gmra.mrb[56].mxu0 %v8094_v54  ;;  %3033 = vmatmul.mubr.bf16.gmra.mrb[136].mxu1 %v8094_v54 }
 0x57a   :  { %2816 = vmatprep.mubr.bf16.mxu0 %v8102_v63  ;;  %3042 = vmatprep.mubr.bf16.mxu1 %v8102_v63 }
 0x581   :  { %2817 = vmatmul.mubr.bf16.gmra.mrb[60].mxu0 %v8114_v40  ;;  %3043 = vmatmul.mubr.bf16.gmra.mrb[140].mxu1 %v8114_v40 }
 0x582   :  { %2826 = vmatprep.mubr.bf16.mxu0 %v8122_v49  ;;  %3052 = vmatprep.mubr.bf16.mxu1 %v8122_v49 }
 0x589   :  { %2827 = vmatmul.mubr.bf16.gmra.mrb[64].mxu0 %v8134_v15  ;;  %3053 = vmatmul.mubr.bf16.gmra.mrb[144].mxu1 %v8134_v15 }
 0x58a   :  { %2836 = vmatprep.mubr.bf16.mxu0 %v8142_v35  ;;  %3062 = vmatprep.mubr.bf16.mxu1 %v8142_v35 }
 0x591   :  { %2837 = vmatmul.mubr.bf16.gmra.mrb[68].mxu0 %v8154_v16  ;;  %3063 = vmatmul.mubr.bf16.gmra.mrb[148].mxu1 %v8154_v16 }
 0x592   :  { %2846 = vmatprep.mubr.bf16.mxu0 %v8162_v19  ;;  %3072 = vmatprep.mubr.bf16.mxu1 %v8162_v19 }
 0x599   :  { %2847 = vmatmul.mubr.bf16.gmra.mrb[72].mxu0 %v8174_v33  ;;  %3073 = vmatmul.mubr.bf16.gmra.mrb[152].mxu1 %v8174_v33 }
 0x59a   :  { %2856 = vmatprep.mubr.bf16.mxu0 %v8182_v55  ;;  %3082 = vmatprep.mubr.bf16.mxu1 %v8182_v55 }
 0x5a1   :  { %2857 = vmatmul.mubr.bf16.gmra.mrb[76].mxu0 %v8194_v37  ;;  %3083 = vmatmul.mubr.bf16.gmra.mrb[156].mxu1 %v8194_v37 }
 0x5bc   :  { %v8262_v22 = vpop.f32.mrb[16].mxu0  ;;  %v8264_v51 = vpop.f32.mrb[96].mxu1 }
 0x5bd   :  { %v8266_v20 = vpop.f32.mrb[17].mxu0  ;;  %v8268_v48 = vpop.f32.mrb[97].mxu1  ;;  %v3263_v57 = vmul.f32 %v8262_v22, %v8262_v22  ;;  %v3265_v46 = vmul.f32 %v8264_v51, %v8264_v51 }
 0x5be   :  { %12446 = vst [vmem:[#allocation92_spill] sm:$0xff] %v8266_v20  ;;  %12447 = vst [vmem:[#allocation79_spill] sm:$0xff] %v8268_v48  ;;  %v3264_v54 = vmul.f32 %v8266_v20, %v8266_v20  ;;  %v3266_v63 = vmul.f32 %v8268_v48, %v8268_v48  ;;  %v8278_v40 = vpop.f32.mrb[18].mxu0  ;;  %v8280_v49 = vpop.f32.mrb[98].mxu1 }
 0x5bf   :  { %v3095_v15 = vadd.f32 %v8278_v40, %v8262_v22  ;;  %v3271_v35 = vmul.f32 %v8278_v40, %v8278_v40  ;;  %v3137_v16 = vadd.f32 %v8280_v49, %v8264_v51  ;;  %v3273_v19 = vmul.f32 %v8280_v49, %v8280_v49  ;;  %v8290_v33 = vpop.f32.mrb[19].mxu0  ;;  %v8292_v55 = vpop.f32.mrb[99].mxu1 }
 0x5c0   :  { %12448 = vst [vmem:[#allocation93_spill] sm:$0xff] %v8290_v33  ;;  %12449 = vst [vmem:[#allocation49_spill] sm:$0xff] %v8292_v55  ;;  %v3116_v37 = vadd.f32 %v8290_v33, %v8266_v20  ;;  %v3272_v1 = vmul.f32 %v8290_v33, %v8290_v33  ;;  %v3158_v25 = vadd.f32 %v8292_v55, %v8268_v48 }
 0x5c1   :  { %v3274_v38 = vmul.f32 %v8292_v55, %v8292_v55  ;;  %v3391_v14 = vadd.f32 %v3271_v35, %v3263_v57  ;;  %v3433_v41 = vadd.f32 %v3273_v19, %v3265_v46 }
 0x5c2   :  { %v3412_v47 = vadd.f32 %v3272_v1, %v3264_v54 }
 0x5c3   :  { %v3454_v53 = vadd.f32 %v3274_v38, %v3266_v63 }
 0x5c4   :  { %v8302_v11 = vpop.f32.mrb[20].mxu0  ;;  %v8304_v23 = vpop.f32.mrb[100].mxu1 }
 0x5c5   :  { %v3096_v8 = vadd.f32 %v3095_v15, %v8302_v11  ;;  %v3279_v13 = vmul.f32 %v8302_v11, %v8302_v11  ;;  %v3138_v6 = vadd.f32 %v3137_v16, %v8304_v23  ;;  %v3281_v60 = vmul.f32 %v8304_v23, %v8304_v23  ;;  %v8312_v30 = vpop.f32.mrb[21].mxu0  ;;  %v8314_v12 = vpop.f32.mrb[101].mxu1 }
 0x5c6   :  { %12450 = vst [vmem:[#allocation65_spill] sm:$0xff] %v8312_v30  ;;  %12451 = vst [vmem:[#allocation50_spill] sm:$0xff] %v8314_v12  ;;  %v3117_v26 = vadd.f32 %v3116_v37, %v8312_v30  ;;  %v3280_v36 = vmul.f32 %v8312_v30, %v8312_v30  ;;  %v3159_v27 = vadd.f32 %v3158_v25, %v8314_v12  ;;  %v8322_v2 = vpop.f32.mrb[22].mxu0  ;;  %v8324_v39 = vpop.f32.mrb[102].mxu1 }
 0x5c7   :  { %v3282_v58 = vmul.f32 %v8314_v12, %v8314_v12  ;;  %v3392_v7 = vadd.f32 %v3391_v14, %v3279_v13  ;;  %v3434_v44 = vadd.f32 %v3433_v41, %v3281_v60  ;;  %v3097_v17 = vadd.f32 %v3096_v8, %v8322_v2  ;;  %v8329_v28 = vpop.f32.mrb[23].mxu0  ;;  %v8331_v21 = vpop.f32.mrb[103].mxu1 }
 0x5c8   :  { %v3287_v42 = vmul.f32 %v8322_v2, %v8322_v2  ;;  %12452 = vst [vmem:[#allocation66_spill] sm:$0xff] %v8329_v28  ;;  %12453 = vst [vmem:[#allocation80_spill] sm:$0xff] %v8331_v21  ;;  %v3413_v5 = vadd.f32 %v3412_v47, %v3280_v36  ;;  %v3139_v0 = vadd.f32 %v3138_v6, %v8324_v39 }
 0x5c9   :  { %v3455_v45 = vadd.f32 %v3454_v53, %v3282_v58  ;;  %v3289_v34 = vmul.f32 %v8324_v39, %v8324_v39  ;;  %v3118_v24 = vadd.f32 %v3117_v26, %v8329_v28  ;;  %v3288_v43 = vmul.f32 %v8329_v28, %v8329_v28 }
 0x5ca   :  { %v3393_v61 = vadd.f32 %v3392_v7, %v3287_v42  ;;  %v3160_v52 = vadd.f32 %v3159_v27, %v8331_v21  ;;  %v3290_v56 = vmul.f32 %v8331_v21, %v8331_v21 }
 0x5cb   :  { %v3435_v9 = vadd.f32 %v3434_v44, %v3289_v34  ;;  %v3414_v62 = vadd.f32 %v3413_v5, %v3288_v43 }
 0x5cc   :  { %v3456_v3 = vadd.f32 %v3455_v45, %v3290_v56  ;;  %v8342_v10 = vpop.f32.mrb[24].mxu0  ;;  %v8344_v32 = vpop.f32.mrb[104].mxu1 }
 0x5cd   :  { %v3098_v59 = vadd.f32 %v3097_v17, %v8342_v10  ;;  %v3295_v31 = vmul.f32 %v8342_v10, %v8342_v10  ;;  %v3140_v4 = vadd.f32 %v3139_v0, %v8344_v32  ;;  %v3297_v50 = vmul.f32 %v8344_v32, %v8344_v32  ;;  %v8352_v29 = vpop.f32.mrb[25].mxu0  ;;  %v8354_v18 = vpop.f32.mrb[105].mxu1 }
 0x5ce   :  { %12454 = vst [vmem:[#allocation94_spill] sm:$0xff] %v8352_v29  ;;  %12455 = vst [vmem:[#allocation81_spill] sm:$0xff] %v8354_v18  ;;  %v3119_v57 = vadd.f32 %v3118_v24, %v8352_v29  ;;  %v3296_v46 = vmul.f32 %v8352_v29, %v8352_v29  ;;  %v3161_v54 = vadd.f32 %v3160_v52, %v8354_v18  ;;  %v8362_v15 = vpop.f32.mrb[26].mxu0  ;;  %v8364_v35 = vpop.f32.mrb[106].mxu1 }
 0x5cf   :  { %v3298_v63 = vmul.f32 %v8354_v18, %v8354_v18  ;;  %v3394_v16 = vadd.f32 %v3393_v61, %v3295_v31  ;;  %v3436_v19 = vadd.f32 %v3435_v9, %v3297_v50  ;;  %v3099_v37 = vadd.f32 %v3098_v59, %v8362_v15  ;;  %v8369_v25 = vpop.f32.mrb[27].mxu0  ;;  %v8371_v38 = vpop.f32.mrb[107].mxu1 }
 0x5d0   :  { %v3303_v1 = vmul.f32 %v8362_v15, %v8362_v15  ;;  %12456 = vst [vmem:[#allocation95_spill] sm:$0xff] %v8369_v25  ;;  %12457 = vst [vmem:[#allocation51_spill] sm:$0xff] %v8371_v38  ;;  %v3415_v14 = vadd.f32 %v3414_v62, %v3296_v46  ;;  %v3141_v47 = vadd.f32 %v3140_v4, %v8364_v35 }
 0x5d1   :  { %v3457_v41 = vadd.f32 %v3456_v3, %v3298_v63  ;;  %v3305_v53 = vmul.f32 %v8364_v35, %v8364_v35  ;;  %v3120_v13 = vadd.f32 %v3119_v57, %v8369_v25  ;;  %v3304_v6 = vmul.f32 %v8369_v25, %v8369_v25 }
 0x5d2   :  { %v3395_v8 = vadd.f32 %v3394_v16, %v3303_v1  ;;  %v3162_v60 = vadd.f32 %v3161_v54, %v8371_v38  ;;  %v3306_v36 = vmul.f32 %v8371_v38, %v8371_v38 }
 0x5d3   :  { %v3437_v26 = vadd.f32 %v3436_v19, %v3305_v53  ;;  %v3416_v27 = vadd.f32 %v3415_v14, %v3304_v6 }
 0x5d4   :  { %v3458_v58 = vadd.f32 %v3457_v41, %v3306_v36  ;;  %v8382_v7 = vpop.f32.mrb[28].mxu0  ;;  %v8384_v44 = vpop.f32.mrb[108].mxu1 }
 0x5d5   :  { %v3100_v17 = vadd.f32 %v3099_v37, %v8382_v7  ;;  %v3311_v42 = vmul.f32 %v8382_v7, %v8382_v7  ;;  %v3142_v5 = vadd.f32 %v3141_v47, %v8384_v44  ;;  %v3313_v45 = vmul.f32 %v8384_v44, %v8384_v44  ;;  %v8392_v0 = vpop.f32.mrb[29].mxu0  ;;  %v8394_v34 = vpop.f32.mrb[109].mxu1 }
 0x5d6   :  { %12458 = vst [vmem:[#allocation67_spill] sm:$0xff] %v8392_v0  ;;  %12459 = vst [vmem:[#allocation52_spill] sm:$0xff] %v8394_v34  ;;  %v3121_v61 = vadd.f32 %v3120_v13, %v8392_v0  ;;  %v3312_v24 = vmul.f32 %v8392_v0, %v8392_v0  ;;  %v3163_v43 = vadd.f32 %v3162_v60, %v8394_v34  ;;  %v8402_v9 = vpop.f32.mrb[30].mxu0  ;;  %v8404_v56 = vpop.f32.mrb[110].mxu1 }
 0x5d7   :  { %v3314_v52 = vmul.f32 %v8394_v34, %v8394_v34  ;;  %v3396_v62 = vadd.f32 %v3395_v8, %v3311_v42  ;;  %v3438_v3 = vadd.f32 %v3437_v26, %v3313_v45  ;;  %v3101_v59 = vadd.f32 %v3100_v17, %v8402_v9  ;;  %v8409_v4 = vpop.f32.mrb[31].mxu0  ;;  %v8411_v50 = vpop.f32.mrb[111].mxu1 }
 0x5d8   :  { %v3319_v31 = vmul.f32 %v8402_v9, %v8402_v9  ;;  %12460 = vst [vmem:[#allocation68_spill] sm:$0xff] %v8409_v4  ;;  %12461 = vst [vmem:[#allocation82_spill] sm:$0xff] %v8411_v50  ;;  %v3417_v57 = vadd.f32 %v3416_v27, %v3312_v24  ;;  %v3143_v54 = vadd.f32 %v3142_v5, %v8404_v56 }
 0x5d9   :  { %v3459_v46 = vadd.f32 %v3458_v58, %v3314_v52  ;;  %v3321_v63 = vmul.f32 %v8404_v56, %v8404_v56  ;;  %v3122_v19 = vadd.f32 %v3121_v61, %v8409_v4  ;;  %v3320_v37 = vmul.f32 %v8409_v4, %v8409_v4 }
 0x5da   :  { %v3397_v16 = vadd.f32 %v3396_v62, %v3319_v31  ;;  %v3164_v1 = vadd.f32 %v3163_v43, %v8411_v50  ;;  %v3322_v41 = vmul.f32 %v8411_v50, %v8411_v50 }
 0x5db   :  { %v3439_v14 = vadd.f32 %v3438_v3, %v3321_v63  ;;  %v3418_v47 = vadd.f32 %v3417_v57, %v3320_v37 }
 0x5dc   :  { %v3460_v53 = vadd.f32 %v3459_v46, %v3322_v41  ;;  %v8422_v8 = vpop.f32.mrb[32].mxu0  ;;  %v8424_v13 = vpop.f32.mrb[112].mxu1 }
 0x5dd   :  { %v3102_v6 = vadd.f32 %v3101_v59, %v8422_v8  ;;  %v3327_v60 = vmul.f32 %v8422_v8, %v8422_v8  ;;  %v3144_v26 = vadd.f32 %v3143_v54, %v8424_v13  ;;  %v3329_v36 = vmul.f32 %v8424_v13, %v8424_v13  ;;  %v8432_v27 = vpop.f32.mrb[33].mxu0  ;;  %v8434_v58 = vpop.f32.mrb[113].mxu1 }
 0x5de   :  { %12462 = vst [vmem:[#allocation96_spill] sm:$0xff] %v8432_v27  ;;  %12463 = vst [vmem:[#allocation83_spill] sm:$0xff] %v8434_v58  ;;  %v3123_v17 = vadd.f32 %v3122_v19, %v8432_v27  ;;  %v3328_v42 = vmul.f32 %v8432_v27, %v8432_v27  ;;  %v3165_v5 = vadd.f32 %v3164_v1, %v8434_v58  ;;  %v8442_v61 = vpop.f32.mrb[34].mxu0  ;;  %v8444_v24 = vpop.f32.mrb[114].mxu1 }
 0x5df   :  { %v3330_v45 = vmul.f32 %v8434_v58, %v8434_v58  ;;  %v3398_v43 = vadd.f32 %v3397_v16, %v3327_v60  ;;  %v3440_v52 = vadd.f32 %v3439_v14, %v3329_v36  ;;  %v3103_v62 = vadd.f32 %v3102_v6, %v8442_v61  ;;  %v8449_v59 = vpop.f32.mrb[35].mxu0  ;;  %v8451_v31 = vpop.f32.mrb[115].mxu1 }
 0x5e0   :  { %v3335_v3 = vmul.f32 %v8442_v61, %v8442_v61  ;;  %12464 = vst [vmem:[#allocation97_spill] sm:$0xff] %v8449_v59  ;;  %12465 = vst [vmem:[#allocation53_spill] sm:$0xff] %v8451_v31  ;;  %v3419_v57 = vadd.f32 %v3418_v47, %v3328_v42  ;;  %v3145_v54 = vadd.f32 %v3144_v26, %v8444_v24 }
 0x5e1   :  { %v3461_v46 = vadd.f32 %v3460_v53, %v3330_v45  ;;  %v3337_v63 = vmul.f32 %v8444_v24, %v8444_v24  ;;  %v3124_v16 = vadd.f32 %v3123_v17, %v8449_v59  ;;  %v3336_v37 = vmul.f32 %v8449_v59, %v8449_v59 }
 0x5e2   :  { %v3399_v19 = vadd.f32 %v3398_v43, %v3335_v3  ;;  %v3166_v1 = vadd.f32 %v3165_v5, %v8451_v31  ;;  %v3338_v41 = vmul.f32 %v8451_v31, %v8451_v31 }
 0x5e3   :  { %v3441_v14 = vadd.f32 %v3440_v52, %v3337_v63  ;;  %v3420_v6 = vadd.f32 %v3419_v57, %v3336_v37 }
 0x5e4   :  { %v3462_v47 = vadd.f32 %v3461_v46, %v3338_v41  ;;  %v8462_v53 = vpop.f32.mrb[36].mxu0  ;;  %v8464_v60 = vpop.f32.mrb[116].mxu1 }
 0x5e5   :  { %v3104_v26 = vadd.f32 %v3103_v62, %v8462_v53  ;;  %v3343_v36 = vmul.f32 %v8462_v53, %v8462_v53  ;;  %v3146_v17 = vadd.f32 %v3145_v54, %v8464_v60  ;;  %v3345_v42 = vmul.f32 %v8464_v60, %v8464_v60  ;;  %v8472_v5 = vpop.f32.mrb[37].mxu0  ;;  %v8474_v45 = vpop.f32.mrb[117].mxu1 }
 0x5e6   :  { %12466 = vst [vmem:[#allocation69_spill] sm:$0xff] %v8472_v5  ;;  %12467 = vst [vmem:[#allocation54_spill] sm:$0xff] %v8474_v45  ;;  %v3125_v43 = vadd.f32 %v3124_v16, %v8472_v5  ;;  %v3344_v52 = vmul.f32 %v8472_v5, %v8472_v5  ;;  %v3167_v3 = vadd.f32 %v3166_v1, %v8474_v45  ;;  %v8482_v57 = vpop.f32.mrb[38].mxu0  ;;  %v8484_v46 = vpop.f32.mrb[118].mxu1 }
 0x5e7   :  { %v3346_v62 = vmul.f32 %v8474_v45, %v8474_v45  ;;  %v3400_v54 = vadd.f32 %v3399_v19, %v3343_v36  ;;  %v3442_v63 = vadd.f32 %v3441_v14, %v3345_v42  ;;  %v3105_v37 = vadd.f32 %v3104_v26, %v8482_v57  ;;  %v8489_v16 = vpop.f32.mrb[39].mxu0  ;;  %v8491_v31 = vpop.f32.mrb[119].mxu1 }
 0x5e8   :  { %v3351_v41 = vmul.f32 %v8482_v57, %v8482_v57  ;;  %12468 = vst [vmem:[#allocation70_spill] sm:$0xff] %v8489_v16  ;;  %12469 = vst [vmem:[#allocation84_spill] sm:$0xff] %v8491_v31  ;;  %v3421_v58 = vadd.f32 %v3420_v6, %v3344_v52  ;;  %v3147_v50 = vadd.f32 %v3146_v17, %v8484_v46 }
 0x5e9   :  { %v3463_v1 = vadd.f32 %v3462_v47, %v3346_v62  ;;  %v3353_v45 = vmul.f32 %v8484_v46, %v8484_v46  ;;  %v3126_v19 = vadd.f32 %v3125_v43, %v8489_v16  ;;  %v3352_v14 = vmul.f32 %v8489_v16, %v8489_v16 }
 0x5ea   :  { %v3401_v34 = vadd.f32 %v3400_v54, %v3351_v41  ;;  %v3168_v26 = vadd.f32 %v3167_v3, %v8491_v31  ;;  %v3354_v42 = vmul.f32 %v8491_v31, %v8491_v31 }
 0x5eb   :  { %v3443_v36 = vadd.f32 %v3442_v63, %v3353_v45  ;;  %v3422_v38 = vadd.f32 %v3421_v58, %v3352_v14 }
 0x5ec   :  { %v3464_v6 = vadd.f32 %v3463_v1, %v3354_v42  ;;  %v8502_v47 = vpop.f32.mrb[40].mxu0  ;;  %v8504_v17 = vpop.f32.mrb[120].mxu1 }
 0x5ed   :  { %v3106_v52 = vadd.f32 %v3105_v37, %v8502_v47  ;;  %v3359_v43 = vmul.f32 %v8502_v47, %v8502_v47  ;;  %v3148_v62 = vadd.f32 %v3147_v50, %v8504_v17  ;;  %v3361_v3 = vmul.f32 %v8504_v17, %v8504_v17  ;;  %v8512_v45 = vpop.f32.mrb[41].mxu0  ;;  %v8514_v54 = vpop.f32.mrb[121].mxu1 }
 0x5ee   :  { %12470 = vst [vmem:[#allocation98_spill] sm:$0xff] %v8512_v45  ;;  %12471 = vst [vmem:[#allocation85_spill] sm:$0xff] %v8514_v54  ;;  %v3127_v58 = vadd.f32 %v3126_v19, %v8512_v45  ;;  %v3360_v63 = vmul.f32 %v8512_v45, %v8512_v45  ;;  %v3169_v41 = vadd.f32 %v3168_v26, %v8514_v54  ;;  %v8522_v1 = vpop.f32.mrb[42].mxu0  ;;  %v8524_v50 = vpop.f32.mrb[122].mxu1 }
 0x5ef   :  { %v3362_v37 = vmul.f32 %v8514_v54, %v8514_v54  ;;  %v3402_v14 = vadd.f32 %v3401_v34, %v3359_v43  ;;  %v3444_v42 = vadd.f32 %v3443_v36, %v3361_v3  ;;  %v3107_v31 = vadd.f32 %v3106_v52, %v8522_v1  ;;  %v8529_v19 = vpop.f32.mrb[43].mxu0  ;;  %v8531_v21 = vpop.f32.mrb[123].mxu1  ;;  %v8539_v34 = vld [vmem:[%s11479_s3 + $0x9] sm:$0xff]  ;;  %v8544_v36 = vld [vmem:[%s11479_s3 + $0x17] sm:$0xff] }
 0x5f0   :  { %v3367_v18 = vmul.f32 %v8522_v1, %v8522_v1  ;;  %12472 = vst [vmem:[#allocation99_spill] sm:$0xff] %v8529_v19  ;;  %12473 = vst [vmem:[#allocation55_spill] sm:$0xff] %v8531_v21  ;;  %v3423_v12 = vadd.f32 %v3422_v38, %v3360_v63  ;;  %v3149_v55 = vadd.f32 %v3148_v62, %v8524_v50 }
 0x5f1   :  { %v3465_v26 = vadd.f32 %v3464_v6, %v3362_v37  ;;  %v3369_v54 = vmul.f32 %v8524_v50, %v8524_v50  ;;  %12474 = vst [vmem:[#allocation71_spill] sm:$0xff] %v8539_v34  ;;  %12475 = vst [vmem:[#allocation56_spill] sm:$0xff] %v8544_v36  ;;  %v3128_v43 = vadd.f32 %v3127_v58, %v8529_v19  ;;  %v12476_v37 = vld [vmem:[#allocation22_spill] sm:$0xff] }
 0x5f2   :  { %v3403_v52 = vadd.f32 %v3402_v14, %v3367_v18  ;;  %v3368_v38 = vmul.f32 %v8529_v19, %v8529_v19  ;;  %v3170_v6 = vadd.f32 %v3169_v41, %v8531_v21  ;;  %v3370_v3 = vmul.f32 %v8531_v21, %v8531_v21  ;;  %v12479_v19 = vld [vmem:[#allocation39_spill] sm:$0xff] }
 0x5f3   :  { %v3445_v62 = vadd.f32 %v3444_v42, %v3369_v54  ;;  %v8554_v48 = vrot.slane %v8539_v34, %v12476_v37  ;;  %v8558_v45 = vrot.slane %v8544_v36, %v12476_v37  ;;  %v8566_v54 = vrot.slane %v8539_v34, %v12479_v19  ;;  %v12482_v41 = vld [vmem:[#allocation23_spill] sm:$0xff] }
 0x5f4   :  { %v3424_v63 = vadd.f32 %v3423_v12, %v3368_v38  ;;  %v3466_v18 = vadd.f32 %v3465_v26, %v3370_v3  ;;  %v8560_v58 = vpop.f32.mrb[44].mxu0  ;;  %v8562_v14 = vpop.f32.mrb[124].mxu1  ;;  %v8570_v12 = vrot.slane %v8544_v36, %v12479_v19  ;;  %v8574_v42 = vrot.slane %v8539_v34, %v12482_v41 }
 0x5f5   :  { %12477 = vst [vmem:[#allocation72_spill] sm:$0xff] %v8554_v48  ;;  %12478 = vst [vmem:[#allocation86_spill] sm:$0xff] %v8558_v45  ;;  %v3108_v38 = vadd.f32 %v3107_v31, %v8560_v58  ;;  %v3375_v26 = vmul.f32 %v8560_v58, %v8560_v58  ;;  %v3150_v3 = vadd.f32 %v3149_v55, %v8562_v14  ;;  %v8582_v21 = vpop.f32.mrb[45].mxu0 }
 0x5f6   :  { %12480 = vst [vmem:[#allocation100_spill] sm:$0xff] %v8566_v54  ;;  %12481 = vst [vmem:[#allocation87_spill] sm:$0xff] %v8570_v12  ;;  %v3377_v37 = vmul.f32 %v8562_v14, %v8562_v14  ;;  %v8584_v54 = vpop.f32.mrb[125].mxu1  ;;  %v3129_v19 = vadd.f32 %v3128_v43, %v8582_v21  ;;  %v3376_v12 = vmul.f32 %v8582_v21, %v8582_v21  ;;  %v8592_v45 = vpop.f32.mrb[46].mxu0 }
 0x5f7   :  { %12483 = vst [vmem:[#allocation101_spill] sm:$0xff] %v8574_v42  ;;  %12484 = vst [vmem:[#allocation57_spill] sm:$0xff] %v8582_v21  ;;  %v3171_v42 = vadd.f32 %v3170_v6, %v8584_v54  ;;  %v3378_v31 = vmul.f32 %v8584_v54, %v8584_v54  ;;  %v8594_v55 = vpop.f32.mrb[126].mxu1  ;;  %v3404_v48 = vadd.f32 %v3403_v52, %v3375_v26  ;;  %v8599_v43 = vpop.f32.mrb[47].mxu0 }
 0x5f8   :  { %12485 = vst [vmem:[#allocation73_spill] sm:$0xff] %v8584_v54  ;;  %12486 = vst [vmem:[#allocation58_spill] sm:$0xff] %v8594_v55  ;;  %v3446_v16 = vadd.f32 %v3445_v62, %v3377_v37  ;;  %v3109_v5 = vadd.f32 %v3108_v38, %v8592_v45  ;;  %v3383_v59 = vmul.f32 %v8592_v45, %v8592_v45  ;;  %v8601_v27 = vpop.f32.mrb[127].mxu1 }
 0x5f9   :  { %12487 = vst [vmem:[#allocation74_spill] sm:$0xff] %v8599_v43  ;;  %12488 = vst [vmem:[#allocation88_spill] sm:$0xff] %v8601_v27  ;;  %v3425_v21 = vadd.f32 %v3424_v63, %v3376_v12  ;;  %v3467_v6 = vadd.f32 %v3466_v18, %v3378_v31  ;;  %v3151_v4 = vadd.f32 %v3150_v3, %v8594_v55 }
 0x5fa   :  { %v3385_v54 = vmul.f32 %v8594_v55, %v8594_v55  ;;  %v3110_v0 = vrot.slane %v3109_v5, 4  ;;  %v3405_v25 = vadd.f32 %v3404_v48, %v3383_v59  ;;  %v3130_v52 = vadd.f32 %v3129_v19, %v8599_v43 }
 0x5fb   :  { %v3384_v62 = vmul.f32 %v8599_v43, %v8599_v43  ;;  %v3152_v37 = vrot.slane %v3151_v4, 4  ;;  %v3172_v26 = vadd.f32 %v3171_v42, %v8601_v27  ;;  %v3386_v63 = vmul.f32 %v8601_v27, %v8601_v27 }
 0x5fc   :  { %v3447_v38 = vadd.f32 %v3446_v16, %v3385_v54  ;;  %v3111_v18 = vadd.f32 %v3110_v0, %v3109_v5  ;;  %v3406_v12 = vrot.slane %v3405_v25, 4  ;;  %v3131_v3 = vrot.slane %v3130_v52, 4 }
 0x5fd   :  { %v3426_v31 = vadd.f32 %v3425_v21, %v3384_v62  ;;  %v3153_v29 = vadd.f32 %v3152_v37, %v3151_v4  ;;  %v3173_v30 = vrot.slane %v3172_v26, 4  ;;  %v3468_v48 = vadd.f32 %v3467_v6, %v3386_v63 }
 0x5fe   :  { %v3448_v28 = vrot.slane %v3447_v38, 4  ;;  %v3112_v59 = vrot.slane %v3111_v18, 2  ;;  %v3407_v19 = vadd.f32 %v3406_v12, %v3405_v25  ;;  %v3132_v33 = vadd.f32 %v3131_v3, %v3130_v52 }
 0x5ff   :  { %v3427_v20 = vrot.slane %v3426_v31, 4  ;;  %v3154_v43 = vrot.slane %v3153_v29, 2  ;;  %v3174_v16 = vadd.f32 %v3173_v30, %v3172_v26  ;;  %v3469_v54 = vrot.slane %v3468_v48, 4 }
 0x600   :  { %v3449_v34 = vadd.f32 %v3448_v28, %v3447_v38  ;;  %v3113_v42 = vadd.f32 %v3112_v59, %v3111_v18  ;;  %v3408_v36 = vrot.slane %v3407_v19, 2  ;;  %v3133_v41 = vrot.slane %v3132_v33, 2 }
 0x601   :  { %v3428_v27 = vadd.f32 %v3427_v20, %v3426_v31  ;;  %v3155_v0 = vadd.f32 %v3154_v43, %v3153_v29  ;;  %v3175_v55 = vrot.slane %v3174_v16, 2  ;;  %v3470_v21 = vadd.f32 %v3469_v54, %v3468_v48 }
 0x602   :  { %v3450_v5 = vrot.slane %v3449_v34, 2  ;;  %v3114_v4 = vrot.slane %v3113_v42, 1  ;;  %v3409_v62 = vadd.f32 %v3408_v36, %v3407_v19  ;;  %v3134_v37 = vadd.f32 %v3133_v41, %v3132_v33 }
 0x603   :  { %v3429_v6 = vrot.slane %v3428_v27, 2  ;;  %v3156_v63 = vrot.slane %v3155_v0, 1  ;;  %v3176_v52 = vadd.f32 %v3175_v55, %v3174_v16  ;;  %v3471_v12 = vrot.slane %v3470_v21, 2 }
 0x604   :  { %v3451_v25 = vadd.f32 %v3450_v5, %v3449_v34  ;;  %v3115_v3 = vadd.f32 %v3114_v4, %v3113_v42  ;;  %v3410_v28 = vrot.slane %v3409_v62, 1  ;;  %v3135_v30 = vrot.slane %v3134_v37, 1  ;;  %v12529_v5 = vld [vmem:[#allocation72_spill] sm:$0xff] }
 0x605   :  { %v3430_v38 = vadd.f32 %v3429_v6, %v3428_v27  ;;  %v3157_v26 = vadd.f32 %v3156_v63, %v3155_v0  ;;  %v3177_v59 = vrot.slane %v3176_v52, 1  ;;  %v3472_v20 = vadd.f32 %v3471_v12, %v3470_v21  ;;  %v12491_v12 = vld [vmem:[#allocation56_spill] sm:$0xff]  ;;  %v12502_v6 = vld [vmem:[#allocation95_spill] sm:$0xff] }
 0x606   :  { %v3452_v18 = vrot.slane %v3451_v25, 1  ;;  %v3411_v29 = vadd.f32 %v3410_v28, %v3409_v62  ;;  %v8612_v43 = vmul.f32 0.0078125, %v3115_v3  ;;  %v3136_v31 = vadd.f32 %v3135_v30, %v3134_v37  ;;  %v12500_v28 = vld [vmem:[#allocation66_spill] sm:$0xff] }
 0x607   :  { %v3431_v48 = vrot.slane %v3430_v38, 1  ;;  %v8614_v33 = vmul.f32 0.0078125, %v3157_v26  ;;  %v3178_v41 = vadd.f32 %v3177_v59, %v3176_v52  ;;  %v3473_v34 = vrot.slane %v3472_v20, 1  ;;  %v12494_v59 = vld [vmem:[#allocation71_spill] sm:$0xff] }
 0x608   :  { %v3453_v36 = vadd.f32 %v3452_v18, %v3451_v25  ;;  %v3567_v55 = vmul.f32 0.0078125, %v3411_v29  ;;  %v3575_v19 = vmul.f32 %v8612_v43, %v8612_v43  ;;  %v8684_v3 = vmul.f32 0.0078125, %v3136_v31  ;;  %v12493_v25 = vld [vmem:[#allocation40_spill] sm:$0xff] }
 0x609   :  { %v3577_v18 = vmul.f32 %v8614_v33, %v8614_v33  ;;  %v8696_v63 = vrot.slane %v12494_v59, %v12493_v25  ;;  %v8700_v29 = vrot.slane %v12491_v12, %v12493_v25  ;;  %v12499_v59 = vld [vmem:[#allocation65_spill] sm:$0xff]  ;;  %v12513_v0 = vsub.f32 %v8262_v22, %v8612_v43 }
 0x60a   :  { %v3583_v21 = vsub.f32 %v3567_v55, %v3575_v19  ;;  %v3569_v26 = vmul.f32 0.0078125, %v3453_v36  ;;  %v3432_v55 = vadd.f32 %v3431_v48, %v3430_v38  ;;  %v12490_v19 = vld [vmem:[#allocation23_spill] sm:$0xff]  ;;  %v8706_v31 = vmul.f32 %v8684_v3, %v8684_v3 }
 0x60b   :  { %v8688_v52 = vrot.slane %v12491_v12, %v12490_v19  ;;  %12495 = vst [vmem:[#allocation89_spill] sm:$0xff] %v8696_v63  ;;  %12496 = vst [vmem:[#allocation103_spill] sm:$0xff] %v8700_v29  ;;  %v12501_v12 = vld [vmem:[#allocation94_spill] sm:$0xff]  ;;  %v12503_v48 = vld [vmem:[#allocation67_spill] sm:$0xff]  ;;  %v12514_v54 = vsub.f32 %v8278_v40, %v8612_v43  ;;  %v12515_v27 = vsub.f32 %v8302_v11, %v8612_v43 }
 0x60c   :  { %v3719_v30 = vadd.f32 0.8, %v3583_v21  ;;  %v3585_v36 = vsub.f32 %v3569_v26, %v3577_v18  ;;  %v8690_v26 = vadd.f32 %v3473_v34, %v3472_v20  ;;  %v8692_v18 = vmul.f32 0.0078125, %v3178_v41  ;;  %v12497_v20 = vld [vmem:[#allocation92_spill] sm:$0xff]  ;;  %v12498_v41 = vld [vmem:[#allocation93_spill] sm:$0xff] }
 0x60d   :  { %12492 = vst [vmem:[#allocation102_spill] sm:$0xff] %v8688_v52  ;;  %v8702_v38 = vmul.f32 0.0078125, %v3432_v55  ;;  %v12516_v19 = vsub.f32 %v8322_v2, %v8612_v43  ;;  %v12517_v29 = vsub.f32 %v8342_v10, %v8612_v43  ;;  %v12518_v22 = vsub.f32 %v8362_v15, %v8612_v43 }
 0x60e   :  { %5631 = vrsqrt.f32 %v3719_v30  ;;  %v12489_v30 = vld [vmem:[#allocation58_spill] sm:$0xff]  ;;  %v3721_v21 = vadd.f32 0.8, %v3585_v36  ;;  %v12519_v40 = vsub.f32 %v8382_v7, %v8612_v43  ;;  %v12520_v11 = vsub.f32 %v8402_v9, %v8612_v43 }
 0x60f   :  { %v12521_v2 = vsub.f32 %v8422_v8, %v8612_v43  ;;  %v12522_v10 = vsub.f32 %v8442_v61, %v8612_v43  ;;  %v12523_v15 = vsub.f32 %v8462_v53, %v8612_v43  ;;  %v12524_v7 = vsub.f32 %v8482_v57, %v8612_v43 }
 0x610   :  { %5633 = vrsqrt.f32 %v3721_v21  ;;  %v12525_v9 = vsub.f32 %v8502_v47, %v8612_v43  ;;  %v12526_v8 = vsub.f32 %v8522_v1, %v8612_v43  ;;  %v12527_v61 = vsub.f32 %v8560_v58, %v8612_v43 }
 0x611   :  { %v12528_v53 = vsub.f32 %v8592_v45, %v8612_v43  ;;  %v12568_v34 = vsub.f32 %v8364_v35, %v8614_v33  ;;  %v12572_v35 = vsub.f32 %v8444_v24, %v8614_v33  ;;  %v12576_v24 = vsub.f32 %v8524_v50, %v8614_v33 }
 0x618   :  { %v5632_v16 = vpop.eup %5631 }
 0x619   :  { %v3735_v42 = vmul.f32 %v5632_v16, %v12513_v0  ;;  %v3743_v52 = vmul.f32 %v5632_v16, %v12514_v54  ;;  %v3751_v37 = vmul.f32 %v5632_v16, %v12515_v27  ;;  %v3759_v62 = vmul.f32 %v5632_v16, %v12516_v19 }
 0x61a   :  { %v3767_v63 = vmul.f32 %v5632_v16, %v12517_v29  ;;  %v3775_v0 = vmul.f32 %v5632_v16, %v12518_v22  ;;  %v3783_v54 = vmul.f32 %v5632_v16, %v12519_v40  ;;  %v3791_v27 = vmul.f32 %v5632_v16, %v12520_v11 }
 0x61b   :  { %v3799_v19 = vmul.f32 %v5632_v16, %v12521_v2  ;;  %v3807_v29 = vmul.f32 %v5632_v16, %v12522_v10  ;;  %v3815_v22 = vmul.f32 %v5632_v16, %v12523_v15  ;;  %v3823_v40 = vmul.f32 %v5632_v16, %v12524_v7 }
 0x61c   :  { %v3831_v11 = vmul.f32 %v5632_v16, %v12525_v9  ;;  %v3839_v2 = vmul.f32 %v5632_v16, %v12526_v8  ;;  %v3847_v10 = vmul.f32 %v5632_v16, %v12527_v61  ;;  %v3855_v15 = vmul.f32 %v5632_v16, %v12528_v53  ;;  %v8794_v9 = vpop.eup %5633 }
 0x61d   :  { %v3904_v4 = vmul.f32 %v12529_v5, %v3735_v42  ;;  %v3912_v57 = vmul.f32 %v12529_v5, %v3743_v52  ;;  %v3920_v7 = vmul.f32 %v12529_v5, %v3751_v37  ;;  %v3928_v47 = vmul.f32 %v12529_v5, %v3759_v62 }
 0x61e   :  { %v3936_v1 = vmul.f32 %v12529_v5, %v3767_v63  ;;  %v3944_v8 = vmul.f32 %v12529_v5, %v3775_v0  ;;  %v3952_v58 = vmul.f32 %v12529_v5, %v3783_v54  ;;  %v3960_v61 = vmul.f32 %v12529_v5, %v3791_v27  ;;  %v12530_v0 = vld [vmem:[#allocation86_spill] sm:$0xff] }
 0x61f   :  { %v3968_v45 = vmul.f32 %v12529_v5, %v3799_v19  ;;  %v3976_v43 = vmul.f32 %v12529_v5, %v3807_v29  ;;  %v3984_v16 = vmul.f32 %v12529_v5, %v3815_v22  ;;  %v3992_v42 = vmul.f32 %v12529_v5, %v3823_v40 }
 0x620   :  { %v4000_v62 = vmul.f32 %v12529_v5, %v3831_v11  ;;  %v4008_v37 = vmul.f32 %v12529_v5, %v3839_v2  ;;  %v4016_v63 = vmul.f32 %v12529_v5, %v3847_v10  ;;  %v4024_v52 = vmul.f32 %v12529_v5, %v3855_v15 }
 0x621   :  { %v8809_v54 = vadd.f32 %v12530_v0, %v3904_v4  ;;  %v8812_v27 = vadd.f32 %v12530_v0, %v3912_v57  ;;  %v8815_v19 = vadd.f32 %v12530_v0, %v3920_v7  ;;  %v8818_v29 = vadd.f32 %v12530_v0, %v3928_v47 }
 0x622   :  { %v8821_v22 = vadd.f32 %v12530_v0, %v3936_v1  ;;  %v8824_v40 = vadd.f32 %v12530_v0, %v3944_v8  ;;  %v8827_v5 = vadd.f32 %v12530_v0, %v3952_v58  ;;  %v8830_v4 = vadd.f32 %v12530_v0, %v3960_v61 }
 0x623   :  { %12531 = vst [vmem:[#allocation59_spill] sm:$0xff] %v8809_v54  ;;  %12532 = vst [vmem:[#allocation75_spill] sm:$0xff] %v8812_v27  ;;  %v8833_v11 = vadd.f32 %v12530_v0, %v3968_v45  ;;  %v8836_v2 = vadd.f32 %v12530_v0, %v3976_v43  ;;  %v8839_v10 = vadd.f32 %v12530_v0, %v3984_v16  ;;  %v8857_v1 = vmul.f32 0.2, %v8809_v54 }
 0x624   :  { %12533 = vst [vmem:[#allocation60_spill] sm:$0xff] %v8815_v19  ;;  %12534 = vst [vmem:[#allocation76_spill] sm:$0xff] %v8818_v29  ;;  %v8842_v53 = vadd.f32 %v12530_v0, %v3992_v42  ;;  %v8845_v15 = vadd.f32 %v12530_v0, %v4000_v62  ;;  %v8848_v57 = vadd.f32 %v12530_v0, %v4008_v37  ;;  %v8860_v8 = vmul.f32 0.2, %v8812_v27 }
 0x625   :  { %12535 = vst [vmem:[#allocation30_spill] sm:$0xff] %v8821_v22  ;;  %12536 = vst [vmem:[#allocation25_spill] sm:$0xff] %v8824_v40  ;;  %v8851_v7 = vadd.f32 %v12530_v0, %v4016_v63  ;;  %v8854_v47 = vadd.f32 %v12530_v0, %v4024_v52  ;;  %v8863_v58 = vmul.f32 0.2, %v8815_v19  ;;  %v12550_v61 = vsub.f32 %v8264_v51, %v8614_v33 }
 0x626   :  { %12537 = vst [vmem:[#allocation26_spill] sm:$0xff] %v8827_v5  ;;  %12538 = vst [vmem:[#allocation42_spill] sm:$0xff] %v8830_v4  ;;  %v8870_v43 = vmul.f32 0.2, %v8818_v29  ;;  %v8873_v16 = vmul.f32 0.2, %v8821_v22  ;;  %v12554_v62 = vsub.f32 %v8280_v49, %v8614_v33 }
 0x627   :  { %12539 = vst [vmem:[#allocation32_spill] sm:$0xff] %v8833_v11  ;;  %12540 = vst [vmem:[#allocation28_spill] sm:$0xff] %v8836_v2  ;;  %v3737_v45 = vmul.f32 %v8794_v9, %v12550_v61  ;;  %v8876_v42 = vmul.f32 0.2, %v8824_v40  ;;  %v8883_v63 = vmul.f32 0.2, %v8827_v5 }
 0x628   :  { %12541 = vst [vmem:[#allocation36_spill] sm:$0xff] %v8839_v10  ;;  %12542 = vst [vmem:[#allocation29_spill] sm:$0xff] %v8842_v53  ;;  %v3745_v37 = vmul.f32 %v8794_v9, %v12554_v62  ;;  %v8886_v51 = vmul.f32 0.2, %v8830_v4  ;;  %v8889_v52 = vmul.f32 0.2, %v8833_v11  ;;  %v12566_v62 = vsub.f32 %v8324_v39, %v8614_v33 }
 0x629   :  { %12543 = vst [vmem:[#allocation37_spill] sm:$0xff] %v8845_v15  ;;  %12544 = vst [vmem:[#allocation41_spill] sm:$0xff] %v8848_v57  ;;  %v8894_v61 = vmul.f32 0.2, %v8836_v2  ;;  %v8897_v21 = vmul.f32 0.2, %v8839_v10  ;;  %v12570_v39 = vsub.f32 %v8404_v56, %v8614_v33  ;;  %v12574_v56 = vsub.f32 %v8484_v46, %v8614_v33 }
 0x62a   :  { %12545 = vst [vmem:[#allocation34_spill] sm:$0xff] %v8851_v7  ;;  %12546 = vst [vmem:[#allocation43_spill] sm:$0xff] %v8854_v47  ;;  %v8900_v49 = vmul.f32 0.2, %v8842_v53  ;;  %v8905_v55 = vmul.f32 0.2, %v8845_v15  ;;  %v12578_v46 = vsub.f32 %v12489_v30, %v8614_v33 }
 0x62b   :  { %12547 = vst [vmem:[#allocation38_spill] sm:$0xff] %v8857_v1  ;;  %12548 = vst [vmem:[#allocation33_spill] sm:$0xff] %v8860_v8  ;;  %v8908_v25 = vmul.f32 0.2, %v8848_v57  ;;  %v8911_v0 = vmul.f32 0.2, %v8851_v7  ;;  %v12567_v8 = vsub.f32 %v8344_v32, %v8614_v33  ;;  %v3777_v1 = vmul.f32 %v8794_v9, %v12568_v34 }
 0x62c   :  { %12549 = vst [vmem:[#allocation104_spill] sm:$0xff] %v8863_v58  ;;  %12551 = vst [vmem:[#allocation35_spill] sm:$0xff] %v8870_v43  ;;  %v8916_v54 = vmul.f32 0.2, %v8854_v47  ;;  %v12565_v58 = vsub.f32 %v8304_v23, %v8614_v33  ;;  %v12569_v23 = vsub.f32 %v8384_v44, %v8614_v33  ;;  %v12571_v32 = vsub.f32 %v8424_v13, %v8614_v33  ;;  %v12625_v53 = vld [vmem:[#allocation80_spill] sm:$0xff] }
 0x62d   :  { %12552 = vst [vmem:[#allocation105_spill] sm:$0xff] %v8873_v16  ;;  %12553 = vst [vmem:[#allocation44_spill] sm:$0xff] %v8876_v42  ;;  %v3769_v27 = vmul.f32 %v8794_v9, %v12567_v8  ;;  %v3809_v34 = vmul.f32 %v8794_v9, %v12572_v35  ;;  %v12573_v44 = vsub.f32 %v8464_v60, %v8614_v33 }
 0x62e   :  { %12555 = vst [vmem:[#allocation27_spill] sm:$0xff] %v8883_v63  ;;  %12556 = vst [vmem:[#allocation24_spill] sm:$0xff] %v8886_v51  ;;  %v3753_v36 = vmul.f32 %v8794_v9, %v12565_v58  ;;  %v3785_v58 = vmul.f32 %v8794_v9, %v12569_v23  ;;  %v3801_v8 = vmul.f32 %v8794_v9, %v12571_v32 }
 0x62f   :  { %12557 = vst [vmem:[#allocation31_spill] sm:$0xff] %v8889_v52  ;;  %12558 = vst [vmem:[#allocation106_spill] sm:$0xff] %v8894_v61  ;;  %v3817_v23 = vmul.f32 %v8794_v9, %v12573_v44  ;;  %v12575_v13 = vsub.f32 %v8504_v17, %v8614_v33  ;;  %v3841_v35 = vmul.f32 %v8794_v9, %v12576_v24 }
 0x630   :  { %12559 = vst [vmem:[#allocation45_spill] sm:$0xff] %v8897_v21  ;;  %12560 = vst [vmem:[#allocation61_spill] sm:$0xff] %v8900_v49  ;;  %v3761_v49 = vmul.f32 %v8794_v9, %v12566_v62  ;;  %v3793_v62 = vmul.f32 %v8794_v9, %v12570_v39  ;;  %v3825_v39 = vmul.f32 %v8794_v9, %v12574_v56 }
 0x631   :  { %12561 = vst [vmem:[#allocation46_spill] sm:$0xff] %v8905_v55  ;;  %12562 = vst [vmem:[#allocation62_spill] sm:$0xff] %v8908_v25  ;;  %v3833_v32 = vmul.f32 %v8794_v9, %v12575_v13  ;;  %v12577_v60 = vsub.f32 %v8562_v14, %v8614_v33  ;;  %v3857_v56 = vmul.f32 %v8794_v9, %v12578_v46 }
 0x632   :  { %12563 = vst [vmem:[#allocation90_spill] sm:$0xff] %v8911_v0  ;;  %12564 = vst [vmem:[#allocation77_spill] sm:$0xff] %v8916_v54  ;;  %v12579_v54 = vld [vmem:[#allocation100_spill] sm:$0xff] }
 0x633   :  { %v3849_v44 = vmul.f32 %v8794_v9, %v12577_v60  ;;  %v3906_v47 = vmul.f32 %v12579_v54, %v3737_v45  ;;  %v3914_v17 = vmul.f32 %v12579_v54, %v3745_v37  ;;  %v3922_v13 = vmul.f32 %v12579_v54, %v3753_v36 }
 0x634   :  { %v3930_v50 = vmul.f32 %v12579_v54, %v3761_v49  ;;  %v3938_v24 = vmul.f32 %v12579_v54, %v3769_v27  ;;  %v3946_v0 = vmul.f32 %v12579_v54, %v3777_v1  ;;  %v3954_v14 = vmul.f32 %v12579_v54, %v3785_v58  ;;  %v12580_v49 = vld [vmem:[#allocation87_spill] sm:$0xff] }
 0x635   :  { %v3962_v60 = vmul.f32 %v12579_v54, %v3793_v62  ;;  %v3970_v33 = vmul.f32 %v12579_v54, %v3801_v8  ;;  %v3978_v30 = vmul.f32 %v12579_v54, %v3809_v34  ;;  %v3986_v9 = vmul.f32 %v12579_v54, %v3817_v23 }
 0x636   :  { %v3994_v45 = vmul.f32 %v12579_v54, %v3825_v39  ;;  %v4002_v36 = vmul.f32 %v12579_v54, %v3833_v32  ;;  %v4010_v37 = vmul.f32 %v12579_v54, %v3841_v35  ;;  %v4018_v27 = vmul.f32 %v12579_v54, %v3849_v44 }
 0x637   :  { %v4026_v1 = vmul.f32 %v12579_v54, %v3857_v56  ;;  %v9017_v58 = vadd.f32 %v12580_v49, %v3906_v47  ;;  %v9020_v62 = vadd.f32 %v12580_v49, %v3914_v17  ;;  %v9023_v8 = vadd.f32 %v12580_v49, %v3922_v13 }
 0x638   :  { %v9026_v34 = vadd.f32 %v12580_v49, %v3930_v50  ;;  %v9029_v23 = vadd.f32 %v12580_v49, %v3938_v24  ;;  %v9032_v39 = vadd.f32 %v12580_v49, %v3946_v0  ;;  %v9035_v54 = vadd.f32 %v12580_v49, %v3954_v14 }
 0x639   :  { %12581 = vst [vmem:[#allocation91_spill] sm:$0xff] %v9017_v58  ;;  %12582 = vst [vmem:[#allocation47_spill] sm:$0xff] %v9020_v62  ;;  %v9038_v47 = vadd.f32 %v12580_v49, %v3962_v60  ;;  %v9041_v32 = vadd.f32 %v12580_v49, %v3970_v33  ;;  %v9044_v35 = vadd.f32 %v12580_v49, %v3978_v30  ;;  %v9065_v50 = vmul.f32 0.2, %v9017_v58 }
 0x63a   :  { %12583 = vst [vmem:[#allocation63_spill] sm:$0xff] %v9023_v8  ;;  %12584 = vst [vmem:[#allocation48_spill] sm:$0xff] %v9026_v34  ;;  %v9047_v44 = vadd.f32 %v12580_v49, %v3986_v9  ;;  %v9050_v46 = vadd.f32 %v12580_v49, %v3994_v45  ;;  %v9053_v0 = vadd.f32 %v12580_v49, %v4002_v36  ;;  %v9068_v24 = vmul.f32 0.2, %v9020_v62  ;;  %v12603_v45 = vld [vmem:[#allocation79_spill] sm:$0xff] }
 0x63b   :  { %12585 = vst [vmem:[#allocation64_spill] sm:$0xff] %v9029_v23  ;;  %12586 = vst [vmem:[#allocation78_spill] sm:$0xff] %v9032_v39  ;;  %v9056_v56 = vadd.f32 %v12580_v49, %v4010_v37  ;;  %v9059_v17 = vadd.f32 %v12580_v49, %v4018_v27  ;;  %v9062_v13 = vadd.f32 %v12580_v49, %v4026_v1  ;;  %v9071_v14 = vmul.f32 0.2, %v9023_v8 }
 0x63c   :  { %12587 = vst [vmem:[#allocation39_spill] sm:$0xff] %v9035_v54  ;;  %12588 = vst [vmem:[#allocation58_spill] sm:$0xff] %v9038_v47  ;;  %v3578_v60 = vmul.f32 %v8692_v18, %v8692_v18  ;;  %v9076_v33 = vmul.f32 0.2, %v9026_v34  ;;  %v9079_v30 = vmul.f32 0.2, %v9029_v23 }
 0x63d   :  { %12589 = vst [vmem:[#allocation56_spill] sm:$0xff] %v9041_v32  ;;  %12590 = vst [vmem:[#allocation40_spill] sm:$0xff] %v9044_v35  ;;  %v9082_v9 = vmul.f32 0.2, %v9032_v39  ;;  %v9087_v37 = vmul.f32 0.2, %v9035_v54 }
 0x63e   :  { %12591 = vst [vmem:[#allocation71_spill] sm:$0xff] %v9047_v44  ;;  %12592 = vst [vmem:[#allocation92_spill] sm:$0xff] %v9050_v46  ;;  %v9090_v27 = vmul.f32 0.2, %v9038_v47  ;;  %v9093_v1 = vmul.f32 0.2, %v9041_v32 }
 0x63f   :  { %12593 = vst [vmem:[#allocation93_spill] sm:$0xff] %v9053_v0  ;;  %12594 = vst [vmem:[#allocation65_spill] sm:$0xff] %v9056_v56  ;;  %v9098_v7 = vmul.f32 0.2, %v9044_v35  ;;  %v9101_v25 = vmul.f32 0.2, %v9047_v44 }
 0x640   :  { %12595 = vst [vmem:[#allocation66_spill] sm:$0xff] %v9059_v17  ;;  %12596 = vst [vmem:[#allocation94_spill] sm:$0xff] %v9062_v13  ;;  %v9104_v36 = vmul.f32 0.2, %v9050_v46  ;;  %v9109_v55 = vmul.f32 0.2, %v9053_v0 }
 0x641   :  { %12597 = vst [vmem:[#allocation95_spill] sm:$0xff] %v9065_v50  ;;  %12598 = vst [vmem:[#allocation67_spill] sm:$0xff] %v9068_v24  ;;  %v9112_v15 = vmul.f32 0.2, %v9056_v56  ;;  %v9115_v49 = vmul.f32 0.2, %v9059_v17  ;;  %v12620_v24 = vsub.f32 %v8702_v38, %v8706_v31 }
 0x642   :  { %12599 = vst [vmem:[#allocation72_spill] sm:$0xff] %v9071_v14  ;;  %12600 = vst [vmem:[#allocation86_spill] sm:$0xff] %v9076_v33  ;;  %v9120_v58 = vmul.f32 0.2, %v9062_v13  ;;  %v9128_v62 = vpop.f32.mrb[48].mxu0  ;;  %v9130_v21 = vpop.f32.mrb[128].mxu1 }
 0x643   :  { %12601 = vst [vmem:[#allocation100_spill] sm:$0xff] %v9079_v30  ;;  %12602 = vst [vmem:[#allocation87_spill] sm:$0xff] %v9082_v9  ;;  %v9140_v57 = vpop.f32.mrb[49].mxu0  ;;  %v9142_v30 = vpop.f32.mrb[129].mxu1  ;;  %v3720_v9 = vadd.f32 0.8, %v12620_v24  ;;  %v3269_v31 = vmul.f32 %v9130_v21, %v9130_v21 }
 0x644   :  { %12604 = vst [vmem:[#allocation79_spill] sm:$0xff] %v9087_v37  ;;  %12605 = vst [vmem:[#allocation107_spill] sm:$0xff] %v9090_v27  ;;  %v9152_v14 = vpop.f32.mrb[50].mxu0  ;;  %v12623_v50 = vld [vmem:[#allocation49_spill] sm:$0xff]  ;;  %v12624_v56 = vld [vmem:[#allocation50_spill] sm:$0xff]  ;;  %v3268_v32 = vmul.f32 %v9140_v57, %v9140_v57  ;;  %v3270_v54 = vmul.f32 %v9142_v30, %v9142_v30 }
 0x645   :  { %12606 = vst [vmem:[#allocation108_spill] sm:$0xff] %v9093_v1  ;;  %12607 = vst [vmem:[#allocation109_spill] sm:$0xff] %v9098_v7  ;;  %v9154_v1 = vpop.f32.mrb[130].mxu1  ;;  %v9164_v10 = vpop.f32.mrb[51].mxu0  ;;  %v12626_v7 = vld [vmem:[#allocation81_spill] sm:$0xff]  ;;  %5635 = vrsqrt.f32 %v3720_v9  ;;  %v12628_v24 = vld [vmem:[#allocation52_spill] sm:$0xff]  ;;  %v3267_v9 = vmul.f32 %v9128_v62, %v9128_v62  ;;  %v3179_v47 = vadd.f32 %v9152_v14, %v9128_v62 }
 0x646   :  { %12608 = vst [vmem:[#allocation110_spill] sm:$0xff] %v9101_v25  ;;  %12609 = vst [vmem:[#allocation111_spill] sm:$0xff] %v9104_v36  ;;  %v3570_v36 = vmul.f32 0.0078125, %v8690_v26  ;;  %v12627_v26 = vld [vmem:[#allocation51_spill] sm:$0xff]  ;;  %v12629_v17 = vld [vmem:[#allocation82_spill] sm:$0xff]  ;;  %v9196_v27 = vpop.f32.mrb[52].mxu0  ;;  %v3221_v33 = vadd.f32 %v9154_v1, %v9130_v21  ;;  %v3277_v34 = vmul.f32 %v9154_v1, %v9154_v1  ;;  %v3200_v8 = vadd.f32 %v9164_v10, %v9140_v57 }
 0x647   :  { %12610 = vst [vmem:[#allocation112_spill] sm:$0xff] %v9109_v55  ;;  %12611 = vst [vmem:[#allocation113_spill] sm:$0xff] %v9112_v15  ;;  %v9166_v55 = vpop.f32.mrb[131].mxu1  ;;  %v12630_v46 = vld [vmem:[#allocation83_spill] sm:$0xff]  ;;  %v12631_v25 = vld [vmem:[#allocation53_spill] sm:$0xff]  ;;  %v9206_v37 = vpop.f32.mrb[53].mxu0  ;;  %v3276_v11 = vmul.f32 %v9164_v10, %v9164_v10  ;;  %v3180_v63 = vadd.f32 %v3179_v47, %v9196_v27  ;;  %v3283_v5 = vmul.f32 %v9196_v27, %v9196_v27 }
 0x648   :  { %12612 = vst [vmem:[#allocation114_spill] sm:$0xff] %v9115_v49  ;;  %12613 = vst [vmem:[#allocation115_spill] sm:$0xff] %v9120_v58  ;;  %v3586_v38 = vsub.f32 %v3570_v36, %v3578_v60  ;;  %v12632_v44 = vld [vmem:[#allocation54_spill] sm:$0xff]  ;;  %v12633_v60 = vld [vmem:[#allocation84_spill] sm:$0xff]  ;;  %v9198_v0 = vpop.f32.mrb[132].mxu1  ;;  %v9218_v39 = vpop.f32.mrb[54].mxu0  ;;  %v3278_v51 = vmul.f32 %v9166_v55, %v9166_v55  ;;  %v3517_v4 = vadd.f32 %v3277_v34, %v3269_v31 }
 0x649   :  { %12614 = vst [vmem:[#allocation116_spill] sm:$0xff] %v9128_v62  ;;  %12615 = vst [vmem:[#allocation117_spill] sm:$0xff] %v9130_v21  ;;  %v12634_v36 = vld [vmem:[#allocation85_spill] sm:$0xff]  ;;  %v12635_v13 = vld [vmem:[#allocation55_spill] sm:$0xff]  ;;  %v9208_v35 = vpop.f32.mrb[133].mxu1  ;;  %v9228_v61 = vpop.f32.mrb[55].mxu0  ;;  %v3222_v42 = vadd.f32 %v3221_v33, %v9198_v0  ;;  %v9242_v40 = vadd.f32 %v3276_v11, %v3268_v32  ;;  %v9249_v16 = vadd.f32 %v3200_v8, %v9206_v37 }
 0x64a   :  { %12616 = vst [vmem:[#allocation118_spill] sm:$0xff] %v9140_v57  ;;  %12617 = vst [vmem:[#allocation119_spill] sm:$0xff] %v9142_v30  ;;  %v12636_v15 = vld [vmem:[#allocation73_spill] sm:$0xff]  ;;  %v12639_v49 = vld [vmem:[#allocation88_spill] sm:$0xff]  ;;  %v3722_v58 = vadd.f32 0.8, %v3586_v38  ;;  %v3275_v38 = vmul.f32 %v9152_v14, %v9152_v14  ;;  %v9255_v34 = vmul.f32 %v9206_v37, %v9206_v37  ;;  %v9262_v11 = vmul.f32 %v9208_v35, %v9208_v35 }
 0x64b   :  { %12618 = vst [vmem:[#allocation120_spill] sm:$0xff] %v9152_v14  ;;  %12619 = vst [vmem:[#allocation121_spill] sm:$0xff] %v9154_v1  ;;  %v9220_v23 = vpop.f32.mrb[134].mxu1  ;;  %v9267_v32 = vadd.f32 %v3180_v63, %v9218_v39  ;;  %v12650_v31 = vsub.f32 %v12497_v20, %v8684_v3  ;;  %v12656_v20 = vsub.f32 %v12501_v12, %v8684_v3  ;;  %v12665_v57 = vld [vmem:[#allocation97_spill] sm:$0xff]  ;;  %v12669_v1 = vld [vmem:[#allocation70_spill] sm:$0xff] }
 0x64c   :  { %12621 = vst [vmem:[#allocation122_spill] sm:$0xff] %v9164_v10  ;;  %12622 = vst [vmem:[#allocation123_spill] sm:$0xff] %v9166_v55  ;;  %5637 = vrsqrt.f32 %v3722_v58  ;;  %v9230_v2 = vpop.f32.mrb[135].mxu1  ;;  %v3475_v52 = vadd.f32 %v3275_v38, %v3267_v9  ;;  %v3242_v58 = vadd.f32 %v9166_v55, %v9142_v30  ;;  %v9244_v9 = vadd.f32 %v3278_v51, %v3270_v54  ;;  %v9276_v8 = vpop.f32.mrb[56].mxu0  ;;  %v12659_v55 = vld [vmem:[#allocation68_spill] sm:$0xff]  ;;  %v12675_v14 = vld [vmem:[#allocation99_spill] sm:$0xff] }
 0x64d   :  { %12637 = vst [vmem:[#allocation49_spill] sm:$0xff] %v9196_v27  ;;  %12638 = vst [vmem:[#allocation50_spill] sm:$0xff] %v9198_v0  ;;  %v3285_v38 = vmul.f32 %v9198_v0, %v9198_v0  ;;  %v9278_v33 = vpop.f32.mrb[136].mxu1  ;;  %v9292_v19 = vpop.f32.mrb[57].mxu0  ;;  %v12663_v10 = vld [vmem:[#allocation96_spill] sm:$0xff]  ;;  %v12667_v0 = vld [vmem:[#allocation69_spill] sm:$0xff] }
 0x64e   :  { %12640 = vst [vmem:[#allocation80_spill] sm:$0xff] %v9206_v37  ;;  %12641 = vst [vmem:[#allocation81_spill] sm:$0xff] %v9208_v35  ;;  %v9251_v22 = vadd.f32 %v3475_v52, %v3283_v5  ;;  %v9258_v47 = vadd.f32 %v3242_v58, %v9208_v35  ;;  %v9271_v5 = vmul.f32 %v9218_v39, %v9218_v39  ;;  %v9294_v35 = vpop.f32.mrb[137].mxu1  ;;  %v9308_v30 = vpop.f32.mrb[58].mxu0  ;;  %v12673_v27 = vld [vmem:[#allocation98_spill] sm:$0xff]  ;;  %v12677_v62 = vld [vmem:[#allocation57_spill] sm:$0xff] }
 0x64f   :  { %12642 = vst [vmem:[#allocation51_spill] sm:$0xff] %v9218_v39  ;;  %12643 = vst [vmem:[#allocation52_spill] sm:$0xff] %v9228_v61  ;;  %v5636_v51 = vpop.eup %5635  ;;  %v9264_v54 = vadd.f32 %v3517_v4, %v3285_v38  ;;  %v9274_v52 = vadd.f32 %v3222_v42, %v9220_v23  ;;  %v12651_v4 = vsub.f32 %v12498_v41, %v8684_v3  ;;  %v9310_v37 = vpop.f32.mrb[138].mxu1 }
 0x650   :  { %12644 = vst [vmem:[#allocation82_spill] sm:$0xff] %v9230_v2  ;;  %12646 = vst [vmem:[#allocation53_spill] sm:$0xff] %v9267_v32  ;;  %v3736_v58 = vmul.f32 %v5636_v51, %v12650_v31  ;;  %v12652_v38 = vsub.f32 %v12499_v59, %v8684_v3  ;;  %v12653_v42 = vsub.f32 %v12500_v28, %v8684_v3  ;;  %v9324_v21 = vpop.f32.mrb[59].mxu0  ;;  %v9326_v39 = vpop.f32.mrb[139].mxu1 }
 0x651   :  { %12645 = vst [vmem:[#allocation83_spill] sm:$0xff] %v9264_v54  ;;  %12647 = vst [vmem:[#allocation54_spill] sm:$0xff] %v9274_v52  ;;  %v3744_v63 = vmul.f32 %v5636_v51, %v12651_v4  ;;  %v3768_v31 = vmul.f32 %v5636_v51, %v12656_v20  ;;  %v12657_v41 = vsub.f32 %v12502_v6, %v8684_v3 }
 0x652   :  { %12648 = vst [vmem:[#allocation84_spill] sm:$0xff] %v9276_v8  ;;  %12649 = vst [vmem:[#allocation85_spill] sm:$0xff] %v9278_v33  ;;  %v3752_v43 = vmul.f32 %v5636_v51, %v12652_v38  ;;  %v3760_v29 = vmul.f32 %v5636_v51, %v12653_v42  ;;  %v12658_v59 = vsub.f32 %v12503_v48, %v8684_v3 }
 0x653   :  { %12654 = vst [vmem:[#allocation55_spill] sm:$0xff] %v9292_v19  ;;  %12655 = vst [vmem:[#allocation73_spill] sm:$0xff] %v9294_v35  ;;  %v3776_v4 = vmul.f32 %v5636_v51, %v12657_v41  ;;  %v12660_v28 = vsub.f32 %v12659_v55, %v8684_v3  ;;  %v12664_v12 = vsub.f32 %v12663_v10, %v8684_v3 }
 0x654   :  { %v3784_v38 = vmul.f32 %v5636_v51, %v12658_v59  ;;  %12661 = vst [vmem:[#allocation88_spill] sm:$0xff] %v9308_v30  ;;  %12662 = vst [vmem:[#allocation68_spill] sm:$0xff] %v9310_v37  ;;  %v12666_v6 = vsub.f32 %v12665_v57, %v8684_v3  ;;  %v12668_v48 = vsub.f32 %v12667_v0, %v8684_v3  ;;  %v12679_v37 = vld [vmem:[#allocation74_spill] sm:$0xff] }
 0x655   :  { %v3792_v42 = vmul.f32 %v5636_v51, %v12660_v28  ;;  %v3800_v20 = vmul.f32 %v5636_v51, %v12664_v12  ;;  %v12670_v55 = vsub.f32 %v12669_v1, %v8684_v3  ;;  %12671 = vst [vmem:[#allocation96_spill] sm:$0xff] %v9324_v21  ;;  %12672 = vst [vmem:[#allocation97_spill] sm:$0xff] %v9326_v39  ;;  %v12681_v21 = vld [vmem:[#allocation101_spill] sm:$0xff] }
 0x656   :  { %v3808_v41 = vmul.f32 %v5636_v51, %v12666_v6  ;;  %v3816_v59 = vmul.f32 %v5636_v51, %v12668_v48  ;;  %v12674_v10 = vsub.f32 %v12673_v27, %v8684_v3  ;;  %v12676_v57 = vsub.f32 %v12675_v14, %v8684_v3  ;;  %v9340_v30 = vpop.eup %5637 }
 0x657   :  { %v3824_v28 = vmul.f32 %v5636_v51, %v12670_v55  ;;  %v12678_v0 = vsub.f32 %v12677_v62, %v8684_v3  ;;  %v12680_v1 = vsub.f32 %v12679_v37, %v8684_v3  ;;  %v3905_v39 = vmul.f32 %v12681_v21, %v3736_v58 }
 0x658   :  { %v3832_v12 = vmul.f32 %v5636_v51, %v12674_v10  ;;  %v3840_v6 = vmul.f32 %v5636_v51, %v12676_v57  ;;  %v3913_v35 = vmul.f32 %v12681_v21, %v3744_v63  ;;  %v3921_v27 = vmul.f32 %v12681_v21, %v3752_v43 }
 0x659   :  { %v3848_v48 = vmul.f32 %v5636_v51, %v12678_v0  ;;  %v3856_v55 = vmul.f32 %v5636_v51, %v12680_v1  ;;  %v3929_v10 = vmul.f32 %v12681_v21, %v3760_v29  ;;  %v3937_v14 = vmul.f32 %v12681_v21, %v3768_v31 }
 0x65a   :  { %v3945_v57 = vmul.f32 %v12681_v21, %v3776_v4  ;;  %v3953_v62 = vmul.f32 %v12681_v21, %v3784_v38  ;;  %v3961_v0 = vmul.f32 %v12681_v21, %v3792_v42  ;;  %v3969_v3 = vmul.f32 %v12681_v21, %v3800_v20  ;;  %v9358_v4 = vpop.f32.mrb[60].mxu0  ;;  %v9360_v38 = vpop.f32.mrb[140].mxu1  ;;  %v12684_v42 = vld [vmem:[#allocation102_spill] sm:$0xff] }
 0x65b   :  { %v3977_v37 = vmul.f32 %v12681_v21, %v3808_v41  ;;  %v3985_v51 = vmul.f32 %v12681_v21, %v3816_v59  ;;  %v3993_v58 = vmul.f32 %v12681_v21, %v3824_v28  ;;  %v4001_v43 = vmul.f32 %v12681_v21, %v3832_v12  ;;  %12682 = vst [vmem:[#allocation69_spill] sm:$0xff] %v9358_v4  ;;  %v9374_v12 = vpop.f32.mrb[61].mxu0 }
 0x65c   :  { %v4009_v29 = vmul.f32 %v12681_v21, %v3840_v6  ;;  %v4017_v63 = vmul.f32 %v12681_v21, %v3848_v48  ;;  %v4025_v31 = vmul.f32 %v12681_v21, %v3856_v55  ;;  %12683 = vst [vmem:[#allocation70_spill] sm:$0xff] %v9360_v38  ;;  %v9363_v20 = vadd.f32 %v12684_v42, %v3905_v39  ;;  %v9376_v6 = vpop.f32.mrb[141].mxu1  ;;  %v9390_v1 = vpop.f32.mrb[62].mxu0 }
 0x65d   :  { %v9366_v41 = vadd.f32 %v12684_v42, %v3913_v35  ;;  %v9369_v59 = vadd.f32 %v12684_v42, %v3921_v27  ;;  %v9372_v28 = vadd.f32 %v12684_v42, %v3929_v10  ;;  %12689 = vst [vmem:[#allocation101_spill] sm:$0xff] %v9374_v12  ;;  %12690 = vst [vmem:[#allocation102_spill] sm:$0xff] %v9376_v6  ;;  %v9392_v55 = vpop.f32.mrb[142].mxu1 }
 0x65e   :  { %12685 = vst [vmem:[#allocation98_spill] sm:$0xff] %v9363_v20  ;;  %v9379_v21 = vadd.f32 %v12684_v42, %v3937_v14  ;;  %v9382_v48 = vadd.f32 %v12684_v42, %v3945_v57  ;;  %v9385_v39 = vadd.f32 %v12684_v42, %v3953_v62  ;;  %v9388_v35 = vadd.f32 %v12684_v42, %v3961_v0  ;;  %v9406_v62 = vpop.f32.mrb[63].mxu0  ;;  %v9408_v0 = vpop.f32.mrb[143].mxu1 }
 0x65f   :  { %12686 = vst [vmem:[#allocation99_spill] sm:$0xff] %v9366_v41  ;;  %12687 = vst [vmem:[#allocation57_spill] sm:$0xff] %v9369_v59  ;;  %v9395_v27 = vadd.f32 %v12684_v42, %v3969_v3  ;;  %v9398_v10 = vadd.f32 %v12684_v42, %v3977_v37  ;;  %v9401_v14 = vadd.f32 %v12684_v42, %v3985_v51  ;;  %v9423_v51 = vmul.f32 0.2, %v9363_v20  ;;  %v9492_v8 = vpop.f32.mrb[144].mxu1 }
 0x660   :  { %12688 = vst [vmem:[#allocation74_spill] sm:$0xff] %v9372_v28  ;;  %12691 = vst [vmem:[#allocation124_spill] sm:$0xff] %v9379_v21  ;;  %v9404_v57 = vadd.f32 %v12684_v42, %v3993_v58  ;;  %v9417_v3 = vadd.f32 %v12684_v42, %v4017_v63  ;;  %v9420_v37 = vadd.f32 %v12684_v42, %v4025_v31  ;;  %v9426_v58 = vmul.f32 0.2, %v9366_v41  ;;  %v9490_v41 = vpop.f32.mrb[64].mxu0 }
 0x661   :  { %12692 = vst [vmem:[#allocation125_spill] sm:$0xff] %v9382_v48  ;;  %12693 = vst [vmem:[#allocation126_spill] sm:$0xff] %v9385_v39  ;;  %v9436_v63 = vmul.f32 0.2, %v9372_v28  ;;  %v9439_v31 = vmul.f32 0.2, %v9379_v21  ;;  %v12728_v54 = vsub.f32 %v12625_v53, %v8692_v18  ;;  %v12730_v32 = vsub.f32 %v12626_v7, %v8692_v18 }
 0x662   :  { %12694 = vst [vmem:[#allocation127_spill] sm:$0xff] %v9388_v35  ;;  %12695 = vst [vmem:[#allocation128_spill] sm:$0xff] %v9390_v1  ;;  %v9411_v1 = vadd.f32 %v12684_v42, %v4001_v43  ;;  %v12710_v43 = vsub.f32 %v12603_v45, %v8692_v18  ;;  %v9449_v12 = vmul.f32 0.2, %v9385_v39  ;;  %v9452_v45 = vmul.f32 0.2, %v9388_v35 }
 0x663   :  { %12696 = vst [vmem:[#allocation129_spill] sm:$0xff] %v9392_v55  ;;  %12697 = vst [vmem:[#allocation130_spill] sm:$0xff] %v9395_v27  ;;  %v9414_v55 = vadd.f32 %v12684_v42, %v4009_v29  ;;  %v9442_v42 = vmul.f32 0.2, %v9382_v48  ;;  %v9460_v4 = vmul.f32 0.2, %v9398_v10  ;;  %v12734_v7 = vsub.f32 %v12630_v46, %v8692_v18 }
 0x664   :  { %12698 = vst [vmem:[#allocation131_spill] sm:$0xff] %v9398_v10  ;;  %12699 = vst [vmem:[#allocation132_spill] sm:$0xff] %v9401_v14  ;;  %v3738_v29 = vmul.f32 %v9340_v30, %v12710_v43  ;;  %v9455_v43 = vmul.f32 0.2, %v9395_v27  ;;  %v9463_v19 = vmul.f32 0.2, %v9401_v14  ;;  %v12738_v46 = vsub.f32 %v12634_v36, %v8692_v18 }
 0x665   :  { %12700 = vst [vmem:[#allocation133_spill] sm:$0xff] %v9404_v57  ;;  %12701 = vst [vmem:[#allocation134_spill] sm:$0xff] %v9406_v62  ;;  %v12714_v62 = vsub.f32 %v12623_v50, %v8692_v18  ;;  %v9466_v50 = vmul.f32 0.2, %v9404_v57  ;;  %v9471_v52 = vmul.f32 0.2, %v9411_v1  ;;  %v3244_v48 = vadd.f32 %v9258_v47, %v9230_v2 }
 0x666   :  { %12702 = vst [vmem:[#allocation135_spill] sm:$0xff] %v9408_v0  ;;  %12703 = vst [vmem:[#allocation136_spill] sm:$0xff] %v9411_v1  ;;  %v9429_v0 = vmul.f32 0.2, %v9369_v59  ;;  %v9474_v33 = vmul.f32 0.2, %v9414_v55 }
 0x667   :  { %12704 = vst [vmem:[#allocation137_spill] sm:$0xff] %v9414_v55  ;;  %12705 = vst [vmem:[#allocation138_spill] sm:$0xff] %v9417_v3  ;;  %v3746_v6 = vmul.f32 %v9340_v30, %v12714_v62  ;;  %v9477_v38 = vmul.f32 0.2, %v9417_v3  ;;  %v9482_v20 = vmul.f32 0.2, %v9420_v37 }
 0x668   :  { %12706 = vst [vmem:[#allocation139_spill] sm:$0xff] %v9420_v37  ;;  %12707 = vst [vmem:[#allocation140_spill] sm:$0xff] %v9423_v51  ;;  %v9502_v62 = vpop.f32.mrb[65].mxu0  ;;  %v3762_v51 = vmul.f32 %v9340_v30, %v12728_v54  ;;  %v12733_v54 = vsub.f32 %v12629_v17, %v8692_v18  ;;  %v12737_v17 = vsub.f32 %v12633_v60, %v8692_v18  ;;  %v12745_v14 = vld [vmem:[#allocation103_spill] sm:$0xff]  ;;  %v12794_v59 = vld [vmem:[#allocation97_spill] sm:$0xff] }
 0x669   :  { %12708 = vst [vmem:[#allocation141_spill] sm:$0xff] %v9426_v58  ;;  %12709 = vst [vmem:[#allocation142_spill] sm:$0xff] %v9429_v0  ;;  %v9514_v0 = vpop.f32.mrb[66].mxu0  ;;  %v12727_v58 = vsub.f32 %v12624_v56, %v8692_v18  ;;  %v12741_v60 = vsub.f32 %v12639_v49, %v8692_v18 }
 0x66a   :  { %12711 = vst [vmem:[#allocation143_spill] sm:$0xff] %v9436_v63  ;;  %12712 = vst [vmem:[#allocation144_spill] sm:$0xff] %v9439_v31  ;;  %v9504_v31 = vpop.f32.mrb[145].mxu1 }
 0x66b   :  { %12713 = vst [vmem:[#allocation145_spill] sm:$0xff] %v9442_v42  ;;  %12715 = vst [vmem:[#allocation146_spill] sm:$0xff] %v9449_v12  ;;  %v3754_v42 = vmul.f32 %v9340_v30, %v12727_v58  ;;  %v12732_v58 = vsub.f32 %v12628_v24, %v8692_v18  ;;  %v12736_v24 = vsub.f32 %v12632_v44, %v8692_v18 }
 0x66c   :  { %12716 = vst [vmem:[#allocation147_spill] sm:$0xff] %v9452_v45  ;;  %12717 = vst [vmem:[#allocation148_spill] sm:$0xff] %v9455_v43  ;;  %v9516_v43 = vpop.f32.mrb[146].mxu1  ;;  %v12740_v44 = vsub.f32 %v12636_v15, %v8692_v18 }
 0x66d   :  { %12718 = vst [vmem:[#allocation149_spill] sm:$0xff] %v9460_v4  ;;  %12719 = vst [vmem:[#allocation150_spill] sm:$0xff] %v9463_v19  ;;  %v9532_v55 = vpop.f32.mrb[147].mxu1  ;;  %v12731_v4 = vsub.f32 %v12627_v26, %v8692_v18  ;;  %v3786_v53 = vmul.f32 %v9340_v30, %v12732_v58  ;;  %v12735_v26 = vsub.f32 %v12631_v25, %v8692_v18 }
 0x66e   :  { %12720 = vst [vmem:[#allocation151_spill] sm:$0xff] %v9466_v50  ;;  %12721 = vst [vmem:[#allocation152_spill] sm:$0xff] %v9471_v52  ;;  %v3818_v58 = vmul.f32 %v9340_v30, %v12736_v24  ;;  %v12739_v25 = vsub.f32 %v12635_v13, %v8692_v18  ;;  %v3850_v24 = vmul.f32 %v9340_v30, %v12740_v44  ;;  %v9584_v36 = vpop.f32.mrb[148].mxu1 }
 0x66f   :  { %12722 = vst [vmem:[#allocation153_spill] sm:$0xff] %v9474_v33  ;;  %12723 = vst [vmem:[#allocation154_spill] sm:$0xff] %v9477_v38  ;;  %v9530_v33 = vpop.f32.mrb[67].mxu0  ;;  %v3770_v38 = vmul.f32 %v9340_v30, %v12730_v32  ;;  %v3778_v56 = vmul.f32 %v9340_v30, %v12731_v4  ;;  %v3802_v32 = vmul.f32 %v9340_v30, %v12734_v7  ;;  %v9592_v44 = vpop.f32.mrb[149].mxu1 }
 0x670   :  { %12724 = vst [vmem:[#allocation155_spill] sm:$0xff] %v9482_v20  ;;  %12725 = vst [vmem:[#allocation156_spill] sm:$0xff] %v9502_v62  ;;  %v3794_v20 = vmul.f32 %v9340_v30, %v12733_v54  ;;  %v3810_v4 = vmul.f32 %v9340_v30, %v12735_v26  ;;  %v3826_v54 = vmul.f32 %v9340_v30, %v12737_v17  ;;  %v9582_v37 = vpop.f32.mrb[68].mxu0 }
 0x671   :  { %12726 = vst [vmem:[#allocation157_spill] sm:$0xff] %v9504_v31  ;;  %12729 = vst [vmem:[#allocation158_spill] sm:$0xff] %v9532_v55  ;;  %v3834_v7 = vmul.f32 %v9340_v30, %v12738_v46  ;;  %v3842_v26 = vmul.f32 %v9340_v30, %v12739_v25  ;;  %v3858_v17 = vmul.f32 %v9340_v30, %v12741_v60  ;;  %v12742_v46 = vld [vmem:[#allocation89_spill] sm:$0xff]  ;;  %v9590_v15 = vpop.f32.mrb[69].mxu0 }
 0x672   :  { %v3907_v3 = vmul.f32 %v12742_v46, %v3738_v29  ;;  %v3915_v13 = vmul.f32 %v12742_v46, %v3746_v6  ;;  %v3923_v25 = vmul.f32 %v12742_v46, %v3754_v42  ;;  %v3931_v52 = vmul.f32 %v12742_v46, %v3762_v51  ;;  %12743 = vst [vmem:[#allocation89_spill] sm:$0xff] %v9592_v44  ;;  %v9598_v1 = vpop.f32.mrb[70].mxu0  ;;  %v9600_v29 = vpop.f32.mrb[150].mxu1 }
 0x673   :  { %v3939_v18 = vmul.f32 %v12742_v46, %v3770_v38  ;;  %v3947_v30 = vmul.f32 %v12742_v46, %v3778_v56  ;;  %v3955_v49 = vmul.f32 %v12742_v46, %v3786_v53  ;;  %v3963_v60 = vmul.f32 %v12742_v46, %v3794_v20  ;;  %v9606_v57 = vpop.f32.mrb[71].mxu0  ;;  %v9608_v38 = vpop.f32.mrb[151].mxu1 }
 0x674   :  { %v3971_v6 = vmul.f32 %v12742_v46, %v3802_v32  ;;  %v3979_v51 = vmul.f32 %v12742_v46, %v3810_v4  ;;  %v3987_v42 = vmul.f32 %v12742_v46, %v3818_v58  ;;  %v3995_v50 = vmul.f32 %v12742_v46, %v3826_v54  ;;  %12744 = vst [vmem:[#allocation159_spill] sm:$0xff] %v9608_v38 }
 0x675   :  { %v4003_v56 = vmul.f32 %v12742_v46, %v3834_v7  ;;  %v4011_v20 = vmul.f32 %v12742_v46, %v3842_v26  ;;  %v4019_v53 = vmul.f32 %v12742_v46, %v3850_v24  ;;  %v4027_v19 = vmul.f32 %v12742_v46, %v3858_v17 }
 0x676   :  { %v9615_v32 = vadd.f32 %v12745_v14, %v3907_v3  ;;  %v9618_v4 = vadd.f32 %v12745_v14, %v3915_v13  ;;  %v9621_v58 = vadd.f32 %v12745_v14, %v3923_v25  ;;  %v9624_v54 = vadd.f32 %v12745_v14, %v3931_v52 }
 0x677   :  { %v9627_v7 = vadd.f32 %v12745_v14, %v3939_v18  ;;  %v9630_v26 = vadd.f32 %v12745_v14, %v3947_v30  ;;  %v9633_v24 = vadd.f32 %v12745_v14, %v3955_v49  ;;  %v9636_v3 = vadd.f32 %v12745_v14, %v3963_v60  ;;  %v9662_v60 = vpop.f32.mrb[72].mxu0 }
 0x678   :  { %12746 = vst [vmem:[#allocation103_spill] sm:$0xff] %v9615_v32  ;;  %12747 = vst [vmem:[#allocation160_spill] sm:$0xff] %v9618_v4  ;;  %v9639_v17 = vadd.f32 %v12745_v14, %v3971_v6  ;;  %v9642_v46 = vadd.f32 %v12745_v14, %v3979_v51  ;;  %v9645_v52 = vadd.f32 %v12745_v14, %v3987_v42  ;;  %v9664_v6 = vpop.f32.mrb[152].mxu1  ;;  %v9667_v51 = vmul.f32 0.2, %v9615_v32 }
 0x679   :  { %12748 = vst [vmem:[#allocation161_spill] sm:$0xff] %v9621_v58  ;;  %12749 = vst [vmem:[#allocation162_spill] sm:$0xff] %v9624_v54  ;;  %v9648_v13 = vadd.f32 %v12745_v14, %v3995_v50  ;;  %v9651_v25 = vadd.f32 %v12745_v14, %v4003_v56  ;;  %v9654_v18 = vadd.f32 %v12745_v14, %v4011_v20  ;;  %v9670_v50 = vmul.f32 0.2, %v9618_v4  ;;  %v9730_v4 = vpop.f32.mrb[73].mxu0  ;;  %v9732_v21 = vpop.f32.mrb[153].mxu1 }
 0x67a   :  { %12750 = vst [vmem:[#allocation163_spill] sm:$0xff] %v9627_v7  ;;  %12751 = vst [vmem:[#allocation164_spill] sm:$0xff] %v9630_v26  ;;  %v9657_v30 = vadd.f32 %v12745_v14, %v4019_v53  ;;  %v9660_v49 = vadd.f32 %v12745_v14, %v4027_v19  ;;  %v9673_v42 = vmul.f32 0.2, %v9621_v58  ;;  %v3497_v56 = vadd.f32 %v9242_v40, %v9255_v34 }
 0x67b   :  { %12752 = vst [vmem:[#allocation165_spill] sm:$0xff] %v9633_v24  ;;  %12753 = vst [vmem:[#allocation166_spill] sm:$0xff] %v9636_v3  ;;  %v9678_v20 = vmul.f32 0.2, %v9624_v54  ;;  %v9681_v19 = vmul.f32 0.2, %v9627_v7  ;;  %v3539_v53 = vadd.f32 %v9244_v9, %v9262_v11 }
 0x67c   :  { %12754 = vst [vmem:[#allocation167_spill] sm:$0xff] %v9639_v17  ;;  %12755 = vst [vmem:[#allocation168_spill] sm:$0xff] %v9642_v46  ;;  %v9684_v14 = vmul.f32 0.2, %v9630_v26  ;;  %v9689_v10 = vmul.f32 0.2, %v9633_v24 }
 0x67d   :  { %12756 = vst [vmem:[#allocation169_spill] sm:$0xff] %v9645_v52  ;;  %12757 = vst [vmem:[#allocation170_spill] sm:$0xff] %v9648_v13  ;;  %v9692_v27 = vmul.f32 0.2, %v9636_v3  ;;  %v9695_v40 = vmul.f32 0.2, %v9639_v17 }
 0x67e   :  { %12758 = vst [vmem:[#allocation171_spill] sm:$0xff] %v9651_v25  ;;  %12759 = vst [vmem:[#allocation172_spill] sm:$0xff] %v9654_v18  ;;  %v9700_v45 = vmul.f32 0.2, %v9642_v46  ;;  %v9703_v35 = vmul.f32 0.2, %v9645_v52 }
 0x67f   :  { %12760 = vst [vmem:[#allocation173_spill] sm:$0xff] %v9657_v30  ;;  %12761 = vst [vmem:[#allocation174_spill] sm:$0xff] %v9660_v49  ;;  %v9706_v9 = vmul.f32 0.2, %v9648_v13  ;;  %v9711_v12 = vmul.f32 0.2, %v9651_v25 }
 0x680   :  { %12762 = vst [vmem:[#allocation175_spill] sm:$0xff] %v9667_v51  ;;  %12763 = vst [vmem:[#allocation176_spill] sm:$0xff] %v9670_v50  ;;  %v9714_v39 = vmul.f32 0.2, %v9654_v18  ;;  %v9717_v34 = vmul.f32 0.2, %v9657_v30  ;;  %v3477_v50 = vadd.f32 %v9251_v22, %v9271_v5  ;;  %v3202_v51 = vadd.f32 %v9249_v16, %v9228_v61 }
 0x681   :  { %12764 = vst [vmem:[#allocation177_spill] sm:$0xff] %v9673_v42  ;;  %12765 = vst [vmem:[#allocation178_spill] sm:$0xff] %v9678_v20  ;;  %v9722_v32 = vmul.f32 0.2, %v9660_v49  ;;  %v9742_v11 = vpop.f32.mrb[74].mxu0  ;;  %v12784_v30 = vld [vmem:[#allocation53_spill] sm:$0xff] }
 0x682   :  { %12766 = vst [vmem:[#allocation179_spill] sm:$0xff] %v9681_v19  ;;  %12767 = vst [vmem:[#allocation180_spill] sm:$0xff] %v9684_v14  ;;  %v9744_v19 = vpop.f32.mrb[154].mxu1  ;;  %v9754_v42 = vpop.f32.mrb[75].mxu0  ;;  %v3293_v14 = vmul.f32 %v9220_v23, %v9220_v23  ;;  %v12785_v25 = vld [vmem:[#allocation85_spill] sm:$0xff] }
 0x683   :  { %12768 = vst [vmem:[#allocation181_spill] sm:$0xff] %v9689_v10  ;;  %12769 = vst [vmem:[#allocation182_spill] sm:$0xff] %v9692_v27  ;;  %v9766_v63 = vpop.f32.mrb[76].mxu0  ;;  %v3301_v17 = vmul.f32 %v12785_v25, %v12785_v25  ;;  %v12787_v27 = vld [vmem:[#allocation55_spill] sm:$0xff] }
 0x684   :  { %12770 = vst [vmem:[#allocation183_spill] sm:$0xff] %v9695_v40  ;;  %12771 = vst [vmem:[#allocation184_spill] sm:$0xff] %v9700_v45  ;;  %v9756_v40 = vpop.f32.mrb[155].mxu1  ;;  %v3294_v45 = vmul.f32 %v9230_v2, %v9230_v2  ;;  %v9778_v22 = vpop.f32.mrb[77].mxu0  ;;  %v3300_v10 = vmul.f32 %v12787_v27, %v12787_v27 }
 0x685   :  { %12772 = vst [vmem:[#allocation185_spill] sm:$0xff] %v9703_v35  ;;  %12773 = vst [vmem:[#allocation186_spill] sm:$0xff] %v9706_v9  ;;  %v12786_v9 = vld [vmem:[#allocation54_spill] sm:$0xff]  ;;  %v9789_v35 = vpop.f32.mrb[78].mxu0 }
 0x686   :  { %12774 = vst [vmem:[#allocation187_spill] sm:$0xff] %v9711_v12  ;;  %12775 = vst [vmem:[#allocation188_spill] sm:$0xff] %v9714_v39  ;;  %v9768_v12 = vpop.f32.mrb[156].mxu1  ;;  %v3292_v39 = vmul.f32 %v9228_v61, %v9228_v61  ;;  %v3224_v13 = vadd.f32 %v12786_v9, %v12785_v25  ;;  %v3540_v46 = vadd.f32 %v3539_v53, %v3294_v45  ;;  %v12790_v9 = vld [vmem:[#allocation73_spill] sm:$0xff]  ;;  %v12791_v45 = vld [vmem:[#allocation88_spill] sm:$0xff] }
 0x687   :  { %12776 = vst [vmem:[#allocation189_spill] sm:$0xff] %v9717_v34  ;;  %12777 = vst [vmem:[#allocation190_spill] sm:$0xff] %v9722_v32  ;;  %v9780_v5 = vpop.f32.mrb[157].mxu1  ;;  %v12782_v32 = vld [vmem:[#allocation83_spill] sm:$0xff]  ;;  %v12783_v34 = vld [vmem:[#allocation84_spill] sm:$0xff]  ;;  %v3245_v24 = vadd.f32 %v3244_v48, %v12790_v9  ;;  %v3302_v26 = vmul.f32 %v12790_v9, %v12790_v9  ;;  %v3307_v53 = vmul.f32 %v12791_v45, %v12791_v45 }
 0x688   :  { %12778 = vst [vmem:[#allocation191_spill] sm:$0xff] %v9732_v21  ;;  %12779 = vst [vmem:[#allocation192_spill] sm:$0xff] %v9756_v40  ;;  %v3519_v49 = vadd.f32 %v12782_v32, %v3293_v14  ;;  %v3182_v18 = vadd.f32 %v12784_v30, %v12783_v34  ;;  %v3299_v16 = vmul.f32 %v12783_v34, %v12783_v34  ;;  %v9791_v47 = vpop.f32.mrb[158].mxu1  ;;  %v9796_v14 = vpop.f32.mrb[79].mxu0  ;;  %v12795_v9 = vld [vmem:[#allocation69_spill] sm:$0xff] }
 0x689   :  { %12780 = vst [vmem:[#allocation193_spill] sm:$0xff] %v9778_v22  ;;  %12781 = vst [vmem:[#allocation194_spill] sm:$0xff] %v9780_v5  ;;  %v3498_v52 = vadd.f32 %v3497_v56, %v3292_v39  ;;  %v3203_v32 = vadd.f32 %v3202_v51, %v12787_v27  ;;  %v9798_v30 = vpop.f32.mrb[159].mxu1  ;;  %v12792_v51 = vld [vmem:[#allocation68_spill] sm:$0xff]  ;;  %v3541_v54 = vadd.f32 %v3540_v46, %v3302_v26  ;;  %v12796_v26 = vld [vmem:[#allocation70_spill] sm:$0xff] }
 0x68a   :  { %12788 = vst [vmem:[#allocation83_spill] sm:$0xff] %v9796_v14  ;;  %12789 = vst [vmem:[#allocation84_spill] sm:$0xff] %v9798_v30  ;;  %v3478_v3 = vadd.f32 %v3477_v50, %v3299_v16  ;;  %v3520_v39 = vadd.f32 %v3519_v49, %v3301_v17  ;;  %v3183_v56 = vadd.f32 %v3182_v18, %v12791_v45  ;;  %v12793_v16 = vld [vmem:[#allocation96_spill] sm:$0xff] }
 0x68b   :  { %v3225_v7 = vadd.f32 %v3224_v13, %v12792_v51  ;;  %v3499_v20 = vadd.f32 %v3498_v52, %v3300_v10  ;;  %v3309_v50 = vmul.f32 %v12792_v51, %v12792_v51  ;;  %v3204_v58 = vadd.f32 %v3203_v32, %v12793_v16  ;;  %v12797_v32 = vld [vmem:[#allocation101_spill] sm:$0xff]  ;;  %v12799_v27 = vld [vmem:[#allocation128_spill] sm:$0xff] }
 0x68c   :  { %v3479_v28 = vadd.f32 %v3478_v3, %v3307_v53  ;;  %v3308_v48 = vmul.f32 %v12793_v16, %v12793_v16  ;;  %v3246_v17 = vadd.f32 %v3245_v24, %v12794_v59  ;;  %v3310_v18 = vmul.f32 %v12794_v59, %v12794_v59  ;;  %v12798_v59 = vld [vmem:[#allocation102_spill] sm:$0xff] }
 0x68d   :  { %v3521_v49 = vadd.f32 %v3520_v39, %v3309_v50  ;;  %v3184_v2 = vadd.f32 %v3183_v56, %v12795_v9  ;;  %v3315_v10 = vmul.f32 %v12795_v9, %v12795_v9  ;;  %v3226_v46 = vadd.f32 %v3225_v7, %v12796_v26  ;;  %v12800_v7 = vld [vmem:[#allocation129_spill] sm:$0xff] }
 0x68e   :  { %v3500_v52 = vadd.f32 %v3499_v20, %v3308_v48  ;;  %v3542_v13 = vadd.f32 %v3541_v54, %v3310_v18  ;;  %v3317_v3 = vmul.f32 %v12796_v26, %v12796_v26  ;;  %v3205_v53 = vadd.f32 %v3204_v58, %v12797_v32  ;;  %v12801_v58 = vld [vmem:[#allocation134_spill] sm:$0xff] }
 0x68f   :  { %v3480_v16 = vadd.f32 %v3479_v28, %v3315_v10  ;;  %v3316_v24 = vmul.f32 %v12797_v32, %v12797_v32  ;;  %v3247_v39 = vadd.f32 %v3246_v17, %v12798_v59  ;;  %v3318_v56 = vmul.f32 %v12798_v59, %v12798_v59  ;;  %v12802_v59 = vld [vmem:[#allocation135_spill] sm:$0xff] }
 0x690   :  { %v3522_v50 = vadd.f32 %v3521_v49, %v3317_v3  ;;  %v3185_v61 = vadd.f32 %v3184_v2, %v12799_v27  ;;  %v3323_v54 = vmul.f32 %v12799_v27, %v12799_v27  ;;  %v3227_v20 = vadd.f32 %v3226_v46, %v12800_v7 }
 0x691   :  { %v3501_v48 = vadd.f32 %v3500_v52, %v3316_v24  ;;  %v3543_v18 = vadd.f32 %v3542_v13, %v3318_v56  ;;  %v3325_v28 = vmul.f32 %v12800_v7, %v12800_v7  ;;  %v3206_v10 = vadd.f32 %v3205_v53, %v12801_v58 }
 0x692   :  { %v3481_v32 = vadd.f32 %v3480_v16, %v3323_v54  ;;  %v3324_v17 = vmul.f32 %v12801_v58, %v12801_v58  ;;  %v3248_v49 = vadd.f32 %v3247_v39, %v12802_v59  ;;  %v3326_v2 = vmul.f32 %v12802_v59, %v12802_v59 }
 0x693   :  { %v3523_v3 = vadd.f32 %v3522_v50, %v3325_v28  ;;  %v3186_v26 = vadd.f32 %v3185_v61, %v9490_v41  ;;  %v3331_v46 = vmul.f32 %v9490_v41, %v9490_v41  ;;  %v3228_v52 = vadd.f32 %v3227_v20, %v9492_v8 }
 0x694   :  { %v3502_v13 = vadd.f32 %v3501_v48, %v3324_v17  ;;  %v3544_v24 = vadd.f32 %v3543_v18, %v3326_v2  ;;  %v3333_v16 = vmul.f32 %v9492_v8, %v9492_v8  ;;  %v3207_v53 = vadd.f32 %v3206_v10, %v9502_v62 }
 0x695   :  { %v3482_v56 = vadd.f32 %v3481_v32, %v3331_v46  ;;  %v3332_v39 = vmul.f32 %v9502_v62, %v9502_v62  ;;  %v3249_v50 = vadd.f32 %v3248_v49, %v9504_v31  ;;  %v3334_v61 = vmul.f32 %v9504_v31, %v9504_v31 }
 0x696   :  { %v3524_v54 = vadd.f32 %v3523_v3, %v3333_v16  ;;  %v3187_v28 = vadd.f32 %v3186_v26, %v9514_v0  ;;  %v3339_v20 = vmul.f32 %v9514_v0, %v9514_v0  ;;  %v3229_v48 = vadd.f32 %v3228_v52, %v9516_v43 }
 0x697   :  { %v3503_v18 = vadd.f32 %v3502_v13, %v3332_v39  ;;  %v3545_v17 = vadd.f32 %v3544_v24, %v3334_v61  ;;  %v3341_v32 = vmul.f32 %v9516_v43, %v9516_v43  ;;  %v3208_v10 = vadd.f32 %v3207_v53, %v9530_v33 }
 0x698   :  { %v3483_v2 = vadd.f32 %v3482_v56, %v3339_v20  ;;  %v3340_v49 = vmul.f32 %v9530_v33, %v9530_v33  ;;  %v3250_v3 = vadd.f32 %v3249_v50, %v9532_v55  ;;  %v3342_v26 = vmul.f32 %v9532_v55, %v9532_v55 }
 0x699   :  { %v3525_v46 = vadd.f32 %v3524_v54, %v3341_v32  ;;  %v3188_v16 = vadd.f32 %v3187_v28, %v9582_v37  ;;  %v3347_v52 = vmul.f32 %v9582_v37, %v9582_v37  ;;  %v3230_v13 = vadd.f32 %v3229_v48, %v9584_v36 }
 0x69a   :  { %v3504_v24 = vadd.f32 %v3503_v18, %v3340_v49  ;;  %v3546_v39 = vadd.f32 %v3545_v17, %v3342_v26  ;;  %v3349_v53 = vmul.f32 %v9584_v36, %v9584_v36  ;;  %v3209_v56 = vadd.f32 %v3208_v10, %v9590_v15 }
 0x69b   :  { %v3484_v61 = vadd.f32 %v3483_v2, %v3347_v52  ;;  %v3348_v50 = vmul.f32 %v9590_v15, %v9590_v15  ;;  %v3251_v54 = vadd.f32 %v3250_v3, %v9592_v44  ;;  %v3350_v28 = vmul.f32 %v9592_v44, %v9592_v44 }
 0x69c   :  { %v3526_v20 = vadd.f32 %v3525_v46, %v3349_v53  ;;  %v3189_v32 = vadd.f32 %v3188_v16, %v9598_v1  ;;  %v3355_v48 = vmul.f32 %v9598_v1, %v9598_v1  ;;  %v3231_v18 = vadd.f32 %v3230_v13, %v9600_v29 }
 0x69d   :  { %v3505_v17 = vadd.f32 %v3504_v24, %v3348_v50  ;;  %v3547_v49 = vadd.f32 %v3546_v39, %v3350_v28  ;;  %v3357_v10 = vmul.f32 %v9600_v29, %v9600_v29  ;;  %v3210_v2 = vadd.f32 %v3209_v56, %v9606_v57 }
 0x69e   :  { %v3485_v26 = vadd.f32 %v3484_v61, %v3355_v48  ;;  %v3356_v3 = vmul.f32 %v9606_v57, %v9606_v57  ;;  %v3252_v46 = vadd.f32 %v3251_v54, %v9608_v38  ;;  %v3358_v16 = vmul.f32 %v9608_v38, %v9608_v38 }
 0x69f   :  { %v3527_v52 = vadd.f32 %v3526_v20, %v3357_v10  ;;  %v3190_v53 = vadd.f32 %v3189_v32, %v9662_v60  ;;  %v3363_v13 = vmul.f32 %v9662_v60, %v9662_v60  ;;  %v3232_v24 = vadd.f32 %v3231_v18, %v9664_v6 }
 0x6a0   :  { %v3506_v39 = vadd.f32 %v3505_v17, %v3356_v3  ;;  %v3548_v50 = vadd.f32 %v3547_v49, %v3358_v16  ;;  %v3365_v56 = vmul.f32 %v9664_v6, %v9664_v6  ;;  %v3211_v61 = vadd.f32 %v3210_v2, %v9730_v4 }
 0x6a1   :  { %v3486_v28 = vadd.f32 %v3485_v26, %v3363_v13  ;;  %v3364_v54 = vmul.f32 %v9730_v4, %v9730_v4  ;;  %v3253_v20 = vadd.f32 %v3252_v46, %v9732_v21  ;;  %v3366_v32 = vmul.f32 %v9732_v21, %v9732_v21 }
 0x6a2   :  { %v3528_v48 = vadd.f32 %v3527_v52, %v3365_v56  ;;  %v3191_v10 = vadd.f32 %v3190_v53, %v9742_v11  ;;  %v3371_v18 = vmul.f32 %v9742_v11, %v9742_v11  ;;  %v3233_v17 = vadd.f32 %v3232_v24, %v9744_v19 }
 0x6a3   :  { %v3507_v49 = vadd.f32 %v3506_v39, %v3364_v54  ;;  %v3549_v3 = vadd.f32 %v3548_v50, %v3366_v32  ;;  %v3373_v2 = vmul.f32 %v9744_v19, %v9744_v19  ;;  %v3212_v26 = vadd.f32 %v3211_v61, %v9754_v42 }
 0x6a4   :  { %v3487_v16 = vadd.f32 %v3486_v28, %v3371_v18  ;;  %v3372_v46 = vmul.f32 %v9754_v42, %v9754_v42  ;;  %v3254_v52 = vadd.f32 %v3253_v20, %v9756_v40  ;;  %v3374_v53 = vmul.f32 %v9756_v40, %v9756_v40 }
 0x6a5   :  { %v3529_v13 = vadd.f32 %v3528_v48, %v3373_v2  ;;  %v3192_v56 = vadd.f32 %v3191_v10, %v9766_v63  ;;  %v3379_v24 = vmul.f32 %v9766_v63, %v9766_v63  ;;  %v3234_v39 = vadd.f32 %v3233_v17, %v9768_v12 }
 0x6a6   :  { %v3508_v50 = vadd.f32 %v3507_v49, %v3372_v46  ;;  %v3550_v54 = vadd.f32 %v3549_v3, %v3374_v53  ;;  %v3381_v61 = vmul.f32 %v9768_v12, %v9768_v12  ;;  %v3213_v28 = vadd.f32 %v3212_v26, %v9778_v22 }
 0x6a7   :  { %v3488_v32 = vadd.f32 %v3487_v16, %v3379_v24  ;;  %v3380_v20 = vmul.f32 %v9778_v22, %v9778_v22  ;;  %v3255_v48 = vadd.f32 %v3254_v52, %v9780_v5  ;;  %v3382_v10 = vmul.f32 %v9780_v5, %v9780_v5 }
 0x6a8   :  { %v3530_v18 = vadd.f32 %v3529_v13, %v3381_v61  ;;  %v3193_v2 = vadd.f32 %v3192_v56, %v9789_v35  ;;  %v3387_v17 = vmul.f32 %v9789_v35, %v9789_v35  ;;  %v3235_v46 = vadd.f32 %v3234_v39, %v9791_v47 }
 0x6a9   :  { %v3509_v49 = vadd.f32 %v3508_v50, %v3380_v20  ;;  %v3551_v3 = vadd.f32 %v3550_v54, %v3382_v10  ;;  %v3389_v26 = vmul.f32 %v9791_v47, %v9791_v47  ;;  %v3214_v40 = vadd.f32 %v3213_v28, %v9796_v14  ;;  %v12803_v10 = vld [vmem:[#allocation21_spill] sm:$0xff] }
 0x6aa   :  { %v3194_v16 = vrot.slane %v3193_v2, 4  ;;  %v3489_v53 = vadd.f32 %v3488_v32, %v3387_v17  ;;  %v3236_v24 = vrot.slane %v3235_v46, 4  ;;  %v3388_v56 = vmul.f32 %v9796_v14, %v9796_v14 }
 0x6ab   :  { %v3531_v52 = vadd.f32 %v3530_v18, %v3389_v26  ;;  %v3215_v20 = vrot.slane %v3214_v40, 4  ;;  %v3256_v31 = vadd.f32 %v3255_v48, %v9798_v30 }
 0x6ac   :  { %v3195_v5 = vadd.f32 %v3194_v16, %v3193_v2  ;;  %v3490_v13 = vrot.slane %v3489_v53, 4  ;;  %v3237_v61 = vadd.f32 %v3236_v24, %v3235_v46  ;;  %v3510_v39 = vadd.f32 %v3509_v49, %v3388_v56 }
 0x6ad   :  { %v3532_v21 = vrot.slane %v3531_v52, 4  ;;  %v3216_v28 = vadd.f32 %v3215_v20, %v3214_v40  ;;  %v3390_v46 = vmul.f32 %v9798_v30, %v9798_v30 }
 0x6ae   :  { %v3196_v50 = vrot.slane %v3195_v5, 2  ;;  %v3491_v54 = vadd.f32 %v3490_v13, %v3489_v53  ;;  %v3238_v44 = vrot.slane %v3237_v61, 2  ;;  %v3511_v2 = vrot.slane %v3510_v39, 4 }
 0x6af   :  { %v3533_v55 = vadd.f32 %v3532_v21, %v3531_v52  ;;  %v3217_v49 = vrot.slane %v3216_v28, 2  ;;  %v3257_v21 = vrot.slane %v3256_v31, 4  ;;  %v3552_v52 = vadd.f32 %v3551_v3, %v3390_v46  ;;  %v12807_v46 = vld [vmem:[#allocation51_spill] sm:$0xff] }
 0x6b0   :  { %v3197_v18 = vadd.f32 %v3196_v50, %v3195_v5  ;;  %v3492_v17 = vrot.slane %v3491_v54, 2  ;;  %v3239_v26 = vadd.f32 %v3238_v44, %v3237_v61  ;;  %v3512_v13 = vadd.f32 %v3511_v2, %v3510_v39 }
 0x6b1   :  { %v3534_v16 = vrot.slane %v3533_v55, 2  ;;  %v3218_v50 = vadd.f32 %v3217_v49, %v3216_v28  ;;  %v3258_v61 = vadd.f32 %v3257_v21, %v3256_v31  ;;  %v3553_v59 = vrot.slane %v3552_v52, 4  ;;  %v12805_v31 = vld [vmem:[#allocation120_spill] sm:$0xff]  ;;  %v12808_v21 = vld [vmem:[#allocation117_spill] sm:$0xff]  ;;  %v12811_v49 = vld [vmem:[#allocation70_spill] sm:$0xff] }
 0x6b2   :  { %v3198_v53 = vrot.slane %v3197_v18, 1  ;;  %v3493_v24 = vadd.f32 %v3492_v17, %v3491_v54  ;;  %v3240_v56 = vrot.slane %v3239_v26, 1  ;;  %v3513_v40 = vrot.slane %v3512_v13, 2 }
 0x6b3   :  { %v3535_v38 = vadd.f32 %v3534_v16, %v3533_v55  ;;  %v3219_v30 = vrot.slane %v3218_v50, 1  ;;  %v3259_v39 = vrot.slane %v3258_v61, 2  ;;  %v3554_v55 = vadd.f32 %v3553_v59, %v3552_v52 }
 0x6b4   :  { %v3199_v32 = vadd.f32 %v3198_v53, %v3197_v18  ;;  %v3494_v5 = vrot.slane %v3493_v24, 1  ;;  %v3241_v20 = vadd.f32 %v3240_v56, %v3239_v26  ;;  %v3514_v22 = vadd.f32 %v3513_v40, %v3512_v13  ;;  %v12804_v18 = vld [vmem:[#allocation116_spill] sm:$0xff]  ;;  %v12809_v56 = vld [vmem:[#allocation121_spill] sm:$0xff] }
 0x6b5   :  { %v3536_v44 = vrot.slane %v3535_v38, 1  ;;  %v3220_v13 = vadd.f32 %v3219_v30, %v3218_v50  ;;  %v10011_v59 = vadd.f32 %v3259_v39, %v3258_v61  ;;  %v10024_v40 = vld [vmem:[%s11479_s3 + $0x17] sm:$0xff]  ;;  %v12817_v61 = vsub.s32 6, %v12803_v10 }
 0x6b6   :  { %v3495_v48 = vadd.f32 %v3494_v5, %v3493_v24  ;;  %v9939_v14 = vmul.f32 0.0078125, %v3199_v32  ;;  %v9941_v17 = vmul.f32 0.0078125, %v3241_v20  ;;  %v12806_v32 = vld [vmem:[#allocation49_spill] sm:$0xff]  ;;  %v12810_v20 = vld [vmem:[#allocation50_spill] sm:$0xff]  ;;  %12815 = vst [vmem:[#allocation54_spill] sm:$0xff] %v10024_v40 }
 0x6b7   :  { %v3537_v54 = vadd.f32 %v3536_v44, %v3535_v38  ;;  %12812 = vst [vmem:[#allocation53_spill] sm:$0xff] %v10011_v59  ;;  %v3555_v44 = vrot.slane %v3554_v55, 2 }
 0x6b8   :  { %v3571_v2 = vmul.f32 0.0078125, %v3495_v48  ;;  %v3579_v3 = vmul.f32 %v9939_v14, %v9939_v14  ;;  %v3581_v52 = vmul.f32 %v9941_v17, %v9941_v17  ;;  %v12829_v38 = vsub.f32 %v12804_v18, %v9939_v14 }
 0x6b9   :  { %v10044_v16 = vadd.f32 %v3555_v44, %v3554_v55  ;;  %v12834_v18 = vsub.f32 %v12791_v45, %v9939_v14  ;;  %v12839_v45 = vsub.f32 %v9582_v37, %v9939_v14  ;;  %v12844_v37 = vsub.f32 %v9789_v35, %v9939_v14 }
 0x6ba   :  { %v3587_v24 = vsub.f32 %v3571_v2, %v3579_v3  ;;  %v3573_v3 = vmul.f32 0.0078125, %v3537_v54 }
 0x6bb   :  { %12819 = vst [vmem:[#allocation88_spill] sm:$0xff] %v10044_v16 }
 0x6bc   :  { %v3723_v2 = vadd.f32 0.8, %v3587_v24  ;;  %v3589_v54 = vsub.f32 %v3573_v3, %v3581_v52  ;;  %v3515_v24 = vrot.slane %v3514_v22, 1  ;;  %v10016_v52 = vld [vmem:[%s11479_s3 + $0x9] sm:$0xff]  ;;  %v12814_v3 = vsub.s32 4, %v12803_v10 }
 0x6bd   :  { %12813 = vst [vmem:[#allocation85_spill] sm:$0xff] %v10016_v52  ;;  %v10034_v39 = vrot.slane %v10016_v52, %v12817_v61  ;;  %v12831_v10 = vsub.f32 %v12806_v32, %v9939_v14  ;;  %v12836_v32 = vsub.f32 %v12799_v27, %v9939_v14  ;;  %v12841_v27 = vsub.f32 %v9662_v60, %v9939_v14 }
 0x6be   :  { %5639 = vrsqrt.f32 %v3723_v2  ;;  %v3725_v48 = vadd.f32 0.8, %v3589_v54  ;;  %v3883_v5 = vrot.slane %v10016_v52, %v12814_v3  ;;  %v12816_v30 = vmov %v12814_v3 }
 0x6bf   :  { %v10029_v50 = vrot.slane %v10024_v40, %v12816_v30  ;;  %v3516_v54 = vadd.f32 %v3515_v24, %v3514_v22  ;;  %v10036_v2 = vmul.f32 0.0078125, %v3220_v13  ;;  %v12818_v3 = vmov %v12817_v61 }
 0x6c0   :  { %5641 = vrsqrt.f32 %v3725_v48  ;;  %v10041_v53 = vrot.slane %v10024_v40, %v12818_v3  ;;  %v12830_v40 = vsub.f32 %v12805_v31, %v9939_v14  ;;  %v12832_v22 = vsub.f32 %v12807_v46, %v9939_v14 }
 0x6c1   :  { %v10046_v30 = vmul.f32 0.0078125, %v3516_v54  ;;  %v10050_v26 = vmul.f32 %v10036_v2, %v10036_v2  ;;  %v12833_v24 = vsub.f32 %v12783_v34, %v9939_v14  ;;  %v12835_v31 = vsub.f32 %v12795_v9, %v9939_v14 }
 0x6c2   :  { %v12837_v46 = vsub.f32 %v9490_v41, %v9939_v14  ;;  %v12838_v34 = vsub.f32 %v9514_v0, %v9939_v14  ;;  %v12840_v9 = vsub.f32 %v9598_v1, %v9939_v14  ;;  %v12842_v41 = vsub.f32 %v9742_v11, %v9939_v14 }
 0x6c3   :  { %12820 = vst [vmem:[#allocation68_spill] sm:$0xff] %v10046_v30  ;;  %12821 = vst [vmem:[#allocation69_spill] sm:$0xff] %v10050_v26  ;;  %v12843_v0 = vsub.f32 %v9766_v63, %v9939_v14 }
 0x6c8   :  { %v5640_v52 = vpop.eup %5639 }
 0x6c9   :  { %v3739_v44 = vmul.f32 %v5640_v52, %v12829_v38  ;;  %v3747_v54 = vmul.f32 %v5640_v52, %v12830_v40  ;;  %v3755_v55 = vmul.f32 %v5640_v52, %v12831_v10  ;;  %v3763_v13 = vmul.f32 %v5640_v52, %v12832_v22 }
 0x6ca   :  { %v3771_v3 = vmul.f32 %v5640_v52, %v12833_v24  ;;  %v3779_v38 = vmul.f32 %v5640_v52, %v12834_v18  ;;  %v3787_v40 = vmul.f32 %v5640_v52, %v12835_v31  ;;  %v3795_v10 = vmul.f32 %v5640_v52, %v12836_v32  ;;  %v10120_v48 = vpop.eup %5641 }
 0x6cb   :  { %v3803_v22 = vmul.f32 %v5640_v52, %v12837_v46  ;;  %v3811_v24 = vmul.f32 %v5640_v52, %v12838_v34  ;;  %v3819_v18 = vmul.f32 %v5640_v52, %v12839_v45  ;;  %v3827_v31 = vmul.f32 %v5640_v52, %v12840_v9 }
 0x6cc   :  { %v3835_v32 = vmul.f32 %v5640_v52, %v12841_v27  ;;  %v3843_v46 = vmul.f32 %v5640_v52, %v12842_v41  ;;  %v3851_v34 = vmul.f32 %v5640_v52, %v12843_v0  ;;  %v3859_v45 = vmul.f32 %v5640_v52, %v12844_v37 }
 0x6cd   :  { %v3908_v62 = vmul.f32 %v3883_v5, %v3739_v44  ;;  %v3916_v58 = vmul.f32 %v3883_v5, %v3747_v54  ;;  %v3924_v1 = vmul.f32 %v3883_v5, %v3755_v55  ;;  %v3932_v9 = vmul.f32 %v3883_v5, %v3763_v13 }
 0x6ce   :  { %v3940_v28 = vmul.f32 %v3883_v5, %v3771_v3  ;;  %v3948_v61 = vmul.f32 %v3883_v5, %v3779_v38  ;;  %v3956_v60 = vmul.f32 %v3883_v5, %v3787_v40  ;;  %v3964_v27 = vmul.f32 %v3883_v5, %v3795_v10 }
 0x6cf   :  { %v3972_v11 = vmul.f32 %v3883_v5, %v3803_v22  ;;  %v3980_v41 = vmul.f32 %v3883_v5, %v3811_v24  ;;  %v3988_v16 = vmul.f32 %v3883_v5, %v3819_v18  ;;  %v3996_v59 = vmul.f32 %v3883_v5, %v3827_v31 }
 0x6d0   :  { %v4004_v63 = vmul.f32 %v3883_v5, %v3835_v32  ;;  %v4012_v0 = vmul.f32 %v3883_v5, %v3843_v46  ;;  %v4020_v26 = vmul.f32 %v3883_v5, %v3851_v34  ;;  %v4028_v30 = vmul.f32 %v3883_v5, %v3859_v45 }
 0x6d1   :  { %v10123_v35 = vadd.f32 %v10029_v50, %v3908_v62  ;;  %v10126_v14 = vadd.f32 %v10029_v50, %v3916_v58  ;;  %v10129_v52 = vadd.f32 %v10029_v50, %v3924_v1  ;;  %v10132_v13 = vadd.f32 %v10029_v50, %v3932_v9 }
 0x6d2   :  { %v10135_v3 = vadd.f32 %v10029_v50, %v3940_v28  ;;  %v10138_v55 = vadd.f32 %v10029_v50, %v3948_v61  ;;  %v10141_v5 = vadd.f32 %v10029_v50, %v3956_v60  ;;  %v10144_v62 = vadd.f32 %v10029_v50, %v3964_v27 }
 0x6d3   :  { %12845 = vst [vmem:[#allocation128_spill] sm:$0xff] %v10123_v35  ;;  %12846 = vst [vmem:[#allocation129_spill] sm:$0xff] %v10126_v14  ;;  %v10147_v58 = vadd.f32 %v10029_v50, %v3972_v11  ;;  %v10150_v44 = vadd.f32 %v10029_v50, %v3980_v41  ;;  %v10153_v54 = vadd.f32 %v10029_v50, %v3988_v16  ;;  %v10171_v22 = vmul.f32 0.2, %v10123_v35 }
 0x6d4   :  { %12847 = vst [vmem:[#allocation116_spill] sm:$0xff] %v10129_v52  ;;  %12848 = vst [vmem:[#allocation120_spill] sm:$0xff] %v10132_v13  ;;  %v10156_v28 = vadd.f32 %v10029_v50, %v3996_v59  ;;  %v10159_v61 = vadd.f32 %v10029_v50, %v4004_v63  ;;  %v10162_v38 = vadd.f32 %v10029_v50, %v4012_v0  ;;  %v10174_v16 = vmul.f32 0.2, %v10126_v14  ;;  %v12951_v14 = vld [vmem:[#allocation122_spill] sm:$0xff] }
 0x6d5   :  { %12849 = vst [vmem:[#allocation49_spill] sm:$0xff] %v10135_v3  ;;  %12850 = vst [vmem:[#allocation51_spill] sm:$0xff] %v10138_v55  ;;  %v10165_v40 = vadd.f32 %v10029_v50, %v4020_v26  ;;  %v10168_v10 = vadd.f32 %v10029_v50, %v4028_v30  ;;  %v10177_v59 = vmul.f32 0.2, %v10129_v52  ;;  %v12864_v24 = vsub.f32 %v12808_v21, %v9941_v17  ;;  %v12947_v52 = vld [vmem:[#allocation54_spill] sm:$0xff] }
 0x6d6   :  { %12851 = vst [vmem:[#allocation117_spill] sm:$0xff] %v10141_v5  ;;  %12852 = vst [vmem:[#allocation121_spill] sm:$0xff] %v10144_v62  ;;  %v10184_v26 = vmul.f32 0.2, %v10132_v13  ;;  %v10187_v50 = vmul.f32 0.2, %v10135_v3  ;;  %v12868_v31 = vsub.f32 %v12809_v56, %v9941_v17  ;;  %v12882_v37 = vsub.f32 %v12792_v51, %v9941_v17 }
 0x6d7   :  { %12853 = vst [vmem:[#allocation50_spill] sm:$0xff] %v10147_v58  ;;  %12854 = vst [vmem:[#allocation70_spill] sm:$0xff] %v10150_v44  ;;  %v3741_v18 = vmul.f32 %v10120_v48, %v12864_v24  ;;  %v10190_v30 = vmul.f32 0.2, %v10138_v55  ;;  %v10197_v46 = vmul.f32 0.2, %v10141_v5  ;;  %v12880_v24 = vsub.f32 %v9220_v23, %v9941_v17 }
 0x6d8   :  { %12855 = vst [vmem:[#allocation195_spill] sm:$0xff] %v10153_v54  ;;  %12856 = vst [vmem:[#allocation196_spill] sm:$0xff] %v10156_v28  ;;  %v3749_v32 = vmul.f32 %v10120_v48, %v12868_v31  ;;  %v10200_v21 = vmul.f32 0.2, %v10144_v62  ;;  %v10203_v34 = vmul.f32 0.2, %v10147_v58  ;;  %v12881_v31 = vsub.f32 %v12785_v25, %v9941_v17 }
 0x6d9   :  { %12857 = vst [vmem:[#allocation197_spill] sm:$0xff] %v10159_v61  ;;  %12858 = vst [vmem:[#allocation198_spill] sm:$0xff] %v10162_v38  ;;  %v10208_v45 = vmul.f32 0.2, %v10150_v44  ;;  %v10211_v1 = vmul.f32 0.2, %v10153_v54  ;;  %v3781_v41 = vmul.f32 %v10120_v48, %v12882_v37  ;;  %v12884_v23 = vsub.f32 %v12800_v7, %v9941_v17 }
 0x6da   :  { %12859 = vst [vmem:[#allocation199_spill] sm:$0xff] %v10165_v40  ;;  %12860 = vst [vmem:[#allocation200_spill] sm:$0xff] %v10168_v10  ;;  %v10214_v56 = vmul.f32 0.2, %v10156_v28  ;;  %v10219_v60 = vmul.f32 0.2, %v10159_v61  ;;  %v3773_v9 = vmul.f32 %v10120_v48, %v12881_v31  ;;  %v12885_v25 = vsub.f32 %v9492_v8, %v9941_v17 }
 0x6db   :  { %12861 = vst [vmem:[#allocation201_spill] sm:$0xff] %v10171_v22  ;;  %12862 = vst [vmem:[#allocation202_spill] sm:$0xff] %v10174_v16  ;;  %v10222_v27 = vmul.f32 0.2, %v10162_v38  ;;  %v10225_v11 = vmul.f32 0.2, %v10165_v40  ;;  %v12886_v51 = vsub.f32 %v9516_v43, %v9941_v17  ;;  %v12888_v7 = vsub.f32 %v9600_v29, %v9941_v17 }
 0x6dc   :  { %12863 = vst [vmem:[#allocation203_spill] sm:$0xff] %v10177_v59  ;;  %12865 = vst [vmem:[#allocation204_spill] sm:$0xff] %v10184_v26  ;;  %v10230_v63 = vmul.f32 0.2, %v10168_v10  ;;  %v12879_v59 = vsub.f32 %v12810_v20, %v9941_v17  ;;  %v12883_v20 = vsub.f32 %v12811_v49, %v9941_v17  ;;  %v3805_v31 = vmul.f32 %v10120_v48, %v12885_v25  ;;  %v12924_v38 = vld [vmem:[#allocation69_spill] sm:$0xff]  ;;  %v12936_v55 = vld [vmem:[#allocation102_spill] sm:$0xff] }
 0x6dd   :  { %12866 = vst [vmem:[#allocation205_spill] sm:$0xff] %v10187_v50  ;;  %12867 = vst [vmem:[#allocation206_spill] sm:$0xff] %v10190_v30  ;;  %v3813_v37 = vmul.f32 %v10120_v48, %v12886_v51  ;;  %v12887_v49 = vsub.f32 %v9584_v36, %v9941_v17  ;;  %v12889_v8 = vsub.f32 %v9664_v6, %v9941_v17  ;;  %v12941_v5 = vld [vmem:[#allocation159_spill] sm:$0xff]  ;;  %v12943_v50 = vld [vmem:[#allocation192_spill] sm:$0xff] }
 0x6de   :  { %12869 = vst [vmem:[#allocation207_spill] sm:$0xff] %v10197_v46  ;;  %12870 = vst [vmem:[#allocation208_spill] sm:$0xff] %v10200_v21  ;;  %v3757_v0 = vmul.f32 %v10120_v48, %v12879_v59  ;;  %v3789_v59 = vmul.f32 %v10120_v48, %v12883_v20  ;;  %v12890_v43 = vsub.f32 %v9744_v19, %v9941_v17  ;;  %v12929_v21 = vld [vmem:[#allocation21_spill] sm:$0xff]  ;;  %v12939_v46 = vld [vmem:[#allocation158_spill] sm:$0xff] }
 0x6df   :  { %12871 = vst [vmem:[#allocation209_spill] sm:$0xff] %v10203_v34  ;;  %12872 = vst [vmem:[#allocation210_spill] sm:$0xff] %v10208_v45  ;;  %v3821_v20 = vmul.f32 %v10120_v48, %v12887_v49  ;;  %v3837_v25 = vmul.f32 %v10120_v48, %v12889_v8  ;;  %v12891_v36 = vsub.f32 %v9768_v12, %v9941_v17  ;;  %v12928_v34 = vld [vmem:[#allocation88_spill] sm:$0xff]  ;;  %v12944_v3 = vld [vmem:[#allocation194_spill] sm:$0xff]  ;;  %v12948_v16 = vsub.s32 7, %v12929_v21 }
 0x6e0   :  { %12873 = vst [vmem:[#allocation211_spill] sm:$0xff] %v10211_v1  ;;  %12874 = vst [vmem:[#allocation212_spill] sm:$0xff] %v10214_v56  ;;  %v3765_v56 = vmul.f32 %v10120_v48, %v12880_v24  ;;  %v3797_v24 = vmul.f32 %v10120_v48, %v12884_v23  ;;  %v3829_v23 = vmul.f32 %v10120_v48, %v12888_v7  ;;  %v12923_v1 = vld [vmem:[#allocation68_spill] sm:$0xff]  ;;  %v3557_v58 = vrot.slane %v12928_v34, 1 }
 0x6e1   :  { %12875 = vst [vmem:[#allocation213_spill] sm:$0xff] %v10219_v60  ;;  %12876 = vst [vmem:[#allocation214_spill] sm:$0xff] %v10222_v27  ;;  %v3845_v51 = vmul.f32 %v10120_v48, %v12890_v43  ;;  %v3853_v49 = vmul.f32 %v10120_v48, %v12891_v36  ;;  %v12892_v29 = vsub.f32 %v9791_v47, %v9941_v17  ;;  %v12945_v26 = vld [vmem:[#allocation84_spill] sm:$0xff] }
 0x6e2   :  { %12877 = vst [vmem:[#allocation215_spill] sm:$0xff] %v10225_v11  ;;  %12878 = vst [vmem:[#allocation216_spill] sm:$0xff] %v10230_v63  ;;  %v3910_v63 = vmul.f32 %v10034_v39, %v3741_v18  ;;  %v3918_v6 = vmul.f32 %v10034_v39, %v3749_v32  ;;  %v3926_v8 = vmul.f32 %v10034_v39, %v3757_v0 }
 0x6e3   :  { %v3861_v7 = vmul.f32 %v10120_v48, %v12892_v29  ;;  %v3934_v19 = vmul.f32 %v10034_v39, %v3765_v56  ;;  %v3942_v43 = vmul.f32 %v10034_v39, %v3773_v9  ;;  %v3950_v10 = vmul.f32 %v10034_v39, %v3781_v41 }
 0x6e4   :  { %v3958_v12 = vmul.f32 %v10034_v39, %v3789_v59  ;;  %v3966_v36 = vmul.f32 %v10034_v39, %v3797_v24  ;;  %v3974_v47 = vmul.f32 %v10034_v39, %v3805_v31  ;;  %v3982_v17 = vmul.f32 %v10034_v39, %v3813_v37 }
 0x6e5   :  { %v3990_v48 = vmul.f32 %v10034_v39, %v3821_v20  ;;  %v3998_v18 = vmul.f32 %v10034_v39, %v3829_v23  ;;  %v4006_v32 = vmul.f32 %v10034_v39, %v3837_v25  ;;  %v4014_v56 = vmul.f32 %v10034_v39, %v3845_v51 }
 0x6e6   :  { %v4022_v9 = vmul.f32 %v10034_v39, %v3853_v49  ;;  %v4030_v41 = vmul.f32 %v10034_v39, %v3861_v7  ;;  %v10331_v0 = vadd.f32 %v10041_v53, %v3910_v63  ;;  %v10334_v59 = vadd.f32 %v10041_v53, %v3918_v6 }
 0x6e7   :  { %v10337_v24 = vadd.f32 %v10041_v53, %v3926_v8  ;;  %v10340_v31 = vadd.f32 %v10041_v53, %v3934_v19  ;;  %v10343_v37 = vadd.f32 %v10041_v53, %v3942_v43  ;;  %v10346_v20 = vadd.f32 %v10041_v53, %v3950_v10 }
 0x6e8   :  { %12893 = vst [vmem:[#allocation217_spill] sm:$0xff] %v10331_v0  ;;  %12894 = vst [vmem:[#allocation218_spill] sm:$0xff] %v10334_v59  ;;  %v10349_v39 = vadd.f32 %v10041_v53, %v3958_v12  ;;  %v10352_v63 = vadd.f32 %v10041_v53, %v3966_v36  ;;  %v10355_v23 = vadd.f32 %v10041_v53, %v3974_v47  ;;  %v10379_v8 = vmul.f32 0.2, %v10331_v0 }
 0x6e9   :  { %12895 = vst [vmem:[#allocation219_spill] sm:$0xff] %v10343_v37  ;;  %12896 = vst [vmem:[#allocation220_spill] sm:$0xff] %v10346_v20  ;;  %v10358_v25 = vadd.f32 %v10041_v53, %v3982_v17  ;;  %v10361_v51 = vadd.f32 %v10041_v53, %v3990_v48  ;;  %v10364_v49 = vadd.f32 %v10041_v53, %v3998_v18  ;;  %v10382_v19 = vmul.f32 0.2, %v10334_v59  ;;  %v12922_v59 = vld [vmem:[#allocation83_spill] sm:$0xff] }
 0x6ea   :  { %12897 = vst [vmem:[#allocation221_spill] sm:$0xff] %v10349_v39  ;;  %12898 = vst [vmem:[#allocation222_spill] sm:$0xff] %v10352_v63  ;;  %v10367_v10 = vadd.f32 %v10041_v53, %v4006_v32  ;;  %v10370_v29 = vadd.f32 %v10041_v53, %v4014_v56  ;;  %v10373_v7 = vadd.f32 %v10041_v53, %v4022_v9  ;;  %v10385_v43 = vmul.f32 0.2, %v10337_v24 }
 0x6eb   :  { %12899 = vst [vmem:[#allocation223_spill] sm:$0xff] %v10355_v23  ;;  %12900 = vst [vmem:[#allocation224_spill] sm:$0xff] %v10358_v25  ;;  %v10376_v6 = vadd.f32 %v10041_v53, %v4030_v41  ;;  %v10390_v36 = vmul.f32 0.2, %v10340_v31  ;;  %v10393_v47 = vmul.f32 0.2, %v10343_v37  ;;  %v3684_v60 = vsub.f32 %v9606_v57, %v10036_v2 }
 0x6ec   :  { %12901 = vst [vmem:[#allocation225_spill] sm:$0xff] %v10361_v51  ;;  %12902 = vst [vmem:[#allocation226_spill] sm:$0xff] %v10364_v49  ;;  %v10396_v53 = vmul.f32 0.2, %v10346_v20  ;;  %v10401_v48 = vmul.f32 0.2, %v10349_v39  ;;  %v3692_v27 = vsub.f32 %v9730_v4, %v10036_v2  ;;  %v3700_v12 = vsub.f32 %v9754_v42, %v10036_v2 }
 0x6ed   :  { %12903 = vst [vmem:[#allocation227_spill] sm:$0xff] %v10367_v10  ;;  %12904 = vst [vmem:[#allocation228_spill] sm:$0xff] %v10370_v29  ;;  %v10404_v18 = vmul.f32 0.2, %v10352_v63  ;;  %v10407_v32 = vmul.f32 0.2, %v10355_v23  ;;  %v3716_v28 = vsub.f32 %v12922_v59, %v10036_v2  ;;  %v12925_v54 = vsub.f32 %v12923_v1, %v12924_v38 }
 0x6ee   :  { %12905 = vst [vmem:[#allocation229_spill] sm:$0xff] %v10373_v7  ;;  %12906 = vst [vmem:[#allocation230_spill] sm:$0xff] %v10376_v6  ;;  %v10412_v9 = vmul.f32 0.2, %v10358_v25  ;;  %v10415_v41 = vmul.f32 0.2, %v10361_v51  ;;  %v3558_v4 = vadd.f32 %v3557_v58, %v12928_v34 }
 0x6ef   :  { %12907 = vst [vmem:[#allocation231_spill] sm:$0xff] %v10379_v8  ;;  %12908 = vst [vmem:[#allocation232_spill] sm:$0xff] %v10382_v19  ;;  %v10418_v17 = vmul.f32 0.2, %v10364_v49  ;;  %v10423_v11 = vmul.f32 0.2, %v10367_v10 }
 0x6f0   :  { %12909 = vst [vmem:[#allocation233_spill] sm:$0xff] %v10393_v47  ;;  %12910 = vst [vmem:[#allocation234_spill] sm:$0xff] %v10396_v53  ;;  %v10426_v40 = vmul.f32 0.2, %v10370_v29  ;;  %v10429_v56 = vmul.f32 0.2, %v10373_v7  ;;  %v12952_v29 = vsub.f32 %v12951_v14, %v10036_v2 }
 0x6f1   :  { %12911 = vst [vmem:[#allocation235_spill] sm:$0xff] %v10401_v48  ;;  %12912 = vst [vmem:[#allocation236_spill] sm:$0xff] %v10404_v18  ;;  %v10434_v0 = vmul.f32 0.2, %v10376_v6  ;;  %v12921_v19 = vld [vmem:[#allocation193_spill] sm:$0xff]  ;;  %v3574_v59 = vmul.f32 0.0078125, %v3558_v4 }
 0x6f2   :  { %12913 = vst [vmem:[#allocation237_spill] sm:$0xff] %v10407_v32  ;;  %12914 = vst [vmem:[#allocation238_spill] sm:$0xff] %v10412_v9  ;;  %v3708_v61 = vsub.f32 %v12921_v19, %v10036_v2  ;;  %v3724_v45 = vadd.f32 0.8, %v12925_v54  ;;  %v12926_v8 = vld [vmem:[#allocation53_spill] sm:$0xff]  ;;  %v3886_v19 = vsub.s32 5, %v12929_v21 }
 0x6f3   :  { %12915 = vst [vmem:[#allocation239_spill] sm:$0xff] %v10415_v41  ;;  %12916 = vst [vmem:[#allocation240_spill] sm:$0xff] %v10418_v17  ;;  %v12927_v44 = vrot.slane %v12926_v8, 1  ;;  %v12930_v54 = vld [vmem:[#allocation119_spill] sm:$0xff]  ;;  %v12933_v58 = vld [vmem:[#allocation82_spill] sm:$0xff] }
 0x6f4   :  { %12917 = vst [vmem:[#allocation241_spill] sm:$0xff] %v10423_v11  ;;  %12918 = vst [vmem:[#allocation242_spill] sm:$0xff] %v10426_v40  ;;  %5643 = vrsqrt.f32 %v3724_v45  ;;  %v12932_v45 = vld [vmem:[#allocation81_spill] sm:$0xff]  ;;  %v12937_v1 = vld [vmem:[#allocation135_spill] sm:$0xff] }
 0x6f5   :  { %12919 = vst [vmem:[#allocation243_spill] sm:$0xff] %v10429_v56  ;;  %12920 = vst [vmem:[#allocation244_spill] sm:$0xff] %v10434_v0  ;;  %v3262_v57 = vadd.f32 %v12927_v44, %v12926_v8  ;;  %v12931_v44 = vld [vmem:[#allocation123_spill] sm:$0xff]  ;;  %v12935_v4 = vld [vmem:[#allocation97_spill] sm:$0xff]  ;;  %v4056_v56 = vrot.slane %v12947_v52, %v3886_v19 }
 0x6f6   :  { %v12938_v8 = vld [vmem:[#allocation157_spill] sm:$0xff]  ;;  %v12949_v7 = vld [vmem:[#allocation118_spill] sm:$0xff]  ;;  %v12955_v17 = vld [vmem:[#allocation52_spill] sm:$0xff] }
 0x6f7   :  { %v10480_v42 = vmul.f32 0.0078125, %v3262_v57  ;;  %v12934_v57 = vld [vmem:[#allocation73_spill] sm:$0xff]  ;;  %v12950_v62 = vsub.f32 %v12949_v7, %v10036_v2  ;;  %v12957_v49 = vld [vmem:[#allocation55_spill] sm:$0xff]  ;;  %v12959_v41 = vld [vmem:[#allocation96_spill] sm:$0xff] }
 0x6f8   :  { %v12940_v34 = vld [vmem:[#allocation89_spill] sm:$0xff]  ;;  %v12960_v7 = vsub.f32 %v12959_v41, %v10036_v2  ;;  %v12963_v9 = vld [vmem:[#allocation134_spill] sm:$0xff]  ;;  %v12965_v25 = vld [vmem:[#allocation156_spill] sm:$0xff]  ;;  %v12968_v41 = vsub.f32 %v9590_v15, %v10036_v2 }
 0x6f9   :  { %v3582_v38 = vmul.f32 %v10480_v42, %v10480_v42  ;;  %v12946_v0 = vld [vmem:[#allocation85_spill] sm:$0xff] }
 0x6fa   :  { %v3887_v6 = vrot.slane %v12946_v0, %v3886_v19  ;;  %v12961_v51 = vld [vmem:[#allocation101_spill] sm:$0xff] }
 0x6fb   :  { %v3590_v30 = vsub.f32 %v3574_v59, %v3582_v38  ;;  %v12942_v59 = vld [vmem:[#allocation191_spill] sm:$0xff]  ;;  %v10523_v38 = vrot.slane %v12946_v0, %v12948_v16  ;;  %v12958_v16 = vsub.f32 %v12957_v49, %v10036_v2  ;;  %v12962_v14 = vsub.f32 %v12961_v51, %v10036_v2 }
 0x6fc   :  { %v12967_v49 = vsub.f32 %v9530_v33, %v10036_v2 }
 0x6fd   :  { %v3726_v35 = vadd.f32 0.8, %v3590_v30  ;;  %v12953_v30 = vld [vmem:[#allocation80_spill] sm:$0xff] }
 0x6fe   :  { %v5644_v13 = vpop.eup %5643  ;;  %v12954_v11 = vsub.f32 %v12953_v30, %v10036_v2  ;;  %v12964_v30 = vsub.f32 %v12963_v9, %v10036_v2 }
 0x6ff   :  { %5645 = vrsqrt.f32 %v3726_v35  ;;  %v3740_v40 = vmul.f32 %v5644_v13, %v12950_v62  ;;  %v3748_v22 = vmul.f32 %v5644_v13, %v12952_v29  ;;  %v12956_v35 = vsub.f32 %v12955_v17, %v10036_v2 }
 0x700   :  { %v3756_v10 = vmul.f32 %v5644_v13, %v12954_v11  ;;  %v3772_v0 = vmul.f32 %v5644_v13, %v12958_v16  ;;  %v3780_v62 = vmul.f32 %v5644_v13, %v12960_v7  ;;  %v3788_v29 = vmul.f32 %v5644_v13, %v12962_v14 }
 0x701   :  { %v3764_v19 = vmul.f32 %v5644_v13, %v12956_v35  ;;  %v3796_v11 = vmul.f32 %v5644_v13, %v12964_v30  ;;  %v12966_v17 = vsub.f32 %v12965_v25, %v10036_v2  ;;  %v3812_v16 = vmul.f32 %v5644_v13, %v12967_v49 }
 0x702   :  { %v3820_v7 = vmul.f32 %v5644_v13, %v12968_v41  ;;  %v3828_v32 = vmul.f32 %v5644_v13, %v3684_v60  ;;  %v3836_v23 = vmul.f32 %v5644_v13, %v3692_v27  ;;  %v3844_v51 = vmul.f32 %v5644_v13, %v3700_v12 }
 0x703   :  { %v3804_v35 = vmul.f32 %v5644_v13, %v12966_v17  ;;  %v3852_v14 = vmul.f32 %v5644_v13, %v3708_v61  ;;  %v3860_v18 = vmul.f32 %v5644_v13, %v3716_v28  ;;  %v3909_v63 = vmul.f32 %v3887_v6, %v3740_v40 }
 0x704   :  { %v3917_v9 = vmul.f32 %v3887_v6, %v3748_v22  ;;  %v3925_v30 = vmul.f32 %v3887_v6, %v3756_v10  ;;  %v3933_v48 = vmul.f32 %v3887_v6, %v3764_v19  ;;  %v3941_v39 = vmul.f32 %v3887_v6, %v3772_v0 }
 0x705   :  { %v3949_v25 = vmul.f32 %v3887_v6, %v3780_v62  ;;  %v3957_v17 = vmul.f32 %v3887_v6, %v3788_v29  ;;  %v3965_v53 = vmul.f32 %v3887_v6, %v3796_v11  ;;  %v3973_v20 = vmul.f32 %v3887_v6, %v3804_v35 }
 0x706   :  { %v3981_v33 = vmul.f32 %v3887_v6, %v3812_v16  ;;  %v3989_v49 = vmul.f32 %v3887_v6, %v3820_v7  ;;  %v3997_v47 = vmul.f32 %v3887_v6, %v3828_v32  ;;  %v4005_v37 = vmul.f32 %v3887_v6, %v3836_v23 }
 0x707   :  { %v4013_v15 = vmul.f32 %v3887_v6, %v3844_v51  ;;  %v4021_v2 = vmul.f32 %v3887_v6, %v3852_v14  ;;  %v4029_v60 = vmul.f32 %v3887_v6, %v3860_v18  ;;  %v10558_v27 = vadd.f32 %v4056_v56, %v3909_v63 }
 0x708   :  { %v10560_v61 = vadd.f32 %v4056_v56, %v3917_v9  ;;  %v10562_v13 = vadd.f32 %v4056_v56, %v3925_v30  ;;  %v10564_v28 = vadd.f32 %v4056_v56, %v3933_v48  ;;  %v10566_v22 = vadd.f32 %v4056_v56, %v3941_v39 }
 0x709   :  { %v5646_v40 = vpop.eup %5645  ;;  %v10568_v10 = vadd.f32 %v4056_v56, %v3949_v25  ;;  %v10570_v12 = vadd.f32 %v4056_v56, %v3957_v17  ;;  %v10572_v32 = vadd.f32 %v4056_v56, %v3965_v53  ;;  %v10574_v23 = vadd.f32 %v4056_v56, %v3973_v20 }
 0x70a   :  { %12969 = vst [vmem:[#allocation193_spill] sm:$0xff] %v10566_v22  ;;  %v10576_v6 = vadd.f32 %v4056_v56, %v3981_v33  ;;  %v10578_v63 = vadd.f32 %v4056_v56, %v3989_v49  ;;  %v10580_v18 = vadd.f32 %v4056_v56, %v3997_v47  ;;  %v10582_v19 = vadd.f32 %v4056_v56, %v4005_v37 }
 0x70b   :  { %12970 = vst [vmem:[#allocation83_spill] sm:$0xff] %v10568_v10  ;;  %12971 = vst [vmem:[#allocation68_spill] sm:$0xff] %v10570_v12  ;;  %v10584_v48 = vadd.f32 %v4056_v56, %v4013_v15  ;;  %v10586_v39 = vadd.f32 %v4056_v56, %v4021_v2  ;;  %v10588_v0 = vadd.f32 %v4056_v56, %v4029_v60  ;;  %v10591_v62 = vmul.f32 0.2, %v10558_v27 }
 0x70c   :  { %12972 = vst [vmem:[#allocation69_spill] sm:$0xff] %v10572_v32  ;;  %12973 = vst [vmem:[#allocation53_spill] sm:$0xff] %v10574_v23  ;;  %v10594_v20 = vmul.f32 0.2, %v10560_v61  ;;  %v10597_v53 = vmul.f32 0.2, %v10562_v13  ;;  %v12981_v47 = vsub.f32 %v12930_v54, %v10480_v42  ;;  %v12984_v35 = vsub.f32 %v12931_v44, %v10480_v42 }
 0x70d   :  { %12974 = vst [vmem:[#allocation88_spill] sm:$0xff] %v10576_v6  ;;  %12975 = vst [vmem:[#allocation21_spill] sm:$0xff] %v10578_v63  ;;  %v10603_v29 = vmul.f32 0.2, %v10564_v28  ;;  %v10606_v11 = vmul.f32 0.2, %v10566_v22  ;;  %v12995_v51 = vsub.f32 %v12932_v45, %v10480_v42  ;;  %v12996_v2 = vsub.f32 %v12933_v58, %v10480_v42 }
 0x70e   :  { %12976 = vst [vmem:[#allocation119_spill] sm:$0xff] %v10580_v18  ;;  %12977 = vst [vmem:[#allocation123_spill] sm:$0xff] %v10582_v19  ;;  %v3742_v37 = vmul.f32 %v5646_v40, %v12981_v47  ;;  %v10609_v56 = vmul.f32 0.2, %v10568_v10  ;;  %v3750_v16 = vmul.f32 %v5646_v40, %v12984_v35  ;;  %v10615_v41 = vmul.f32 0.2, %v10570_v12 }
 0x70f   :  { %12978 = vst [vmem:[#allocation81_spill] sm:$0xff] %v10584_v48  ;;  %12979 = vst [vmem:[#allocation82_spill] sm:$0xff] %v10586_v39  ;;  %v10618_v7 = vmul.f32 0.2, %v10572_v32  ;;  %v10621_v54 = vmul.f32 0.2, %v10574_v23  ;;  %v3766_v60 = vmul.f32 %v5646_v40, %v12996_v2  ;;  %v12997_v47 = vsub.f32 %v12934_v57, %v10480_v42 }
 0x710   :  { %12980 = vst [vmem:[#allocation73_spill] sm:$0xff] %v10588_v0  ;;  %12982 = vst [vmem:[#allocation97_spill] sm:$0xff] %v10606_v11  ;;  %v10626_v14 = vmul.f32 0.2, %v10576_v6  ;;  %v10629_v9 = vmul.f32 0.2, %v10578_v63  ;;  %v12998_v35 = vsub.f32 %v12935_v4, %v10480_v42  ;;  %v12999_v30 = vsub.f32 %v12936_v55, %v10480_v42 }
 0x711   :  { %12983 = vst [vmem:[#allocation102_spill] sm:$0xff] %v10609_v56  ;;  %12985 = vst [vmem:[#allocation135_spill] sm:$0xff] %v10615_v41  ;;  %v10632_v44 = vmul.f32 0.2, %v10580_v18  ;;  %v10637_v25 = vmul.f32 0.2, %v10582_v19  ;;  %v13000_v45 = vsub.f32 %v12937_v1, %v10480_v42  ;;  %v13001_v58 = vsub.f32 %v12938_v8, %v10480_v42 }
 0x712   :  { %12986 = vst [vmem:[#allocation157_spill] sm:$0xff] %v10618_v7  ;;  %12987 = vst [vmem:[#allocation158_spill] sm:$0xff] %v10621_v54  ;;  %v10640_v17 = vmul.f32 0.2, %v10584_v48  ;;  %v10643_v33 = vmul.f32 0.2, %v10586_v39  ;;  %v3790_v49 = vmul.f32 %v5646_v40, %v12999_v30  ;;  %v13002_v57 = vsub.f32 %v12939_v46, %v10480_v42 }
 0x713   :  { %12988 = vst [vmem:[#allocation89_spill] sm:$0xff] %v10626_v14  ;;  %12989 = vst [vmem:[#allocation159_spill] sm:$0xff] %v10629_v9  ;;  %v10648_v15 = vmul.f32 0.2, %v10588_v0  ;;  %v3758_v14 = vmul.f32 %v5646_v40, %v12995_v51  ;;  %v3798_v51 = vmul.f32 %v5646_v40, %v13000_v45  ;;  %v3806_v2 = vmul.f32 %v5646_v40, %v13001_v58 }
 0x714   :  { %12990 = vst [vmem:[#allocation191_spill] sm:$0xff] %v10632_v44  ;;  %12991 = vst [vmem:[#allocation192_spill] sm:$0xff] %v10637_v25  ;;  %v3774_v25 = vmul.f32 %v5646_v40, %v12997_v47  ;;  %v3814_v47 = vmul.f32 %v5646_v40, %v13002_v57  ;;  %v13003_v4 = vsub.f32 %v12940_v34, %v10480_v42 }
 0x715   :  { %12992 = vst [vmem:[#allocation194_spill] sm:$0xff] %v10640_v17  ;;  %12993 = vst [vmem:[#allocation84_spill] sm:$0xff] %v10643_v33  ;;  %v3782_v17 = vmul.f32 %v5646_v40, %v12998_v35  ;;  %v13004_v55 = vsub.f32 %v12941_v5, %v10480_v42  ;;  %v13005_v1 = vsub.f32 %v12942_v59, %v10480_v42  ;;  %v13009_v59 = vsub.s32 7, %v12929_v21 }
 0x716   :  { %12994 = vst [vmem:[#allocation85_spill] sm:$0xff] %v10648_v15  ;;  %v3822_v35 = vmul.f32 %v5646_v40, %v13003_v4  ;;  %v13006_v8 = vsub.f32 %v12943_v50, %v10480_v42  ;;  %v13007_v46 = vsub.f32 %v12944_v3, %v10480_v42  ;;  %v13008_v34 = vsub.f32 %v12945_v26, %v10480_v42 }
 0x717   :  { %v3830_v30 = vmul.f32 %v5646_v40, %v13004_v55  ;;  %v3838_v45 = vmul.f32 %v5646_v40, %v13005_v1  ;;  %v3911_v15 = vmul.f32 %v10523_v38, %v3742_v37  ;;  %v3919_v5 = vmul.f32 %v10523_v38, %v3750_v16 }
 0x718   :  { %v3846_v58 = vmul.f32 %v5646_v40, %v13006_v8  ;;  %v3854_v57 = vmul.f32 %v5646_v40, %v13007_v46  ;;  %v3862_v4 = vmul.f32 %v5646_v40, %v13008_v34  ;;  %v3927_v55 = vmul.f32 %v10523_v38, %v3758_v14 }
 0x719   :  { %v4064_v1 = vrot.slane %v12947_v52, %v13009_v59  ;;  %v3935_v50 = vmul.f32 %v10523_v38, %v3766_v60  ;;  %v3943_v8 = vmul.f32 %v10523_v38, %v3774_v25  ;;  %v3951_v3 = vmul.f32 %v10523_v38, %v3782_v17 }
 0x71a   :  { %v3959_v46 = vmul.f32 %v10523_v38, %v3790_v49  ;;  %v3967_v26 = vmul.f32 %v10523_v38, %v3798_v51  ;;  %v3975_v42 = vmul.f32 %v10523_v38, %v3806_v2  ;;  %v3983_v40 = vmul.f32 %v10523_v38, %v3814_v47 }
 0x71b   :  { %v3991_v37 = vmul.f32 %v10523_v38, %v3822_v35  ;;  %v3999_v21 = vmul.f32 %v10523_v38, %v3830_v30  ;;  %v4007_v52 = vmul.f32 %v10523_v38, %v3838_v45  ;;  %v4015_v16 = vmul.f32 %v10523_v38, %v3846_v58 }
 0x71c   :  { %v4023_v14 = vmul.f32 %v10523_v38, %v3854_v57  ;;  %v10736_v25 = vadd.f32 %v4064_v1, %v3911_v15  ;;  %v10738_v17 = vadd.f32 %v4064_v1, %v3919_v5  ;;  %v10740_v49 = vadd.f32 %v4064_v1, %v3927_v55 }
 0x71d   :  { %v4031_v60 = vmul.f32 %v10523_v38, %v3862_v4  ;;  %v10743_v51 = vadd.f32 %v4064_v1, %v3935_v50  ;;  %v10745_v2 = vadd.f32 %v4064_v1, %v3943_v8  ;;  %v10747_v47 = vadd.f32 %v4064_v1, %v3951_v3 }
 0x71e   :  { %13010 = vst [vmem:[#allocation54_spill] sm:$0xff] %v10736_v25  ;;  %13011 = vst [vmem:[#allocation118_spill] sm:$0xff] %v10738_v17  ;;  %v10749_v35 = vadd.f32 %v4064_v1, %v3959_v46  ;;  %v10751_v30 = vadd.f32 %v4064_v1, %v3967_v26  ;;  %v10753_v45 = vadd.f32 %v4064_v1, %v3975_v42  ;;  %v10768_v5 = vmul.f32 0.2, %v10736_v25 }
 0x71f   :  { %v10755_v15 = vadd.f32 %v4064_v1, %v3983_v40  ;;  %v10757_v58 = vadd.f32 %v4064_v1, %v3991_v37  ;;  %v10759_v57 = vadd.f32 %v4064_v1, %v3999_v21  ;;  %v10761_v34 = vadd.f32 %v4064_v1, %v4007_v52 }
 0x720   :  { %v10763_v38 = vadd.f32 %v4064_v1, %v4015_v16  ;;  %v10765_v4 = vadd.f32 %v4064_v1, %v4023_v14  ;;  %13012 = vst [vmem:[#allocation122_spill] sm:$0xff] %v10768_v5  ;;  %v10771_v55 = vmul.f32 0.2, %v10738_v17  ;;  %v10774_v59 = vmul.f32 0.2, %v10740_v49 }
 0x721   :  { %v10776_v50 = vadd.f32 %v4064_v1, %v4031_v60  ;;  %v10779_v8 = vmul.f32 0.2, %v10743_v51  ;;  %v10782_v3 = vmul.f32 0.2, %v10745_v2  ;;  %v10785_v46 = vmul.f32 0.2, %v10747_v47 }
 0x722   :  { %13013 = vst [vmem:[#allocation80_spill] sm:$0xff] %v10771_v55  ;;  %v10788_v26 = vmul.f32 0.2, %v10749_v35  ;;  %v10791_v42 = vmul.f32 0.2, %v10751_v30 }
 0x723   :  { %v10794_v40 = vmul.f32 0.2, %v10753_v45  ;;  %v10799_v37 = vmul.f32 0.2, %v10755_v15  ;;  %v10802_v21 = vmul.f32 0.2, %v10757_v58 }
 0x724   :  { %v10805_v52 = vmul.f32 0.2, %v10759_v57  ;;  %v10810_v14 = vmul.f32 0.2, %v10761_v34  ;;  %v10813_v60 = vmul.f32 0.2, %v10763_v38 }
 0x725   :  { %v10816_v1 = vmul.f32 0.2, %v10765_v4  ;;  %v10821_v25 = vmul.f32 0.2, %v10776_v50 }
 0x726   :  { %5763 = dma.done.wait [#allocation5 + $0x2], 16384 }
 0x727   :  { %5764 = vsyncadd [#allocation5 + $0x2], 4294950912  ;;  %v13014_v39 = vld [vmem:[#allocation98_spill] sm:$0xff]  ;;  %v13015_v48 = vld [vmem:[#allocation140_spill] sm:$0xff] }
 0x728   :  { %v13016_v0 = vmax.f32 %v13014_v39, %v13015_v48  ;;  %v13017_v19 = vld [vmem:[#allocation99_spill] sm:$0xff]  ;;  %v13018_v44 = vld [vmem:[#allocation141_spill] sm:$0xff]  ;;  %v4462_v55 = vld [vmem:[#allocation4 + $0x8] sm:$0xff] }
 0x729   :  { %v13019_v16 = vmax.f32 %v13017_v19, %v13018_v44  ;;  %v4461_v9 = vld [vmem:[#allocation4] sm:$0xff]  ;;  %v4464_v63 = vld [vmem:[#allocation4 + $0x18] sm:$0xff]  ;;  %4665 = vmatprep.subr.bf16.mxu0 %v4462_v55  ;;  %v4463_v33 = vld [vmem:[#allocation4 + $0x10] sm:$0xff] }
 0x72a   :  { %4666 = vmatpush1.bf16.msra.mxu0 %v4461_v9  ;;  %v4466_v17 = vld [vmem:[#allocation4 + $0x28] sm:$0xff]  ;;  %v4465_v5 = vld [vmem:[#allocation4 + $0x20] sm:$0xff]  ;;  %v4468_v6 = vld [vmem:[#allocation4 + $0x38] sm:$0xff] }
 0x72b   :  { %v4591_v18 = vpack.c.bf16 %v13019_v16, %v13016_v0  ;;  %4667 = vmatprep.subr.bf16.mxu0 %v4464_v63  ;;  %v4467_v48 = vld [vmem:[#allocation4 + $0x30] sm:$0xff]  ;;  %v4470_v39 = vld [vmem:[#allocation4 + $0x48] sm:$0xff]  ;;  %v4469_v19 = vld [vmem:[#allocation4 + $0x40] sm:$0xff] }
 0x72c   :  { %v4471_v0 = vld [vmem:[#allocation4 + $0x50] sm:$0xff]  ;;  %v4474_v44 = vld [vmem:[#allocation4 + $0x68] sm:$0xff]  ;;  %v4473_v63 = vld [vmem:[#allocation4 + $0x60] sm:$0xff] }
 0x72d   :  { %4697 = vmatprep.mubr.bf16.mxu0 %v4591_v18  ;;  %v4472_v18 = vld [vmem:[#allocation4 + $0x58] sm:$0xff]  ;;  %v10855_v9 = vld [vmem:[#allocation4 + $0x308] sm:$0xff]  ;;  %v4475_v55 = vld [vmem:[#allocation4 + $0x70] sm:$0xff] }
 0x72e   :  { %4668 = vmatpush1.bf16.msra.mxu0 %v4463_v33  ;;  %v10857_v33 = vld [vmem:[#allocation4 + $0x300] sm:$0xff]  ;;  %5284 = vmatprep.subr.bf16.mxu1 %v10855_v9  ;;  %v10866_v16 = vld [vmem:[#allocation4 + $0x328] sm:$0xff]  ;;  %v10884_v23 = vld [vmem:[#allocation4 + $0x358] sm:$0xff] }
 0x72f   :  { %4669 = vmatprep.subr.bf16.mxu0 %v4466_v17  ;;  %v4476_v17 = vld [vmem:[#allocation4 + $0x78] sm:$0xff]  ;;  %5300 = vmatpush1.bf16.msra.mxu1 %v10857_v33  ;;  %13020 = vst [vmem:[#allocation52_spill] sm:$0xff] %v10866_v16  ;;  %v4481_v54 = vld [vmem:[#allocation4 + $0xa0] sm:$0xff]  ;;  %13026 = vst [vmem:[#allocation98_spill] sm:$0xff] %v10884_v23 }
 0x730   :  { %v4483_v7 = vld [vmem:[#allocation4 + $0xb0] sm:$0xff]  ;;  %v10890_v32 = vld [vmem:[#allocation4 + $0x368] sm:$0xff]  ;;  %v13038_v41 = vld [vmem:[#allocation38_spill] sm:$0xff] }
 0x731   :  { %13028 = vst [vmem:[#allocation99_spill] sm:$0xff] %v10890_v32  ;;  %v13047_v56 = vld [vmem:[#allocation143_spill] sm:$0xff]  ;;  %v10932_v22 = vld [vmem:[#allocation4 + $0x3b8] sm:$0xff] }
 0x732   :  { %4670 = vmatpush1.bf16.msra.mxu0 %v4465_v5  ;;  %v10864_v5 = vld [vmem:[#allocation4 + $0x310] sm:$0xff]  ;;  %v10930_v11 = vld [vmem:[#allocation4 + $0x3a0] sm:$0xff]  ;;  %13050 = vst [vmem:[#allocation38_spill] sm:$0xff] %v10932_v22 }
 0x733   :  { %4671 = vmatprep.subr.bf16.mxu0 %v4468_v6  ;;  %v10860_v6 = vld [vmem:[#allocation4 + $0x318] sm:$0xff] }
 0x734   :  { %5285 = vmatprep.subr.bf16.mxu1 %v10860_v6 }
 0x735   :  { %5301 = vmatpush1.bf16.msra.mxu1 %v10864_v5 }
 0x736   :  { %4672 = vmatpush1.bf16.msra.mxu0 %v4467_v48  ;;  %v4478_v48 = vld [vmem:[#allocation4 + $0x88] sm:$0xff]  ;;  %5286 = vmatprep.subr.bf16.mxu1 %v10866_v16  ;;  %v13046_v16 = vld [vmem:[#allocation74_spill] sm:$0xff] }
 0x737   :  { %4673 = vmatprep.subr.bf16.mxu0 %v4470_v39  ;;  %v10870_v39 = vld [vmem:[#allocation4 + $0x320] sm:$0xff] }
 0x738   :  { %13021 = vst [vmem:[#allocation55_spill] sm:$0xff] %v10870_v39 }
 0x739   :  { %5302 = vmatpush1.bf16.msra.mxu1 %v10870_v39 }
 0x73a   :  { %4674 = vmatpush1.bf16.msra.mxu0 %v4469_v19  ;;  %v4477_v19 = vld [vmem:[#allocation4 + $0x80] sm:$0xff] }
 0x73b   :  { %4675 = vmatprep.subr.bf16.mxu0 %v4472_v18  ;;  %v10872_v18 = vld [vmem:[#allocation4 + $0x338] sm:$0xff] }
 0x73c   :  { %13022 = vst [vmem:[#allocation96_spill] sm:$0xff] %v10872_v18  ;;  %5287 = vmatprep.subr.bf16.mxu1 %v10872_v18 }
 0x73e   :  { %4676 = vmatpush1.bf16.msra.mxu0 %v4471_v0  ;;  %v4480_v0 = vld [vmem:[#allocation4 + $0x98] sm:$0xff] }
 0x73f   :  { %4677 = vmatprep.subr.bf16.mxu0 %v4474_v44  ;;  %v10876_v44 = vld [vmem:[#allocation4 + $0x330] sm:$0xff] }
 0x740   :  { %13023 = vst [vmem:[#allocation101_spill] sm:$0xff] %v10876_v44  ;;  %5303 = vmatpush1.bf16.msra.mxu1 %v10876_v44  ;;  %v13041_v44 = vld [vmem:[#allocation33_spill] sm:$0xff] }
 0x742   :  { %4678 = vmatpush1.bf16.msra.mxu0 %v4473_v63  ;;  %v4479_v63 = vld [vmem:[#allocation4 + $0x90] sm:$0xff] }
 0x743   :  { %4679 = vmatprep.subr.bf16.mxu0 %v4476_v17  ;;  %v10878_v17 = vld [vmem:[#allocation4 + $0x348] sm:$0xff] }
 0x744   :  { %13024 = vst [vmem:[#allocation134_spill] sm:$0xff] %v10878_v17  ;;  %5288 = vmatprep.subr.bf16.mxu1 %v10878_v17  ;;  %v4485_v17 = vld [vmem:[#allocation4 + $0xc0] sm:$0xff] }
 0x746   :  { %4680 = vmatpush1.bf16.msra.mxu0 %v4475_v55  ;;  %v4482_v55 = vld [vmem:[#allocation4 + $0xa8] sm:$0xff] }
 0x747   :  { %4681 = vmatprep.subr.bf16.mxu0 %v4478_v48  ;;  %v10882_v48 = vld [vmem:[#allocation4 + $0x340] sm:$0xff] }
 0x748   :  { %13025 = vst [vmem:[#allocation156_spill] sm:$0xff] %v10882_v48  ;;  %5304 = vmatpush1.bf16.msra.mxu1 %v10882_v48  ;;  %v10896_v48 = vld [vmem:[#allocation4 + $0x378] sm:$0xff] }
 0x749   :  { %5289 = vmatprep.subr.bf16.mxu1 %v10884_v23  ;;  %13030 = vst [vmem:[#allocation245_spill] sm:$0xff] %v10896_v48  ;;  %v4487_v23 = vld [vmem:[#allocation4 + $0xd0] sm:$0xff] }
 0x74a   :  { %4682 = vmatpush1.bf16.msra.mxu0 %v4477_v19  ;;  %v4484_v19 = vld [vmem:[#allocation4 + $0xb8] sm:$0xff] }
 0x74b   :  { %4683 = vmatprep.subr.bf16.mxu0 %v4480_v0  ;;  %v10888_v0 = vld [vmem:[#allocation4 + $0x350] sm:$0xff] }
 0x74c   :  { %13027 = vst [vmem:[#allocation140_spill] sm:$0xff] %v10888_v0  ;;  %5305 = vmatpush1.bf16.msra.mxu1 %v10888_v0  ;;  %v10902_v0 = vld [vmem:[#allocation4 + $0x388] sm:$0xff] }
 0x74d   :  { %5290 = vmatprep.subr.bf16.mxu1 %v10890_v32  ;;  %13032 = vst [vmem:[#allocation247_spill] sm:$0xff] %v10902_v0  ;;  %v4489_v32 = vld [vmem:[#allocation4 + $0xe0] sm:$0xff] }
 0x74e   :  { %4684 = vmatpush1.bf16.msra.mxu0 %v4479_v63  ;;  %v4486_v63 = vld [vmem:[#allocation4 + $0xc8] sm:$0xff] }
 0x74f   :  { %4685 = vmatprep.subr.bf16.mxu0 %v4482_v55  ;;  %v10894_v55 = vld [vmem:[#allocation4 + $0x360] sm:$0xff] }
 0x750   :  { %13029 = vst [vmem:[#allocation141_spill] sm:$0xff] %v10894_v55  ;;  %5306 = vmatpush1.bf16.msra.mxu1 %v10894_v55  ;;  %v10908_v55 = vld [vmem:[#allocation4 + $0x398] sm:$0xff] }
 0x751   :  { %5291 = vmatprep.subr.bf16.mxu1 %v10896_v48  ;;  %13034 = vst [vmem:[#allocation249_spill] sm:$0xff] %v10908_v55  ;;  %v4491_v48 = vld [vmem:[#allocation4 + $0xf0] sm:$0xff] }
 0x752   :  { %4686 = vmatpush1.bf16.msra.mxu0 %v4481_v54  ;;  %v4488_v54 = vld [vmem:[#allocation4 + $0xd8] sm:$0xff] }
 0x753   :  { %4687 = vmatprep.subr.bf16.mxu0 %v4484_v19  ;;  %v10900_v19 = vld [vmem:[#allocation4 + $0x370] sm:$0xff] }
 0x754   :  { %13031 = vst [vmem:[#allocation246_spill] sm:$0xff] %v10900_v19  ;;  %5307 = vmatpush1.bf16.msra.mxu1 %v10900_v19  ;;  %v10914_v19 = vld [vmem:[#allocation4 + $0x3a8] sm:$0xff] }
 0x755   :  { %5292 = vmatprep.subr.bf16.mxu1 %v10902_v0  ;;  %13036 = vst [vmem:[#allocation251_spill] sm:$0xff] %v10914_v19  ;;  %v13037_v0 = vld [vmem:[#allocation59_spill] sm:$0xff] }
 0x756   :  { %4688 = vmatpush1.bf16.msra.mxu0 %v4483_v7  ;;  %v4490_v7 = vld [vmem:[#allocation4 + $0xe8] sm:$0xff]  ;;  %v13039_v12 = vmax.f32 %v13037_v0, %v13038_v41  ;;  %13049 = vst [vmem:[#allocation59_spill] sm:$0xff] %v10930_v11  ;;  %v4493_v41 = vld [vmem:[#allocation4 + $0x100] sm:$0xff]  ;;  %v4496_v0 = vld [vmem:[#allocation4 + $0x118] sm:$0xff] }
 0x757   :  { %4689 = vmatprep.subr.bf16.mxu0 %v4486_v63  ;;  %v10906_v63 = vld [vmem:[#allocation4 + $0x380] sm:$0xff] }
 0x758   :  { %13033 = vst [vmem:[#allocation248_spill] sm:$0xff] %v10906_v63  ;;  %5308 = vmatpush1.bf16.msra.mxu1 %v10906_v63  ;;  %v13044_v63 = vld [vmem:[#allocation142_spill] sm:$0xff] }
 0x759   :  { %5293 = vmatprep.subr.bf16.mxu1 %v10908_v55 }
 0x75a   :  { %4690 = vmatpush1.bf16.msra.mxu0 %v4485_v17  ;;  %v4492_v17 = vld [vmem:[#allocation4 + $0xf8] sm:$0xff] }
 0x75b   :  { %4691 = vmatprep.subr.bf16.mxu0 %v4488_v54  ;;  %v10912_v54 = vld [vmem:[#allocation4 + $0x390] sm:$0xff] }
 0x75c   :  { %13035 = vst [vmem:[#allocation250_spill] sm:$0xff] %v10912_v54  ;;  %5309 = vmatpush1.bf16.msra.mxu1 %v10912_v54  ;;  %v10956_v54 = vld [vmem:[#allocation4 + $0x3d8] sm:$0xff] }
 0x75d   :  { %5294 = vmatprep.subr.bf16.mxu1 %v10914_v19  ;;  %v10954_v19 = vld [vmem:[#allocation4 + $0x3c0] sm:$0xff] }
 0x75e   :  { %4692 = vmatpush1.bf16.msra.mxu0 %v4487_v23  ;;  %v4494_v23 = vld [vmem:[#allocation4 + $0x108] sm:$0xff] }
 0x75f   :  { %4693 = vmatprep.subr.bf16.mxu0 %v4490_v7  ;;  %v13040_v7 = vld [vmem:[#allocation75_spill] sm:$0xff] }
 0x760   :  { %v13042_v18 = vmax.f32 %v13040_v7, %v13041_v44  ;;  %5310 = vmatpush1.bf16.msra.mxu1 %v10930_v11  ;;  %v13051_v44 = vld [vmem:[#allocation60_spill] sm:$0xff] }
 0x761   :  { %5295 = vmatprep.subr.bf16.mxu1 %v10932_v22 }
 0x762   :  { %4694 = vmatpush1.bf16.msra.mxu0 %v4489_v32  ;;  %v4590_v39 = vpack.c.bf16 %v13042_v18, %v13039_v12  ;;  %v13043_v32 = vld [vmem:[#allocation57_spill] sm:$0xff] }
 0x763   :  { %4695 = vmatprep.subr.bf16.mxu0 %v4492_v17  ;;  %v13045_v55 = vmax.f32 %v13043_v32, %v13044_v63  ;;  %v13048_v17 = vmax.f32 %v13046_v16, %v13047_v56  ;;  %v10935_v12 = vld [vmem:[#allocation4 + $0x3b0] sm:$0xff]  ;;  %v10938_v56 = vld [vmem:[#allocation4 + $0x3c8] sm:$0xff] }
 0x764   :  { %v4495_v18 = vld [vmem:[#allocation4 + $0x110] sm:$0xff]  ;;  %v4498_v16 = vld [vmem:[#allocation4 + $0x128] sm:$0xff]  ;;  %5311 = vmatpush1.bf16.msra.mxu1 %v10935_v12 }
 0x765   :  { %v4599_v10 = vpack.c.bf16 %v13048_v17, %v13045_v55  ;;  %v13054_v63 = vld [vmem:[#allocation76_spill] sm:$0xff]  ;;  %5296 = vmatprep.subr.bf16.mxu1 %v10938_v56 }
 0x766   :  { %4696 = vmatpush1.bf16.msra.mxu0 %v4491_v48  ;;  %v13052_v48 = vld [vmem:[#allocation104_spill] sm:$0xff] }
 0x767   :  { %4778 = vmatprep.subr.bf16.mxu0 %v4494_v23  ;;  %v13053_v55 = vmax.f32 %v13051_v44, %v13052_v48  ;;  %v13055_v23 = vld [vmem:[#allocation35_spill] sm:$0xff]  ;;  %v13058_v32 = vld [vmem:[#allocation144_spill] sm:$0xff]  ;;  %v4500_v48 = vld [vmem:[#allocation4 + $0x138] sm:$0xff] }
 0x768   :  { %v13056_v7 = vmax.f32 %v13054_v63, %v13055_v23  ;;  %v4497_v44 = vld [vmem:[#allocation4 + $0x120] sm:$0xff]  ;;  %5312 = vmatpush1.bf16.msra.mxu1 %v10954_v19  ;;  %v10968_v23 = vld [vmem:[#allocation4 + $0x3e8] sm:$0xff] }
 0x769   :  { %4698 = vmatmul.mubr.bf16.vlgmr.msra.gmra.mrb[80].mxu0 %v4590_v39  ;;  %5297 = vmatprep.subr.bf16.mxu1 %v10956_v54 }
 0x76a   :  { %4779 = vmatpush1.bf16.msra.mxu0 %v4493_v41  ;;  %4707 = vmatprep.mubr.bf16.mxu0 %v4599_v10  ;;  %v4598_v39 = vpack.c.bf16 %v13056_v7, %v13053_v55  ;;  %v13057_v10 = vld [vmem:[#allocation124_spill] sm:$0xff]  ;;  %v13060_v41 = vld [vmem:[#allocation125_spill] sm:$0xff]  ;;  %v13063_v55 = vmax.f32 %v10740_v49, %v10774_v59  ;;  %v13065_v49 = vld [vmem:[#allocation30_spill] sm:$0xff] }
 0x76b   :  { %4780 = vmatprep.subr.bf16.mxu0 %v4496_v0  ;;  %v13059_v17 = vmax.f32 %v13057_v10, %v13058_v32  ;;  %v13061_v0 = vld [vmem:[#allocation145_spill] sm:$0xff]  ;;  %v4502_v7 = vld [vmem:[#allocation4 + $0x148] sm:$0xff] }
 0x76c   :  { %v13062_v11 = vmax.f32 %v13060_v41, %v13061_v0  ;;  %v13066_v59 = vld [vmem:[#allocation105_spill] sm:$0xff]  ;;  %v13074_v0 = vld [vmem:[#allocation127_spill] sm:$0xff] }
 0x76d   :  { %v13067_v10 = vmax.f32 %v13065_v49, %v13066_v59  ;;  %v4504_v49 = vld [vmem:[#allocation4 + $0x158] sm:$0xff] }
 0x76e   :  { %4781 = vmatpush1.bf16.msra.mxu0 %v4495_v18  ;;  %v4607_v22 = vpack.c.bf16 %v13062_v11, %v13059_v17  ;;  %v13064_v18 = vmax.f32 %v10743_v51, %v10779_v8  ;;  %v10965_v11 = vld [vmem:[#allocation4 + $0x3d0] sm:$0xff]  ;;  %v13069_v8 = vld [vmem:[#allocation44_spill] sm:$0xff]  ;;  %v13072_v17 = vld [vmem:[#allocation146_spill] sm:$0xff] }
 0x76f   :  { %4782 = vmatprep.subr.bf16.mxu0 %v4498_v16  ;;  %v4499_v16 = vld [vmem:[#allocation4 + $0x130] sm:$0xff]  ;;  %5313 = vmatpush1.bf16.msra.mxu1 %v10965_v11  ;;  %v10986_v59 = vld [vmem:[#allocation4 + $0x3f8] sm:$0xff] }
 0x770   :  { %v4605_v63 = vpack.c.bf16 %v13064_v18, %v13063_v55  ;;  %v13068_v51 = vld [vmem:[#allocation25_spill] sm:$0xff]  ;;  %5298 = vmatprep.subr.bf16.mxu1 %v10968_v23  ;;  %v10984_v18 = vld [vmem:[#allocation4 + $0x3e0] sm:$0xff] }
 0x771   :  { %4708 = vmatmul.mubr.bf16.gmra.mrb[84].mxu0 %v4598_v39  ;;  %v13070_v39 = vmax.f32 %v13068_v51, %v13069_v8  ;;  %v4506_v51 = vld [vmem:[#allocation4 + $0x168] sm:$0xff]  ;;  %v13077_v8 = vmax.f32 %v10337_v24, %v10385_v43  ;;  %v13087_v43 = vld [vmem:[#allocation130_spill] sm:$0xff] }
 0x772   :  { %4783 = vmatpush1.bf16.msra.mxu0 %v4497_v44  ;;  %4717 = vmatprep.mubr.bf16.mxu0 %v4607_v22  ;;  %v13071_v22 = vld [vmem:[#allocation126_spill] sm:$0xff]  ;;  %v13075_v44 = vld [vmem:[#allocation147_spill] sm:$0xff] }
 0x773   :  { %4784 = vmatprep.subr.bf16.mxu0 %v4500_v48  ;;  %5046 = vmatprep.mubr.bf16.mxu1 %v4605_v63  ;;  %v4606_v32 = vpack.c.bf16 %v13070_v39, %v13067_v10  ;;  %v13073_v41 = vmax.f32 %v13071_v22, %v13072_v17  ;;  %v13076_v48 = vmax.f32 %v13074_v0, %v13075_v44  ;;  %v4501_v63 = vld [vmem:[#allocation4 + $0x140] sm:$0xff]  ;;  %v4503_v10 = vld [vmem:[#allocation4 + $0x150] sm:$0xff]  ;;  %v13079_v22 = vld [vmem:[#allocation26_spill] sm:$0xff] }
 0x774   :  { %5314 = vmatpush1.bf16.msra.mxu1 %v10984_v18  ;;  %v13083_v0 = vld [vmem:[#allocation24_spill] sm:$0xff] }
 0x775   :  { %v4615_v55 = vpack.c.bf16 %v13076_v48, %v13073_v41  ;;  %5299 = vmatprep.subr.bf16.mxu1 %v10986_v59  ;;  %v13082_v41 = vld [vmem:[#allocation42_spill] sm:$0xff] }
 0x776   :  { %4785 = vmatpush1.bf16.msra.mxu0 %v4499_v16  ;;  %v10989_v16 = vld [vmem:[#allocation4 + $0x3f0] sm:$0xff]  ;;  %v13084_v44 = vmax.f32 %v13082_v41, %v13083_v0  ;;  %v13096_v41 = vld [vmem:[#allocation220_spill] sm:$0xff]  ;;  %v13097_v0 = vld [vmem:[#allocation234_spill] sm:$0xff] }
 0x777   :  { %4786 = vmatprep.subr.bf16.mxu0 %v4502_v7  ;;  %v13078_v7 = vmax.f32 %v10340_v31, %v10390_v36  ;;  %v13088_v31 = vld [vmem:[#allocation148_spill] sm:$0xff] }
 0x778   :  { %5315 = vmatpush1.bf16.msra.mxu1 %v10989_v16  ;;  %v13089_v36 = vmax.f32 %v13087_v43, %v13088_v31  ;;  %v13100_v43 = vld [vmem:[#allocation31_spill] sm:$0xff]  ;;  %v13102_v31 = vld [vmem:[#allocation28_spill] sm:$0xff] }
 0x779   :  { %4718 = vmatmul.mubr.bf16.gmra.mrb[88].mxu0 %v4606_v32  ;;  %v4604_v39 = vpack.c.bf16 %v13078_v7, %v13077_v8  ;;  %v13080_v32 = vld [vmem:[#allocation27_spill] sm:$0xff]  ;;  %v13091_v8 = vld [vmem:[#allocation149_spill] sm:$0xff] }
 0x77a   :  { %4787 = vmatpush1.bf16.msra.mxu0 %v4501_v63  ;;  %4727 = vmatprep.mubr.bf16.mxu0 %v4615_v55  ;;  %v13081_v17 = vmax.f32 %v13079_v22, %v13080_v32  ;;  %v13085_v55 = vmax.f32 %v10745_v2, %v10782_v3  ;;  %v13086_v63 = vmax.f32 %v10747_v47, %v10785_v46  ;;  %v4505_v32 = vld [vmem:[#allocation4 + $0x160] sm:$0xff]  ;;  %v4507_v2 = vld [vmem:[#allocation4 + $0x170] sm:$0xff]  ;;  %v4510_v47 = vld [vmem:[#allocation4 + $0x188] sm:$0xff] }
 0x77b   :  { %4788 = vmatprep.subr.bf16.mxu0 %v4504_v49  ;;  %v13090_v49 = vld [vmem:[#allocation131_spill] sm:$0xff]  ;;  %5047 = vmatmul.mubr.bf16.vlgmr.msra.gmra.mrb[160].mxu1 %v4604_v39  ;;  %v13094_v46 = vld [vmem:[#allocation233_spill] sm:$0xff] }
 0x77c   :  { %v4614_v48 = vpack.c.bf16 %v13084_v44, %v13081_v17  ;;  %v4613_v24 = vpack.c.bf16 %v13086_v63, %v13085_v55  ;;  %v13092_v7 = vmax.f32 %v13090_v49, %v13091_v8  ;;  %v4508_v17 = vld [vmem:[#allocation4 + $0x178] sm:$0xff]  ;;  %v13093_v3 = vld [vmem:[#allocation219_spill] sm:$0xff]  ;;  %v13098_v44 = vmax.f32 %v13096_v41, %v13097_v0  ;;  %v13099_v63 = vld [vmem:[#allocation32_spill] sm:$0xff] }
 0x77d   :  { %v13106_v49 = vmax.f32 %v10751_v30, %v10791_v42  ;;  %v4509_v41 = vld [vmem:[#allocation4 + $0x180] sm:$0xff]  ;;  %v4512_v0 = vld [vmem:[#allocation4 + $0x198] sm:$0xff]  ;;  %v4514_v30 = vld [vmem:[#allocation4 + $0x1a8] sm:$0xff] }
 0x77e   :  { %4789 = vmatpush1.bf16.msra.mxu0 %v4503_v10  ;;  %v4623_v22 = vpack.c.bf16 %v13092_v7, %v13089_v36  ;;  %5056 = vmatprep.mubr.bf16.mxu1 %v4613_v24  ;;  %v13095_v10 = vmax.f32 %v13093_v3, %v13094_v46  ;;  %v13103_v36 = vld [vmem:[#allocation106_spill] sm:$0xff]  ;;  %v13105_v24 = vmax.f32 %v10749_v35, %v10788_v26  ;;  %v13107_v7 = vld [vmem:[#allocation132_spill] sm:$0xff]  ;;  %v13111_v3 = vld [vmem:[#allocation151_spill] sm:$0xff] }
 0x77f   :  { %4790 = vmatprep.subr.bf16.mxu0 %v4506_v51  ;;  %v13101_v51 = vmax.f32 %v13099_v63, %v13100_v43  ;;  %v13104_v39 = vmax.f32 %v13102_v31, %v13103_v36  ;;  %v4511_v35 = vld [vmem:[#allocation4 + $0x190] sm:$0xff]  ;;  %v13114_v42 = vld [vmem:[#allocation235_spill] sm:$0xff]  ;;  %v13117_v63 = vld [vmem:[#allocation236_spill] sm:$0xff] }
 0x780   :  { %v4612_v55 = vpack.c.bf16 %v13098_v44, %v13095_v10  ;;  %v4621_v8 = vpack.c.bf16 %v13106_v49, %v13105_v24  ;;  %v13113_v26 = vld [vmem:[#allocation221_spill] sm:$0xff]  ;;  %v13116_v44 = vld [vmem:[#allocation222_spill] sm:$0xff]  ;;  %v13119_v31 = vld [vmem:[#allocation36_spill] sm:$0xff]  ;;  %v13125_v49 = vmax.f32 %v10753_v45, %v10794_v40 }
 0x781   :  { %4728 = vmatmul.mubr.bf16.gmra.mrb[92].mxu0 %v4614_v48  ;;  %v4622_v48 = vpack.c.bf16 %v13104_v39, %v13101_v51  ;;  %v13118_v43 = vmax.f32 %v13116_v44, %v13117_v63  ;;  %v13120_v36 = vld [vmem:[#allocation45_spill] sm:$0xff]  ;;  %v13133_v40 = vld [vmem:[#allocation223_spill] sm:$0xff] }
 0x782   :  { %4791 = vmatpush1.bf16.msra.mxu0 %v4505_v32  ;;  %4737 = vmatprep.mubr.bf16.mxu0 %v4623_v22  ;;  %v13108_v22 = vld [vmem:[#allocation150_spill] sm:$0xff]  ;;  %v13122_v39 = vld [vmem:[#allocation29_spill] sm:$0xff] }
 0x783   :  { %4792 = vmatprep.subr.bf16.mxu0 %v4508_v17  ;;  %v13109_v32 = vmax.f32 %v13107_v7, %v13108_v22  ;;  %v13110_v17 = vld [vmem:[#allocation133_spill] sm:$0xff]  ;;  %5057 = vmatmul.mubr.bf16.gmra.mrb[164].mxu1 %v4612_v55  ;;  %v13127_v22 = vld [vmem:[#allocation136_spill] sm:$0xff] }
 0x784   :  { %v13112_v46 = vmax.f32 %v13110_v17, %v13111_v3  ;;  %5066 = vmatprep.mubr.bf16.mxu1 %v4621_v8  ;;  %v13123_v24 = vld [vmem:[#allocation61_spill] sm:$0xff]  ;;  %v13126_v8 = vmax.f32 %v10755_v15, %v10799_v37  ;;  %v4518_v15 = vld [vmem:[#allocation4 + $0x1c8] sm:$0xff] }
 0x785   :  { %v13124_v55 = vmax.f32 %v13122_v39, %v13123_v24  ;;  %v13130_v3 = vld [vmem:[#allocation137_spill] sm:$0xff]  ;;  %v13145_v24 = vmax.f32 %v10757_v58, %v10802_v21 }
 0x786   :  { %4793 = vmatpush1.bf16.msra.mxu0 %v4507_v2  ;;  %v4631_v10 = vpack.c.bf16 %v13112_v46, %v13109_v32  ;;  %v13115_v2 = vmax.f32 %v13113_v26, %v13114_v42  ;;  %v4629_v7 = vpack.c.bf16 %v13126_v8, %v13125_v49  ;;  %v13128_v32 = vld [vmem:[#allocation152_spill] sm:$0xff]  ;;  %v13131_v46 = vld [vmem:[#allocation153_spill] sm:$0xff]  ;;  %v4516_v26 = vld [vmem:[#allocation4 + $0x1b8] sm:$0xff] }
 0x787   :  { %4794 = vmatprep.subr.bf16.mxu0 %v4510_v47  ;;  %v13121_v47 = vmax.f32 %v13119_v31, %v13120_v36  ;;  %v13129_v17 = vmax.f32 %v13127_v22, %v13128_v32  ;;  %v4515_v45 = vld [vmem:[#allocation4 + $0x1b0] sm:$0xff]  ;;  %v13136_v42 = vld [vmem:[#allocation224_spill] sm:$0xff]  ;;  %v13140_v31 = vld [vmem:[#allocation46_spill] sm:$0xff] }
 0x788   :  { %v4620_v51 = vpack.c.bf16 %v13118_v43, %v13115_v2  ;;  %v13134_v37 = vld [vmem:[#allocation237_spill] sm:$0xff]  ;;  %v13137_v2 = vld [vmem:[#allocation238_spill] sm:$0xff]  ;;  %v13150_v22 = vld [vmem:[#allocation139_spill] sm:$0xff] }
 0x789   :  { %4738 = vmatmul.mubr.bf16.gmra.mrb[96].mxu0 %v4622_v48  ;;  %v4630_v48 = vpack.c.bf16 %v13124_v55, %v13121_v47  ;;  %v13138_v44 = vmax.f32 %v13136_v42, %v13137_v2  ;;  %v13139_v43 = vld [vmem:[#allocation37_spill] sm:$0xff]  ;;  %v13143_v47 = vld [vmem:[#allocation62_spill] sm:$0xff]  ;;  %v13146_v55 = vmax.f32 %v10759_v57, %v10805_v52  ;;  %v13151_v32 = vld [vmem:[#allocation155_spill] sm:$0xff] }
 0x78a   :  { %4795 = vmatpush1.bf16.msra.mxu0 %v4509_v41  ;;  %4747 = vmatprep.mubr.bf16.mxu0 %v4631_v10  ;;  %v13132_v10 = vmax.f32 %v13130_v3, %v13131_v46  ;;  %v13142_v36 = vld [vmem:[#allocation41_spill] sm:$0xff]  ;;  %v13147_v49 = vld [vmem:[#allocation138_spill] sm:$0xff]  ;;  %v4517_v46 = vld [vmem:[#allocation4 + $0x1c0] sm:$0xff] }
 0x78b   :  { %4796 = vmatprep.subr.bf16.mxu0 %v4512_v0  ;;  %v4513_v0 = vld [vmem:[#allocation4 + $0x1a0] sm:$0xff]  ;;  %5067 = vmatmul.mubr.bf16.gmra.mrb[168].mxu1 %v4620_v51  ;;  %v13144_v51 = vmax.f32 %v13142_v36, %v13143_v47  ;;  %v13148_v8 = vld [vmem:[#allocation154_spill] sm:$0xff]  ;;  %v4519_v58 = vld [vmem:[#allocation4 + $0x1d0] sm:$0xff] }
 0x78c   :  { %v4639_v41 = vpack.c.bf16 %v13132_v10, %v13129_v17  ;;  %5076 = vmatprep.mubr.bf16.mxu1 %v4629_v7  ;;  %v13149_v7 = vmax.f32 %v13147_v49, %v13148_v8  ;;  %v13152_v17 = vmax.f32 %v13150_v22, %v13151_v32  ;;  %v4520_v10 = vld [vmem:[#allocation4 + $0x1d8] sm:$0xff]  ;;  %v4522_v57 = vld [vmem:[#allocation4 + $0x1e8] sm:$0xff]  ;;  %v13153_v21 = vld [vmem:[#allocation225_spill] sm:$0xff] }
 0x78d   :  { %v13154_v52 = vld [vmem:[#allocation239_spill] sm:$0xff]  ;;  %v13163_v2 = vld [vmem:[#allocation77_spill] sm:$0xff]  ;;  %v4524_v8 = vld [vmem:[#allocation4 + $0x1f8] sm:$0xff] }
 0x78e   :  { %4797 = vmatpush1.bf16.msra.mxu0 %v4511_v35  ;;  %v13135_v35 = vmax.f32 %v13133_v40, %v13134_v37  ;;  %v4647_v3 = vpack.c.bf16 %v13152_v17, %v13149_v7  ;;  %v13159_v37 = vld [vmem:[#allocation34_spill] sm:$0xff]  ;;  %v13162_v42 = vld [vmem:[#allocation43_spill] sm:$0xff]  ;;  %v13176_v22 = vld [vmem:[#allocation228_spill] sm:$0xff] }
 0x78f   :  { %4798 = vmatprep.subr.bf16.mxu0 %v4514_v30  ;;  %v13141_v30 = vmax.f32 %v13139_v43, %v13140_v31  ;;  %v13165_v43 = vmax.f32 %v10761_v34, %v10810_v14  ;;  %v13166_v31 = vmax.f32 %v10763_v38, %v10813_v60  ;;  %v13167_v36 = vld [vmem:[#allocation103_spill] sm:$0xff]  ;;  %v4523_v34 = vld [vmem:[#allocation4 + $0x1f0] sm:$0xff]  ;;  %v4526_v38 = vld [vmem:[#allocation4 + $0x208] sm:$0xff] }
 0x790   :  { %v4628_v63 = vpack.c.bf16 %v13138_v44, %v13135_v35  ;;  %v13160_v35 = vld [vmem:[#allocation90_spill] sm:$0xff]  ;;  %v13164_v44 = vmax.f32 %v13162_v42, %v13163_v2  ;;  %v13168_v47 = vld [vmem:[#allocation175_spill] sm:$0xff]  ;;  %v13174_v60 = vld [vmem:[#allocation241_spill] sm:$0xff] }
 0x791   :  { %4748 = vmatmul.mubr.bf16.gmra.mrb[100].mxu0 %v4630_v48  ;;  %v4638_v39 = vpack.c.bf16 %v13144_v51, %v13141_v30  ;;  %v4637_v48 = vpack.c.bf16 %v13146_v55, %v13145_v24  ;;  %v4645_v30 = vpack.c.bf16 %v13166_v31, %v13165_v43  ;;  %v13169_v51 = vmax.f32 %v13167_v36, %v13168_v47  ;;  %v13171_v24 = vld [vmem:[#allocation176_spill] sm:$0xff]  ;;  %v4521_v49 = vld [vmem:[#allocation4 + $0x1e0] sm:$0xff]  ;;  %v13177_v32 = vld [vmem:[#allocation242_spill] sm:$0xff] }
 0x792   :  { %4799 = vmatpush1.bf16.msra.mxu0 %v4513_v0  ;;  %4757 = vmatprep.mubr.bf16.mxu0 %v4639_v41  ;;  %v13155_v41 = vmax.f32 %v13153_v21, %v13154_v52  ;;  %v13156_v0 = vld [vmem:[#allocation226_spill] sm:$0xff]  ;;  %v13173_v14 = vld [vmem:[#allocation227_spill] sm:$0xff]  ;;  %v13178_v17 = vmax.f32 %v13176_v22, %v13177_v32  ;;  %v13197_v36 = vld [vmem:[#allocation244_spill] sm:$0xff] }
 0x793   :  { %4800 = vmatprep.subr.bf16.mxu0 %v4516_v26  ;;  %5077 = vmatmul.mubr.bf16.gmra.mrb[172].mxu1 %v4628_v63  ;;  %v13157_v26 = vld [vmem:[#allocation240_spill] sm:$0xff]  ;;  %v13175_v7 = vmax.f32 %v13173_v14, %v13174_v60  ;;  %v13183_v21 = vld [vmem:[#allocation67_spill] sm:$0xff]  ;;  %v13191_v42 = vld [vmem:[#allocation178_spill] sm:$0xff] }
 0x794   :  { %5086 = vmatprep.mubr.bf16.mxu1 %v4637_v48  ;;  %v4528_v43 = vld [vmem:[#allocation4 + $0x218] sm:$0xff]  ;;  %v13206_v14 = vld [vmem:[#allocation179_spill] sm:$0xff]  ;;  %v13209_v22 = vld [vmem:[#allocation180_spill] sm:$0xff] }
 0x796   :  { %4801 = vmatpush1.bf16.msra.mxu0 %v4515_v45  ;;  %v13158_v45 = vmax.f32 %v13156_v0, %v13157_v26  ;;  %v13185_v0 = vmax.f32 %v10765_v4, %v10816_v1  ;;  %v13186_v26 = vmax.f32 %v10776_v50, %v10821_v25  ;;  %v4527_v4 = vld [vmem:[#allocation4 + $0x210] sm:$0xff]  ;;  %v4530_v25 = vld [vmem:[#allocation4 + $0x228] sm:$0xff]  ;;  %v13194_v1 = vld [vmem:[#allocation243_spill] sm:$0xff] }
 0x797   :  { %4802 = vmatprep.subr.bf16.mxu0 %v4518_v15  ;;  %v13161_v15 = vmax.f32 %v13159_v37, %v13160_v35  ;;  %v13188_v37 = vld [vmem:[#allocation177_spill] sm:$0xff] }
 0x798   :  { %v4636_v40 = vpack.c.bf16 %v13158_v45, %v13155_v41  ;;  %v4653_v45 = vpack.c.bf16 %v13186_v26, %v13185_v0  ;;  %v13193_v50 = vld [vmem:[#allocation229_spill] sm:$0xff]  ;;  %v13215_v0 = vld [vmem:[#allocation87_spill] sm:$0xff] }
 0x799   :  { %4758 = vmatmul.mubr.bf16.gmra.mrb[104].mxu0 %v4638_v39  ;;  %v4646_v63 = vpack.c.bf16 %v13164_v44, %v13161_v15  ;;  %v13170_v39 = vld [vmem:[#allocation160_spill] sm:$0xff]  ;;  %v13190_v15 = vld [vmem:[#allocation162_spill] sm:$0xff]  ;;  %v13195_v31 = vmax.f32 %v13193_v50, %v13194_v1  ;;  %v13223_v50 = vld [vmem:[#allocation39_spill] sm:$0xff] }
 0x79a   :  { %4803 = vmatpush1.bf16.msra.mxu0 %v4517_v46  ;;  %4767 = vmatprep.mubr.bf16.mxu0 %v4647_v3  ;;  %v13172_v55 = vmax.f32 %v13170_v39, %v13171_v24  ;;  %v4644_v3 = vpack.c.bf16 %v13178_v17, %v13175_v7  ;;  %v13179_v46 = vld [vmem:[#allocation91_spill] sm:$0xff]  ;;  %v13192_v2 = vmax.f32 %v13190_v15, %v13191_v42  ;;  %v13200_v24 = vld [vmem:[#allocation72_spill] sm:$0xff]  ;;  %v13220_v15 = vld [vmem:[#allocation166_spill] sm:$0xff] }
 0x79b   :  { %4804 = vmatprep.subr.bf16.mxu0 %v4520_v10  ;;  %5087 = vmatmul.mubr.bf16.gmra.mrb[176].mxu1 %v4636_v40  ;;  %v13180_v10 = vld [vmem:[#allocation95_spill] sm:$0xff]  ;;  %v13187_v40 = vld [vmem:[#allocation161_spill] sm:$0xff]  ;;  %v13208_v7 = vld [vmem:[#allocation164_spill] sm:$0xff] }
 0x79c   :  { %v4593_v48 = vpack.c.bf16 %v13172_v55, %v13169_v51  ;;  %5096 = vmatprep.mubr.bf16.mxu1 %v4645_v30  ;;  %v13189_v35 = vmax.f32 %v13187_v40, %v13188_v37  ;;  %v13196_v30 = vld [vmem:[#allocation230_spill] sm:$0xff]  ;;  %v13199_v39 = vld [vmem:[#allocation63_spill] sm:$0xff]  ;;  %v13210_v32 = vmax.f32 %v13208_v7, %v13209_v22  ;;  %v13217_v40 = vld [vmem:[#allocation165_spill] sm:$0xff] }
 0x79d   :  { %v13198_v47 = vmax.f32 %v13196_v30, %v13197_v36  ;;  %v13201_v55 = vmax.f32 %v13199_v39, %v13200_v24  ;;  %v13218_v37 = vld [vmem:[#allocation181_spill] sm:$0xff]  ;;  %v13221_v42 = vld [vmem:[#allocation182_spill] sm:$0xff]  ;;  %v13224_v1 = vld [vmem:[#allocation79_spill] sm:$0xff] }
 0x79e   :  { %4805 = vmatpush1.bf16.msra.mxu0 %v4519_v58  ;;  %v13181_v58 = vmax.f32 %v13179_v46, %v13180_v10  ;;  %v4601_v44 = vpack.c.bf16 %v13192_v2, %v13189_v35  ;;  %v4532_v46 = vld [vmem:[#allocation4 + $0x238] sm:$0xff]  ;;  %v4531_v10 = vld [vmem:[#allocation4 + $0x230] sm:$0xff]  ;;  %v13219_v35 = vmax.f32 %v13217_v40, %v13218_v37  ;;  %v13222_v2 = vmax.f32 %v13220_v15, %v13221_v42  ;;  %v13227_v36 = vld [vmem:[#allocation107_spill] sm:$0xff] }
 0x79f   :  { %4806 = vmatprep.subr.bf16.mxu0 %v4522_v57  ;;  %v13182_v57 = vld [vmem:[#allocation47_spill] sm:$0xff]  ;;  %v4652_v51 = vpack.c.bf16 %v13198_v47, %v13195_v31  ;;  %v13225_v31 = vmax.f32 %v13223_v50, %v13224_v1  ;;  %v13226_v30 = vld [vmem:[#allocation58_spill] sm:$0xff]  ;;  %v4542_v7 = vld [vmem:[#allocation4 + $0x288] sm:$0xff] }
 0x7a0   :  { %v13184_v52 = vmax.f32 %v13182_v57, %v13183_v21  ;;  %v13211_v57 = vld [vmem:[#allocation64_spill] sm:$0xff]  ;;  %v13228_v47 = vmax.f32 %v13226_v30, %v13227_v36  ;;  %v13229_v39 = vld [vmem:[#allocation167_spill] sm:$0xff]  ;;  %v4544_v37 = vld [vmem:[#allocation4 + $0x298] sm:$0xff] }
 0x7a1   :  { %4768 = vmatmul.mubr.bf16.gmra.mrb[108].mxu0 %v4646_v63  ;;  %v4525_v63 = vld [vmem:[#allocation4 + $0x200] sm:$0xff]  ;;  %v13212_v21 = vld [vmem:[#allocation100_spill] sm:$0xff] }
 0x7a2   :  { %4807 = vmatpush1.bf16.msra.mxu0 %v4521_v49  ;;  %4810 = vmatprep.mubr.bf16.mxu0 %v4593_v48  ;;  %v4592_v41 = vpack.c.bf16 %v13184_v52, %v13181_v58  ;;  %v13202_v48 = vld [vmem:[#allocation48_spill] sm:$0xff]  ;;  %v13203_v49 = vld [vmem:[#allocation86_spill] sm:$0xff]  ;;  %v13213_v52 = vmax.f32 %v13211_v57, %v13212_v21  ;;  %v13230_v24 = vld [vmem:[#allocation183_spill] sm:$0xff] }
 0x7a3   :  { %4808 = vmatprep.subr.bf16.mxu0 %v4524_v8  ;;  %5097 = vmatmul.mubr.bf16.gmra.mrb[180].mxu1 %v4644_v3  ;;  %v13204_v8 = vmax.f32 %v13202_v48, %v13203_v49  ;;  %v4529_v3 = vld [vmem:[#allocation4 + $0x220] sm:$0xff]  ;;  %v4534_v58 = vld [vmem:[#allocation4 + $0x248] sm:$0xff]  ;;  %v13241_v57 = vld [vmem:[#allocation169_spill] sm:$0xff] }
 0x7a4   :  { %5106 = vmatprep.mubr.bf16.mxu1 %v4653_v45  ;;  %v13232_v48 = vld [vmem:[#allocation168_spill] sm:$0xff]  ;;  %v13242_v21 = vld [vmem:[#allocation185_spill] sm:$0xff]  ;;  %v4541_v40 = vld [vmem:[#allocation4 + $0x280] sm:$0xff] }
 0x7a5   :  { %v13233_v49 = vld [vmem:[#allocation184_spill] sm:$0xff]  ;;  %v13247_v42 = vld [vmem:[#allocation71_spill] sm:$0xff] }
 0x7a6   :  { %4809 = vmatpush1.bf16.msra.mxu0 %v4523_v34  ;;  %v4600_v34 = vpack.c.bf16 %v13204_v8, %v13201_v55  ;;  %v13231_v55 = vmax.f32 %v13229_v39, %v13230_v24  ;;  %v13234_v8 = vmax.f32 %v13232_v48, %v13233_v49  ;;  %v13235_v22 = vld [vmem:[#allocation56_spill] sm:$0xff]  ;;  %v13253_v50 = vld [vmem:[#allocation171_spill] sm:$0xff]  ;;  %v4548_v24 = vld [vmem:[#allocation4 + $0x2b8] sm:$0xff] }
 0x7a7   :  { %4891 = vmatprep.subr.bf16.mxu0 %v4526_v38  ;;  %v13205_v38 = vld [vmem:[#allocation163_spill] sm:$0xff]  ;;  %v4546_v15 = vld [vmem:[#allocation4 + $0x2a8] sm:$0xff]  ;;  %v13259_v49 = vld [vmem:[#allocation93_spill] sm:$0xff] }
 0x7a8   :  { %v13207_v60 = vmax.f32 %v13205_v38, %v13206_v14  ;;  %v4537_v38 = vld [vmem:[#allocation4 + $0x260] sm:$0xff]  ;;  %v4540_v14 = vld [vmem:[#allocation4 + $0x278] sm:$0xff]  ;;  %v13256_v30 = vld [vmem:[#allocation172_spill] sm:$0xff] }
 0x7a9   :  { %4811 = vmatmul.mubr.bf16.vlgmr.msra.gmra.mrb[80].mxu0 %v4592_v41  ;;  %v13214_v41 = vld [vmem:[#allocation78_spill] sm:$0xff]  ;;  %v13254_v1 = vld [vmem:[#allocation187_spill] sm:$0xff]  ;;  %v13257_v36 = vld [vmem:[#allocation188_spill] sm:$0xff] }
 0x7aa   :  { %4892 = vmatpush1.bf16.msra.mxu0 %v4525_v63  ;;  %4820 = vmatprep.mubr.bf16.mxu0 %v4601_v44  ;;  %v4609_v17 = vpack.c.bf16 %v13210_v32, %v13207_v60  ;;  %v13216_v26 = vmax.f32 %v13214_v41, %v13215_v0  ;;  %v4617_v44 = vpack.c.bf16 %v13222_v2, %v13219_v35  ;;  %v4533_v63 = vld [vmem:[#allocation4 + $0x240] sm:$0xff]  ;;  %v4539_v60 = vld [vmem:[#allocation4 + $0x270] sm:$0xff]  ;;  %v13236_v32 = vld [vmem:[#allocation108_spill] sm:$0xff] }
 0x7ab   :  { %4893 = vmatprep.subr.bf16.mxu0 %v4528_v43  ;;  %5107 = vmatmul.mubr.bf16.gmra.mrb[184].mxu1 %v4652_v51  ;;  %v4536_v43 = vld [vmem:[#allocation4 + $0x258] sm:$0xff]  ;;  %v4616_v51 = vpack.c.bf16 %v13228_v47, %v13225_v31  ;;  %v4543_v35 = vld [vmem:[#allocation4 + $0x290] sm:$0xff]  ;;  %v13255_v31 = vmax.f32 %v13253_v50, %v13254_v1  ;;  %v13258_v47 = vmax.f32 %v13256_v30, %v13257_v36  ;;  %v4545_v39 = vld [vmem:[#allocation4 + $0x2a0] sm:$0xff] }
 0x7ac   :  { %v4608_v45 = vpack.c.bf16 %v13216_v26, %v13213_v52  ;;  %v13243_v52 = vmax.f32 %v13241_v57, %v13242_v21  ;;  %v13244_v41 = vld [vmem:[#allocation170_spill] sm:$0xff]  ;;  %v4550_v48 = vld [vmem:[#allocation4 + $0x2c8] sm:$0xff]  ;;  %v4549_v57 = vld [vmem:[#allocation4 + $0x2c0] sm:$0xff] }
 0x7ad   :  { %v13245_v0 = vld [vmem:[#allocation186_spill] sm:$0xff]  ;;  %v13280_v50 = vld [vmem:[#allocation201_spill] sm:$0xff] }
 0x7ae   :  { %4894 = vmatpush1.bf16.msra.mxu0 %v4527_v4  ;;  %v4535_v4 = vld [vmem:[#allocation4 + $0x250] sm:$0xff]  ;;  %v13246_v26 = vmax.f32 %v13244_v41, %v13245_v0  ;;  %v13248_v2 = vld [vmem:[#allocation110_spill] sm:$0xff]  ;;  %v4554_v41 = vld [vmem:[#allocation4 + $0x2e8] sm:$0xff] }
 0x7af   :  { %4895 = vmatprep.subr.bf16.mxu0 %v4530_v25  ;;  %v4538_v25 = vld [vmem:[#allocation4 + $0x268] sm:$0xff]  ;;  %v4552_v21 = vld [vmem:[#allocation4 + $0x2d8] sm:$0xff] }
 0x7b0   :  { %v13271_v0 = vld [vmem:[#allocation66_spill] sm:$0xff] }
 0x7b1   :  { %4821 = vmatmul.mubr.bf16.gmra.mrb[84].mxu0 %v4600_v34  ;;  %v4625_v34 = vpack.c.bf16 %v13234_v8, %v13231_v55  ;;  %v4547_v55 = vld [vmem:[#allocation4 + $0x2b0] sm:$0xff]  ;;  %v13260_v8 = vld [vmem:[#allocation112_spill] sm:$0xff]  ;;  %v13283_v30 = vld [vmem:[#allocation202_spill] sm:$0xff] }
 0x7b2   :  { %4896 = vmatpush1.bf16.msra.mxu0 %v4529_v3  ;;  %4830 = vmatprep.mubr.bf16.mxu0 %v4609_v17  ;;  %v13237_v17 = vmax.f32 %v13235_v22, %v13236_v32  ;;  %v13238_v3 = vld [vmem:[#allocation40_spill] sm:$0xff]  ;;  %v13265_v22 = vld [vmem:[#allocation173_spill] sm:$0xff] }
 0x7b3   :  { %4897 = vmatprep.subr.bf16.mxu0 %v4532_v46  ;;  %v13239_v46 = vld [vmem:[#allocation109_spill] sm:$0xff] }
 0x7b4   :  { %v13266_v32 = vld [vmem:[#allocation189_spill] sm:$0xff] }
 0x7b6   :  { %4898 = vmatpush1.bf16.msra.mxu0 %v4531_v10  ;;  %v13240_v10 = vmax.f32 %v13238_v3, %v13239_v46  ;;  %v13268_v3 = vld [vmem:[#allocation174_spill] sm:$0xff] }
 0x7b7   :  { %4899 = vmatprep.subr.bf16.mxu0 %v4534_v58  ;;  %v13269_v46 = vld [vmem:[#allocation190_spill] sm:$0xff] }
 0x7b8   :  { %v4624_v58 = vpack.c.bf16 %v13240_v10, %v13237_v17  ;;  %v13267_v17 = vmax.f32 %v13265_v22, %v13266_v32  ;;  %v13270_v10 = vmax.f32 %v13268_v3, %v13269_v46  ;;  %v13305_v22 = vld [vmem:[#allocation51_spill] sm:$0xff]  ;;  %v13308_v3 = vld [vmem:[#allocation101_spill] sm:$0xff]  ;;  %v13309_v46 = vld [vmem:[#allocation68_spill] sm:$0xff] }
 0x7b9   :  { %4831 = vmatmul.mubr.bf16.gmra.mrb[88].mxu0 %v4608_v45  ;;  %v4633_v45 = vpack.c.bf16 %v13246_v26, %v13243_v52  ;;  %v4551_v52 = vld [vmem:[#allocation4 + $0x2d0] sm:$0xff]  ;;  %v13272_v26 = vld [vmem:[#allocation114_spill] sm:$0xff] }
 0x7ba   :  { %4900 = vmatpush1.bf16.msra.mxu0 %v4533_v63  ;;  %4840 = vmatprep.mubr.bf16.mxu0 %v4617_v44  ;;  %v13249_v44 = vmax.f32 %v13247_v42, %v13248_v2  ;;  %v13250_v63 = vld [vmem:[#allocation92_spill] sm:$0xff]  ;;  %v13277_v42 = vmax.f32 %v10558_v27, %v10591_v62  ;;  %v13278_v2 = vmax.f32 %v10560_v61, %v10594_v20 }
 0x7bb   :  { %4901 = vmatprep.subr.bf16.mxu0 %v4536_v43  ;;  %v13251_v43 = vld [vmem:[#allocation111_spill] sm:$0xff]  ;;  %v13285_v27 = vmax.f32 %v10562_v13, %v10597_v53  ;;  %v13286_v61 = vmax.f32 %v10564_v28, %v10603_v29  ;;  %v13287_v20 = vld [vmem:[#allocation116_spill] sm:$0xff]  ;;  %v13293_v13 = vld [vmem:[#allocation193_spill] sm:$0xff] }
 0x7bc   :  { %v13294_v28 = vld [vmem:[#allocation97_spill] sm:$0xff]  ;;  %v13296_v29 = vld [vmem:[#allocation83_spill] sm:$0xff] }
 0x7bd   :  { %v4603_v62 = vpack.c.bf16 %v13286_v61, %v13285_v27  ;;  %v13295_v53 = vmax.f32 %v13293_v13, %v13294_v28  ;;  %v13333_v27 = vld [vmem:[#allocation245_spill] sm:$0xff]  ;;  %v13334_v61 = vld [vmem:[#allocation50_spill] sm:$0xff]  ;;  %v13342_v13 = vld [vmem:[#allocation159_spill] sm:$0xff] }
 0x7be   :  { %4902 = vmatpush1.bf16.msra.mxu0 %v4535_v4  ;;  %v13252_v4 = vmax.f32 %v13250_v63, %v13251_v43  ;;  %v4553_v63 = vld [vmem:[#allocation4 + $0x2e0] sm:$0xff]  ;;  %v4556_v43 = vld [vmem:[#allocation4 + $0x2f8] sm:$0xff] }
 0x7bf   :  { %4903 = vmatprep.subr.bf16.mxu0 %v4538_v25 }
 0x7c0   :  { %v4632_v25 = vpack.c.bf16 %v13252_v4, %v13249_v44  ;;  %v4595_v44 = vpack.c.bf16 %v13278_v2, %v13277_v42  ;;  %v4555_v4 = vld [vmem:[#allocation4 + $0x2f0] sm:$0xff]  ;;  %v13322_v42 = vld [vmem:[#allocation208_spill] sm:$0xff] }
 0x7c1   :  { %4841 = vmatmul.mubr.bf16.gmra.mrb[92].mxu0 %v4616_v51  ;;  %v4641_v51 = vpack.c.bf16 %v13258_v47, %v13255_v31  ;;  %v13282_v31 = vld [vmem:[#allocation129_spill] sm:$0xff] }
 0x7c2   :  { %4904 = vmatpush1.bf16.msra.mxu0 %v4537_v38  ;;  %4850 = vmatprep.mubr.bf16.mxu0 %v4625_v34  ;;  %v13261_v34 = vmax.f32 %v13259_v49, %v13260_v8  ;;  %v13262_v38 = vld [vmem:[#allocation65_spill] sm:$0xff]  ;;  %v13284_v36 = vmax.f32 %v13282_v31, %v13283_v30 }
 0x7c3   :  { %4905 = vmatprep.subr.bf16.mxu0 %v4540_v14  ;;  %v13263_v14 = vld [vmem:[#allocation113_spill] sm:$0xff] }
 0x7c6   :  { %4906 = vmatpush1.bf16.msra.mxu0 %v4539_v60  ;;  %v13264_v60 = vmax.f32 %v13262_v38, %v13263_v14  ;;  %v13301_v38 = vld [vmem:[#allocation96_spill] sm:$0xff]  ;;  %v13302_v14 = vld [vmem:[#allocation49_spill] sm:$0xff] }
 0x7c7   :  { %4907 = vmatprep.subr.bf16.mxu0 %v4542_v7 }
 0x7c8   :  { %v4640_v7 = vpack.c.bf16 %v13264_v60, %v13261_v34  ;;  %v13303_v60 = vld [vmem:[#allocation205_spill] sm:$0xff] }
 0x7c9   :  { %4851 = vmatmul.mubr.bf16.gmra.mrb[96].mxu0 %v4624_v58  ;;  %v4649_v58 = vpack.c.bf16 %v13270_v10, %v13267_v17  ;;  %v13310_v10 = vld [vmem:[#allocation135_spill] sm:$0xff] }
 0x7ca   :  { %4908 = vmatpush1.bf16.msra.mxu0 %v4541_v40  ;;  %4860 = vmatprep.mubr.bf16.mxu0 %v4633_v45  ;;  %v13273_v45 = vmax.f32 %v13271_v0, %v13272_v26  ;;  %v13274_v40 = vld [vmem:[#allocation94_spill] sm:$0xff]  ;;  %v13316_v26 = vld [vmem:[#allocation156_spill] sm:$0xff] }
 0x7cb   :  { %4909 = vmatprep.subr.bf16.mxu0 %v4544_v37  ;;  %v13275_v37 = vld [vmem:[#allocation115_spill] sm:$0xff]  ;;  %v13315_v0 = vld [vmem:[#allocation134_spill] sm:$0xff] }
 0x7ce   :  { %4910 = vmatpush1.bf16.msra.mxu0 %v4543_v35  ;;  %v13276_v35 = vmax.f32 %v13274_v40, %v13275_v37  ;;  %v13318_v40 = vld [vmem:[#allocation117_spill] sm:$0xff]  ;;  %v13319_v37 = vld [vmem:[#allocation207_spill] sm:$0xff] }
 0x7cf   :  { %4911 = vmatprep.subr.bf16.mxu0 %v4546_v15 }
 0x7d0   :  { %v4648_v15 = vpack.c.bf16 %v13276_v35, %v13273_v45  ;;  %v13317_v45 = vld [vmem:[#allocation98_spill] sm:$0xff]  ;;  %v13320_v35 = vmax.f32 %v13318_v40, %v13319_v37  ;;  %v13367_v40 = vld [vmem:[#allocation213_spill] sm:$0xff] }
 0x7d1   :  { %4861 = vmatmul.mubr.bf16.gmra.mrb[100].mxu0 %v4632_v25  ;;  %v13279_v25 = vld [vmem:[#allocation128_spill] sm:$0xff] }
 0x7d2   :  { %4912 = vmatpush1.bf16.msra.mxu0 %v4545_v39  ;;  %4870 = vmatprep.mubr.bf16.mxu0 %v4641_v51  ;;  %v13281_v1 = vmax.f32 %v13279_v25, %v13280_v50  ;;  %v13288_v51 = vld [vmem:[#allocation203_spill] sm:$0xff]  ;;  %v13328_v50 = vld [vmem:[#allocation88_spill] sm:$0xff] }
 0x7d3   :  { %4913 = vmatprep.subr.bf16.mxu0 %v4548_v24  ;;  %v13289_v39 = vmax.f32 %v13287_v20, %v13288_v51  ;;  %v13290_v24 = vld [vmem:[#allocation120_spill] sm:$0xff]  ;;  %v13337_v51 = vld [vmem:[#allocation70_spill] sm:$0xff] }
 0x7d4   :  { %v4594_v47 = vpack.c.bf16 %v13284_v36, %v13281_v1  ;;  %v13329_v1 = vld [vmem:[#allocation89_spill] sm:$0xff]  ;;  %v13331_v36 = vld [vmem:[#allocation99_spill] sm:$0xff] }
 0x7d5   :  { %v13330_v31 = vmax.f32 %v13328_v50, %v13329_v1 }
 0x7d6   :  { %4914 = vmatpush1.bf16.msra.mxu0 %v4547_v55  ;;  %v13291_v55 = vld [vmem:[#allocation204_spill] sm:$0xff] }
 0x7d7   :  { %4915 = vmatprep.subr.bf16.mxu0 %v4550_v48  ;;  %v13292_v48 = vmax.f32 %v13290_v24, %v13291_v55 }
 0x7d9   :  { %4871 = vmatmul.mubr.bf16.gmra.mrb[104].mxu0 %v4640_v7  ;;  %v4602_v49 = vpack.c.bf16 %v13292_v48, %v13289_v39  ;;  %v13304_v7 = vmax.f32 %v13302_v14, %v13303_v60  ;;  %v13338_v39 = vld [vmem:[#allocation210_spill] sm:$0xff]  ;;  %v13351_v14 = vld [vmem:[#allocation211_spill] sm:$0xff] }
 0x7da   :  { %4916 = vmatpush1.bf16.msra.mxu0 %v4549_v57  ;;  %4880 = vmatprep.mubr.bf16.mxu0 %v4649_v58  ;;  %v13311_v58 = vmax.f32 %v13309_v46, %v13310_v10  ;;  %v13312_v57 = vld [vmem:[#allocation69_spill] sm:$0xff]  ;;  %v13339_v24 = vmax.f32 %v13337_v51, %v13338_v39  ;;  %v13340_v48 = vld [vmem:[#allocation246_spill] sm:$0xff]  ;;  %v13358_v46 = vld [vmem:[#allocation192_spill] sm:$0xff] }
 0x7db   :  { %4917 = vmatprep.subr.bf16.mxu0 %v4552_v21  ;;  %v13313_v21 = vld [vmem:[#allocation157_spill] sm:$0xff]  ;;  %v13387_v39 = vld [vmem:[#allocation118_spill] sm:$0xff] }
 0x7de   :  { %4918 = vmatpush1.bf16.msra.mxu0 %v4551_v52  ;;  %v13314_v52 = vmax.f32 %v13312_v57, %v13313_v21  ;;  %v13361_v57 = vld [vmem:[#allocation194_spill] sm:$0xff] }
 0x7df   :  { %4919 = vmatprep.subr.bf16.mxu0 %v4554_v41 }
 0x7e0   :  { %v4619_v41 = vpack.c.bf16 %v13314_v52, %v13311_v58  ;;  %v13360_v58 = vld [vmem:[#allocation81_spill] sm:$0xff] }
 0x7e1   :  { %4881 = vmatmul.mubr.bf16.gmra.mrb[108].mxu0 %v4648_v15  ;;  %v13321_v15 = vld [vmem:[#allocation121_spill] sm:$0xff]  ;;  %v13362_v21 = vmax.f32 %v13360_v58, %v13361_v57 }
 0x7e2   :  { %4920 = vmatpush1.bf16.msra.mxu0 %v4553_v63  ;;  %4923 = vmatprep.mubr.bf16.mxu0 %v4595_v44  ;;  %v13323_v2 = vmax.f32 %v13321_v15, %v13322_v42  ;;  %v13324_v63 = vld [vmem:[#allocation140_spill] sm:$0xff]  ;;  %v13370_v15 = vld [vmem:[#allocation214_spill] sm:$0xff] }
 0x7e3   :  { %4921 = vmatprep.subr.bf16.mxu0 %v4556_v43  ;;  %v13325_v43 = vld [vmem:[#allocation53_spill] sm:$0xff] }
 0x7e4   :  { %v4618_v44 = vpack.c.bf16 %v13323_v2, %v13320_v35  ;;  %v13369_v35 = vld [vmem:[#allocation198_spill] sm:$0xff] }
 0x7e5   :  { %v13371_v42 = vmax.f32 %v13369_v35, %v13370_v15 }
 0x7e6   :  { %4922 = vmatpush1.bf16.msra.mxu0 %v4555_v4  ;;  %v13326_v4 = vld [vmem:[#allocation158_spill] sm:$0xff] }
 0x7e7   :  { %5004 = vmatprep.subr.bf16.mxu0 %v10855_v9  ;;  %v13297_v9 = vld [vmem:[#allocation102_spill] sm:$0xff]  ;;  %v13327_v25 = vmax.f32 %v13325_v43, %v13326_v4  ;;  %v13375_v4 = vld [vmem:[#allocation73_spill] sm:$0xff] }
 0x7e8   :  { %v13298_v8 = vmax.f32 %v13296_v29, %v13297_v9  ;;  %v13345_v29 = vld [vmem:[#allocation191_spill] sm:$0xff] }
 0x7e9   :  { %4924 = vmatmul.mubr.bf16.vlgmr.msra.gmra.mrb[80].mxu0 %v4594_v47  ;;  %v4627_v30 = vpack.c.bf16 %v13330_v31, %v13327_v25  ;;  %v13332_v47 = vld [vmem:[#allocation141_spill] sm:$0xff]  ;;  %v13378_v31 = vld [vmem:[#allocation199_spill] sm:$0xff] }
 0x7ea   :  { %5005 = vmatpush1.bf16.msra.mxu0 %v10857_v33  ;;  %4933 = vmatprep.mubr.bf16.mxu0 %v4603_v62  ;;  %v4611_v34 = vpack.c.bf16 %v13298_v8, %v13295_v53  ;;  %v13299_v33 = vld [vmem:[#allocation52_spill] sm:$0xff]  ;;  %v13335_v62 = vld [vmem:[#allocation209_spill] sm:$0xff]  ;;  %v13344_v53 = vld [vmem:[#allocation119_spill] sm:$0xff] }
 0x7eb   :  { %5006 = vmatprep.subr.bf16.mxu0 %v10860_v6  ;;  %v13300_v6 = vld [vmem:[#allocation55_spill] sm:$0xff]  ;;  %v13336_v20 = vmax.f32 %v13334_v61, %v13335_v62  ;;  %v13346_v9 = vmax.f32 %v13344_v53, %v13345_v29  ;;  %v13376_v25 = vld [vmem:[#allocation85_spill] sm:$0xff]  ;;  %v13384_v62 = vld [vmem:[#allocation54_spill] sm:$0xff] }
 0x7ec   :  { %v13377_v50 = vmax.f32 %v13375_v4, %v13376_v25 }
 0x7ed   :  { %v4626_v55 = vpack.c.bf16 %v13339_v24, %v13336_v20  ;;  %v13385_v20 = vld [vmem:[#allocation122_spill] sm:$0xff] }
 0x7ee   :  { %5007 = vmatpush1.bf16.msra.mxu0 %v10864_v5  ;;  %v13306_v5 = vld [vmem:[#allocation206_spill] sm:$0xff]  ;;  %v13386_v51 = vmax.f32 %v13384_v62, %v13385_v20 }
 0x7ef   :  { %5008 = vmatprep.subr.bf16.mxu0 %v13299_v33  ;;  %v13307_v32 = vmax.f32 %v13305_v22, %v13306_v5  ;;  %v13348_v33 = vld [vmem:[#allocation248_spill] sm:$0xff] }
 0x7f0   :  { %v13354_v22 = vld [vmem:[#allocation212_spill] sm:$0xff] }
 0x7f1   :  { %4934 = vmatmul.mubr.bf16.gmra.mrb[84].mxu0 %v4602_v49  ;;  %v4610_v17 = vpack.c.bf16 %v13307_v32, %v13304_v7  ;;  %v13341_v49 = vld [vmem:[#allocation21_spill] sm:$0xff]  ;;  %v13353_v7 = vld [vmem:[#allocation196_spill] sm:$0xff] }
 0x7f2   :  { %5009 = vmatpush1.bf16.msra.mxu0 %v13300_v6  ;;  %4943 = vmatprep.mubr.bf16.mxu0 %v4611_v34  ;;  %v13343_v28 = vmax.f32 %v13341_v49, %v13342_v13  ;;  %v13347_v34 = vld [vmem:[#allocation247_spill] sm:$0xff]  ;;  %v13349_v6 = vld [vmem:[#allocation249_spill] sm:$0xff]  ;;  %v13355_v5 = vmax.f32 %v13353_v7, %v13354_v22  ;;  %v13393_v49 = vld [vmem:[#allocation218_spill] sm:$0xff] }
 0x7f3   :  { %5010 = vmatprep.subr.bf16.mxu0 %v13301_v38  ;;  %v13350_v38 = vld [vmem:[#allocation195_spill] sm:$0xff] }
 0x7f4   :  { %v4635_v8 = vpack.c.bf16 %v13346_v9, %v13343_v28  ;;  %v13352_v60 = vmax.f32 %v13350_v38, %v13351_v14 }
 0x7f6   :  { %5011 = vmatpush1.bf16.msra.mxu0 %v13308_v3  ;;  %v4634_v32 = vpack.c.bf16 %v13355_v5, %v13352_v60  ;;  %v13357_v3 = vld [vmem:[#allocation123_spill] sm:$0xff] }
 0x7f7   :  { %5012 = vmatprep.subr.bf16.mxu0 %v13315_v0  ;;  %v13359_v10 = vmax.f32 %v13357_v3, %v13358_v46  ;;  %v13364_v0 = vld [vmem:[#allocation59_spill] sm:$0xff] }
 0x7f9   :  { %4944 = vmatmul.mubr.bf16.gmra.mrb[88].mxu0 %v4610_v17  ;;  %v13356_v17 = vld [vmem:[#allocation250_spill] sm:$0xff]  ;;  %v4643_v52 = vpack.c.bf16 %v13362_v21, %v13359_v10 }
 0x7fa   :  { %5013 = vmatpush1.bf16.msra.mxu0 %v13316_v26  ;;  %4953 = vmatprep.mubr.bf16.mxu0 %v4619_v41  ;;  %v13363_v41 = vld [vmem:[#allocation251_spill] sm:$0xff]  ;;  %v13365_v26 = vld [vmem:[#allocation38_spill] sm:$0xff] }
 0x7fb   :  { %5014 = vmatprep.subr.bf16.mxu0 %v13317_v45  ;;  %v13366_v45 = vld [vmem:[#allocation197_spill] sm:$0xff] }
 0x7fc   :  { %v13368_v37 = vmax.f32 %v13366_v45, %v13367_v40  ;;  %v13396_v45 = vld [vmem:[#allocation22_spill] sm:$0xff] }
 0x7fe   :  { %5015 = vmatpush1.bf16.msra.mxu0 %v13324_v63  ;;  %v4642_v2 = vpack.c.bf16 %v13371_v42, %v13368_v37  ;;  %v13373_v63 = vld [vmem:[#allocation84_spill] sm:$0xff]  ;;  %v13397_v37 = vld [vmem:[#allocation23_spill] sm:$0xff] }
 0x7ff   :  { %5016 = vmatprep.subr.bf16.mxu0 %v13331_v36 }
 0x801   :  { %4954 = vmatmul.mubr.bf16.gmra.mrb[92].mxu0 %v4618_v44  ;;  %v13372_v44 = vld [vmem:[#allocation82_spill] sm:$0xff] }
 0x802   :  { %5017 = vmatpush1.bf16.msra.mxu0 %v13332_v47  ;;  %4963 = vmatprep.mubr.bf16.mxu0 %v4627_v30  ;;  %v13374_v43 = vmax.f32 %v13372_v44, %v13373_v63  ;;  %v13379_v30 = vld [vmem:[#allocation215_spill] sm:$0xff]  ;;  %v13381_v47 = vld [vmem:[#allocation200_spill] sm:$0xff] }
 0x803   :  { %5018 = vmatprep.subr.bf16.mxu0 %v13333_v27  ;;  %v13380_v36 = vmax.f32 %v13378_v31, %v13379_v30 }
 0x804   :  { %v4651_v1 = vpack.c.bf16 %v13377_v50, %v13374_v43 }
 0x806   :  { %5019 = vmatpush1.bf16.msra.mxu0 %v13340_v48 }
 0x807   :  { %5020 = vmatprep.subr.bf16.mxu0 %v13347_v34 }
 0x809   :  { %4964 = vmatmul.mubr.bf16.gmra.mrb[96].mxu0 %v4626_v55 }
 0x80a   :  { %5021 = vmatpush1.bf16.msra.mxu0 %v13348_v33  ;;  %4973 = vmatprep.mubr.bf16.mxu0 %v4635_v8 }
 0x80b   :  { %5022 = vmatprep.subr.bf16.mxu0 %v13349_v6 }
 0x80e   :  { %5023 = vmatpush1.bf16.msra.mxu0 %v13356_v17 }
 0x80f   :  { %5024 = vmatprep.subr.bf16.mxu0 %v13363_v41 }
 0x811   :  { %4974 = vmatmul.mubr.bf16.gmra.mrb[100].mxu0 %v4634_v32 }
 0x812   :  { %5025 = vmatpush1.bf16.msra.mxu0 %v13364_v0  ;;  %4983 = vmatprep.mubr.bf16.mxu0 %v4643_v52 }
 0x813   :  { %5026 = vmatprep.subr.bf16.mxu0 %v13365_v26  ;;  %v4589_v26 = vld [vmem:[%s11479_s3 + $0x1] sm:$0x3]  ;;  %s5786_s3 = smov [#allocation9]  }
 0x814   :  { %v11405_v40 = vrot.slane %v4589_v26, %v13396_v45  ;;  %v11408_v35 = vrot.slane %v4589_v26, %v13397_v37  ;;  %s5186_s11 = sshll.u32 %s5786_s3, 4  ;;  %s5187_s11 = int_to_ptr.vmem [resolvable:$true] %s5186_s11 }
 0x815   :  { %s5735_s12 = scalar_lea.vmem %s5187_s11, 4096  ;;  %p5740_p9 = scmp.lt.s32.totalorder %s5187_s11, %s5187_s11 }
 0x816   :  { %5027 = vmatpush1.bf16.msra.mxu0 %v10935_v12  ;;  %v13382_v12 = vld [vmem:[#allocation216_spill] sm:$0xff]  ;;  %p5736_p8 = scmp.ne.s32.totalorder %s5187_s11, %s5735_s12  ;;  %p5741_p10 = scmp.lt.s32.totalorder %s5735_s12, %s5735_s12 }
 0x817   :  { %5028 = vmatprep.subr.bf16.mxu0 %v10938_v56  ;;  %v13383_v27 = vmax.f32 %v13381_v47, %v13382_v12  ;;  %v13388_v56 = vld [vmem:[#allocation80_spill] sm:$0xff] }
 0x818   :  { %v13389_v24 = vmax.f32 %v13387_v39, %v13388_v56  ;;  %p5742_p11 = por %p5741_p10, %p5740_p9 }
 0x819   :  { %4984 = vmatmul.mubr.bf16.gmra.mrb[104].mxu0 %v4642_v2  ;;  %v4650_v61 = vpack.c.bf16 %v13383_v27, %v13380_v36 }
 0x81a   :  { %5029 = vmatpush1.bf16.msra.mxu0 %v10954_v19  ;;  %4993 = vmatprep.mubr.bf16.mxu0 %v4651_v1  ;;  %v4597_v55 = vpack.c.bf16 %v13389_v24, %v13386_v51  ;;  %v13390_v19 = vld [vmem:[#allocation217_spill] sm:$0xff]  ;;  %p5743_p12 = pnand %p5742_p11, %p5736_p8 }
 0x81b   :  { %5030 = vmatprep.subr.bf16.mxu0 %v10956_v54  ;;  %v13391_v54 = vld [vmem:[#allocation231_spill] sm:$0xff] }
 0x81c   :  { %v13392_v48 = vmax.f32 %v13390_v19, %v13391_v54 }
 0x81e   :  { %5031 = vmatpush1.bf16.msra.mxu0 %v10965_v11  ;;  %v13394_v11 = vld [vmem:[#allocation232_spill] sm:$0xff] }
 0x81f   :  { %5032 = vmatprep.subr.bf16.mxu0 %v10968_v23  ;;  %v13395_v13 = vmax.f32 %v13393_v49, %v13394_v11 }
 0x821   :  { %4994 = vmatmul.mubr.bf16.gmra.mrb[108].mxu0 %v4650_v61  ;;  %v4596_v28 = vpack.c.bf16 %v13395_v13, %v13392_v48 }
 0x822   :  { %5033 = vmatpush1.bf16.msra.mxu0 %v10984_v18  ;;  %5036 = vmatprep.mubr.bf16.mxu0 %v4597_v55 }
 0x823   :  { %5034 = vmatprep.subr.bf16.mxu0 %v10986_v59 }
 0x826   :  { %5035 = vmatpush1.bf16.msra.mxu0 %v10989_v16 }
 0x829   :  { %5037 = vmatmul.mubr.bf16.vlgmr.msra.gmra.mrb[80].mxu0 %v4596_v28 }
 0x84e   :  { %v5048_v53 = vpop.f32.mrb[160].mxu1 }
 0x84f   :  { %v5050_v29 = vpop.f32.mrb[161].mxu1 }
 0x850   :  { %v5052_v9 = vpop.f32.mrb[162].mxu1 }
 0x851   :  { %v5054_v23 = vpop.f32.mrb[163].mxu1 }
 0x856   :  { %v5058_v8 = vpop.f32.mrb[164].mxu1 }
 0x857   :  { %v5060_v34 = vpop.f32.mrb[165].mxu1 }
 0x858   :  { %v5062_v18 = vpop.f32.mrb[166].mxu1 }
 0x859   :  { %v5064_v33 = vpop.f32.mrb[167].mxu1 }
 0x85e   :  { %v11361_v6 = vpop.f32.mrb[168].mxu1 }
 0x85f   :  { %v11363_v59 = vpop.f32.mrb[169].mxu1 }
 0x860   :  { %v11365_v38 = vpop.f32.mrb[170].mxu1 }
 0x861   :  { %v11367_v14 = vpop.f32.mrb[171].mxu1 }
 0x866   :  { %v11369_v60 = vpop.f32.mrb[172].mxu1 }
 0x867   :  { %v11371_v16 = vpop.f32.mrb[173].mxu1 }
 0x868   :  { %v11373_v7 = vpop.f32.mrb[174].mxu1 }
 0x869   :  { %v11375_v22 = vpop.f32.mrb[175].mxu1 }
 0x86e   :  { %v11377_v5 = vpop.f32.mrb[176].mxu1 }
 0x86f   :  { %v11379_v32 = vpop.f32.mrb[177].mxu1 }
 0x870   :  { %v11381_v17 = vpop.f32.mrb[178].mxu1 }
 0x871   :  { %v11383_v3 = vpop.f32.mrb[179].mxu1 }
 0x876   :  { %v11385_v46 = vpop.f32.mrb[180].mxu1 }
 0x877   :  { %v11387_v10 = vpop.f32.mrb[181].mxu1 }
 0x878   :  { %v11389_v58 = vpop.f32.mrb[182].mxu1 }
 0x879   :  { %v11391_v57 = vpop.f32.mrb[183].mxu1 }
 0x87e   :  { %v11393_v21 = vpop.f32.mrb[184].mxu1 }
 0x87f   :  { %v11395_v52 = vpop.f32.mrb[185].mxu1 }
 0x880   :  { %v11397_v41 = vpop.f32.mrb[186].mxu1 }
 0x881   :  { %v11399_v0 = vpop.f32.mrb[187].mxu1 }
 0x8c4   :  { %v4935_v15 = vpop.f32.mrb[84].mxu0 }
 0x8c5   :  { %v5320_v42 = vadd.f32 %v4935_v15, %v11405_v40  ;;  %v4937_v2 = vpop.f32.mrb[85].mxu0 }
 0x8c6   :  { %v5322_v44 = vadd.f32 %v4937_v2, %v11408_v35  ;;  %v4939_v63 = vpop.f32.mrb[86].mxu0 }
 0x8c7   :  { %v5324_v43 = vadd.f32 %v4939_v63, %v11405_v40  ;;  %v5321_v4 = vadd.f32 %v5320_v42, %v5048_v53  ;;  %v4941_v25 = vpop.f32.mrb[87].mxu0 }
 0x8c8   :  { %v5326_v50 = vadd.f32 %v4941_v25, %v11408_v35  ;;  %v5323_v1 = vadd.f32 %v5322_v44, %v5050_v29 }
 0x8c9   :  { %5649 = vtanh.f32 %v5321_v4  ;;  %v5325_v31 = vadd.f32 %v5324_v43, %v5052_v9 }
 0x8ca   :  { %5651 = vtanh.f32 %v5323_v1  ;;  %v5327_v30 = vadd.f32 %v5326_v50, %v5054_v23 }
 0x8cb   :  { %5653 = vtanh.f32 %v5325_v31 }
 0x8cc   :  { %5655 = vtanh.f32 %v5327_v30  ;;  %v4945_v36 = vpop.f32.mrb[88].mxu0 }
 0x8cd   :  { %v5328_v47 = vadd.f32 %v4945_v36, %v11405_v40  ;;  %v4947_v12 = vpop.f32.mrb[89].mxu0 }
 0x8ce   :  { %v5330_v27 = vadd.f32 %v4947_v12, %v11408_v35  ;;  %v4949_v61 = vpop.f32.mrb[90].mxu0 }
 0x8cf   :  { %v5332_v62 = vadd.f32 %v4949_v61, %v11405_v40  ;;  %v5329_v20 = vadd.f32 %v5328_v47, %v5058_v8  ;;  %v4951_v51 = vpop.f32.mrb[91].mxu0 }
 0x8d0   :  { %v5334_v39 = vadd.f32 %v4951_v51, %v11408_v35  ;;  %v5331_v56 = vadd.f32 %v5330_v27, %v5060_v34 }
 0x8d1   :  { %5657 = vtanh.f32 %v5329_v20  ;;  %v5333_v24 = vadd.f32 %v5332_v62, %v5062_v18 }
 0x8d2   :  { %5659 = vtanh.f32 %v5331_v56  ;;  %v5335_v55 = vadd.f32 %v5334_v39, %v5064_v33 }
 0x8d3   :  { %v5650_v19 = vpop.eup %5649  ;;  %5661 = vtanh.f32 %v5333_v24 }
 0x8d4   :  { %v5652_v54 = vpop.eup %5651  ;;  %5153 = vst [vmem:[#allocation9 + $0x20] sm:$0xff] %v5650_v19  ;;  %5663 = vtanh.f32 %v5335_v55  ;;  %v4955_v48 = vpop.f32.mrb[92].mxu0 }
 0x8d5   :  { %v5654_v49 = vpop.eup %5653  ;;  %5154 = vst [vmem:[#allocation9 + $0x28] sm:$0xff] %v5652_v54  ;;  %v5336_v11 = vadd.f32 %v4955_v48, %v11405_v40  ;;  %v4957_v13 = vpop.f32.mrb[93].mxu0 }
 0x8d6   :  { %v5656_v28 = vpop.eup %5655  ;;  %5155 = vst [vmem:[#allocation9 + $0x30] sm:$0xff] %v5654_v49  ;;  %v5338_v53 = vadd.f32 %v4957_v13, %v11408_v35  ;;  %v4959_v29 = vpop.f32.mrb[94].mxu0 }
 0x8d7   :  { %5156 = vst [vmem:[#allocation9 + $0x38] sm:$0xff] %v5656_v28  ;;  %v5340_v9 = vadd.f32 %v4959_v29, %v11405_v40  ;;  %v5337_v23 = vadd.f32 %v5336_v11, %v11361_v6  ;;  %v4961_v8 = vpop.f32.mrb[95].mxu0 }
 0x8d8   :  { %v5342_v34 = vadd.f32 %v4961_v8, %v11408_v35  ;;  %v5339_v18 = vadd.f32 %v5338_v53, %v11363_v59 }
 0x8d9   :  { %5665 = vtanh.f32 %v5337_v23  ;;  %v5341_v33 = vadd.f32 %v5340_v9, %v11365_v38 }
 0x8da   :  { %5667 = vtanh.f32 %v5339_v18  ;;  %v5343_v26 = vadd.f32 %v5342_v34, %v11367_v14 }
 0x8db   :  { %v5658_v45 = vpop.eup %5657  ;;  %5669 = vtanh.f32 %v5341_v33 }
 0x8dc   :  { %v5660_v37 = vpop.eup %5659  ;;  %5157 = vst [vmem:[#allocation9 + $0x40] sm:$0xff] %v5658_v45  ;;  %5671 = vtanh.f32 %v5343_v26  ;;  %v4965_v15 = vpop.f32.mrb[96].mxu0 }
 0x8dd   :  { %v5662_v42 = vpop.eup %5661  ;;  %5158 = vst [vmem:[#allocation9 + $0x48] sm:$0xff] %v5660_v37  ;;  %v5344_v6 = vadd.f32 %v4965_v15, %v11405_v40  ;;  %v4967_v2 = vpop.f32.mrb[97].mxu0 }
 0x8de   :  { %v5664_v44 = vpop.eup %5663  ;;  %5159 = vst [vmem:[#allocation9 + $0x50] sm:$0xff] %v5662_v42  ;;  %v5346_v59 = vadd.f32 %v4967_v2, %v11408_v35  ;;  %v4969_v63 = vpop.f32.mrb[98].mxu0 }
 0x8df   :  { %5160 = vst [vmem:[#allocation9 + $0x58] sm:$0xff] %v5664_v44  ;;  %v5348_v38 = vadd.f32 %v4969_v63, %v11405_v40  ;;  %v5345_v14 = vadd.f32 %v5344_v6, %v11369_v60  ;;  %v4971_v43 = vpop.f32.mrb[99].mxu0 }
 0x8e0   :  { %v5350_v4 = vadd.f32 %v4971_v43, %v11408_v35  ;;  %v5347_v25 = vadd.f32 %v5346_v59, %v11371_v16 }
 0x8e1   :  { %5673 = vtanh.f32 %v5345_v14  ;;  %v5349_v50 = vadd.f32 %v5348_v38, %v11373_v7 }
 0x8e2   :  { %5675 = vtanh.f32 %v5347_v25  ;;  %v5351_v1 = vadd.f32 %v5350_v4, %v11375_v22 }
 0x8e3   :  { %v5666_v31 = vpop.eup %5665  ;;  %5677 = vtanh.f32 %v5349_v50 }
 0x8e4   :  { %v5668_v30 = vpop.eup %5667  ;;  %5161 = vst [vmem:[#allocation9 + $0x60] sm:$0xff] %v5666_v31  ;;  %5679 = vtanh.f32 %v5351_v1  ;;  %v4975_v36 = vpop.f32.mrb[100].mxu0 }
 0x8e5   :  { %v5670_v47 = vpop.eup %5669  ;;  %5162 = vst [vmem:[#allocation9 + $0x68] sm:$0xff] %v5668_v30  ;;  %v5352_v60 = vadd.f32 %v4975_v36, %v11405_v40  ;;  %v4977_v12 = vpop.f32.mrb[101].mxu0 }
 0x8e6   :  { %v5672_v27 = vpop.eup %5671  ;;  %5163 = vst [vmem:[#allocation9 + $0x70] sm:$0xff] %v5670_v47  ;;  %v5354_v16 = vadd.f32 %v4977_v12, %v11408_v35  ;;  %v4979_v61 = vpop.f32.mrb[102].mxu0 }
 0x8e7   :  { %5164 = vst [vmem:[#allocation9 + $0x78] sm:$0xff] %v5672_v27  ;;  %v5356_v7 = vadd.f32 %v4979_v61, %v11405_v40  ;;  %v5353_v22 = vadd.f32 %v5352_v60, %v11377_v5  ;;  %v4981_v62 = vpop.f32.mrb[103].mxu0 }
 0x8e8   :  { %v5358_v20 = vadd.f32 %v4981_v62, %v11408_v35  ;;  %v5355_v51 = vadd.f32 %v5354_v16, %v11379_v32 }
 0x8e9   :  { %5681 = vtanh.f32 %v5353_v22  ;;  %v5357_v39 = vadd.f32 %v5356_v7, %v11381_v17 }
 0x8ea   :  { %5683 = vtanh.f32 %v5355_v51  ;;  %v5359_v56 = vadd.f32 %v5358_v20, %v11383_v3 }
 0x8eb   :  { %v5674_v24 = vpop.eup %5673  ;;  %5685 = vtanh.f32 %v5357_v39 }
 0x8ec   :  { %v5676_v55 = vpop.eup %5675  ;;  %5165 = vst [vmem:[#allocation9 + $0x80] sm:$0xff] %v5674_v24  ;;  %5687 = vtanh.f32 %v5359_v56  ;;  %v4985_v19 = vpop.f32.mrb[104].mxu0 }
 0x8ed   :  { %v5678_v54 = vpop.eup %5677  ;;  %5166 = vst [vmem:[#allocation9 + $0x88] sm:$0xff] %v5676_v55  ;;  %v5360_v5 = vadd.f32 %v4985_v19, %v11405_v40  ;;  %v4987_v48 = vpop.f32.mrb[105].mxu0 }
 0x8ee   :  { %v5680_v49 = vpop.eup %5679  ;;  %5167 = vst [vmem:[#allocation9 + $0x90] sm:$0xff] %v5678_v54  ;;  %v5362_v32 = vadd.f32 %v4987_v48, %v11408_v35  ;;  %v4989_v11 = vpop.f32.mrb[106].mxu0 }
 0x8ef   :  { %5168 = vst [vmem:[#allocation9 + $0x98] sm:$0xff] %v5680_v49  ;;  %v5364_v17 = vadd.f32 %v4989_v11, %v11405_v40  ;;  %v5361_v3 = vadd.f32 %v5360_v5, %v11385_v46  ;;  %v4991_v13 = vpop.f32.mrb[107].mxu0 }
 0x8f0   :  { %v5366_v28 = vadd.f32 %v4991_v13, %v11408_v35  ;;  %v5363_v53 = vadd.f32 %v5362_v32, %v11387_v10 }
 0x8f1   :  { %5689 = vtanh.f32 %v5361_v3  ;;  %v5365_v29 = vadd.f32 %v5364_v17, %v11389_v58 }
 0x8f2   :  { %5691 = vtanh.f32 %v5363_v53  ;;  %v5367_v9 = vadd.f32 %v5366_v28, %v11391_v57 }
 0x8f3   :  { %v5682_v23 = vpop.eup %5681  ;;  %5693 = vtanh.f32 %v5365_v29 }
 0x8f4   :  { %v5684_v8 = vpop.eup %5683  ;;  %5169 = vst [vmem:[#allocation9 + $0xa0] sm:$0xff] %v5682_v23  ;;  %5695 = vtanh.f32 %v5367_v9  ;;  %v4995_v34 = vpop.f32.mrb[108].mxu0 }
 0x8f5   :  { %v5686_v18 = vpop.eup %5685  ;;  %5170 = vst [vmem:[#allocation9 + $0xa8] sm:$0xff] %v5684_v8  ;;  %v5368_v46 = vadd.f32 %v4995_v34, %v11405_v40  ;;  %v4997_v33 = vpop.f32.mrb[109].mxu0 }
 0x8f6   :  { %v5688_v26 = vpop.eup %5687  ;;  %5171 = vst [vmem:[#allocation9 + $0xb0] sm:$0xff] %v5686_v18  ;;  %v5370_v10 = vadd.f32 %v4997_v33, %v11408_v35  ;;  %v4999_v45 = vpop.f32.mrb[110].mxu0 }
 0x8f7   :  { %5172 = vst [vmem:[#allocation9 + $0xb8] sm:$0xff] %v5688_v26  ;;  %v5372_v58 = vadd.f32 %v4999_v45, %v11405_v40  ;;  %v5369_v57 = vadd.f32 %v5368_v46, %v11393_v21  ;;  %v5001_v37 = vpop.f32.mrb[111].mxu0 }
 0x8f8   :  { %v5374_v15 = vadd.f32 %v5001_v37, %v11408_v35  ;;  %v5371_v42 = vadd.f32 %v5370_v10, %v11395_v52 }
 0x8f9   :  { %5697 = vtanh.f32 %v5369_v57  ;;  %v5373_v6 = vadd.f32 %v5372_v58, %v11397_v41 }
 0x8fa   :  { %5699 = vtanh.f32 %v5371_v42  ;;  %v5375_v2 = vadd.f32 %v5374_v15, %v11399_v0 }
 0x8fb   :  { %v5690_v44 = vpop.eup %5689  ;;  %5701 = vtanh.f32 %v5373_v6 }
 0x8fc   :  { %v5692_v59 = vpop.eup %5691  ;;  %5173 = vst [vmem:[#allocation9 + $0xc0] sm:$0xff] %v5690_v44  ;;  %5703 = vtanh.f32 %v5375_v2  ;;  %v5038_v63 = vpop.f32.mrb[80].mxu0 }
 0x8fd   :  { %v5694_v38 = vpop.eup %5693  ;;  %5174 = vst [vmem:[#allocation9 + $0xc8] sm:$0xff] %v5692_v59  ;;  %v5316_v21 = vadd.f32 %v5038_v63, %v11405_v40  ;;  %v5040_v14 = vpop.f32.mrb[81].mxu0 }
 0x8fe   :  { %v5696_v43 = vpop.eup %5695  ;;  %5175 = vst [vmem:[#allocation9 + $0xd0] sm:$0xff] %v5694_v38  ;;  %v5317_v52 = vadd.f32 %v5040_v14, %v11408_v35  ;;  %v5042_v4 = vpop.f32.mrb[82].mxu0 }
 0x8ff   :  { %5176 = vst [vmem:[#allocation9 + $0xd8] sm:$0xff] %v5696_v43  ;;  %5705 = vtanh.f32 %v5316_v21  ;;  %v5318_v41 = vadd.f32 %v5042_v4, %v11405_v40  ;;  %v5044_v0 = vpop.f32.mrb[83].mxu0 }
 0x900   :  { %5707 = vtanh.f32 %v5317_v52  ;;  %v5319_v25 = vadd.f32 %v5044_v0, %v11408_v35 }
 0x901   :  { %5709 = vtanh.f32 %v5318_v41 }
 0x902   :  { %5711 = vtanh.f32 %v5319_v25 }
 0x903   :  { %v5698_v50 = vpop.eup %5697 }
 0x904   :  { %v5700_v1 = vpop.eup %5699  ;;  %5177 = vst [vmem:[#allocation9 + $0xe0] sm:$0xff] %v5698_v50 }
 0x905   :  { %v5702_v31 = vpop.eup %5701  ;;  %5178 = vst [vmem:[#allocation9 + $0xe8] sm:$0xff] %v5700_v1 }
 0x906   :  { %v5704_v30 = vpop.eup %5703  ;;  %5179 = vst [vmem:[#allocation9 + $0xf0] sm:$0xff] %v5702_v31 }
 0x907   :  { %5180 = vst [vmem:[#allocation9 + $0xf8] sm:$0xff] %v5704_v30 }
 0x909   :  { %v5706_v36 = vpop.eup %5705 }
 0x90a   :  { %v5708_v47 = vpop.eup %5707  ;;  %5149 = vst [vmem:[#allocation9] sm:$0xff] %v5706_v36 }
 0x90b   :  { %v5710_v40 = vpop.eup %5709  ;;  %5150 = vst [vmem:[#allocation9 + $0x8] sm:$0xff] %v5708_v47 }
 0x90c   :  { %v5712_v60 = vpop.eup %5711  ;;  %5151 = vst [vmem:[#allocation9 + $0x10] sm:$0xff] %v5710_v40 }
 0x90d   :  { %5152 = vst [vmem:[#allocation9 + $0x18] sm:$0xff] %v5712_v60 }
 0x90e   :  { %5746 = shalt.err (!%p5743_p12)
}
 0x90f   :  { %s5747_s6 = scalar_lea.hbm %s11483_s7, 4096 }
 0x910   :  { %p5748_p13 = scmp.ne.s32.totalorder %s11483_s7, %s5747_s6  ;;  %p5751_p0 = scmp.lt.u32.totalorder %s5747_s6, %s11483_s7 }
 0x912   :  { %p5753_p1 = pnand %p5751_p0, %p5748_p13 }
 0x914   :  { %5756 = shalt.err (!%p5753_p1)
}
 0x915   :  { %s5787_s27 = smov 16  }
 0x916   :  { %5192 = dma.vmem_to_hbm [thread:$0]  %s5187_s11, 4096, %s11483_s7, [#allocation8], %s5771_s18, %s5771_s18, %s5787_s27  }
 0x917   :  { %5765 = dma.done.wait [#allocation8], 4096  }
 0x918   :  { %5766 = vsyncadd [#allocation8], 4294963200 }
 0x919   :  { %5196 = vsyncpa [#allocation7], 1 }
 0x91a   :  { %5197 = vsyncpa [#allocation8], 1 }
 0x91b   :  { %5198 = vsyncmov [#allocation5] }
 0x91e   :  { %s5199_s29 = vpop.sfrf %5198 }
 0x91f   :  { %p5251_p2 = scmp.ne.s32.totalorder %s5199_s29, 0 }
 0x921   :  { %5203 = shalt.err (%p5251_p2)  }
 0x922   :  { %5205 = vsyncmov [#allocation5 + $0x1] }
 0x925   :  { %s5206_s30 = vpop.sfrf %5205 }
 0x926   :  { %p5252_p3 = scmp.ne.s32.totalorder %s5206_s30, 0 }
 0x928   :  { %5210 = shalt.err (%p5252_p3)  }
 0x929   :  { %5212 = vsyncmov [#allocation5 + $0x2] }
 0x92c   :  { %s5213_s4 = vpop.sfrf %5212 }
 0x92d   :  { %p5253_p4 = scmp.ne.s32.totalorder %s5213_s4, 0 }
 0x92f   :  { %5217 = shalt.err (%p5253_p4)  }

</bundles_post_ra>
